<compile_context>
chip_gen: v7x
topology: tpu7x:2x2x1
jax: 0.10.0
libtpu: 0.0.40
codegen_flags: <defaults>
</compile_context>

<pallas_src>
import jax
import jax.numpy as jnp
from jax.experimental import pallas as pl
from jax.experimental.pallas import tpu as pltpu


# ----------------------------------------------------------------------------
# The single fused kernel
# ----------------------------------------------------------------------------
def _cnn_fused_kernel(x_ref,      # (N, Cin, 30, 30) padded input      VMEM
                      w1_ref,     # (6, Cin*9) conv1 weights           SMEM
                      b1_ref,     # (6,) conv1 bias                    SMEM
                      r1_ref,     # (14, 27) pool1 row selection       VMEM
                      c1_ref,     # (27, 14) pool1 col selection       VMEM
                      t2_ref,     # (6, 5, 14, 160) conv2 Toeplitz     VMEM
                      b2_ref,     # (1, 160) conv2 bias (per lane)     VMEM
                      r2_ref,     # (5, 9) pool2 row selection         VMEM
                      csa_ref,    # (160, 80) pool2 col sel (j = 2s)   VMEM
                      csb_ref,    # (160, 80) pool2 col sel (j = 2s+1) VMEM
                      wf1_ref,    # (5, 80, 120) fc1 weight blocks     VMEM
                      bf1_ref,    # (1, 120)                           VMEM
                      wf2_ref,    # (120, 84)                          VMEM
                      bf2_ref,    # (1, 84)                            VMEM
                      wf3_ref,    # (84, n_class)                      VMEM
                      bf3_ref,    # (1, n_class)                       VMEM
                      out_ref):   # (N, 1, n_class)                    VMEM
    f32 = jnp.float32
    n_batch, cin = x_ref.shape[0], x_ref.shape[1]

    # ------------- conv1: 3x3, pad=1, ReLU (VPU tap accumulation) -----------
    x = x_ref[...]                                        # (N, Cin, 30, 30)
    taps = [x[:, ci, di:di + 28, dj:dj + 28]              # (N, 28, 28) each
            for ci in range(cin) for di in range(3) for dj in range(3)]

    r1 = r1_ref[...]                                      # (14, 27)
    c1 = c1_ref[...]                                      # (27, 14)

    pooled1 = []                                          # pooled1[c][n]: (14, 14)
    for c in range(6):
        acc = taps[0] * w1_ref[c, 0]
        for k in range(1, cin * 9):
            acc = acc + taps[k] * w1_ref[c, k]
        acc = jnp.maximum(acc + b1_ref[c], 0.0)           # (N, 28, 28)
        # fused 2x2 max-pool: neighbour max, then even-index selection matmuls
        hm = jnp.maximum(acc[:, :, 0:27], acc[:, :, 1:28])    # (N, 28, 27)
        vm = jnp.maximum(hm[:, 0:27, :], hm[:, 1:28, :])      # (N, 27, 27)
        pooled1.append([
            jnp.dot(jnp.dot(r1, vm[n], preferred_element_type=f32), c1,
                    preferred_element_type=f32)               # (14, 14)
            for n in range(n_batch)])

    # ------------- conv2 + ReLU + pool2 + fc1/fc2/fc3, per sample -----------
    b2 = b2_ref[...]                                      # (1, 160)
    r2 = r2_ref[...]                                      # (5, 9)
    csa = csa_ref[...]                                    # (160, 80)
    csb = csb_ref[...]                                    # (160, 80)
    bf1 = bf1_ref[...]
    wf2 = wf2_ref[...]
    bf2 = bf2_ref[...]
    wf3 = wf3_ref[...]
    bf3 = bf3_ref[...]

    for n in range(n_batch):
        # conv2 as banded-Toeplitz GEMMs; output columns ordered 16*j + o
        acc2 = jnp.zeros((10, 160), dtype=f32)
        for c in range(6):
            p_cn = pooled1[c][n]                          # (14, 14)
            for di in range(5):
                acc2 = acc2 + jnp.dot(p_cn[di:di + 10, :], t2_ref[c, di],
                                      preferred_element_type=f32)
        conv2 = jnp.maximum(acc2 + b2, 0.0)               # (10, 160)

        # fused 2x2 max-pool -> feat[r, 16*s + o]
        hm2 = jnp.maximum(jnp.dot(conv2, csa, preferred_element_type=f32),
                          jnp.dot(conv2, csb, preferred_element_type=f32))
        vm2 = jnp.maximum(hm2[0:9, :], hm2[1:10, :])      # (9, 80)
        feat = jnp.dot(r2, vm2, preferred_element_type=f32)   # (5, 80)

        # fc1 (weight blocks permuted to the kernel's feature layout), fc2, fc3
        y = jnp.dot(feat[0:1, :], wf1_ref[0], preferred_element_type=f32)
        for r in range(1, 5):
            y = y + jnp.dot(feat[r:r + 1, :], wf1_ref[r],
                            preferred_element_type=f32)
        y = y + bf1                                       # (1, 120)
        y = jnp.dot(y, wf2, preferred_element_type=f32) + bf2   # (1, 84)
        y = jnp.dot(y, wf3, preferred_element_type=f32) + bf3   # (1, n_class)
        out_ref[n] = y


# ----------------------------------------------------------------------------
# One-time host-side parameter preparation (pre-transposed / pre-permuted)
# ----------------------------------------------------------------------------
def prepare_params(params):
    f32 = jnp.float32

    conv1_w = jnp.asarray(params["conv1_w"], f32)         # (6, Cin, 3, 3)
    cin = conv1_w.shape[1]
    w1s = conv1_w.reshape(6, cin * 9)                     # k = ci*9 + di*3 + dj
    b1 = jnp.asarray(params["conv1_b"], f32)              # (6,)

    # conv2 -> banded-Toeplitz blocks T2[c, di] : (14, 160), column = 16*j + o
    w2 = jnp.asarray(params["conv2_w"], f32)              # (16, 6, 5, 5)
    w_idx = jnp.arange(14)[:, None]
    j_idx = jnp.arange(10)[None, :]
    dj = w_idx - j_idx                                    # (14, 10)
    valid = (dj >= 0) & (dj <= 4)
    w2p = jnp.transpose(w2, (1, 2, 3, 0))                 # (6, 5, 5, 16) [c,di,dj,o]
    t2 = w2p[:, :, jnp.clip(dj, 0, 4), :]                 # (6, 5, 14, 10, 16)
    t2 = jnp.where(valid[None, None, :, :, None], t2, 0.0).reshape(6, 5, 14, 160)
    b2row = jnp.tile(jnp.asarray(params["conv2_b"], f32), 10).reshape(1, 160)

    # 0/1 selection matrices for the fused max-pools (constant)
    r1 = (jnp.arange(27)[None, :] == 2 * jnp.arange(14)[:, None]).astype(f32)
    c1 = (jnp.arange(27)[:, None] == 2 * jnp.arange(14)[None, :]).astype(f32)
    r2 = (jnp.arange(9)[None, :] == 2 * jnp.arange(5)[:, None]).astype(f32)
    colin = jnp.arange(160)[:, None]
    colout = jnp.arange(80)[None, :]
    base = 32 * (colout // 16) + colout % 16
    csa = (colin == base).astype(f32)                     # picks column j = 2s
    csb = (colin == base + 16).astype(f32)                # picks column j = 2s+1

    # fc weights, pre-permuted / pre-transposed once
    wf1 = jnp.asarray(params["fc1_w"], f32).reshape(120, 16, 5, 5)   # [u,o,r,s]
    wf1 = jnp.transpose(wf1, (2, 3, 1, 0)).reshape(5, 80, 120)       # [r,16s+o,u]
    bf1 = jnp.asarray(params["fc1_b"], f32).reshape(1, 120)
    wf2 = jnp.asarray(params["fc2_w"], f32).T                        # (120, 84)
    bf2 = jnp.asarray(params["fc2_b"], f32).reshape(1, 84)
    wf3 = jnp.asarray(params["fc3_w"], f32).T                        # (84, n_class)
    bf3 = jnp.asarray(params["fc3_b"], f32).reshape(1, -1)

    return dict(w1s=w1s, b1=b1, t2=t2, b2row=b2row, r1=r1, c1=c1, r2=r2,
                csa=csa, csb=csb, wf1=wf1, bf1=bf1, wf2=wf2, bf2=bf2,
                wf3=wf3, bf3=bf3)


# ----------------------------------------------------------------------------
# Forward pass: pad input (tiny), one fused pallas_call, reshape output
# ----------------------------------------------------------------------------
def cnn_forward(x_nchw, kp):
    n = x_nchw.shape[0]
    n_class = kp["wf3"].shape[1]
    xpad = jnp.pad(x_nchw.astype(jnp.float32),
                   ((0, 0), (0, 0), (1, 1), (1, 1)))      # (N, Cin, 30, 30)

    vmem = pl.BlockSpec(memory_space=pltpu.MemorySpace.VMEM)
    smem = pl.BlockSpec(memory_space=pltpu.MemorySpace.SMEM)

    out = pl.pallas_call(
        _cnn_fused_kernel,
        out_shape=jax.ShapeDtypeStruct((n, 1, n_class), jnp.float32),
        in_specs=[vmem, smem, smem, vmem, vmem, vmem, vmem, vmem,
                  vmem, vmem, vmem, vmem, vmem, vmem, vmem, vmem],
        out_specs=vmem,
    )(xpad, kp["w1s"], kp["b1"], kp["r1"], kp["c1"], kp["t2"], kp["b2row"],
      kp["r2"], kp["csa"], kp["csb"], kp["wf1"], kp["bf1"], kp["wf2"],
      kp["bf2"], kp["wf3"], kp["bf3"])
    return out.reshape(n, n_class)


# ----------------------------------------------------------------------------
# Pure-JAX reference (mirrors the PyTorch module) and param init
# ----------------------------------------------------------------------------
def cnn_reference(x, params):
    y = jax.lax.conv_general_dilated(
        x.astype(jnp.float32), params["conv1_w"], (1, 1), ((1, 1), (1, 1)),
        dimension_numbers=("NCHW", "OIHW", "NCHW"))
    y = jnp.maximum(y + params["conv1_b"][None, :, None, None], 0.0)
    y = jax.lax.reduce_window(y, -jnp.inf, jax.lax.max,
                              (1, 1, 2, 2), (1, 1, 2, 2), "VALID")
    y = jax.lax.conv_general_dilated(
        y, params["conv2_w"], (1, 1), ((0, 0), (0, 0)),
        dimension_numbers=("NCHW", "OIHW", "NCHW"))
    y = jnp.maximum(y + params["conv2_b"][None, :, None, None], 0.0)
    y = jax.lax.reduce_window(y, -jnp.inf, jax.lax.max,
                              (1, 1, 2, 2), (1, 1, 2, 2), "VALID")
    y = y.reshape(y.shape[0], -1)
    y = y @ params["fc1_w"].T + params["fc1_b"]
    y = y @ params["fc2_w"].T + params["fc2_b"]
    y = y @ params["fc3_w"].T + params["fc3_b"]
    return y


def init_params(key, in_dim, n_class):
    ks = jax.random.split(key, 10)
    return {
        "conv1_w": jax.random.normal(ks[0], (6, in_dim, 3, 3), jnp.float32) * 0.1,
        "conv1_b": jax.random.normal(ks[1], (6,), jnp.float32) * 0.1,
        "conv2_w": jax.random.normal(ks[2], (16, 6, 5, 5), jnp.float32) * 0.1,
        "conv2_b": jax.random.normal(ks[3], (16,), jnp.float32) * 0.1,
        "fc1_w": jax.random.normal(ks[4], (120, 400), jnp.float32) * 0.05,
        "fc1_b": jax.random.normal(ks[5], (120,), jnp.float32) * 0.05,
        "fc2_w": jax.random.normal(ks[6], (84, 120), jnp.float32) * 0.05,
        "fc2_b": jax.random.normal(ks[7], (84,), jnp.float32) * 0.05,
        "fc3_w": jax.random.normal(ks[8], (n_class, 84), jnp.float32) * 0.05,
        "fc3_b": jax.random.normal(ks[9], (n_class,), jnp.float32) * 0.05,
    }


if __name__ == "__main__":
    # The fc stack requires 16*5*5 = 400 flattened features, which pins the
    # spatial input to 28x28 (MNIST-style).  Small batch / in_dim.
    N, in_dim, n_class = 2, 1, 10
    key = jax.random.PRNGKey(0)
    k_x, k_p = jax.random.split(key)
    x = jax.random.normal(k_x, (N, in_dim, 28, 28), jnp.float32)
    params = init_params(k_p, in_dim, n_class)

    kparams = prepare_params(params)           # one-time weight preparation
    out = jax.jit(cnn_forward)(x, kparams)
    out = jax.block_until_ready(out)

    assert out.shape == (N, n_class), out.shape
    assert bool(jnp.all(jnp.isfinite(out)))

    ref = cnn_reference(x, params)
    assert bool(jnp.allclose(out, ref, rtol=5e-2, atol=5e-2)), (
        "max |diff| = %f" % float(jnp.max(jnp.abs(out - ref))))
    print("KERNEL_OK")
</pallas_src>

<mosaic_0001>
module attributes {stable_mosaic.version = 11 : i64} {
  func.func @_cnn_fused_kernel(%arg0: memref<2x1x30x30xf32, #tpu.memory_space<vmem>>, %arg1: memref<6x9xf32, #tpu.memory_space<smem>>, %arg2: memref<6xf32, #tpu.memory_space<smem>>, %arg3: memref<14x27xf32, #tpu.memory_space<vmem>>, %arg4: memref<27x14xf32, #tpu.memory_space<vmem>>, %arg5: memref<6x5x14x160xf32, #tpu.memory_space<vmem>>, %arg6: memref<1x160xf32, #tpu.memory_space<vmem>>, %arg7: memref<5x9xf32, #tpu.memory_space<vmem>>, %arg8: memref<160x80xf32, #tpu.memory_space<vmem>>, %arg9: memref<160x80xf32, #tpu.memory_space<vmem>>, %arg10: memref<5x80x120xf32, #tpu.memory_space<vmem>>, %arg11: memref<1x120xf32, #tpu.memory_space<vmem>>, %arg12: memref<120x84xf32, #tpu.memory_space<vmem>>, %arg13: memref<1x84xf32, #tpu.memory_space<vmem>>, %arg14: memref<84x10xf32, #tpu.memory_space<vmem>>, %arg15: memref<1x10xf32, #tpu.memory_space<vmem>>, %arg16: memref<2x1x10xf32, #tpu.memory_space<vmem>>) attributes {dimension_semantics = [], scalar_prefetch = 0 : i64, scratch_operands = 0 : i64, tpu.core_type = #tpu.core_type<tc>} {
    %c0 = arith.constant 0 : index
    %c0_0 = arith.constant 0 : index
    %c0_1 = arith.constant 0 : index
    %c0_2 = arith.constant 0 : index
    %0 = vector.load %arg0[%c0, %c0_0, %c0_1, %c0_2] : memref<2x1x30x30xf32, #tpu.memory_space<vmem>>, vector<2x1x30x30xf32>
    %1 = vector.extract_strided_slice %0 {offsets = [0, 0, 0, 0], sizes = [2, 1, 28, 28], strides = [1, 1, 1, 1]} : vector<2x1x30x30xf32> to vector<2x1x28x28xf32>
    %2 = vector.shape_cast %1 : vector<2x1x28x28xf32> to vector<2x28x28xf32>
    %3 = vector.extract_strided_slice %0 {offsets = [0, 0, 0, 1], sizes = [2, 1, 28, 28], strides = [1, 1, 1, 1]} : vector<2x1x30x30xf32> to vector<2x1x28x28xf32>
    %4 = vector.shape_cast %3 : vector<2x1x28x28xf32> to vector<2x28x28xf32>
    %5 = vector.extract_strided_slice %0 {offsets = [0, 0, 0, 2], sizes = [2, 1, 28, 28], strides = [1, 1, 1, 1]} : vector<2x1x30x30xf32> to vector<2x1x28x28xf32>
    %6 = vector.shape_cast %5 : vector<2x1x28x28xf32> to vector<2x28x28xf32>
    %7 = vector.extract_strided_slice %0 {offsets = [0, 0, 1, 0], sizes = [2, 1, 28, 28], strides = [1, 1, 1, 1]} : vector<2x1x30x30xf32> to vector<2x1x28x28xf32>
    %8 = vector.shape_cast %7 : vector<2x1x28x28xf32> to vector<2x28x28xf32>
    %9 = vector.extract_strided_slice %0 {offsets = [0, 0, 1, 1], sizes = [2, 1, 28, 28], strides = [1, 1, 1, 1]} : vector<2x1x30x30xf32> to vector<2x1x28x28xf32>
    %10 = vector.shape_cast %9 : vector<2x1x28x28xf32> to vector<2x28x28xf32>
    %11 = vector.extract_strided_slice %0 {offsets = [0, 0, 1, 2], sizes = [2, 1, 28, 28], strides = [1, 1, 1, 1]} : vector<2x1x30x30xf32> to vector<2x1x28x28xf32>
    %12 = vector.shape_cast %11 : vector<2x1x28x28xf32> to vector<2x28x28xf32>
    %13 = vector.extract_strided_slice %0 {offsets = [0, 0, 2, 0], sizes = [2, 1, 28, 28], strides = [1, 1, 1, 1]} : vector<2x1x30x30xf32> to vector<2x1x28x28xf32>
    %14 = vector.shape_cast %13 : vector<2x1x28x28xf32> to vector<2x28x28xf32>
    %15 = vector.extract_strided_slice %0 {offsets = [0, 0, 2, 1], sizes = [2, 1, 28, 28], strides = [1, 1, 1, 1]} : vector<2x1x30x30xf32> to vector<2x1x28x28xf32>
    %16 = vector.shape_cast %15 : vector<2x1x28x28xf32> to vector<2x28x28xf32>
    %17 = vector.extract_strided_slice %0 {offsets = [0, 0, 2, 2], sizes = [2, 1, 28, 28], strides = [1, 1, 1, 1]} : vector<2x1x30x30xf32> to vector<2x1x28x28xf32>
    %18 = vector.shape_cast %17 : vector<2x1x28x28xf32> to vector<2x28x28xf32>
    %c0_3 = arith.constant 0 : index
    %c0_4 = arith.constant 0 : index
    %19 = vector.load %arg3[%c0_3, %c0_4] : memref<14x27xf32, #tpu.memory_space<vmem>>, vector<14x27xf32>
    %c0_5 = arith.constant 0 : index
    %c0_6 = arith.constant 0 : index
    %20 = vector.load %arg4[%c0_5, %c0_6] : memref<27x14xf32, #tpu.memory_space<vmem>>, vector<27x14xf32>
    %c0_7 = arith.constant 0 : index
    %c0_8 = arith.constant 0 : index
    %21 = memref.load %arg1[%c0_7, %c0_8] : memref<6x9xf32, #tpu.memory_space<smem>>
    %22 = vector.broadcast %21 : f32 to vector<2x28x28xf32>
    %23 = arith.mulf %2, %22 : vector<2x28x28xf32>
    %c0_9 = arith.constant 0 : index
    %c1 = arith.constant 1 : index
    %24 = memref.load %arg1[%c0_9, %c1] : memref<6x9xf32, #tpu.memory_space<smem>>
    %25 = vector.broadcast %24 : f32 to vector<2x28x28xf32>
    %26 = arith.mulf %4, %25 : vector<2x28x28xf32>
    %27 = arith.addf %23, %26 : vector<2x28x28xf32>
    %c0_10 = arith.constant 0 : index
    %c2 = arith.constant 2 : index
    %28 = memref.load %arg1[%c0_10, %c2] : memref<6x9xf32, #tpu.memory_space<smem>>
    %29 = vector.broadcast %28 : f32 to vector<2x28x28xf32>
    %30 = arith.mulf %6, %29 : vector<2x28x28xf32>
    %31 = arith.addf %27, %30 : vector<2x28x28xf32>
    %c0_11 = arith.constant 0 : index
    %c3 = arith.constant 3 : index
    %32 = memref.load %arg1[%c0_11, %c3] : memref<6x9xf32, #tpu.memory_space<smem>>
    %33 = vector.broadcast %32 : f32 to vector<2x28x28xf32>
    %34 = arith.mulf %8, %33 : vector<2x28x28xf32>
    %35 = arith.addf %31, %34 : vector<2x28x28xf32>
    %c0_12 = arith.constant 0 : index
    %c4 = arith.constant 4 : index
    %36 = memref.load %arg1[%c0_12, %c4] : memref<6x9xf32, #tpu.memory_space<smem>>
    %37 = vector.broadcast %36 : f32 to vector<2x28x28xf32>
    %38 = arith.mulf %10, %37 : vector<2x28x28xf32>
    %39 = arith.addf %35, %38 : vector<2x28x28xf32>
    %c0_13 = arith.constant 0 : index
    %c5 = arith.constant 5 : index
    %40 = memref.load %arg1[%c0_13, %c5] : memref<6x9xf32, #tpu.memory_space<smem>>
    %41 = vector.broadcast %40 : f32 to vector<2x28x28xf32>
    %42 = arith.mulf %12, %41 : vector<2x28x28xf32>
    %43 = arith.addf %39, %42 : vector<2x28x28xf32>
    %c0_14 = arith.constant 0 : index
    %c6 = arith.constant 6 : index
    %44 = memref.load %arg1[%c0_14, %c6] : memref<6x9xf32, #tpu.memory_space<smem>>
    %45 = vector.broadcast %44 : f32 to vector<2x28x28xf32>
    %46 = arith.mulf %14, %45 : vector<2x28x28xf32>
    %47 = arith.addf %43, %46 : vector<2x28x28xf32>
    %c0_15 = arith.constant 0 : index
    %c7 = arith.constant 7 : index
    %48 = memref.load %arg1[%c0_15, %c7] : memref<6x9xf32, #tpu.memory_space<smem>>
    %49 = vector.broadcast %48 : f32 to vector<2x28x28xf32>
    %50 = arith.mulf %16, %49 : vector<2x28x28xf32>
    %51 = arith.addf %47, %50 : vector<2x28x28xf32>
    %c0_16 = arith.constant 0 : index
    %c8 = arith.constant 8 : index
    %52 = memref.load %arg1[%c0_16, %c8] : memref<6x9xf32, #tpu.memory_space<smem>>
    %53 = vector.broadcast %52 : f32 to vector<2x28x28xf32>
    %54 = arith.mulf %18, %53 : vector<2x28x28xf32>
    %55 = arith.addf %51, %54 : vector<2x28x28xf32>
    %c0_17 = arith.constant 0 : index
    %56 = memref.load %arg2[%c0_17] : memref<6xf32, #tpu.memory_space<smem>>
    %57 = vector.broadcast %56 : f32 to vector<2x28x28xf32>
    %58 = arith.addf %55, %57 : vector<2x28x28xf32>
    %cst = arith.constant 0.000000e+00 : f32
    %59 = vector.broadcast %cst : f32 to vector<2x28x28xf32>
    %60 = arith.maximumf %58, %59 : vector<2x28x28xf32>
    %61 = vector.extract_strided_slice %60 {offsets = [0, 0, 0], sizes = [2, 28, 27], strides = [1, 1, 1]} : vector<2x28x28xf32> to vector<2x28x27xf32>
    %62 = vector.extract_strided_slice %60 {offsets = [0, 0, 1], sizes = [2, 28, 27], strides = [1, 1, 1]} : vector<2x28x28xf32> to vector<2x28x27xf32>
    %63 = arith.maximumf %61, %62 : vector<2x28x27xf32>
    %64 = vector.extract_strided_slice %63 {offsets = [0, 0, 0], sizes = [2, 27, 27], strides = [1, 1, 1]} : vector<2x28x27xf32> to vector<2x27x27xf32>
    %65 = vector.extract_strided_slice %63 {offsets = [0, 1, 0], sizes = [2, 27, 27], strides = [1, 1, 1]} : vector<2x28x27xf32> to vector<2x27x27xf32>
    %66 = arith.maximumf %64, %65 : vector<2x27x27xf32>
    %67 = vector.extract_strided_slice %66 {offsets = [0, 0, 0], sizes = [1, 27, 27], strides = [1, 1, 1]} : vector<2x27x27xf32> to vector<1x27x27xf32>
    %68 = vector.shape_cast %67 : vector<1x27x27xf32> to vector<27x27xf32>
    %cst_18 = arith.constant dense<0.000000e+00> : vector<14x27xf32>
    %69 = tpu.matmul %19, %68, %cst_18 {dimension_numbers = #tpu.dot_dimension_numbers<[1], [0], [0], [1], [0, 0, 1, 1], [], []>} : vector<14x27xf32>, vector<27x27xf32>, vector<14x27xf32> -> vector<14x27xf32>
    %cst_19 = arith.constant dense<0.000000e+00> : vector<14x14xf32>
    %70 = tpu.matmul %69, %20, %cst_19 {dimension_numbers = #tpu.dot_dimension_numbers<[1], [0], [0], [1], [0, 0, 1, 1], [], []>} : vector<14x27xf32>, vector<27x14xf32>, vector<14x14xf32> -> vector<14x14xf32>
    %71 = vector.extract_strided_slice %66 {offsets = [1, 0, 0], sizes = [1, 27, 27], strides = [1, 1, 1]} : vector<2x27x27xf32> to vector<1x27x27xf32>
    %72 = vector.shape_cast %71 : vector<1x27x27xf32> to vector<27x27xf32>
    %cst_20 = arith.constant dense<0.000000e+00> : vector<14x27xf32>
    %73 = tpu.matmul %19, %72, %cst_20 {dimension_numbers = #tpu.dot_dimension_numbers<[1], [0], [0], [1], [0, 0, 1, 1], [], []>} : vector<14x27xf32>, vector<27x27xf32>, vector<14x27xf32> -> vector<14x27xf32>
    %cst_21 = arith.constant dense<0.000000e+00> : vector<14x14xf32>
    %74 = tpu.matmul %73, %20, %cst_21 {dimension_numbers = #tpu.dot_dimension_numbers<[1], [0], [0], [1], [0, 0, 1, 1], [], []>} : vector<14x27xf32>, vector<27x14xf32>, vector<14x14xf32> -> vector<14x14xf32>
    %c1_22 = arith.constant 1 : index
    %c0_23 = arith.constant 0 : index
    %75 = memref.load %arg1[%c1_22, %c0_23] : memref<6x9xf32, #tpu.memory_space<smem>>
    %76 = vector.broadcast %75 : f32 to vector<2x28x28xf32>
    %77 = arith.mulf %2, %76 : vector<2x28x28xf32>
    %c1_24 = arith.constant 1 : index
    %c1_25 = arith.constant 1 : index
    %78 = memref.load %arg1[%c1_24, %c1_25] : memref<6x9xf32, #tpu.memory_space<smem>>
    %79 = vector.broadcast %78 : f32 to vector<2x28x28xf32>
    %80 = arith.mulf %4, %79 : vector<2x28x28xf32>
    %81 = arith.addf %77, %80 : vector<2x28x28xf32>
    %c1_26 = arith.constant 1 : index
    %c2_27 = arith.constant 2 : index
    %82 = memref.load %arg1[%c1_26, %c2_27] : memref<6x9xf32, #tpu.memory_space<smem>>
    %83 = vector.broadcast %82 : f32 to vector<2x28x28xf32>
    %84 = arith.mulf %6, %83 : vector<2x28x28xf32>
    %85 = arith.addf %81, %84 : vector<2x28x28xf32>
    %c1_28 = arith.constant 1 : index
    %c3_29 = arith.constant 3 : index
    %86 = memref.load %arg1[%c1_28, %c3_29] : memref<6x9xf32, #tpu.memory_space<smem>>
    %87 = vector.broadcast %86 : f32 to vector<2x28x28xf32>
    %88 = arith.mulf %8, %87 : vector<2x28x28xf32>
    %89 = arith.addf %85, %88 : vector<2x28x28xf32>
    %c1_30 = arith.constant 1 : index
    %c4_31 = arith.constant 4 : index
    %90 = memref.load %arg1[%c1_30, %c4_31] : memref<6x9xf32, #tpu.memory_space<smem>>
    %91 = vector.broadcast %90 : f32 to vector<2x28x28xf32>
    %92 = arith.mulf %10, %91 : vector<2x28x28xf32>
    %93 = arith.addf %89, %92 : vector<2x28x28xf32>
    %c1_32 = arith.constant 1 : index
    %c5_33 = arith.constant 5 : index
    %94 = memref.load %arg1[%c1_32, %c5_33] : memref<6x9xf32, #tpu.memory_space<smem>>
    %95 = vector.broadcast %94 : f32 to vector<2x28x28xf32>
    %96 = arith.mulf %12, %95 : vector<2x28x28xf32>
    %97 = arith.addf %93, %96 : vector<2x28x28xf32>
    %c1_34 = arith.constant 1 : index
    %c6_35 = arith.constant 6 : index
    %98 = memref.load %arg1[%c1_34, %c6_35] : memref<6x9xf32, #tpu.memory_space<smem>>
    %99 = vector.broadcast %98 : f32 to vector<2x28x28xf32>
    %100 = arith.mulf %14, %99 : vector<2x28x28xf32>
    %101 = arith.addf %97, %100 : vector<2x28x28xf32>
    %c1_36 = arith.constant 1 : index
    %c7_37 = arith.constant 7 : index
    %102 = memref.load %arg1[%c1_36, %c7_37] : memref<6x9xf32, #tpu.memory_space<smem>>
    %103 = vector.broadcast %102 : f32 to vector<2x28x28xf32>
    %104 = arith.mulf %16, %103 : vector<2x28x28xf32>
    %105 = arith.addf %101, %104 : vector<2x28x28xf32>
    %c1_38 = arith.constant 1 : index
    %c8_39 = arith.constant 8 : index
    %106 = memref.load %arg1[%c1_38, %c8_39] : memref<6x9xf32, #tpu.memory_space<smem>>
    %107 = vector.broadcast %106 : f32 to vector<2x28x28xf32>
    %108 = arith.mulf %18, %107 : vector<2x28x28xf32>
    %109 = arith.addf %105, %108 : vector<2x28x28xf32>
    %c1_40 = arith.constant 1 : index
    %110 = memref.load %arg2[%c1_40] : memref<6xf32, #tpu.memory_space<smem>>
    %111 = vector.broadcast %110 : f32 to vector<2x28x28xf32>
    %112 = arith.addf %109, %111 : vector<2x28x28xf32>
    %cst_41 = arith.constant 0.000000e+00 : f32
    %113 = vector.broadcast %cst_41 : f32 to vector<2x28x28xf32>
    %114 = arith.maximumf %112, %113 : vector<2x28x28xf32>
    %115 = vector.extract_strided_slice %114 {offsets = [0, 0, 0], sizes = [2, 28, 27], strides = [1, 1, 1]} : vector<2x28x28xf32> to vector<2x28x27xf32>
    %116 = vector.extract_strided_slice %114 {offsets = [0, 0, 1], sizes = [2, 28, 27], strides = [1, 1, 1]} : vector<2x28x28xf32> to vector<2x28x27xf32>
    %117 = arith.maximumf %115, %116 : vector<2x28x27xf32>
    %118 = vector.extract_strided_slice %117 {offsets = [0, 0, 0], sizes = [2, 27, 27], strides = [1, 1, 1]} : vector<2x28x27xf32> to vector<2x27x27xf32>
    %119 = vector.extract_strided_slice %117 {offsets = [0, 1, 0], sizes = [2, 27, 27], strides = [1, 1, 1]} : vector<2x28x27xf32> to vector<2x27x27xf32>
    %120 = arith.maximumf %118, %119 : vector<2x27x27xf32>
    %121 = vector.extract_strided_slice %120 {offsets = [0, 0, 0], sizes = [1, 27, 27], strides = [1, 1, 1]} : vector<2x27x27xf32> to vector<1x27x27xf32>
    %122 = vector.shape_cast %121 : vector<1x27x27xf32> to vector<27x27xf32>
    %cst_42 = arith.constant dense<0.000000e+00> : vector<14x27xf32>
    %123 = tpu.matmul %19, %122, %cst_42 {dimension_numbers = #tpu.dot_dimension_numbers<[1], [0], [0], [1], [0, 0, 1, 1], [], []>} : vector<14x27xf32>, vector<27x27xf32>, vector<14x27xf32> -> vector<14x27xf32>
    %cst_43 = arith.constant dense<0.000000e+00> : vector<14x14xf32>
    %124 = tpu.matmul %123, %20, %cst_43 {dimension_numbers = #tpu.dot_dimension_numbers<[1], [0], [0], [1], [0, 0, 1, 1], [], []>} : vector<14x27xf32>, vector<27x14xf32>, vector<14x14xf32> -> vector<14x14xf32>
    %125 = vector.extract_strided_slice %120 {offsets = [1, 0, 0], sizes = [1, 27, 27], strides = [1, 1, 1]} : vector<2x27x27xf32> to vector<1x27x27xf32>
    %126 = vector.shape_cast %125 : vector<1x27x27xf32> to vector<27x27xf32>
    %cst_44 = arith.constant dense<0.000000e+00> : vector<14x27xf32>
    %127 = tpu.matmul %19, %126, %cst_44 {dimension_numbers = #tpu.dot_dimension_numbers<[1], [0], [0], [1], [0, 0, 1, 1], [], []>} : vector<14x27xf32>, vector<27x27xf32>, vector<14x27xf32> -> vector<14x27xf32>
    %cst_45 = arith.constant dense<0.000000e+00> : vector<14x14xf32>
    %128 = tpu.matmul %127, %20, %cst_45 {dimension_numbers = #tpu.dot_dimension_numbers<[1], [0], [0], [1], [0, 0, 1, 1], [], []>} : vector<14x27xf32>, vector<27x14xf32>, vector<14x14xf32> -> vector<14x14xf32>
    %c2_46 = arith.constant 2 : index
    %c0_47 = arith.constant 0 : index
    %129 = memref.load %arg1[%c2_46, %c0_47] : memref<6x9xf32, #tpu.memory_space<smem>>
    %130 = vector.broadcast %129 : f32 to vector<2x28x28xf32>
    %131 = arith.mulf %2, %130 : vector<2x28x28xf32>
    %c2_48 = arith.constant 2 : index
    %c1_49 = arith.constant 1 : index
    %132 = memref.load %arg1[%c2_48, %c1_49] : memref<6x9xf32, #tpu.memory_space<smem>>
    %133 = vector.broadcast %132 : f32 to vector<2x28x28xf32>
    %134 = arith.mulf %4, %133 : vector<2x28x28xf32>
    %135 = arith.addf %131, %134 : vector<2x28x28xf32>
    %c2_50 = arith.constant 2 : index
    %c2_51 = arith.constant 2 : index
    %136 = memref.load %arg1[%c2_50, %c2_51] : memref<6x9xf32, #tpu.memory_space<smem>>
    %137 = vector.broadcast %136 : f32 to vector<2x28x28xf32>
    %138 = arith.mulf %6, %137 : vector<2x28x28xf32>
    %139 = arith.addf %135, %138 : vector<2x28x28xf32>
    %c2_52 = arith.constant 2 : index
    %c3_53 = arith.constant 3 : index
    %140 = memref.load %arg1[%c2_52, %c3_53] : memref<6x9xf32, #tpu.memory_space<smem>>
    %141 = vector.broadcast %140 : f32 to vector<2x28x28xf32>
    %142 = arith.mulf %8, %141 : vector<2x28x28xf32>
    %143 = arith.addf %139, %142 : vector<2x28x28xf32>
    %c2_54 = arith.constant 2 : index
    %c4_55 = arith.constant 4 : index
    %144 = memref.load %arg1[%c2_54, %c4_55] : memref<6x9xf32, #tpu.memory_space<smem>>
    %145 = vector.broadcast %144 : f32 to vector<2x28x28xf32>
    %146 = arith.mulf %10, %145 : vector<2x28x28xf32>
    %147 = arith.addf %143, %146 : vector<2x28x28xf32>
    %c2_56 = arith.constant 2 : index
    %c5_57 = arith.constant 5 : index
    %148 = memref.load %arg1[%c2_56, %c5_57] : memref<6x9xf32, #tpu.memory_space<smem>>
    %149 = vector.broadcast %148 : f32 to vector<2x28x28xf32>
    %150 = arith.mulf %12, %149 : vector<2x28x28xf32>
    %151 = arith.addf %147, %150 : vector<2x28x28xf32>
    %c2_58 = arith.constant 2 : index
    %c6_59 = arith.constant 6 : index
    %152 = memref.load %arg1[%c2_58, %c6_59] : memref<6x9xf32, #tpu.memory_space<smem>>
    %153 = vector.broadcast %152 : f32 to vector<2x28x28xf32>
    %154 = arith.mulf %14, %153 : vector<2x28x28xf32>
    %155 = arith.addf %151, %154 : vector<2x28x28xf32>
    %c2_60 = arith.constant 2 : index
    %c7_61 = arith.constant 7 : index
    %156 = memref.load %arg1[%c2_60, %c7_61] : memref<6x9xf32, #tpu.memory_space<smem>>
    %157 = vector.broadcast %156 : f32 to vector<2x28x28xf32>
    %158 = arith.mulf %16, %157 : vector<2x28x28xf32>
    %159 = arith.addf %155, %158 : vector<2x28x28xf32>
    %c2_62 = arith.constant 2 : index
    %c8_63 = arith.constant 8 : index
    %160 = memref.load %arg1[%c2_62, %c8_63] : memref<6x9xf32, #tpu.memory_space<smem>>
    %161 = vector.broadcast %160 : f32 to vector<2x28x28xf32>
    %162 = arith.mulf %18, %161 : vector<2x28x28xf32>
    %163 = arith.addf %159, %162 : vector<2x28x28xf32>
    %c2_64 = arith.constant 2 : index
    %164 = memref.load %arg2[%c2_64] : memref<6xf32, #tpu.memory_space<smem>>
    %165 = vector.broadcast %164 : f32 to vector<2x28x28xf32>
    %166 = arith.addf %163, %165 : vector<2x28x28xf32>
    %cst_65 = arith.constant 0.000000e+00 : f32
    %167 = vector.broadcast %cst_65 : f32 to vector<2x28x28xf32>
    %168 = arith.maximumf %166, %167 : vector<2x28x28xf32>
    %169 = vector.extract_strided_slice %168 {offsets = [0, 0, 0], sizes = [2, 28, 27], strides = [1, 1, 1]} : vector<2x28x28xf32> to vector<2x28x27xf32>
    %170 = vector.extract_strided_slice %168 {offsets = [0, 0, 1], sizes = [2, 28, 27], strides = [1, 1, 1]} : vector<2x28x28xf32> to vector<2x28x27xf32>
    %171 = arith.maximumf %169, %170 : vector<2x28x27xf32>
    %172 = vector.extract_strided_slice %171 {offsets = [0, 0, 0], sizes = [2, 27, 27], strides = [1, 1, 1]} : vector<2x28x27xf32> to vector<2x27x27xf32>
    %173 = vector.extract_strided_slice %171 {offsets = [0, 1, 0], sizes = [2, 27, 27], strides = [1, 1, 1]} : vector<2x28x27xf32> to vector<2x27x27xf32>
    %174 = arith.maximumf %172, %173 : vector<2x27x27xf32>
    %175 = vector.extract_strided_slice %174 {offsets = [0, 0, 0], sizes = [1, 27, 27], strides = [1, 1, 1]} : vector<2x27x27xf32> to vector<1x27x27xf32>
    %176 = vector.shape_cast %175 : vector<1x27x27xf32> to vector<27x27xf32>
    %cst_66 = arith.constant dense<0.000000e+00> : vector<14x27xf32>
    %177 = tpu.matmul %19, %176, %cst_66 {dimension_numbers = #tpu.dot_dimension_numbers<[1], [0], [0], [1], [0, 0, 1, 1], [], []>} : vector<14x27xf32>, vector<27x27xf32>, vector<14x27xf32> -> vector<14x27xf32>
    %cst_67 = arith.constant dense<0.000000e+00> : vector<14x14xf32>
    %178 = tpu.matmul %177, %20, %cst_67 {dimension_numbers = #tpu.dot_dimension_numbers<[1], [0], [0], [1], [0, 0, 1, 1], [], []>} : vector<14x27xf32>, vector<27x14xf32>, vector<14x14xf32> -> vector<14x14xf32>
    %179 = vector.extract_strided_slice %174 {offsets = [1, 0, 0], sizes = [1, 27, 27], strides = [1, 1, 1]} : vector<2x27x27xf32> to vector<1x27x27xf32>
    %180 = vector.shape_cast %179 : vector<1x27x27xf32> to vector<27x27xf32>
    %cst_68 = arith.constant dense<0.000000e+00> : vector<14x27xf32>
    %181 = tpu.matmul %19, %180, %cst_68 {dimension_numbers = #tpu.dot_dimension_numbers<[1], [0], [0], [1], [0, 0, 1, 1], [], []>} : vector<14x27xf32>, vector<27x27xf32>, vector<14x27xf32> -> vector<14x27xf32>
    %cst_69 = arith.constant dense<0.000000e+00> : vector<14x14xf32>
    %182 = tpu.matmul %181, %20, %cst_69 {dimension_numbers = #tpu.dot_dimension_numbers<[1], [0], [0], [1], [0, 0, 1, 1], [], []>} : vector<14x27xf32>, vector<27x14xf32>, vector<14x14xf32> -> vector<14x14xf32>
    %c3_70 = arith.constant 3 : index
    %c0_71 = arith.constant 0 : index
    %183 = memref.load %arg1[%c3_70, %c0_71] : memref<6x9xf32, #tpu.memory_space<smem>>
    %184 = vector.broadcast %183 : f32 to vector<2x28x28xf32>
    %185 = arith.mulf %2, %184 : vector<2x28x28xf32>
    %c3_72 = arith.constant 3 : index
    %c1_73 = arith.constant 1 : index
    %186 = memref.load %arg1[%c3_72, %c1_73] : memref<6x9xf32, #tpu.memory_space<smem>>
    %187 = vector.broadcast %186 : f32 to vector<2x28x28xf32>
    %188 = arith.mulf %4, %187 : vector<2x28x28xf32>
    %189 = arith.addf %185, %188 : vector<2x28x28xf32>
    %c3_74 = arith.constant 3 : index
    %c2_75 = arith.constant 2 : index
    %190 = memref.load %arg1[%c3_74, %c2_75] : memref<6x9xf32, #tpu.memory_space<smem>>
    %191 = vector.broadcast %190 : f32 to vector<2x28x28xf32>
    %192 = arith.mulf %6, %191 : vector<2x28x28xf32>
    %193 = arith.addf %189, %192 : vector<2x28x28xf32>
    %c3_76 = arith.constant 3 : index
    %c3_77 = arith.constant 3 : index
    %194 = memref.load %arg1[%c3_76, %c3_77] : memref<6x9xf32, #tpu.memory_space<smem>>
    %195 = vector.broadcast %194 : f32 to vector<2x28x28xf32>
    %196 = arith.mulf %8, %195 : vector<2x28x28xf32>
    %197 = arith.addf %193, %196 : vector<2x28x28xf32>
    %c3_78 = arith.constant 3 : index
    %c4_79 = arith.constant 4 : index
    %198 = memref.load %arg1[%c3_78, %c4_79] : memref<6x9xf32, #tpu.memory_space<smem>>
    %199 = vector.broadcast %198 : f32 to vector<2x28x28xf32>
    %200 = arith.mulf %10, %199 : vector<2x28x28xf32>
    %201 = arith.addf %197, %200 : vector<2x28x28xf32>
    %c3_80 = arith.constant 3 : index
    %c5_81 = arith.constant 5 : index
    %202 = memref.load %arg1[%c3_80, %c5_81] : memref<6x9xf32, #tpu.memory_space<smem>>
    %203 = vector.broadcast %202 : f32 to vector<2x28x28xf32>
    %204 = arith.mulf %12, %203 : vector<2x28x28xf32>
    %205 = arith.addf %201, %204 : vector<2x28x28xf32>
    %c3_82 = arith.constant 3 : index
    %c6_83 = arith.constant 6 : index
    %206 = memref.load %arg1[%c3_82, %c6_83] : memref<6x9xf32, #tpu.memory_space<smem>>
    %207 = vector.broadcast %206 : f32 to vector<2x28x28xf32>
    %208 = arith.mulf %14, %207 : vector<2x28x28xf32>
    %209 = arith.addf %205, %208 : vector<2x28x28xf32>
    %c3_84 = arith.constant 3 : index
    %c7_85 = arith.constant 7 : index
    %210 = memref.load %arg1[%c3_84, %c7_85] : memref<6x9xf32, #tpu.memory_space<smem>>
    %211 = vector.broadcast %210 : f32 to vector<2x28x28xf32>
    %212 = arith.mulf %16, %211 : vector<2x28x28xf32>
    %213 = arith.addf %209, %212 : vector<2x28x28xf32>
    %c3_86 = arith.constant 3 : index
    %c8_87 = arith.constant 8 : index
    %214 = memref.load %arg1[%c3_86, %c8_87] : memref<6x9xf32, #tpu.memory_space<smem>>
    %215 = vector.broadcast %214 : f32 to vector<2x28x28xf32>
    %216 = arith.mulf %18, %215 : vector<2x28x28xf32>
    %217 = arith.addf %213, %216 : vector<2x28x28xf32>
    %c3_88 = arith.constant 3 : index
    %218 = memref.load %arg2[%c3_88] : memref<6xf32, #tpu.memory_space<smem>>
    %219 = vector.broadcast %218 : f32 to vector<2x28x28xf32>
    %220 = arith.addf %217, %219 : vector<2x28x28xf32>
    %cst_89 = arith.constant 0.000000e+00 : f32
    %221 = vector.broadcast %cst_89 : f32 to vector<2x28x28xf32>
    %222 = arith.maximumf %220, %221 : vector<2x28x28xf32>
    %223 = vector.extract_strided_slice %222 {offsets = [0, 0, 0], sizes = [2, 28, 27], strides = [1, 1, 1]} : vector<2x28x28xf32> to vector<2x28x27xf32>
    %224 = vector.extract_strided_slice %222 {offsets = [0, 0, 1], sizes = [2, 28, 27], strides = [1, 1, 1]} : vector<2x28x28xf32> to vector<2x28x27xf32>
    %225 = arith.maximumf %223, %224 : vector<2x28x27xf32>
    %226 = vector.extract_strided_slice %225 {offsets = [0, 0, 0], sizes = [2, 27, 27], strides = [1, 1, 1]} : vector<2x28x27xf32> to vector<2x27x27xf32>
    %227 = vector.extract_strided_slice %225 {offsets = [0, 1, 0], sizes = [2, 27, 27], strides = [1, 1, 1]} : vector<2x28x27xf32> to vector<2x27x27xf32>
    %228 = arith.maximumf %226, %227 : vector<2x27x27xf32>
    %229 = vector.extract_strided_slice %228 {offsets = [0, 0, 0], sizes = [1, 27, 27], strides = [1, 1, 1]} : vector<2x27x27xf32> to vector<1x27x27xf32>
    %230 = vector.shape_cast %229 : vector<1x27x27xf32> to vector<27x27xf32>
    %cst_90 = arith.constant dense<0.000000e+00> : vector<14x27xf32>
    %231 = tpu.matmul %19, %230, %cst_90 {dimension_numbers = #tpu.dot_dimension_numbers<[1], [0], [0], [1], [0, 0, 1, 1], [], []>} : vector<14x27xf32>, vector<27x27xf32>, vector<14x27xf32> -> vector<14x27xf32>
    %cst_91 = arith.constant dense<0.000000e+00> : vector<14x14xf32>
    %232 = tpu.matmul %231, %20, %cst_91 {dimension_numbers = #tpu.dot_dimension_numbers<[1], [0], [0], [1], [0, 0, 1, 1], [], []>} : vector<14x27xf32>, vector<27x14xf32>, vector<14x14xf32> -> vector<14x14xf32>
    %233 = vector.extract_strided_slice %228 {offsets = [1, 0, 0], sizes = [1, 27, 27], strides = [1, 1, 1]} : vector<2x27x27xf32> to vector<1x27x27xf32>
    %234 = vector.shape_cast %233 : vector<1x27x27xf32> to vector<27x27xf32>
    %cst_92 = arith.constant dense<0.000000e+00> : vector<14x27xf32>
    %235 = tpu.matmul %19, %234, %cst_92 {dimension_numbers = #tpu.dot_dimension_numbers<[1], [0], [0], [1], [0, 0, 1, 1], [], []>} : vector<14x27xf32>, vector<27x27xf32>, vector<14x27xf32> -> vector<14x27xf32>
    %cst_93 = arith.constant dense<0.000000e+00> : vector<14x14xf32>
    %236 = tpu.matmul %235, %20, %cst_93 {dimension_numbers = #tpu.dot_dimension_numbers<[1], [0], [0], [1], [0, 0, 1, 1], [], []>} : vector<14x27xf32>, vector<27x14xf32>, vector<14x14xf32> -> vector<14x14xf32>
    %c4_94 = arith.constant 4 : index
    %c0_95 = arith.constant 0 : index
    %237 = memref.load %arg1[%c4_94, %c0_95] : memref<6x9xf32, #tpu.memory_space<smem>>
    %238 = vector.broadcast %237 : f32 to vector<2x28x28xf32>
    %239 = arith.mulf %2, %238 : vector<2x28x28xf32>
    %c4_96 = arith.constant 4 : index
    %c1_97 = arith.constant 1 : index
    %240 = memref.load %arg1[%c4_96, %c1_97] : memref<6x9xf32, #tpu.memory_space<smem>>
    %241 = vector.broadcast %240 : f32 to vector<2x28x28xf32>
    %242 = arith.mulf %4, %241 : vector<2x28x28xf32>
    %243 = arith.addf %239, %242 : vector<2x28x28xf32>
    %c4_98 = arith.constant 4 : index
    %c2_99 = arith.constant 2 : index
    %244 = memref.load %arg1[%c4_98, %c2_99] : memref<6x9xf32, #tpu.memory_space<smem>>
    %245 = vector.broadcast %244 : f32 to vector<2x28x28xf32>
    %246 = arith.mulf %6, %245 : vector<2x28x28xf32>
    %247 = arith.addf %243, %246 : vector<2x28x28xf32>
    %c4_100 = arith.constant 4 : index
    %c3_101 = arith.constant 3 : index
    %248 = memref.load %arg1[%c4_100, %c3_101] : memref<6x9xf32, #tpu.memory_space<smem>>
    %249 = vector.broadcast %248 : f32 to vector<2x28x28xf32>
    %250 = arith.mulf %8, %249 : vector<2x28x28xf32>
    %251 = arith.addf %247, %250 : vector<2x28x28xf32>
    %c4_102 = arith.constant 4 : index
    %c4_103 = arith.constant 4 : index
    %252 = memref.load %arg1[%c4_102, %c4_103] : memref<6x9xf32, #tpu.memory_space<smem>>
    %253 = vector.broadcast %252 : f32 to vector<2x28x28xf32>
    %254 = arith.mulf %10, %253 : vector<2x28x28xf32>
    %255 = arith.addf %251, %254 : vector<2x28x28xf32>
    %c4_104 = arith.constant 4 : index
    %c5_105 = arith.constant 5 : index
    %256 = memref.load %arg1[%c4_104, %c5_105] : memref<6x9xf32, #tpu.memory_space<smem>>
    %257 = vector.broadcast %256 : f32 to vector<2x28x28xf32>
    %258 = arith.mulf %12, %257 : vector<2x28x28xf32>
    %259 = arith.addf %255, %258 : vector<2x28x28xf32>
    %c4_106 = arith.constant 4 : index
    %c6_107 = arith.constant 6 : index
    %260 = memref.load %arg1[%c4_106, %c6_107] : memref<6x9xf32, #tpu.memory_space<smem>>
    %261 = vector.broadcast %260 : f32 to vector<2x28x28xf32>
    %262 = arith.mulf %14, %261 : vector<2x28x28xf32>
    %263 = arith.addf %259, %262 : vector<2x28x28xf32>
    %c4_108 = arith.constant 4 : index
    %c7_109 = arith.constant 7 : index
    %264 = memref.load %arg1[%c4_108, %c7_109] : memref<6x9xf32, #tpu.memory_space<smem>>
    %265 = vector.broadcast %264 : f32 to vector<2x28x28xf32>
    %266 = arith.mulf %16, %265 : vector<2x28x28xf32>
    %267 = arith.addf %263, %266 : vector<2x28x28xf32>
    %c4_110 = arith.constant 4 : index
    %c8_111 = arith.constant 8 : index
    %268 = memref.load %arg1[%c4_110, %c8_111] : memref<6x9xf32, #tpu.memory_space<smem>>
    %269 = vector.broadcast %268 : f32 to vector<2x28x28xf32>
    %270 = arith.mulf %18, %269 : vector<2x28x28xf32>
    %271 = arith.addf %267, %270 : vector<2x28x28xf32>
    %c4_112 = arith.constant 4 : index
    %272 = memref.load %arg2[%c4_112] : memref<6xf32, #tpu.memory_space<smem>>
    %273 = vector.broadcast %272 : f32 to vector<2x28x28xf32>
    %274 = arith.addf %271, %273 : vector<2x28x28xf32>
    %cst_113 = arith.constant 0.000000e+00 : f32
    %275 = vector.broadcast %cst_113 : f32 to vector<2x28x28xf32>
    %276 = arith.maximumf %274, %275 : vector<2x28x28xf32>
    %277 = vector.extract_strided_slice %276 {offsets = [0, 0, 0], sizes = [2, 28, 27], strides = [1, 1, 1]} : vector<2x28x28xf32> to vector<2x28x27xf32>
    %278 = vector.extract_strided_slice %276 {offsets = [0, 0, 1], sizes = [2, 28, 27], strides = [1, 1, 1]} : vector<2x28x28xf32> to vector<2x28x27xf32>
    %279 = arith.maximumf %277, %278 : vector<2x28x27xf32>
    %280 = vector.extract_strided_slice %279 {offsets = [0, 0, 0], sizes = [2, 27, 27], strides = [1, 1, 1]} : vector<2x28x27xf32> to vector<2x27x27xf32>
    %281 = vector.extract_strided_slice %279 {offsets = [0, 1, 0], sizes = [2, 27, 27], strides = [1, 1, 1]} : vector<2x28x27xf32> to vector<2x27x27xf32>
    %282 = arith.maximumf %280, %281 : vector<2x27x27xf32>
    %283 = vector.extract_strided_slice %282 {offsets = [0, 0, 0], sizes = [1, 27, 27], strides = [1, 1, 1]} : vector<2x27x27xf32> to vector<1x27x27xf32>
    %284 = vector.shape_cast %283 : vector<1x27x27xf32> to vector<27x27xf32>
    %cst_114 = arith.constant dense<0.000000e+00> : vector<14x27xf32>
    %285 = tpu.matmul %19, %284, %cst_114 {dimension_numbers = #tpu.dot_dimension_numbers<[1], [0], [0], [1], [0, 0, 1, 1], [], []>} : vector<14x27xf32>, vector<27x27xf32>, vector<14x27xf32> -> vector<14x27xf32>
    %cst_115 = arith.constant dense<0.000000e+00> : vector<14x14xf32>
    %286 = tpu.matmul %285, %20, %cst_115 {dimension_numbers = #tpu.dot_dimension_numbers<[1], [0], [0], [1], [0, 0, 1, 1], [], []>} : vector<14x27xf32>, vector<27x14xf32>, vector<14x14xf32> -> vector<14x14xf32>
    %287 = vector.extract_strided_slice %282 {offsets = [1, 0, 0], sizes = [1, 27, 27], strides = [1, 1, 1]} : vector<2x27x27xf32> to vector<1x27x27xf32>
    %288 = vector.shape_cast %287 : vector<1x27x27xf32> to vector<27x27xf32>
    %cst_116 = arith.constant dense<0.000000e+00> : vector<14x27xf32>
    %289 = tpu.matmul %19, %288, %cst_116 {dimension_numbers = #tpu.dot_dimension_numbers<[1], [0], [0], [1], [0, 0, 1, 1], [], []>} : vector<14x27xf32>, vector<27x27xf32>, vector<14x27xf32> -> vector<14x27xf32>
    %cst_117 = arith.constant dense<0.000000e+00> : vector<14x14xf32>
    %290 = tpu.matmul %289, %20, %cst_117 {dimension_numbers = #tpu.dot_dimension_numbers<[1], [0], [0], [1], [0, 0, 1, 1], [], []>} : vector<14x27xf32>, vector<27x14xf32>, vector<14x14xf32> -> vector<14x14xf32>
    %c5_118 = arith.constant 5 : index
    %c0_119 = arith.constant 0 : index
    %291 = memref.load %arg1[%c5_118, %c0_119] : memref<6x9xf32, #tpu.memory_space<smem>>
    %292 = vector.broadcast %291 : f32 to vector<2x28x28xf32>
    %293 = arith.mulf %2, %292 : vector<2x28x28xf32>
    %c5_120 = arith.constant 5 : index
    %c1_121 = arith.constant 1 : index
    %294 = memref.load %arg1[%c5_120, %c1_121] : memref<6x9xf32, #tpu.memory_space<smem>>
    %295 = vector.broadcast %294 : f32 to vector<2x28x28xf32>
    %296 = arith.mulf %4, %295 : vector<2x28x28xf32>
    %297 = arith.addf %293, %296 : vector<2x28x28xf32>
    %c5_122 = arith.constant 5 : index
    %c2_123 = arith.constant 2 : index
    %298 = memref.load %arg1[%c5_122, %c2_123] : memref<6x9xf32, #tpu.memory_space<smem>>
    %299 = vector.broadcast %298 : f32 to vector<2x28x28xf32>
    %300 = arith.mulf %6, %299 : vector<2x28x28xf32>
    %301 = arith.addf %297, %300 : vector<2x28x28xf32>
    %c5_124 = arith.constant 5 : index
    %c3_125 = arith.constant 3 : index
    %302 = memref.load %arg1[%c5_124, %c3_125] : memref<6x9xf32, #tpu.memory_space<smem>>
    %303 = vector.broadcast %302 : f32 to vector<2x28x28xf32>
    %304 = arith.mulf %8, %303 : vector<2x28x28xf32>
    %305 = arith.addf %301, %304 : vector<2x28x28xf32>
    %c5_126 = arith.constant 5 : index
    %c4_127 = arith.constant 4 : index
    %306 = memref.load %arg1[%c5_126, %c4_127] : memref<6x9xf32, #tpu.memory_space<smem>>
    %307 = vector.broadcast %306 : f32 to vector<2x28x28xf32>
    %308 = arith.mulf %10, %307 : vector<2x28x28xf32>
    %309 = arith.addf %305, %308 : vector<2x28x28xf32>
    %c5_128 = arith.constant 5 : index
    %c5_129 = arith.constant 5 : index
    %310 = memref.load %arg1[%c5_128, %c5_129] : memref<6x9xf32, #tpu.memory_space<smem>>
    %311 = vector.broadcast %310 : f32 to vector<2x28x28xf32>
    %312 = arith.mulf %12, %311 : vector<2x28x28xf32>
    %313 = arith.addf %309, %312 : vector<2x28x28xf32>
    %c5_130 = arith.constant 5 : index
    %c6_131 = arith.constant 6 : index
    %314 = memref.load %arg1[%c5_130, %c6_131] : memref<6x9xf32, #tpu.memory_space<smem>>
    %315 = vector.broadcast %314 : f32 to vector<2x28x28xf32>
    %316 = arith.mulf %14, %315 : vector<2x28x28xf32>
    %317 = arith.addf %313, %316 : vector<2x28x28xf32>
    %c5_132 = arith.constant 5 : index
    %c7_133 = arith.constant 7 : index
    %318 = memref.load %arg1[%c5_132, %c7_133] : memref<6x9xf32, #tpu.memory_space<smem>>
    %319 = vector.broadcast %318 : f32 to vector<2x28x28xf32>
    %320 = arith.mulf %16, %319 : vector<2x28x28xf32>
    %321 = arith.addf %317, %320 : vector<2x28x28xf32>
    %c5_134 = arith.constant 5 : index
    %c8_135 = arith.constant 8 : index
    %322 = memref.load %arg1[%c5_134, %c8_135] : memref<6x9xf32, #tpu.memory_space<smem>>
    %323 = vector.broadcast %322 : f32 to vector<2x28x28xf32>
    %324 = arith.mulf %18, %323 : vector<2x28x28xf32>
    %325 = arith.addf %321, %324 : vector<2x28x28xf32>
    %c5_136 = arith.constant 5 : index
    %326 = memref.load %arg2[%c5_136] : memref<6xf32, #tpu.memory_space<smem>>
    %327 = vector.broadcast %326 : f32 to vector<2x28x28xf32>
    %328 = arith.addf %325, %327 : vector<2x28x28xf32>
    %cst_137 = arith.constant 0.000000e+00 : f32
    %329 = vector.broadcast %cst_137 : f32 to vector<2x28x28xf32>
    %330 = arith.maximumf %328, %329 : vector<2x28x28xf32>
    %331 = vector.extract_strided_slice %330 {offsets = [0, 0, 0], sizes = [2, 28, 27], strides = [1, 1, 1]} : vector<2x28x28xf32> to vector<2x28x27xf32>
    %332 = vector.extract_strided_slice %330 {offsets = [0, 0, 1], sizes = [2, 28, 27], strides = [1, 1, 1]} : vector<2x28x28xf32> to vector<2x28x27xf32>
    %333 = arith.maximumf %331, %332 : vector<2x28x27xf32>
    %334 = vector.extract_strided_slice %333 {offsets = [0, 0, 0], sizes = [2, 27, 27], strides = [1, 1, 1]} : vector<2x28x27xf32> to vector<2x27x27xf32>
    %335 = vector.extract_strided_slice %333 {offsets = [0, 1, 0], sizes = [2, 27, 27], strides = [1, 1, 1]} : vector<2x28x27xf32> to vector<2x27x27xf32>
    %336 = arith.maximumf %334, %335 : vector<2x27x27xf32>
    %337 = vector.extract_strided_slice %336 {offsets = [0, 0, 0], sizes = [1, 27, 27], strides = [1, 1, 1]} : vector<2x27x27xf32> to vector<1x27x27xf32>
    %338 = vector.shape_cast %337 : vector<1x27x27xf32> to vector<27x27xf32>
    %cst_138 = arith.constant dense<0.000000e+00> : vector<14x27xf32>
    %339 = tpu.matmul %19, %338, %cst_138 {dimension_numbers = #tpu.dot_dimension_numbers<[1], [0], [0], [1], [0, 0, 1, 1], [], []>} : vector<14x27xf32>, vector<27x27xf32>, vector<14x27xf32> -> vector<14x27xf32>
    %cst_139 = arith.constant dense<0.000000e+00> : vector<14x14xf32>
    %340 = tpu.matmul %339, %20, %cst_139 {dimension_numbers = #tpu.dot_dimension_numbers<[1], [0], [0], [1], [0, 0, 1, 1], [], []>} : vector<14x27xf32>, vector<27x14xf32>, vector<14x14xf32> -> vector<14x14xf32>
    %341 = vector.extract_strided_slice %336 {offsets = [1, 0, 0], sizes = [1, 27, 27], strides = [1, 1, 1]} : vector<2x27x27xf32> to vector<1x27x27xf32>
    %342 = vector.shape_cast %341 : vector<1x27x27xf32> to vector<27x27xf32>
    %cst_140 = arith.constant dense<0.000000e+00> : vector<14x27xf32>
    %343 = tpu.matmul %19, %342, %cst_140 {dimension_numbers = #tpu.dot_dimension_numbers<[1], [0], [0], [1], [0, 0, 1, 1], [], []>} : vector<14x27xf32>, vector<27x27xf32>, vector<14x27xf32> -> vector<14x27xf32>
    %cst_141 = arith.constant dense<0.000000e+00> : vector<14x14xf32>
    %344 = tpu.matmul %343, %20, %cst_141 {dimension_numbers = #tpu.dot_dimension_numbers<[1], [0], [0], [1], [0, 0, 1, 1], [], []>} : vector<14x27xf32>, vector<27x14xf32>, vector<14x14xf32> -> vector<14x14xf32>
    %c0_142 = arith.constant 0 : index
    %c0_143 = arith.constant 0 : index
    %345 = vector.load %arg6[%c0_142, %c0_143] : memref<1x160xf32, #tpu.memory_space<vmem>>, vector<1x160xf32>
    %c0_144 = arith.constant 0 : index
    %c0_145 = arith.constant 0 : index
    %346 = vector.load %arg7[%c0_144, %c0_145] : memref<5x9xf32, #tpu.memory_space<vmem>>, vector<5x9xf32>
    %c0_146 = arith.constant 0 : index
    %c0_147 = arith.constant 0 : index
    %347 = vector.load %arg8[%c0_146, %c0_147] : memref<160x80xf32, #tpu.memory_space<vmem>>, vector<160x80xf32>
    %c0_148 = arith.constant 0 : index
    %c0_149 = arith.constant 0 : index
    %348 = vector.load %arg9[%c0_148, %c0_149] : memref<160x80xf32, #tpu.memory_space<vmem>>, vector<160x80xf32>
    %c0_150 = arith.constant 0 : index
    %c0_151 = arith.constant 0 : index
    %349 = vector.load %arg11[%c0_150, %c0_151] : memref<1x120xf32, #tpu.memory_space<vmem>>, vector<1x120xf32>
    %c0_152 = arith.constant 0 : index
    %c0_153 = arith.constant 0 : index
    %350 = vector.load %arg12[%c0_152, %c0_153] : memref<120x84xf32, #tpu.memory_space<vmem>>, vector<120x84xf32>
    %c0_154 = arith.constant 0 : index
    %c0_155 = arith.constant 0 : index
    %351 = vector.load %arg13[%c0_154, %c0_155] : memref<1x84xf32, #tpu.memory_space<vmem>>, vector<1x84xf32>
    %c0_156 = arith.constant 0 : index
    %c0_157 = arith.constant 0 : index
    %352 = vector.load %arg14[%c0_156, %c0_157] : memref<84x10xf32, #tpu.memory_space<vmem>>, vector<84x10xf32>
    %c0_158 = arith.constant 0 : index
    %c0_159 = arith.constant 0 : index
    %353 = vector.load %arg15[%c0_158, %c0_159] : memref<1x10xf32, #tpu.memory_space<vmem>>, vector<1x10xf32>
    %cst_160 = arith.constant 0.000000e+00 : f32
    %354 = vector.broadcast %cst_160 : f32 to vector<10x160xf32>
    %355 = vector.extract_strided_slice %70 {offsets = [0, 0], sizes = [10, 14], strides = [1, 1]} : vector<14x14xf32> to vector<10x14xf32>
    %c0_161 = arith.constant 0 : index
    %c0_162 = arith.constant 0 : index
    %c0_163 = arith.constant 0 : index
    %c0_164 = arith.constant 0 : index
    %356 = vector.load %arg5[%c0_161, %c0_162, %c0_163, %c0_164] : memref<6x5x14x160xf32, #tpu.memory_space<vmem>>, vector<1x1x14x160xf32>
    %357 = vector.shape_cast %356 : vector<1x1x14x160xf32> to vector<14x160xf32>
    %cst_165 = arith.constant dense<0.000000e+00> : vector<10x160xf32>
    %358 = tpu.matmul %355, %357, %cst_165 {dimension_numbers = #tpu.dot_dimension_numbers<[1], [0], [0], [1], [0, 0, 1, 1], [], []>} : vector<10x14xf32>, vector<14x160xf32>, vector<10x160xf32> -> vector<10x160xf32>
    %359 = arith.addf %354, %358 : vector<10x160xf32>
    %360 = vector.extract_strided_slice %70 {offsets = [1, 0], sizes = [10, 14], strides = [1, 1]} : vector<14x14xf32> to vector<10x14xf32>
    %c0_166 = arith.constant 0 : index
    %c1_167 = arith.constant 1 : index
    %c0_168 = arith.constant 0 : index
    %c0_169 = arith.constant 0 : index
    %361 = vector.load %arg5[%c0_166, %c1_167, %c0_168, %c0_169] : memref<6x5x14x160xf32, #tpu.memory_space<vmem>>, vector<1x1x14x160xf32>
    %362 = vector.shape_cast %361 : vector<1x1x14x160xf32> to vector<14x160xf32>
    %cst_170 = arith.constant dense<0.000000e+00> : vector<10x160xf32>
    %363 = tpu.matmul %360, %362, %cst_170 {dimension_numbers = #tpu.dot_dimension_numbers<[1], [0], [0], [1], [0, 0, 1, 1], [], []>} : vector<10x14xf32>, vector<14x160xf32>, vector<10x160xf32> -> vector<10x160xf32>
    %364 = arith.addf %359, %363 : vector<10x160xf32>
    %365 = vector.extract_strided_slice %70 {offsets = [2, 0], sizes = [10, 14], strides = [1, 1]} : vector<14x14xf32> to vector<10x14xf32>
    %c0_171 = arith.constant 0 : index
    %c2_172 = arith.constant 2 : index
    %c0_173 = arith.constant 0 : index
    %c0_174 = arith.constant 0 : index
    %366 = vector.load %arg5[%c0_171, %c2_172, %c0_173, %c0_174] : memref<6x5x14x160xf32, #tpu.memory_space<vmem>>, vector<1x1x14x160xf32>
    %367 = vector.shape_cast %366 : vector<1x1x14x160xf32> to vector<14x160xf32>
    %cst_175 = arith.constant dense<0.000000e+00> : vector<10x160xf32>
    %368 = tpu.matmul %365, %367, %cst_175 {dimension_numbers = #tpu.dot_dimension_numbers<[1], [0], [0], [1], [0, 0, 1, 1], [], []>} : vector<10x14xf32>, vector<14x160xf32>, vector<10x160xf32> -> vector<10x160xf32>
    %369 = arith.addf %364, %368 : vector<10x160xf32>
    %370 = vector.extract_strided_slice %70 {offsets = [3, 0], sizes = [10, 14], strides = [1, 1]} : vector<14x14xf32> to vector<10x14xf32>
    %c0_176 = arith.constant 0 : index
    %c3_177 = arith.constant 3 : index
    %c0_178 = arith.constant 0 : index
    %c0_179 = arith.constant 0 : index
    %371 = vector.load %arg5[%c0_176, %c3_177, %c0_178, %c0_179] : memref<6x5x14x160xf32, #tpu.memory_space<vmem>>, vector<1x1x14x160xf32>
    %372 = vector.shape_cast %371 : vector<1x1x14x160xf32> to vector<14x160xf32>
    %cst_180 = arith.constant dense<0.000000e+00> : vector<10x160xf32>
    %373 = tpu.matmul %370, %372, %cst_180 {dimension_numbers = #tpu.dot_dimension_numbers<[1], [0], [0], [1], [0, 0, 1, 1], [], []>} : vector<10x14xf32>, vector<14x160xf32>, vector<10x160xf32> -> vector<10x160xf32>
    %374 = arith.addf %369, %373 : vector<10x160xf32>
    %375 = vector.extract_strided_slice %70 {offsets = [4, 0], sizes = [10, 14], strides = [1, 1]} : vector<14x14xf32> to vector<10x14xf32>
    %c0_181 = arith.constant 0 : index
    %c4_182 = arith.constant 4 : index
    %c0_183 = arith.constant 0 : index
    %c0_184 = arith.constant 0 : index
    %376 = vector.load %arg5[%c0_181, %c4_182, %c0_183, %c0_184] : memref<6x5x14x160xf32, #tpu.memory_space<vmem>>, vector<1x1x14x160xf32>
    %377 = vector.shape_cast %376 : vector<1x1x14x160xf32> to vector<14x160xf32>
    %cst_185 = arith.constant dense<0.000000e+00> : vector<10x160xf32>
    %378 = tpu.matmul %375, %377, %cst_185 {dimension_numbers = #tpu.dot_dimension_numbers<[1], [0], [0], [1], [0, 0, 1, 1], [], []>} : vector<10x14xf32>, vector<14x160xf32>, vector<10x160xf32> -> vector<10x160xf32>
    %379 = arith.addf %374, %378 : vector<10x160xf32>
    %380 = vector.extract_strided_slice %124 {offsets = [0, 0], sizes = [10, 14], strides = [1, 1]} : vector<14x14xf32> to vector<10x14xf32>
    %c1_186 = arith.constant 1 : index
    %c0_187 = arith.constant 0 : index
    %c0_188 = arith.constant 0 : index
    %c0_189 = arith.constant 0 : index
    %381 = vector.load %arg5[%c1_186, %c0_187, %c0_188, %c0_189] : memref<6x5x14x160xf32, #tpu.memory_space<vmem>>, vector<1x1x14x160xf32>
    %382 = vector.shape_cast %381 : vector<1x1x14x160xf32> to vector<14x160xf32>
    %cst_190 = arith.constant dense<0.000000e+00> : vector<10x160xf32>
    %383 = tpu.matmul %380, %382, %cst_190 {dimension_numbers = #tpu.dot_dimension_numbers<[1], [0], [0], [1], [0, 0, 1, 1], [], []>} : vector<10x14xf32>, vector<14x160xf32>, vector<10x160xf32> -> vector<10x160xf32>
    %384 = arith.addf %379, %383 : vector<10x160xf32>
    %385 = vector.extract_strided_slice %124 {offsets = [1, 0], sizes = [10, 14], strides = [1, 1]} : vector<14x14xf32> to vector<10x14xf32>
    %c1_191 = arith.constant 1 : index
    %c1_192 = arith.constant 1 : index
    %c0_193 = arith.constant 0 : index
    %c0_194 = arith.constant 0 : index
    %386 = vector.load %arg5[%c1_191, %c1_192, %c0_193, %c0_194] : memref<6x5x14x160xf32, #tpu.memory_space<vmem>>, vector<1x1x14x160xf32>
    %387 = vector.shape_cast %386 : vector<1x1x14x160xf32> to vector<14x160xf32>
    %cst_195 = arith.constant dense<0.000000e+00> : vector<10x160xf32>
    %388 = tpu.matmul %385, %387, %cst_195 {dimension_numbers = #tpu.dot_dimension_numbers<[1], [0], [0], [1], [0, 0, 1, 1], [], []>} : vector<10x14xf32>, vector<14x160xf32>, vector<10x160xf32> -> vector<10x160xf32>
    %389 = arith.addf %384, %388 : vector<10x160xf32>
    %390 = vector.extract_strided_slice %124 {offsets = [2, 0], sizes = [10, 14], strides = [1, 1]} : vector<14x14xf32> to vector<10x14xf32>
    %c1_196 = arith.constant 1 : index
    %c2_197 = arith.constant 2 : index
    %c0_198 = arith.constant 0 : index
    %c0_199 = arith.constant 0 : index
    %391 = vector.load %arg5[%c1_196, %c2_197, %c0_198, %c0_199] : memref<6x5x14x160xf32, #tpu.memory_space<vmem>>, vector<1x1x14x160xf32>
    %392 = vector.shape_cast %391 : vector<1x1x14x160xf32> to vector<14x160xf32>
    %cst_200 = arith.constant dense<0.000000e+00> : vector<10x160xf32>
    %393 = tpu.matmul %390, %392, %cst_200 {dimension_numbers = #tpu.dot_dimension_numbers<[1], [0], [0], [1], [0, 0, 1, 1], [], []>} : vector<10x14xf32>, vector<14x160xf32>, vector<10x160xf32> -> vector<10x160xf32>
    %394 = arith.addf %389, %393 : vector<10x160xf32>
    %395 = vector.extract_strided_slice %124 {offsets = [3, 0], sizes = [10, 14], strides = [1, 1]} : vector<14x14xf32> to vector<10x14xf32>
    %c1_201 = arith.constant 1 : index
    %c3_202 = arith.constant 3 : index
    %c0_203 = arith.constant 0 : index
    %c0_204 = arith.constant 0 : index
    %396 = vector.load %arg5[%c1_201, %c3_202, %c0_203, %c0_204] : memref<6x5x14x160xf32, #tpu.memory_space<vmem>>, vector<1x1x14x160xf32>
    %397 = vector.shape_cast %396 : vector<1x1x14x160xf32> to vector<14x160xf32>
    %cst_205 = arith.constant dense<0.000000e+00> : vector<10x160xf32>
    %398 = tpu.matmul %395, %397, %cst_205 {dimension_numbers = #tpu.dot_dimension_numbers<[1], [0], [0], [1], [0, 0, 1, 1], [], []>} : vector<10x14xf32>, vector<14x160xf32>, vector<10x160xf32> -> vector<10x160xf32>
    %399 = arith.addf %394, %398 : vector<10x160xf32>
    %400 = vector.extract_strided_slice %124 {offsets = [4, 0], sizes = [10, 14], strides = [1, 1]} : vector<14x14xf32> to vector<10x14xf32>
    %c1_206 = arith.constant 1 : index
    %c4_207 = arith.constant 4 : index
    %c0_208 = arith.constant 0 : index
    %c0_209 = arith.constant 0 : index
    %401 = vector.load %arg5[%c1_206, %c4_207, %c0_208, %c0_209] : memref<6x5x14x160xf32, #tpu.memory_space<vmem>>, vector<1x1x14x160xf32>
    %402 = vector.shape_cast %401 : vector<1x1x14x160xf32> to vector<14x160xf32>
    %cst_210 = arith.constant dense<0.000000e+00> : vector<10x160xf32>
    %403 = tpu.matmul %400, %402, %cst_210 {dimension_numbers = #tpu.dot_dimension_numbers<[1], [0], [0], [1], [0, 0, 1, 1], [], []>} : vector<10x14xf32>, vector<14x160xf32>, vector<10x160xf32> -> vector<10x160xf32>
    %404 = arith.addf %399, %403 : vector<10x160xf32>
    %405 = vector.extract_strided_slice %178 {offsets = [0, 0], sizes = [10, 14], strides = [1, 1]} : vector<14x14xf32> to vector<10x14xf32>
    %c2_211 = arith.constant 2 : index
    %c0_212 = arith.constant 0 : index
    %c0_213 = arith.constant 0 : index
    %c0_214 = arith.constant 0 : index
    %406 = vector.load %arg5[%c2_211, %c0_212, %c0_213, %c0_214] : memref<6x5x14x160xf32, #tpu.memory_space<vmem>>, vector<1x1x14x160xf32>
    %407 = vector.shape_cast %406 : vector<1x1x14x160xf32> to vector<14x160xf32>
    %cst_215 = arith.constant dense<0.000000e+00> : vector<10x160xf32>
    %408 = tpu.matmul %405, %407, %cst_215 {dimension_numbers = #tpu.dot_dimension_numbers<[1], [0], [0], [1], [0, 0, 1, 1], [], []>} : vector<10x14xf32>, vector<14x160xf32>, vector<10x160xf32> -> vector<10x160xf32>
    %409 = arith.addf %404, %408 : vector<10x160xf32>
    %410 = vector.extract_strided_slice %178 {offsets = [1, 0], sizes = [10, 14], strides = [1, 1]} : vector<14x14xf32> to vector<10x14xf32>
    %c2_216 = arith.constant 2 : index
    %c1_217 = arith.constant 1 : index
    %c0_218 = arith.constant 0 : index
    %c0_219 = arith.constant 0 : index
    %411 = vector.load %arg5[%c2_216, %c1_217, %c0_218, %c0_219] : memref<6x5x14x160xf32, #tpu.memory_space<vmem>>, vector<1x1x14x160xf32>
    %412 = vector.shape_cast %411 : vector<1x1x14x160xf32> to vector<14x160xf32>
    %cst_220 = arith.constant dense<0.000000e+00> : vector<10x160xf32>
    %413 = tpu.matmul %410, %412, %cst_220 {dimension_numbers = #tpu.dot_dimension_numbers<[1], [0], [0], [1], [0, 0, 1, 1], [], []>} : vector<10x14xf32>, vector<14x160xf32>, vector<10x160xf32> -> vector<10x160xf32>
    %414 = arith.addf %409, %413 : vector<10x160xf32>
    %415 = vector.extract_strided_slice %178 {offsets = [2, 0], sizes = [10, 14], strides = [1, 1]} : vector<14x14xf32> to vector<10x14xf32>
    %c2_221 = arith.constant 2 : index
    %c2_222 = arith.constant 2 : index
    %c0_223 = arith.constant 0 : index
    %c0_224 = arith.constant 0 : index
    %416 = vector.load %arg5[%c2_221, %c2_222, %c0_223, %c0_224] : memref<6x5x14x160xf32, #tpu.memory_space<vmem>>, vector<1x1x14x160xf32>
    %417 = vector.shape_cast %416 : vector<1x1x14x160xf32> to vector<14x160xf32>
    %cst_225 = arith.constant dense<0.000000e+00> : vector<10x160xf32>
    %418 = tpu.matmul %415, %417, %cst_225 {dimension_numbers = #tpu.dot_dimension_numbers<[1], [0], [0], [1], [0, 0, 1, 1], [], []>} : vector<10x14xf32>, vector<14x160xf32>, vector<10x160xf32> -> vector<10x160xf32>
    %419 = arith.addf %414, %418 : vector<10x160xf32>
    %420 = vector.extract_strided_slice %178 {offsets = [3, 0], sizes = [10, 14], strides = [1, 1]} : vector<14x14xf32> to vector<10x14xf32>
    %c2_226 = arith.constant 2 : index
    %c3_227 = arith.constant 3 : index
    %c0_228 = arith.constant 0 : index
    %c0_229 = arith.constant 0 : index
    %421 = vector.load %arg5[%c2_226, %c3_227, %c0_228, %c0_229] : memref<6x5x14x160xf32, #tpu.memory_space<vmem>>, vector<1x1x14x160xf32>
    %422 = vector.shape_cast %421 : vector<1x1x14x160xf32> to vector<14x160xf32>
    %cst_230 = arith.constant dense<0.000000e+00> : vector<10x160xf32>
    %423 = tpu.matmul %420, %422, %cst_230 {dimension_numbers = #tpu.dot_dimension_numbers<[1], [0], [0], [1], [0, 0, 1, 1], [], []>} : vector<10x14xf32>, vector<14x160xf32>, vector<10x160xf32> -> vector<10x160xf32>
    %424 = arith.addf %419, %423 : vector<10x160xf32>
    %425 = vector.extract_strided_slice %178 {offsets = [4, 0], sizes = [10, 14], strides = [1, 1]} : vector<14x14xf32> to vector<10x14xf32>
    %c2_231 = arith.constant 2 : index
    %c4_232 = arith.constant 4 : index
    %c0_233 = arith.constant 0 : index
    %c0_234 = arith.constant 0 : index
    %426 = vector.load %arg5[%c2_231, %c4_232, %c0_233, %c0_234] : memref<6x5x14x160xf32, #tpu.memory_space<vmem>>, vector<1x1x14x160xf32>
    %427 = vector.shape_cast %426 : vector<1x1x14x160xf32> to vector<14x160xf32>
    %cst_235 = arith.constant dense<0.000000e+00> : vector<10x160xf32>
    %428 = tpu.matmul %425, %427, %cst_235 {dimension_numbers = #tpu.dot_dimension_numbers<[1], [0], [0], [1], [0, 0, 1, 1], [], []>} : vector<10x14xf32>, vector<14x160xf32>, vector<10x160xf32> -> vector<10x160xf32>
    %429 = arith.addf %424, %428 : vector<10x160xf32>
    %430 = vector.extract_strided_slice %232 {offsets = [0, 0], sizes = [10, 14], strides = [1, 1]} : vector<14x14xf32> to vector<10x14xf32>
    %c3_236 = arith.constant 3 : index
    %c0_237 = arith.constant 0 : index
    %c0_238 = arith.constant 0 : index
    %c0_239 = arith.constant 0 : index
    %431 = vector.load %arg5[%c3_236, %c0_237, %c0_238, %c0_239] : memref<6x5x14x160xf32, #tpu.memory_space<vmem>>, vector<1x1x14x160xf32>
    %432 = vector.shape_cast %431 : vector<1x1x14x160xf32> to vector<14x160xf32>
    %cst_240 = arith.constant dense<0.000000e+00> : vector<10x160xf32>
    %433 = tpu.matmul %430, %432, %cst_240 {dimension_numbers = #tpu.dot_dimension_numbers<[1], [0], [0], [1], [0, 0, 1, 1], [], []>} : vector<10x14xf32>, vector<14x160xf32>, vector<10x160xf32> -> vector<10x160xf32>
    %434 = arith.addf %429, %433 : vector<10x160xf32>
    %435 = vector.extract_strided_slice %232 {offsets = [1, 0], sizes = [10, 14], strides = [1, 1]} : vector<14x14xf32> to vector<10x14xf32>
    %c3_241 = arith.constant 3 : index
    %c1_242 = arith.constant 1 : index
    %c0_243 = arith.constant 0 : index
    %c0_244 = arith.constant 0 : index
    %436 = vector.load %arg5[%c3_241, %c1_242, %c0_243, %c0_244] : memref<6x5x14x160xf32, #tpu.memory_space<vmem>>, vector<1x1x14x160xf32>
    %437 = vector.shape_cast %436 : vector<1x1x14x160xf32> to vector<14x160xf32>
    %cst_245 = arith.constant dense<0.000000e+00> : vector<10x160xf32>
    %438 = tpu.matmul %435, %437, %cst_245 {dimension_numbers = #tpu.dot_dimension_numbers<[1], [0], [0], [1], [0, 0, 1, 1], [], []>} : vector<10x14xf32>, vector<14x160xf32>, vector<10x160xf32> -> vector<10x160xf32>
    %439 = arith.addf %434, %438 : vector<10x160xf32>
    %440 = vector.extract_strided_slice %232 {offsets = [2, 0], sizes = [10, 14], strides = [1, 1]} : vector<14x14xf32> to vector<10x14xf32>
    %c3_246 = arith.constant 3 : index
    %c2_247 = arith.constant 2 : index
    %c0_248 = arith.constant 0 : index
    %c0_249 = arith.constant 0 : index
    %441 = vector.load %arg5[%c3_246, %c2_247, %c0_248, %c0_249] : memref<6x5x14x160xf32, #tpu.memory_space<vmem>>, vector<1x1x14x160xf32>
    %442 = vector.shape_cast %441 : vector<1x1x14x160xf32> to vector<14x160xf32>
    %cst_250 = arith.constant dense<0.000000e+00> : vector<10x160xf32>
    %443 = tpu.matmul %440, %442, %cst_250 {dimension_numbers = #tpu.dot_dimension_numbers<[1], [0], [0], [1], [0, 0, 1, 1], [], []>} : vector<10x14xf32>, vector<14x160xf32>, vector<10x160xf32> -> vector<10x160xf32>
    %444 = arith.addf %439, %443 : vector<10x160xf32>
    %445 = vector.extract_strided_slice %232 {offsets = [3, 0], sizes = [10, 14], strides = [1, 1]} : vector<14x14xf32> to vector<10x14xf32>
    %c3_251 = arith.constant 3 : index
    %c3_252 = arith.constant 3 : index
    %c0_253 = arith.constant 0 : index
    %c0_254 = arith.constant 0 : index
    %446 = vector.load %arg5[%c3_251, %c3_252, %c0_253, %c0_254] : memref<6x5x14x160xf32, #tpu.memory_space<vmem>>, vector<1x1x14x160xf32>
    %447 = vector.shape_cast %446 : vector<1x1x14x160xf32> to vector<14x160xf32>
    %cst_255 = arith.constant dense<0.000000e+00> : vector<10x160xf32>
    %448 = tpu.matmul %445, %447, %cst_255 {dimension_numbers = #tpu.dot_dimension_numbers<[1], [0], [0], [1], [0, 0, 1, 1], [], []>} : vector<10x14xf32>, vector<14x160xf32>, vector<10x160xf32> -> vector<10x160xf32>
    %449 = arith.addf %444, %448 : vector<10x160xf32>
    %450 = vector.extract_strided_slice %232 {offsets = [4, 0], sizes = [10, 14], strides = [1, 1]} : vector<14x14xf32> to vector<10x14xf32>
    %c3_256 = arith.constant 3 : index
    %c4_257 = arith.constant 4 : index
    %c0_258 = arith.constant 0 : index
    %c0_259 = arith.constant 0 : index
    %451 = vector.load %arg5[%c3_256, %c4_257, %c0_258, %c0_259] : memref<6x5x14x160xf32, #tpu.memory_space<vmem>>, vector<1x1x14x160xf32>
    %452 = vector.shape_cast %451 : vector<1x1x14x160xf32> to vector<14x160xf32>
    %cst_260 = arith.constant dense<0.000000e+00> : vector<10x160xf32>
    %453 = tpu.matmul %450, %452, %cst_260 {dimension_numbers = #tpu.dot_dimension_numbers<[1], [0], [0], [1], [0, 0, 1, 1], [], []>} : vector<10x14xf32>, vector<14x160xf32>, vector<10x160xf32> -> vector<10x160xf32>
    %454 = arith.addf %449, %453 : vector<10x160xf32>
    %455 = vector.extract_strided_slice %286 {offsets = [0, 0], sizes = [10, 14], strides = [1, 1]} : vector<14x14xf32> to vector<10x14xf32>
    %c4_261 = arith.constant 4 : index
    %c0_262 = arith.constant 0 : index
    %c0_263 = arith.constant 0 : index
    %c0_264 = arith.constant 0 : index
    %456 = vector.load %arg5[%c4_261, %c0_262, %c0_263, %c0_264] : memref<6x5x14x160xf32, #tpu.memory_space<vmem>>, vector<1x1x14x160xf32>
    %457 = vector.shape_cast %456 : vector<1x1x14x160xf32> to vector<14x160xf32>
    %cst_265 = arith.constant dense<0.000000e+00> : vector<10x160xf32>
    %458 = tpu.matmul %455, %457, %cst_265 {dimension_numbers = #tpu.dot_dimension_numbers<[1], [0], [0], [1], [0, 0, 1, 1], [], []>} : vector<10x14xf32>, vector<14x160xf32>, vector<10x160xf32> -> vector<10x160xf32>
    %459 = arith.addf %454, %458 : vector<10x160xf32>
    %460 = vector.extract_strided_slice %286 {offsets = [1, 0], sizes = [10, 14], strides = [1, 1]} : vector<14x14xf32> to vector<10x14xf32>
    %c4_266 = arith.constant 4 : index
    %c1_267 = arith.constant 1 : index
    %c0_268 = arith.constant 0 : index
    %c0_269 = arith.constant 0 : index
    %461 = vector.load %arg5[%c4_266, %c1_267, %c0_268, %c0_269] : memref<6x5x14x160xf32, #tpu.memory_space<vmem>>, vector<1x1x14x160xf32>
    %462 = vector.shape_cast %461 : vector<1x1x14x160xf32> to vector<14x160xf32>
    %cst_270 = arith.constant dense<0.000000e+00> : vector<10x160xf32>
    %463 = tpu.matmul %460, %462, %cst_270 {dimension_numbers = #tpu.dot_dimension_numbers<[1], [0], [0], [1], [0, 0, 1, 1], [], []>} : vector<10x14xf32>, vector<14x160xf32>, vector<10x160xf32> -> vector<10x160xf32>
    %464 = arith.addf %459, %463 : vector<10x160xf32>
    %465 = vector.extract_strided_slice %286 {offsets = [2, 0], sizes = [10, 14], strides = [1, 1]} : vector<14x14xf32> to vector<10x14xf32>
    %c4_271 = arith.constant 4 : index
    %c2_272 = arith.constant 2 : index
    %c0_273 = arith.constant 0 : index
    %c0_274 = arith.constant 0 : index
    %466 = vector.load %arg5[%c4_271, %c2_272, %c0_273, %c0_274] : memref<6x5x14x160xf32, #tpu.memory_space<vmem>>, vector<1x1x14x160xf32>
    %467 = vector.shape_cast %466 : vector<1x1x14x160xf32> to vector<14x160xf32>
    %cst_275 = arith.constant dense<0.000000e+00> : vector<10x160xf32>
    %468 = tpu.matmul %465, %467, %cst_275 {dimension_numbers = #tpu.dot_dimension_numbers<[1], [0], [0], [1], [0, 0, 1, 1], [], []>} : vector<10x14xf32>, vector<14x160xf32>, vector<10x160xf32> -> vector<10x160xf32>
    %469 = arith.addf %464, %468 : vector<10x160xf32>
    %470 = vector.extract_strided_slice %286 {offsets = [3, 0], sizes = [10, 14], strides = [1, 1]} : vector<14x14xf32> to vector<10x14xf32>
    %c4_276 = arith.constant 4 : index
    %c3_277 = arith.constant 3 : index
    %c0_278 = arith.constant 0 : index
    %c0_279 = arith.constant 0 : index
    %471 = vector.load %arg5[%c4_276, %c3_277, %c0_278, %c0_279] : memref<6x5x14x160xf32, #tpu.memory_space<vmem>>, vector<1x1x14x160xf32>
    %472 = vector.shape_cast %471 : vector<1x1x14x160xf32> to vector<14x160xf32>
    %cst_280 = arith.constant dense<0.000000e+00> : vector<10x160xf32>
    %473 = tpu.matmul %470, %472, %cst_280 {dimension_numbers = #tpu.dot_dimension_numbers<[1], [0], [0], [1], [0, 0, 1, 1], [], []>} : vector<10x14xf32>, vector<14x160xf32>, vector<10x160xf32> -> vector<10x160xf32>
    %474 = arith.addf %469, %473 : vector<10x160xf32>
    %475 = vector.extract_strided_slice %286 {offsets = [4, 0], sizes = [10, 14], strides = [1, 1]} : vector<14x14xf32> to vector<10x14xf32>
    %c4_281 = arith.constant 4 : index
    %c4_282 = arith.constant 4 : index
    %c0_283 = arith.constant 0 : index
    %c0_284 = arith.constant 0 : index
    %476 = vector.load %arg5[%c4_281, %c4_282, %c0_283, %c0_284] : memref<6x5x14x160xf32, #tpu.memory_space<vmem>>, vector<1x1x14x160xf32>
    %477 = vector.shape_cast %476 : vector<1x1x14x160xf32> to vector<14x160xf32>
    %cst_285 = arith.constant dense<0.000000e+00> : vector<10x160xf32>
    %478 = tpu.matmul %475, %477, %cst_285 {dimension_numbers = #tpu.dot_dimension_numbers<[1], [0], [0], [1], [0, 0, 1, 1], [], []>} : vector<10x14xf32>, vector<14x160xf32>, vector<10x160xf32> -> vector<10x160xf32>
    %479 = arith.addf %474, %478 : vector<10x160xf32>
    %480 = vector.extract_strided_slice %340 {offsets = [0, 0], sizes = [10, 14], strides = [1, 1]} : vector<14x14xf32> to vector<10x14xf32>
    %c5_286 = arith.constant 5 : index
    %c0_287 = arith.constant 0 : index
    %c0_288 = arith.constant 0 : index
    %c0_289 = arith.constant 0 : index
    %481 = vector.load %arg5[%c5_286, %c0_287, %c0_288, %c0_289] : memref<6x5x14x160xf32, #tpu.memory_space<vmem>>, vector<1x1x14x160xf32>
    %482 = vector.shape_cast %481 : vector<1x1x14x160xf32> to vector<14x160xf32>
    %cst_290 = arith.constant dense<0.000000e+00> : vector<10x160xf32>
    %483 = tpu.matmul %480, %482, %cst_290 {dimension_numbers = #tpu.dot_dimension_numbers<[1], [0], [0], [1], [0, 0, 1, 1], [], []>} : vector<10x14xf32>, vector<14x160xf32>, vector<10x160xf32> -> vector<10x160xf32>
    %484 = arith.addf %479, %483 : vector<10x160xf32>
    %485 = vector.extract_strided_slice %340 {offsets = [1, 0], sizes = [10, 14], strides = [1, 1]} : vector<14x14xf32> to vector<10x14xf32>
    %c5_291 = arith.constant 5 : index
    %c1_292 = arith.constant 1 : index
    %c0_293 = arith.constant 0 : index
    %c0_294 = arith.constant 0 : index
    %486 = vector.load %arg5[%c5_291, %c1_292, %c0_293, %c0_294] : memref<6x5x14x160xf32, #tpu.memory_space<vmem>>, vector<1x1x14x160xf32>
    %487 = vector.shape_cast %486 : vector<1x1x14x160xf32> to vector<14x160xf32>
    %cst_295 = arith.constant dense<0.000000e+00> : vector<10x160xf32>
    %488 = tpu.matmul %485, %487, %cst_295 {dimension_numbers = #tpu.dot_dimension_numbers<[1], [0], [0], [1], [0, 0, 1, 1], [], []>} : vector<10x14xf32>, vector<14x160xf32>, vector<10x160xf32> -> vector<10x160xf32>
    %489 = arith.addf %484, %488 : vector<10x160xf32>
    %490 = vector.extract_strided_slice %340 {offsets = [2, 0], sizes = [10, 14], strides = [1, 1]} : vector<14x14xf32> to vector<10x14xf32>
    %c5_296 = arith.constant 5 : index
    %c2_297 = arith.constant 2 : index
    %c0_298 = arith.constant 0 : index
    %c0_299 = arith.constant 0 : index
    %491 = vector.load %arg5[%c5_296, %c2_297, %c0_298, %c0_299] : memref<6x5x14x160xf32, #tpu.memory_space<vmem>>, vector<1x1x14x160xf32>
    %492 = vector.shape_cast %491 : vector<1x1x14x160xf32> to vector<14x160xf32>
    %cst_300 = arith.constant dense<0.000000e+00> : vector<10x160xf32>
    %493 = tpu.matmul %490, %492, %cst_300 {dimension_numbers = #tpu.dot_dimension_numbers<[1], [0], [0], [1], [0, 0, 1, 1], [], []>} : vector<10x14xf32>, vector<14x160xf32>, vector<10x160xf32> -> vector<10x160xf32>
    %494 = arith.addf %489, %493 : vector<10x160xf32>
    %495 = vector.extract_strided_slice %340 {offsets = [3, 0], sizes = [10, 14], strides = [1, 1]} : vector<14x14xf32> to vector<10x14xf32>
    %c5_301 = arith.constant 5 : index
    %c3_302 = arith.constant 3 : index
    %c0_303 = arith.constant 0 : index
    %c0_304 = arith.constant 0 : index
    %496 = vector.load %arg5[%c5_301, %c3_302, %c0_303, %c0_304] : memref<6x5x14x160xf32, #tpu.memory_space<vmem>>, vector<1x1x14x160xf32>
    %497 = vector.shape_cast %496 : vector<1x1x14x160xf32> to vector<14x160xf32>
    %cst_305 = arith.constant dense<0.000000e+00> : vector<10x160xf32>
    %498 = tpu.matmul %495, %497, %cst_305 {dimension_numbers = #tpu.dot_dimension_numbers<[1], [0], [0], [1], [0, 0, 1, 1], [], []>} : vector<10x14xf32>, vector<14x160xf32>, vector<10x160xf32> -> vector<10x160xf32>
    %499 = arith.addf %494, %498 : vector<10x160xf32>
    %500 = vector.extract_strided_slice %340 {offsets = [4, 0], sizes = [10, 14], strides = [1, 1]} : vector<14x14xf32> to vector<10x14xf32>
    %c5_306 = arith.constant 5 : index
    %c4_307 = arith.constant 4 : index
    %c0_308 = arith.constant 0 : index
    %c0_309 = arith.constant 0 : index
    %501 = vector.load %arg5[%c5_306, %c4_307, %c0_308, %c0_309] : memref<6x5x14x160xf32, #tpu.memory_space<vmem>>, vector<1x1x14x160xf32>
    %502 = vector.shape_cast %501 : vector<1x1x14x160xf32> to vector<14x160xf32>
    %cst_310 = arith.constant dense<0.000000e+00> : vector<10x160xf32>
    %503 = tpu.matmul %500, %502, %cst_310 {dimension_numbers = #tpu.dot_dimension_numbers<[1], [0], [0], [1], [0, 0, 1, 1], [], []>} : vector<10x14xf32>, vector<14x160xf32>, vector<10x160xf32> -> vector<10x160xf32>
    %504 = arith.addf %499, %503 : vector<10x160xf32>
    %505 = vector.broadcast %345 : vector<1x160xf32> to vector<10x160xf32>
    %506 = arith.addf %504, %505 : vector<10x160xf32>
    %cst_311 = arith.constant 0.000000e+00 : f32
    %507 = vector.broadcast %cst_311 : f32 to vector<10x160xf32>
    %508 = arith.maximumf %506, %507 : vector<10x160xf32>
    %cst_312 = arith.constant dense<0.000000e+00> : vector<10x80xf32>
    %509 = tpu.matmul %508, %347, %cst_312 {dimension_numbers = #tpu.dot_dimension_numbers<[1], [0], [0], [1], [0, 0, 1, 1], [], []>} : vector<10x160xf32>, vector<160x80xf32>, vector<10x80xf32> -> vector<10x80xf32>
    %cst_313 = arith.constant dense<0.000000e+00> : vector<10x80xf32>
    %510 = tpu.matmul %508, %348, %cst_313 {dimension_numbers = #tpu.dot_dimension_numbers<[1], [0], [0], [1], [0, 0, 1, 1], [], []>} : vector<10x160xf32>, vector<160x80xf32>, vector<10x80xf32> -> vector<10x80xf32>
    %511 = arith.maximumf %509, %510 : vector<10x80xf32>
    %512 = vector.extract_strided_slice %511 {offsets = [0, 0], sizes = [9, 80], strides = [1, 1]} : vector<10x80xf32> to vector<9x80xf32>
    %513 = vector.extract_strided_slice %511 {offsets = [1, 0], sizes = [9, 80], strides = [1, 1]} : vector<10x80xf32> to vector<9x80xf32>
    %514 = arith.maximumf %512, %513 : vector<9x80xf32>
    %cst_314 = arith.constant dense<0.000000e+00> : vector<5x80xf32>
    %515 = tpu.matmul %346, %514, %cst_314 {dimension_numbers = #tpu.dot_dimension_numbers<[1], [0], [0], [1], [0, 0, 1, 1], [], []>} : vector<5x9xf32>, vector<9x80xf32>, vector<5x80xf32> -> vector<5x80xf32>
    %516 = vector.extract_strided_slice %515 {offsets = [0, 0], sizes = [1, 80], strides = [1, 1]} : vector<5x80xf32> to vector<1x80xf32>
    %c0_315 = arith.constant 0 : index
    %c0_316 = arith.constant 0 : index
    %c0_317 = arith.constant 0 : index
    %517 = vector.load %arg10[%c0_315, %c0_316, %c0_317] : memref<5x80x120xf32, #tpu.memory_space<vmem>>, vector<1x80x120xf32>
    %518 = vector.shape_cast %517 : vector<1x80x120xf32> to vector<80x120xf32>
    %cst_318 = arith.constant dense<0.000000e+00> : vector<1x120xf32>
    %519 = tpu.matmul %516, %518, %cst_318 {dimension_numbers = #tpu.dot_dimension_numbers<[1], [0], [0], [1], [0, 0, 1, 1], [], []>} : vector<1x80xf32>, vector<80x120xf32>, vector<1x120xf32> -> vector<1x120xf32>
    %520 = vector.extract_strided_slice %515 {offsets = [1, 0], sizes = [1, 80], strides = [1, 1]} : vector<5x80xf32> to vector<1x80xf32>
    %c1_319 = arith.constant 1 : index
    %c0_320 = arith.constant 0 : index
    %c0_321 = arith.constant 0 : index
    %521 = vector.load %arg10[%c1_319, %c0_320, %c0_321] : memref<5x80x120xf32, #tpu.memory_space<vmem>>, vector<1x80x120xf32>
    %522 = vector.shape_cast %521 : vector<1x80x120xf32> to vector<80x120xf32>
    %cst_322 = arith.constant dense<0.000000e+00> : vector<1x120xf32>
    %523 = tpu.matmul %520, %522, %cst_322 {dimension_numbers = #tpu.dot_dimension_numbers<[1], [0], [0], [1], [0, 0, 1, 1], [], []>} : vector<1x80xf32>, vector<80x120xf32>, vector<1x120xf32> -> vector<1x120xf32>
    %524 = arith.addf %519, %523 : vector<1x120xf32>
    %525 = vector.extract_strided_slice %515 {offsets = [2, 0], sizes = [1, 80], strides = [1, 1]} : vector<5x80xf32> to vector<1x80xf32>
    %c2_323 = arith.constant 2 : index
    %c0_324 = arith.constant 0 : index
    %c0_325 = arith.constant 0 : index
    %526 = vector.load %arg10[%c2_323, %c0_324, %c0_325] : memref<5x80x120xf32, #tpu.memory_space<vmem>>, vector<1x80x120xf32>
    %527 = vector.shape_cast %526 : vector<1x80x120xf32> to vector<80x120xf32>
    %cst_326 = arith.constant dense<0.000000e+00> : vector<1x120xf32>
    %528 = tpu.matmul %525, %527, %cst_326 {dimension_numbers = #tpu.dot_dimension_numbers<[1], [0], [0], [1], [0, 0, 1, 1], [], []>} : vector<1x80xf32>, vector<80x120xf32>, vector<1x120xf32> -> vector<1x120xf32>
    %529 = arith.addf %524, %528 : vector<1x120xf32>
    %530 = vector.extract_strided_slice %515 {offsets = [3, 0], sizes = [1, 80], strides = [1, 1]} : vector<5x80xf32> to vector<1x80xf32>
    %c3_327 = arith.constant 3 : index
    %c0_328 = arith.constant 0 : index
    %c0_329 = arith.constant 0 : index
    %531 = vector.load %arg10[%c3_327, %c0_328, %c0_329] : memref<5x80x120xf32, #tpu.memory_space<vmem>>, vector<1x80x120xf32>
    %532 = vector.shape_cast %531 : vector<1x80x120xf32> to vector<80x120xf32>
    %cst_330 = arith.constant dense<0.000000e+00> : vector<1x120xf32>
    %533 = tpu.matmul %530, %532, %cst_330 {dimension_numbers = #tpu.dot_dimension_numbers<[1], [0], [0], [1], [0, 0, 1, 1], [], []>} : vector<1x80xf32>, vector<80x120xf32>, vector<1x120xf32> -> vector<1x120xf32>
    %534 = arith.addf %529, %533 : vector<1x120xf32>
    %535 = vector.extract_strided_slice %515 {offsets = [4, 0], sizes = [1, 80], strides = [1, 1]} : vector<5x80xf32> to vector<1x80xf32>
    %c4_331 = arith.constant 4 : index
    %c0_332 = arith.constant 0 : index
    %c0_333 = arith.constant 0 : index
    %536 = vector.load %arg10[%c4_331, %c0_332, %c0_333] : memref<5x80x120xf32, #tpu.memory_space<vmem>>, vector<1x80x120xf32>
    %537 = vector.shape_cast %536 : vector<1x80x120xf32> to vector<80x120xf32>
    %cst_334 = arith.constant dense<0.000000e+00> : vector<1x120xf32>
    %538 = tpu.matmul %535, %537, %cst_334 {dimension_numbers = #tpu.dot_dimension_numbers<[1], [0], [0], [1], [0, 0, 1, 1], [], []>} : vector<1x80xf32>, vector<80x120xf32>, vector<1x120xf32> -> vector<1x120xf32>
    %539 = arith.addf %534, %538 : vector<1x120xf32>
    %540 = arith.addf %539, %349 : vector<1x120xf32>
    %cst_335 = arith.constant dense<0.000000e+00> : vector<1x84xf32>
    %541 = tpu.matmul %540, %350, %cst_335 {dimension_numbers = #tpu.dot_dimension_numbers<[1], [0], [0], [1], [0, 0, 1, 1], [], []>} : vector<1x120xf32>, vector<120x84xf32>, vector<1x84xf32> -> vector<1x84xf32>
    %542 = arith.addf %541, %351 : vector<1x84xf32>
    %cst_336 = arith.constant dense<0.000000e+00> : vector<1x10xf32>
    %543 = tpu.matmul %542, %352, %cst_336 {dimension_numbers = #tpu.dot_dimension_numbers<[1], [0], [0], [1], [0, 0, 1, 1], [], []>} : vector<1x84xf32>, vector<84x10xf32>, vector<1x10xf32> -> vector<1x10xf32>
    %544 = arith.addf %543, %353 : vector<1x10xf32>
    %c0_337 = arith.constant 0 : index
    %c0_338 = arith.constant 0 : index
    %c0_339 = arith.constant 0 : index
    %545 = vector.load %arg16[%c0_337, %c0_338, %c0_339] : memref<2x1x10xf32, #tpu.memory_space<vmem>>, vector<1x1x10xf32>
    %546 = vector.shape_cast %545 : vector<1x1x10xf32> to vector<1x10xf32>
    %547 = vector.shape_cast %544 : vector<1x10xf32> to vector<1x1x10xf32>
    tpu.vector_store %arg16[%c0_337, %c0_338, %c0_339], %547 {strides = array<i32>} : memref<2x1x10xf32, #tpu.memory_space<vmem>>, vector<1x1x10xf32>,
    %cst_340 = arith.constant 0.000000e+00 : f32
    %548 = vector.broadcast %cst_340 : f32 to vector<10x160xf32>
    %549 = vector.extract_strided_slice %74 {offsets = [0, 0], sizes = [10, 14], strides = [1, 1]} : vector<14x14xf32> to vector<10x14xf32>
    %c0_341 = arith.constant 0 : index
    %c0_342 = arith.constant 0 : index
    %c0_343 = arith.constant 0 : index
    %c0_344 = arith.constant 0 : index
    %550 = vector.load %arg5[%c0_341, %c0_342, %c0_343, %c0_344] : memref<6x5x14x160xf32, #tpu.memory_space<vmem>>, vector<1x1x14x160xf32>
    %551 = vector.shape_cast %550 : vector<1x1x14x160xf32> to vector<14x160xf32>
    %cst_345 = arith.constant dense<0.000000e+00> : vector<10x160xf32>
    %552 = tpu.matmul %549, %551, %cst_345 {dimension_numbers = #tpu.dot_dimension_numbers<[1], [0], [0], [1], [0, 0, 1, 1], [], []>} : vector<10x14xf32>, vector<14x160xf32>, vector<10x160xf32> -> vector<10x160xf32>
    %553 = arith.addf %548, %552 : vector<10x160xf32>
    %554 = vector.extract_strided_slice %74 {offsets = [1, 0], sizes = [10, 14], strides = [1, 1]} : vector<14x14xf32> to vector<10x14xf32>
    %c0_346 = arith.constant 0 : index
    %c1_347 = arith.constant 1 : index
    %c0_348 = arith.constant 0 : index
    %c0_349 = arith.constant 0 : index
    %555 = vector.load %arg5[%c0_346, %c1_347, %c0_348, %c0_349] : memref<6x5x14x160xf32, #tpu.memory_space<vmem>>, vector<1x1x14x160xf32>
    %556 = vector.shape_cast %555 : vector<1x1x14x160xf32> to vector<14x160xf32>
    %cst_350 = arith.constant dense<0.000000e+00> : vector<10x160xf32>
    %557 = tpu.matmul %554, %556, %cst_350 {dimension_numbers = #tpu.dot_dimension_numbers<[1], [0], [0], [1], [0, 0, 1, 1], [], []>} : vector<10x14xf32>, vector<14x160xf32>, vector<10x160xf32> -> vector<10x160xf32>
    %558 = arith.addf %553, %557 : vector<10x160xf32>
    %559 = vector.extract_strided_slice %74 {offsets = [2, 0], sizes = [10, 14], strides = [1, 1]} : vector<14x14xf32> to vector<10x14xf32>
    %c0_351 = arith.constant 0 : index
    %c2_352 = arith.constant 2 : index
    %c0_353 = arith.constant 0 : index
    %c0_354 = arith.constant 0 : index
    %560 = vector.load %arg5[%c0_351, %c2_352, %c0_353, %c0_354] : memref<6x5x14x160xf32, #tpu.memory_space<vmem>>, vector<1x1x14x160xf32>
    %561 = vector.shape_cast %560 : vector<1x1x14x160xf32> to vector<14x160xf32>
    %cst_355 = arith.constant dense<0.000000e+00> : vector<10x160xf32>
    %562 = tpu.matmul %559, %561, %cst_355 {dimension_numbers = #tpu.dot_dimension_numbers<[1], [0], [0], [1], [0, 0, 1, 1], [], []>} : vector<10x14xf32>, vector<14x160xf32>, vector<10x160xf32> -> vector<10x160xf32>
    %563 = arith.addf %558, %562 : vector<10x160xf32>
    %564 = vector.extract_strided_slice %74 {offsets = [3, 0], sizes = [10, 14], strides = [1, 1]} : vector<14x14xf32> to vector<10x14xf32>
    %c0_356 = arith.constant 0 : index
    %c3_357 = arith.constant 3 : index
    %c0_358 = arith.constant 0 : index
    %c0_359 = arith.constant 0 : index
    %565 = vector.load %arg5[%c0_356, %c3_357, %c0_358, %c0_359] : memref<6x5x14x160xf32, #tpu.memory_space<vmem>>, vector<1x1x14x160xf32>
    %566 = vector.shape_cast %565 : vector<1x1x14x160xf32> to vector<14x160xf32>
    %cst_360 = arith.constant dense<0.000000e+00> : vector<10x160xf32>
    %567 = tpu.matmul %564, %566, %cst_360 {dimension_numbers = #tpu.dot_dimension_numbers<[1], [0], [0], [1], [0, 0, 1, 1], [], []>} : vector<10x14xf32>, vector<14x160xf32>, vector<10x160xf32> -> vector<10x160xf32>
    %568 = arith.addf %563, %567 : vector<10x160xf32>
    %569 = vector.extract_strided_slice %74 {offsets = [4, 0], sizes = [10, 14], strides = [1, 1]} : vector<14x14xf32> to vector<10x14xf32>
    %c0_361 = arith.constant 0 : index
    %c4_362 = arith.constant 4 : index
    %c0_363 = arith.constant 0 : index
    %c0_364 = arith.constant 0 : index
    %570 = vector.load %arg5[%c0_361, %c4_362, %c0_363, %c0_364] : memref<6x5x14x160xf32, #tpu.memory_space<vmem>>, vector<1x1x14x160xf32>
    %571 = vector.shape_cast %570 : vector<1x1x14x160xf32> to vector<14x160xf32>
    %cst_365 = arith.constant dense<0.000000e+00> : vector<10x160xf32>
    %572 = tpu.matmul %569, %571, %cst_365 {dimension_numbers = #tpu.dot_dimension_numbers<[1], [0], [0], [1], [0, 0, 1, 1], [], []>} : vector<10x14xf32>, vector<14x160xf32>, vector<10x160xf32> -> vector<10x160xf32>
    %573 = arith.addf %568, %572 : vector<10x160xf32>
    %574 = vector.extract_strided_slice %128 {offsets = [0, 0], sizes = [10, 14], strides = [1, 1]} : vector<14x14xf32> to vector<10x14xf32>
    %c1_366 = arith.constant 1 : index
    %c0_367 = arith.constant 0 : index
    %c0_368 = arith.constant 0 : index
    %c0_369 = arith.constant 0 : index
    %575 = vector.load %arg5[%c1_366, %c0_367, %c0_368, %c0_369] : memref<6x5x14x160xf32, #tpu.memory_space<vmem>>, vector<1x1x14x160xf32>
    %576 = vector.shape_cast %575 : vector<1x1x14x160xf32> to vector<14x160xf32>
    %cst_370 = arith.constant dense<0.000000e+00> : vector<10x160xf32>
    %577 = tpu.matmul %574, %576, %cst_370 {dimension_numbers = #tpu.dot_dimension_numbers<[1], [0], [0], [1], [0, 0, 1, 1], [], []>} : vector<10x14xf32>, vector<14x160xf32>, vector<10x160xf32> -> vector<10x160xf32>
    %578 = arith.addf %573, %577 : vector<10x160xf32>
    %579 = vector.extract_strided_slice %128 {offsets = [1, 0], sizes = [10, 14], strides = [1, 1]} : vector<14x14xf32> to vector<10x14xf32>
    %c1_371 = arith.constant 1 : index
    %c1_372 = arith.constant 1 : index
    %c0_373 = arith.constant 0 : index
    %c0_374 = arith.constant 0 : index
    %580 = vector.load %arg5[%c1_371, %c1_372, %c0_373, %c0_374] : memref<6x5x14x160xf32, #tpu.memory_space<vmem>>, vector<1x1x14x160xf32>
    %581 = vector.shape_cast %580 : vector<1x1x14x160xf32> to vector<14x160xf32>
    %cst_375 = arith.constant dense<0.000000e+00> : vector<10x160xf32>
    %582 = tpu.matmul %579, %581, %cst_375 {dimension_numbers = #tpu.dot_dimension_numbers<[1], [0], [0], [1], [0, 0, 1, 1], [], []>} : vector<10x14xf32>, vector<14x160xf32>, vector<10x160xf32> -> vector<10x160xf32>
    %583 = arith.addf %578, %582 : vector<10x160xf32>
    %584 = vector.extract_strided_slice %128 {offsets = [2, 0], sizes = [10, 14], strides = [1, 1]} : vector<14x14xf32> to vector<10x14xf32>
    %c1_376 = arith.constant 1 : index
    %c2_377 = arith.constant 2 : index
    %c0_378 = arith.constant 0 : index
    %c0_379 = arith.constant 0 : index
    %585 = vector.load %arg5[%c1_376, %c2_377, %c0_378, %c0_379] : memref<6x5x14x160xf32, #tpu.memory_space<vmem>>, vector<1x1x14x160xf32>
    %586 = vector.shape_cast %585 : vector<1x1x14x160xf32> to vector<14x160xf32>
    %cst_380 = arith.constant dense<0.000000e+00> : vector<10x160xf32>
    %587 = tpu.matmul %584, %586, %cst_380 {dimension_numbers = #tpu.dot_dimension_numbers<[1], [0], [0], [1], [0, 0, 1, 1], [], []>} : vector<10x14xf32>, vector<14x160xf32>, vector<10x160xf32> -> vector<10x160xf32>
    %588 = arith.addf %583, %587 : vector<10x160xf32>
    %589 = vector.extract_strided_slice %128 {offsets = [3, 0], sizes = [10, 14], strides = [1, 1]} : vector<14x14xf32> to vector<10x14xf32>
    %c1_381 = arith.constant 1 : index
    %c3_382 = arith.constant 3 : index
    %c0_383 = arith.constant 0 : index
    %c0_384 = arith.constant 0 : index
    %590 = vector.load %arg5[%c1_381, %c3_382, %c0_383, %c0_384] : memref<6x5x14x160xf32, #tpu.memory_space<vmem>>, vector<1x1x14x160xf32>
    %591 = vector.shape_cast %590 : vector<1x1x14x160xf32> to vector<14x160xf32>
    %cst_385 = arith.constant dense<0.000000e+00> : vector<10x160xf32>
    %592 = tpu.matmul %589, %591, %cst_385 {dimension_numbers = #tpu.dot_dimension_numbers<[1], [0], [0], [1], [0, 0, 1, 1], [], []>} : vector<10x14xf32>, vector<14x160xf32>, vector<10x160xf32> -> vector<10x160xf32>
    %593 = arith.addf %588, %592 : vector<10x160xf32>
    %594 = vector.extract_strided_slice %128 {offsets = [4, 0], sizes = [10, 14], strides = [1, 1]} : vector<14x14xf32> to vector<10x14xf32>
    %c1_386 = arith.constant 1 : index
    %c4_387 = arith.constant 4 : index
    %c0_388 = arith.constant 0 : index
    %c0_389 = arith.constant 0 : index
    %595 = vector.load %arg5[%c1_386, %c4_387, %c0_388, %c0_389] : memref<6x5x14x160xf32, #tpu.memory_space<vmem>>, vector<1x1x14x160xf32>
    %596 = vector.shape_cast %595 : vector<1x1x14x160xf32> to vector<14x160xf32>
    %cst_390 = arith.constant dense<0.000000e+00> : vector<10x160xf32>
    %597 = tpu.matmul %594, %596, %cst_390 {dimension_numbers = #tpu.dot_dimension_numbers<[1], [0], [0], [1], [0, 0, 1, 1], [], []>} : vector<10x14xf32>, vector<14x160xf32>, vector<10x160xf32> -> vector<10x160xf32>
    %598 = arith.addf %593, %597 : vector<10x160xf32>
    %599 = vector.extract_strided_slice %182 {offsets = [0, 0], sizes = [10, 14], strides = [1, 1]} : vector<14x14xf32> to vector<10x14xf32>
    %c2_391 = arith.constant 2 : index
    %c0_392 = arith.constant 0 : index
    %c0_393 = arith.constant 0 : index
    %c0_394 = arith.constant 0 : index
    %600 = vector.load %arg5[%c2_391, %c0_392, %c0_393, %c0_394] : memref<6x5x14x160xf32, #tpu.memory_space<vmem>>, vector<1x1x14x160xf32>
    %601 = vector.shape_cast %600 : vector<1x1x14x160xf32> to vector<14x160xf32>
    %cst_395 = arith.constant dense<0.000000e+00> : vector<10x160xf32>
    %602 = tpu.matmul %599, %601, %cst_395 {dimension_numbers = #tpu.dot_dimension_numbers<[1], [0], [0], [1], [0, 0, 1, 1], [], []>} : vector<10x14xf32>, vector<14x160xf32>, vector<10x160xf32> -> vector<10x160xf32>
    %603 = arith.addf %598, %602 : vector<10x160xf32>
    %604 = vector.extract_strided_slice %182 {offsets = [1, 0], sizes = [10, 14], strides = [1, 1]} : vector<14x14xf32> to vector<10x14xf32>
    %c2_396 = arith.constant 2 : index
    %c1_397 = arith.constant 1 : index
    %c0_398 = arith.constant 0 : index
    %c0_399 = arith.constant 0 : index
    %605 = vector.load %arg5[%c2_396, %c1_397, %c0_398, %c0_399] : memref<6x5x14x160xf32, #tpu.memory_space<vmem>>, vector<1x1x14x160xf32>
    %606 = vector.shape_cast %605 : vector<1x1x14x160xf32> to vector<14x160xf32>
    %cst_400 = arith.constant dense<0.000000e+00> : vector<10x160xf32>
    %607 = tpu.matmul %604, %606, %cst_400 {dimension_numbers = #tpu.dot_dimension_numbers<[1], [0], [0], [1], [0, 0, 1, 1], [], []>} : vector<10x14xf32>, vector<14x160xf32>, vector<10x160xf32> -> vector<10x160xf32>
    %608 = arith.addf %603, %607 : vector<10x160xf32>
    %609 = vector.extract_strided_slice %182 {offsets = [2, 0], sizes = [10, 14], strides = [1, 1]} : vector<14x14xf32> to vector<10x14xf32>
    %c2_401 = arith.constant 2 : index
    %c2_402 = arith.constant 2 : index
    %c0_403 = arith.constant 0 : index
    %c0_404 = arith.constant 0 : index
    %610 = vector.load %arg5[%c2_401, %c2_402, %c0_403, %c0_404] : memref<6x5x14x160xf32, #tpu.memory_space<vmem>>, vector<1x1x14x160xf32>
    %611 = vector.shape_cast %610 : vector<1x1x14x160xf32> to vector<14x160xf32>
    %cst_405 = arith.constant dense<0.000000e+00> : vector<10x160xf32>
    %612 = tpu.matmul %609, %611, %cst_405 {dimension_numbers = #tpu.dot_dimension_numbers<[1], [0], [0], [1], [0, 0, 1, 1], [], []>} : vector<10x14xf32>, vector<14x160xf32>, vector<10x160xf32> -> vector<10x160xf32>
    %613 = arith.addf %608, %612 : vector<10x160xf32>
    %614 = vector.extract_strided_slice %182 {offsets = [3, 0], sizes = [10, 14], strides = [1, 1]} : vector<14x14xf32> to vector<10x14xf32>
    %c2_406 = arith.constant 2 : index
    %c3_407 = arith.constant 3 : index
    %c0_408 = arith.constant 0 : index
    %c0_409 = arith.constant 0 : index
    %615 = vector.load %arg5[%c2_406, %c3_407, %c0_408, %c0_409] : memref<6x5x14x160xf32, #tpu.memory_space<vmem>>, vector<1x1x14x160xf32>
    %616 = vector.shape_cast %615 : vector<1x1x14x160xf32> to vector<14x160xf32>
    %cst_410 = arith.constant dense<0.000000e+00> : vector<10x160xf32>
    %617 = tpu.matmul %614, %616, %cst_410 {dimension_numbers = #tpu.dot_dimension_numbers<[1], [0], [0], [1], [0, 0, 1, 1], [], []>} : vector<10x14xf32>, vector<14x160xf32>, vector<10x160xf32> -> vector<10x160xf32>
    %618 = arith.addf %613, %617 : vector<10x160xf32>
    %619 = vector.extract_strided_slice %182 {offsets = [4, 0], sizes = [10, 14], strides = [1, 1]} : vector<14x14xf32> to vector<10x14xf32>
    %c2_411 = arith.constant 2 : index
    %c4_412 = arith.constant 4 : index
    %c0_413 = arith.constant 0 : index
    %c0_414 = arith.constant 0 : index
    %620 = vector.load %arg5[%c2_411, %c4_412, %c0_413, %c0_414] : memref<6x5x14x160xf32, #tpu.memory_space<vmem>>, vector<1x1x14x160xf32>
    %621 = vector.shape_cast %620 : vector<1x1x14x160xf32> to vector<14x160xf32>
    %cst_415 = arith.constant dense<0.000000e+00> : vector<10x160xf32>
    %622 = tpu.matmul %619, %621, %cst_415 {dimension_numbers = #tpu.dot_dimension_numbers<[1], [0], [0], [1], [0, 0, 1, 1], [], []>} : vector<10x14xf32>, vector<14x160xf32>, vector<10x160xf32> -> vector<10x160xf32>
    %623 = arith.addf %618, %622 : vector<10x160xf32>
    %624 = vector.extract_strided_slice %236 {offsets = [0, 0], sizes = [10, 14], strides = [1, 1]} : vector<14x14xf32> to vector<10x14xf32>
    %c3_416 = arith.constant 3 : index
    %c0_417 = arith.constant 0 : index
    %c0_418 = arith.constant 0 : index
    %c0_419 = arith.constant 0 : index
    %625 = vector.load %arg5[%c3_416, %c0_417, %c0_418, %c0_419] : memref<6x5x14x160xf32, #tpu.memory_space<vmem>>, vector<1x1x14x160xf32>
    %626 = vector.shape_cast %625 : vector<1x1x14x160xf32> to vector<14x160xf32>
    %cst_420 = arith.constant dense<0.000000e+00> : vector<10x160xf32>
    %627 = tpu.matmul %624, %626, %cst_420 {dimension_numbers = #tpu.dot_dimension_numbers<[1], [0], [0], [1], [0, 0, 1, 1], [], []>} : vector<10x14xf32>, vector<14x160xf32>, vector<10x160xf32> -> vector<10x160xf32>
    %628 = arith.addf %623, %627 : vector<10x160xf32>
    %629 = vector.extract_strided_slice %236 {offsets = [1, 0], sizes = [10, 14], strides = [1, 1]} : vector<14x14xf32> to vector<10x14xf32>
    %c3_421 = arith.constant 3 : index
    %c1_422 = arith.constant 1 : index
    %c0_423 = arith.constant 0 : index
    %c0_424 = arith.constant 0 : index
    %630 = vector.load %arg5[%c3_421, %c1_422, %c0_423, %c0_424] : memref<6x5x14x160xf32, #tpu.memory_space<vmem>>, vector<1x1x14x160xf32>
    %631 = vector.shape_cast %630 : vector<1x1x14x160xf32> to vector<14x160xf32>
    %cst_425 = arith.constant dense<0.000000e+00> : vector<10x160xf32>
    %632 = tpu.matmul %629, %631, %cst_425 {dimension_numbers = #tpu.dot_dimension_numbers<[1], [0], [0], [1], [0, 0, 1, 1], [], []>} : vector<10x14xf32>, vector<14x160xf32>, vector<10x160xf32> -> vector<10x160xf32>
    %633 = arith.addf %628, %632 : vector<10x160xf32>
    %634 = vector.extract_strided_slice %236 {offsets = [2, 0], sizes = [10, 14], strides = [1, 1]} : vector<14x14xf32> to vector<10x14xf32>
    %c3_426 = arith.constant 3 : index
    %c2_427 = arith.constant 2 : index
    %c0_428 = arith.constant 0 : index
    %c0_429 = arith.constant 0 : index
    %635 = vector.load %arg5[%c3_426, %c2_427, %c0_428, %c0_429] : memref<6x5x14x160xf32, #tpu.memory_space<vmem>>, vector<1x1x14x160xf32>
    %636 = vector.shape_cast %635 : vector<1x1x14x160xf32> to vector<14x160xf32>
    %cst_430 = arith.constant dense<0.000000e+00> : vector<10x160xf32>
    %637 = tpu.matmul %634, %636, %cst_430 {dimension_numbers = #tpu.dot_dimension_numbers<[1], [0], [0], [1], [0, 0, 1, 1], [], []>} : vector<10x14xf32>, vector<14x160xf32>, vector<10x160xf32> -> vector<10x160xf32>
    %638 = arith.addf %633, %637 : vector<10x160xf32>
    %639 = vector.extract_strided_slice %236 {offsets = [3, 0], sizes = [10, 14], strides = [1, 1]} : vector<14x14xf32> to vector<10x14xf32>
    %c3_431 = arith.constant 3 : index
    %c3_432 = arith.constant 3 : index
    %c0_433 = arith.constant 0 : index
    %c0_434 = arith.constant 0 : index
    %640 = vector.load %arg5[%c3_431, %c3_432, %c0_433, %c0_434] : memref<6x5x14x160xf32, #tpu.memory_space<vmem>>, vector<1x1x14x160xf32>
    %641 = vector.shape_cast %640 : vector<1x1x14x160xf32> to vector<14x160xf32>
    %cst_435 = arith.constant dense<0.000000e+00> : vector<10x160xf32>
    %642 = tpu.matmul %639, %641, %cst_435 {dimension_numbers = #tpu.dot_dimension_numbers<[1], [0], [0], [1], [0, 0, 1, 1], [], []>} : vector<10x14xf32>, vector<14x160xf32>, vector<10x160xf32> -> vector<10x160xf32>
    %643 = arith.addf %638, %642 : vector<10x160xf32>
    %644 = vector.extract_strided_slice %236 {offsets = [4, 0], sizes = [10, 14], strides = [1, 1]} : vector<14x14xf32> to vector<10x14xf32>
    %c3_436 = arith.constant 3 : index
    %c4_437 = arith.constant 4 : index
    %c0_438 = arith.constant 0 : index
    %c0_439 = arith.constant 0 : index
    %645 = vector.load %arg5[%c3_436, %c4_437, %c0_438, %c0_439] : memref<6x5x14x160xf32, #tpu.memory_space<vmem>>, vector<1x1x14x160xf32>
    %646 = vector.shape_cast %645 : vector<1x1x14x160xf32> to vector<14x160xf32>
    %cst_440 = arith.constant dense<0.000000e+00> : vector<10x160xf32>
    %647 = tpu.matmul %644, %646, %cst_440 {dimension_numbers = #tpu.dot_dimension_numbers<[1], [0], [0], [1], [0, 0, 1, 1], [], []>} : vector<10x14xf32>, vector<14x160xf32>, vector<10x160xf32> -> vector<10x160xf32>
    %648 = arith.addf %643, %647 : vector<10x160xf32>
    %649 = vector.extract_strided_slice %290 {offsets = [0, 0], sizes = [10, 14], strides = [1, 1]} : vector<14x14xf32> to vector<10x14xf32>
    %c4_441 = arith.constant 4 : index
    %c0_442 = arith.constant 0 : index
    %c0_443 = arith.constant 0 : index
    %c0_444 = arith.constant 0 : index
    %650 = vector.load %arg5[%c4_441, %c0_442, %c0_443, %c0_444] : memref<6x5x14x160xf32, #tpu.memory_space<vmem>>, vector<1x1x14x160xf32>
    %651 = vector.shape_cast %650 : vector<1x1x14x160xf32> to vector<14x160xf32>
    %cst_445 = arith.constant dense<0.000000e+00> : vector<10x160xf32>
    %652 = tpu.matmul %649, %651, %cst_445 {dimension_numbers = #tpu.dot_dimension_numbers<[1], [0], [0], [1], [0, 0, 1, 1], [], []>} : vector<10x14xf32>, vector<14x160xf32>, vector<10x160xf32> -> vector<10x160xf32>
    %653 = arith.addf %648, %652 : vector<10x160xf32>
    %654 = vector.extract_strided_slice %290 {offsets = [1, 0], sizes = [10, 14], strides = [1, 1]} : vector<14x14xf32> to vector<10x14xf32>
    %c4_446 = arith.constant 4 : index
    %c1_447 = arith.constant 1 : index
    %c0_448 = arith.constant 0 : index
    %c0_449 = arith.constant 0 : index
    %655 = vector.load %arg5[%c4_446, %c1_447, %c0_448, %c0_449] : memref<6x5x14x160xf32, #tpu.memory_space<vmem>>, vector<1x1x14x160xf32>
    %656 = vector.shape_cast %655 : vector<1x1x14x160xf32> to vector<14x160xf32>
    %cst_450 = arith.constant dense<0.000000e+00> : vector<10x160xf32>
    %657 = tpu.matmul %654, %656, %cst_450 {dimension_numbers = #tpu.dot_dimension_numbers<[1], [0], [0], [1], [0, 0, 1, 1], [], []>} : vector<10x14xf32>, vector<14x160xf32>, vector<10x160xf32> -> vector<10x160xf32>
    %658 = arith.addf %653, %657 : vector<10x160xf32>
    %659 = vector.extract_strided_slice %290 {offsets = [2, 0], sizes = [10, 14], strides = [1, 1]} : vector<14x14xf32> to vector<10x14xf32>
    %c4_451 = arith.constant 4 : index
    %c2_452 = arith.constant 2 : index
    %c0_453 = arith.constant 0 : index
    %c0_454 = arith.constant 0 : index
    %660 = vector.load %arg5[%c4_451, %c2_452, %c0_453, %c0_454] : memref<6x5x14x160xf32, #tpu.memory_space<vmem>>, vector<1x1x14x160xf32>
    %661 = vector.shape_cast %660 : vector<1x1x14x160xf32> to vector<14x160xf32>
    %cst_455 = arith.constant dense<0.000000e+00> : vector<10x160xf32>
    %662 = tpu.matmul %659, %661, %cst_455 {dimension_numbers = #tpu.dot_dimension_numbers<[1], [0], [0], [1], [0, 0, 1, 1], [], []>} : vector<10x14xf32>, vector<14x160xf32>, vector<10x160xf32> -> vector<10x160xf32>
    %663 = arith.addf %658, %662 : vector<10x160xf32>
    %664 = vector.extract_strided_slice %290 {offsets = [3, 0], sizes = [10, 14], strides = [1, 1]} : vector<14x14xf32> to vector<10x14xf32>
    %c4_456 = arith.constant 4 : index
    %c3_457 = arith.constant 3 : index
    %c0_458 = arith.constant 0 : index
    %c0_459 = arith.constant 0 : index
    %665 = vector.load %arg5[%c4_456, %c3_457, %c0_458, %c0_459] : memref<6x5x14x160xf32, #tpu.memory_space<vmem>>, vector<1x1x14x160xf32>
    %666 = vector.shape_cast %665 : vector<1x1x14x160xf32> to vector<14x160xf32>
    %cst_460 = arith.constant dense<0.000000e+00> : vector<10x160xf32>
    %667 = tpu.matmul %664, %666, %cst_460 {dimension_numbers = #tpu.dot_dimension_numbers<[1], [0], [0], [1], [0, 0, 1, 1], [], []>} : vector<10x14xf32>, vector<14x160xf32>, vector<10x160xf32> -> vector<10x160xf32>
    %668 = arith.addf %663, %667 : vector<10x160xf32>
    %669 = vector.extract_strided_slice %290 {offsets = [4, 0], sizes = [10, 14], strides = [1, 1]} : vector<14x14xf32> to vector<10x14xf32>
    %c4_461 = arith.constant 4 : index
    %c4_462 = arith.constant 4 : index
    %c0_463 = arith.constant 0 : index
    %c0_464 = arith.constant 0 : index
    %670 = vector.load %arg5[%c4_461, %c4_462, %c0_463, %c0_464] : memref<6x5x14x160xf32, #tpu.memory_space<vmem>>, vector<1x1x14x160xf32>
    %671 = vector.shape_cast %670 : vector<1x1x14x160xf32> to vector<14x160xf32>
    %cst_465 = arith.constant dense<0.000000e+00> : vector<10x160xf32>
    %672 = tpu.matmul %669, %671, %cst_465 {dimension_numbers = #tpu.dot_dimension_numbers<[1], [0], [0], [1], [0, 0, 1, 1], [], []>} : vector<10x14xf32>, vector<14x160xf32>, vector<10x160xf32> -> vector<10x160xf32>
    %673 = arith.addf %668, %672 : vector<10x160xf32>
    %674 = vector.extract_strided_slice %344 {offsets = [0, 0], sizes = [10, 14], strides = [1, 1]} : vector<14x14xf32> to vector<10x14xf32>
    %c5_466 = arith.constant 5 : index
    %c0_467 = arith.constant 0 : index
    %c0_468 = arith.constant 0 : index
    %c0_469 = arith.constant 0 : index
    %675 = vector.load %arg5[%c5_466, %c0_467, %c0_468, %c0_469] : memref<6x5x14x160xf32, #tpu.memory_space<vmem>>, vector<1x1x14x160xf32>
    %676 = vector.shape_cast %675 : vector<1x1x14x160xf32> to vector<14x160xf32>
    %cst_470 = arith.constant dense<0.000000e+00> : vector<10x160xf32>
    %677 = tpu.matmul %674, %676, %cst_470 {dimension_numbers = #tpu.dot_dimension_numbers<[1], [0], [0], [1], [0, 0, 1, 1], [], []>} : vector<10x14xf32>, vector<14x160xf32>, vector<10x160xf32> -> vector<10x160xf32>
    %678 = arith.addf %673, %677 : vector<10x160xf32>
    %679 = vector.extract_strided_slice %344 {offsets = [1, 0], sizes = [10, 14], strides = [1, 1]} : vector<14x14xf32> to vector<10x14xf32>
    %c5_471 = arith.constant 5 : index
    %c1_472 = arith.constant 1 : index
    %c0_473 = arith.constant 0 : index
    %c0_474 = arith.constant 0 : index
    %680 = vector.load %arg5[%c5_471, %c1_472, %c0_473, %c0_474] : memref<6x5x14x160xf32, #tpu.memory_space<vmem>>, vector<1x1x14x160xf32>
    %681 = vector.shape_cast %680 : vector<1x1x14x160xf32> to vector<14x160xf32>
    %cst_475 = arith.constant dense<0.000000e+00> : vector<10x160xf32>
    %682 = tpu.matmul %679, %681, %cst_475 {dimension_numbers = #tpu.dot_dimension_numbers<[1], [0], [0], [1], [0, 0, 1, 1], [], []>} : vector<10x14xf32>, vector<14x160xf32>, vector<10x160xf32> -> vector<10x160xf32>
    %683 = arith.addf %678, %682 : vector<10x160xf32>
    %684 = vector.extract_strided_slice %344 {offsets = [2, 0], sizes = [10, 14], strides = [1, 1]} : vector<14x14xf32> to vector<10x14xf32>
    %c5_476 = arith.constant 5 : index
    %c2_477 = arith.constant 2 : index
    %c0_478 = arith.constant 0 : index
    %c0_479 = arith.constant 0 : index
    %685 = vector.load %arg5[%c5_476, %c2_477, %c0_478, %c0_479] : memref<6x5x14x160xf32, #tpu.memory_space<vmem>>, vector<1x1x14x160xf32>
    %686 = vector.shape_cast %685 : vector<1x1x14x160xf32> to vector<14x160xf32>
    %cst_480 = arith.constant dense<0.000000e+00> : vector<10x160xf32>
    %687 = tpu.matmul %684, %686, %cst_480 {dimension_numbers = #tpu.dot_dimension_numbers<[1], [0], [0], [1], [0, 0, 1, 1], [], []>} : vector<10x14xf32>, vector<14x160xf32>, vector<10x160xf32> -> vector<10x160xf32>
    %688 = arith.addf %683, %687 : vector<10x160xf32>
    %689 = vector.extract_strided_slice %344 {offsets = [3, 0], sizes = [10, 14], strides = [1, 1]} : vector<14x14xf32> to vector<10x14xf32>
    %c5_481 = arith.constant 5 : index
    %c3_482 = arith.constant 3 : index
    %c0_483 = arith.constant 0 : index
    %c0_484 = arith.constant 0 : index
    %690 = vector.load %arg5[%c5_481, %c3_482, %c0_483, %c0_484] : memref<6x5x14x160xf32, #tpu.memory_space<vmem>>, vector<1x1x14x160xf32>
    %691 = vector.shape_cast %690 : vector<1x1x14x160xf32> to vector<14x160xf32>
    %cst_485 = arith.constant dense<0.000000e+00> : vector<10x160xf32>
    %692 = tpu.matmul %689, %691, %cst_485 {dimension_numbers = #tpu.dot_dimension_numbers<[1], [0], [0], [1], [0, 0, 1, 1], [], []>} : vector<10x14xf32>, vector<14x160xf32>, vector<10x160xf32> -> vector<10x160xf32>
    %693 = arith.addf %688, %692 : vector<10x160xf32>
    %694 = vector.extract_strided_slice %344 {offsets = [4, 0], sizes = [10, 14], strides = [1, 1]} : vector<14x14xf32> to vector<10x14xf32>
    %c5_486 = arith.constant 5 : index
    %c4_487 = arith.constant 4 : index
    %c0_488 = arith.constant 0 : index
    %c0_489 = arith.constant 0 : index
    %695 = vector.load %arg5[%c5_486, %c4_487, %c0_488, %c0_489] : memref<6x5x14x160xf32, #tpu.memory_space<vmem>>, vector<1x1x14x160xf32>
    %696 = vector.shape_cast %695 : vector<1x1x14x160xf32> to vector<14x160xf32>
    %cst_490 = arith.constant dense<0.000000e+00> : vector<10x160xf32>
    %697 = tpu.matmul %694, %696, %cst_490 {dimension_numbers = #tpu.dot_dimension_numbers<[1], [0], [0], [1], [0, 0, 1, 1], [], []>} : vector<10x14xf32>, vector<14x160xf32>, vector<10x160xf32> -> vector<10x160xf32>
    %698 = arith.addf %693, %697 : vector<10x160xf32>
    %699 = vector.broadcast %345 : vector<1x160xf32> to vector<10x160xf32>
    %700 = arith.addf %698, %699 : vector<10x160xf32>
    %cst_491 = arith.constant 0.000000e+00 : f32
    %701 = vector.broadcast %cst_491 : f32 to vector<10x160xf32>
    %702 = arith.maximumf %700, %701 : vector<10x160xf32>
    %cst_492 = arith.constant dense<0.000000e+00> : vector<10x80xf32>
    %703 = tpu.matmul %702, %347, %cst_492 {dimension_numbers = #tpu.dot_dimension_numbers<[1], [0], [0], [1], [0, 0, 1, 1], [], []>} : vector<10x160xf32>, vector<160x80xf32>, vector<10x80xf32> -> vector<10x80xf32>
    %cst_493 = arith.constant dense<0.000000e+00> : vector<10x80xf32>
    %704 = tpu.matmul %702, %348, %cst_493 {dimension_numbers = #tpu.dot_dimension_numbers<[1], [0], [0], [1], [0, 0, 1, 1], [], []>} : vector<10x160xf32>, vector<160x80xf32>, vector<10x80xf32> -> vector<10x80xf32>
    %705 = arith.maximumf %703, %704 : vector<10x80xf32>
    %706 = vector.extract_strided_slice %705 {offsets = [0, 0], sizes = [9, 80], strides = [1, 1]} : vector<10x80xf32> to vector<9x80xf32>
    %707 = vector.extract_strided_slice %705 {offsets = [1, 0], sizes = [9, 80], strides = [1, 1]} : vector<10x80xf32> to vector<9x80xf32>
    %708 = arith.maximumf %706, %707 : vector<9x80xf32>
    %cst_494 = arith.constant dense<0.000000e+00> : vector<5x80xf32>
    %709 = tpu.matmul %346, %708, %cst_494 {dimension_numbers = #tpu.dot_dimension_numbers<[1], [0], [0], [1], [0, 0, 1, 1], [], []>} : vector<5x9xf32>, vector<9x80xf32>, vector<5x80xf32> -> vector<5x80xf32>
    %710 = vector.extract_strided_slice %709 {offsets = [0, 0], sizes = [1, 80], strides = [1, 1]} : vector<5x80xf32> to vector<1x80xf32>
    %c0_495 = arith.constant 0 : index
    %c0_496 = arith.constant 0 : index
    %c0_497 = arith.constant 0 : index
    %711 = vector.load %arg10[%c0_495, %c0_496, %c0_497] : memref<5x80x120xf32, #tpu.memory_space<vmem>>, vector<1x80x120xf32>
    %712 = vector.shape_cast %711 : vector<1x80x120xf32> to vector<80x120xf32>
    %cst_498 = arith.constant dense<0.000000e+00> : vector<1x120xf32>
    %713 = tpu.matmul %710, %712, %cst_498 {dimension_numbers = #tpu.dot_dimension_numbers<[1], [0], [0], [1], [0, 0, 1, 1], [], []>} : vector<1x80xf32>, vector<80x120xf32>, vector<1x120xf32> -> vector<1x120xf32>
    %714 = vector.extract_strided_slice %709 {offsets = [1, 0], sizes = [1, 80], strides = [1, 1]} : vector<5x80xf32> to vector<1x80xf32>
    %c1_499 = arith.constant 1 : index
    %c0_500 = arith.constant 0 : index
    %c0_501 = arith.constant 0 : index
    %715 = vector.load %arg10[%c1_499, %c0_500, %c0_501] : memref<5x80x120xf32, #tpu.memory_space<vmem>>, vector<1x80x120xf32>
    %716 = vector.shape_cast %715 : vector<1x80x120xf32> to vector<80x120xf32>
    %cst_502 = arith.constant dense<0.000000e+00> : vector<1x120xf32>
    %717 = tpu.matmul %714, %716, %cst_502 {dimension_numbers = #tpu.dot_dimension_numbers<[1], [0], [0], [1], [0, 0, 1, 1], [], []>} : vector<1x80xf32>, vector<80x120xf32>, vector<1x120xf32> -> vector<1x120xf32>
    %718 = arith.addf %713, %717 : vector<1x120xf32>
    %719 = vector.extract_strided_slice %709 {offsets = [2, 0], sizes = [1, 80], strides = [1, 1]} : vector<5x80xf32> to vector<1x80xf32>
    %c2_503 = arith.constant 2 : index
    %c0_504 = arith.constant 0 : index
    %c0_505 = arith.constant 0 : index
    %720 = vector.load %arg10[%c2_503, %c0_504, %c0_505] : memref<5x80x120xf32, #tpu.memory_space<vmem>>, vector<1x80x120xf32>
    %721 = vector.shape_cast %720 : vector<1x80x120xf32> to vector<80x120xf32>
    %cst_506 = arith.constant dense<0.000000e+00> : vector<1x120xf32>
    %722 = tpu.matmul %719, %721, %cst_506 {dimension_numbers = #tpu.dot_dimension_numbers<[1], [0], [0], [1], [0, 0, 1, 1], [], []>} : vector<1x80xf32>, vector<80x120xf32>, vector<1x120xf32> -> vector<1x120xf32>
    %723 = arith.addf %718, %722 : vector<1x120xf32>
    %724 = vector.extract_strided_slice %709 {offsets = [3, 0], sizes = [1, 80], strides = [1, 1]} : vector<5x80xf32> to vector<1x80xf32>
    %c3_507 = arith.constant 3 : index
    %c0_508 = arith.constant 0 : index
    %c0_509 = arith.constant 0 : index
    %725 = vector.load %arg10[%c3_507, %c0_508, %c0_509] : memref<5x80x120xf32, #tpu.memory_space<vmem>>, vector<1x80x120xf32>
    %726 = vector.shape_cast %725 : vector<1x80x120xf32> to vector<80x120xf32>
    %cst_510 = arith.constant dense<0.000000e+00> : vector<1x120xf32>
    %727 = tpu.matmul %724, %726, %cst_510 {dimension_numbers = #tpu.dot_dimension_numbers<[1], [0], [0], [1], [0, 0, 1, 1], [], []>} : vector<1x80xf32>, vector<80x120xf32>, vector<1x120xf32> -> vector<1x120xf32>
    %728 = arith.addf %723, %727 : vector<1x120xf32>
    %729 = vector.extract_strided_slice %709 {offsets = [4, 0], sizes = [1, 80], strides = [1, 1]} : vector<5x80xf32> to vector<1x80xf32>
    %c4_511 = arith.constant 4 : index
    %c0_512 = arith.constant 0 : index
    %c0_513 = arith.constant 0 : index
    %730 = vector.load %arg10[%c4_511, %c0_512, %c0_513] : memref<5x80x120xf32, #tpu.memory_space<vmem>>, vector<1x80x120xf32>
    %731 = vector.shape_cast %730 : vector<1x80x120xf32> to vector<80x120xf32>
    %cst_514 = arith.constant dense<0.000000e+00> : vector<1x120xf32>
    %732 = tpu.matmul %729, %731, %cst_514 {dimension_numbers = #tpu.dot_dimension_numbers<[1], [0], [0], [1], [0, 0, 1, 1], [], []>} : vector<1x80xf32>, vector<80x120xf32>, vector<1x120xf32> -> vector<1x120xf32>
    %733 = arith.addf %728, %732 : vector<1x120xf32>
    %734 = arith.addf %733, %349 : vector<1x120xf32>
    %cst_515 = arith.constant dense<0.000000e+00> : vector<1x84xf32>
    %735 = tpu.matmul %734, %350, %cst_515 {dimension_numbers = #tpu.dot_dimension_numbers<[1], [0], [0], [1], [0, 0, 1, 1], [], []>} : vector<1x120xf32>, vector<120x84xf32>, vector<1x84xf32> -> vector<1x84xf32>
    %736 = arith.addf %735, %351 : vector<1x84xf32>
    %cst_516 = arith.constant dense<0.000000e+00> : vector<1x10xf32>
    %737 = tpu.matmul %736, %352, %cst_516 {dimension_numbers = #tpu.dot_dimension_numbers<[1], [0], [0], [1], [0, 0, 1, 1], [], []>} : vector<1x84xf32>, vector<84x10xf32>, vector<1x10xf32> -> vector<1x10xf32>
    %738 = arith.addf %737, %353 : vector<1x10xf32>
    %c1_517 = arith.constant 1 : index
    %c0_518 = arith.constant 0 : index
    %c0_519 = arith.constant 0 : index
    %739 = vector.load %arg16[%c1_517, %c0_518, %c0_519] : memref<2x1x10xf32, #tpu.memory_space<vmem>>, vector<1x1x10xf32>
    %740 = vector.shape_cast %739 : vector<1x1x10xf32> to vector<1x10xf32>
    %741 = vector.shape_cast %738 : vector<1x10xf32> to vector<1x1x10xf32>
    tpu.vector_store %arg16[%c1_517, %c0_518, %c0_519], %741 {strides = array<i32>} : memref<2x1x10xf32, #tpu.memory_space<vmem>>, vector<1x1x10xf32>,
    return
  }
}

</mosaic_0001>

<bundles_post_ra>
// kernel: cnn_forward.1
= control target key start
LH: loop header
LB: loop body
LE: loop exit
PB: predicated region body
PF: predicated region fallthrough
CT: control target
= control target key end

     0   :  { %s21536_s0 = inlined_call_operand.vmem [shape: f32[2,1,30,30], index: 0, kind: input, shape index: {}]   ;;  %s21537_s1 = inlined_call_operand.hbm [shape: f32[6,9], index: 1, kind: input, shape index: {}]   ;;  %s21538_s2 = inlined_call_operand.vmem [shape: f32[6], index: 2, kind: input, shape index: {}]   ;;  %s21539_s3 = inlined_call_operand.hbm [shape: f32[14,27], index: 3, kind: input, shape index: {}]   ;;  %s21540_s4 = inlined_call_operand.vmem [shape: f32[27,14], index: 4, kind: input, shape index: {}]   ;;  %s21541_s5 = inlined_call_operand.hbm [shape: f32[6,5,14,160], index: 5, kind: input, shape index: {}]   ;;  %s21542_s6 = inlined_call_operand.hbm [shape: f32[1,160], index: 6, kind: input, shape index: {}]   ;;  %s21543_s7 = inlined_call_operand.hbm [shape: f32[5,9], index: 7, kind: input, shape index: {}]   ;;  %s21544_s8 = inlined_call_operand.vmem [shape: f32[160,80], index: 8, kind: input, shape index: {}]   ;;  %s21545_s9 = inlined_call_operand.hbm [shape: f32[160,80], index: 9, kind: input, shape index: {}]   ;;  %s21546_s10 = inlined_call_operand.vmem [shape: f32[5,80,120], index: 10, kind: input, shape index: {}]   ;;  %s21547_s11 = inlined_call_operand.hbm [shape: f32[1,120], index: 11, kind: input, shape index: {}]   ;;  %s21548_s12 = inlined_call_operand.vmem [shape: f32[120,84], index: 12, kind: input, shape index: {}]   ;;  %s21549_s13 = inlined_call_operand.hbm [shape: f32[1,84], index: 13, kind: input, shape index: {}]   ;;  %s21550_s14 = inlined_call_operand.vmem [shape: f32[84,10], index: 14, kind: input, shape index: {}]   ;;  %s21551_s15 = inlined_call_operand.hbm [shape: f32[1,10], index: 15, kind: input, shape index: {}]   ;;  %s21552_s16 = inlined_call_operand.hbm [shape: f32[2,1,10], index: 16, kind: output, shape index: {}]  }
   0x1   :  { %21750 = sst [smem:[#allocation71_spill]] %s21536_s0 }
   0x2   :  { %21751 = sst [smem:[#allocation72_spill]] %s21552_s16 }
   0x3   :  { %21 = vsyncpa [#allocation5], 0 }
   0x4   :  { %22 = vsyncpa [#allocation6], 0 }
   0x5   :  { %23 = vsyncpa [#allocation3], 0 }
   0x6   :  { %24 = vsyncpa [#allocation10], 0 }
   0x7   :  { %25 = vsyncpa [#allocation13], 0 }
   0x8   :  { %26 = vsyncpa [#allocation16], 0 }
   0x9   :  { %27 = vsyncpa [#allocation19], 0 }
   0xa   :  { %28 = vsyncpa [#allocation4], 0  ;;  %s16088_s21 = smov [#allocation9]   ;;  %s15852_s25 = scalar_lea.hbm %s21541_s5, 15360 }
   0xb   :  { %s68_s22 = sshll.u32 %s16088_s21, 4  ;;  %p15853_p0 = scmp.ne.s32.totalorder %s21541_s5, %s15852_s25  ;;  %s69_s22 = int_to_ptr.vmem [resolvable:$true] %s68_s22 }
   0xc   :  { %p15856_p1 = scmp.lt.u32.totalorder %s15852_s25, %s21541_s5 }
   0xe   :  { %p15858_p2 = pnand %p15856_p1, %p15853_p0 }
  0x10   :  { %15861 = shalt.err (!%p15858_p2)
}
  0x11   :  { %s15862_s30 = scalar_lea.vmem %s69_s22, 15360  ;;  %p15867_p4 = scmp.lt.s32.totalorder %s69_s22, %s69_s22 }
  0x12   :  { %p15863_p3 = scmp.ne.s32.totalorder %s69_s22, %s15862_s30  ;;  %p15868_p5 = scmp.lt.s32.totalorder %s15862_s30, %s15862_s30 }
  0x14   :  { %p15869_p6 = por %p15868_p5, %p15867_p4 }
  0x16   :  { %p15870_p7 = pnand %p15869_p6, %p15863_p3 }
  0x18   :  { %15873 = shalt.err (!%p15870_p7)
}
  0x19   :  { %s16089_s0 = smov 256   ;;  %s16090_s17 = smov 16  }
  0x1a   :  { %74 = dma.hbm_to_vmem [thread:$0]  %s21541_s5, 15360, %s69_s22, [#allocation10], %s16089_s0, %s16089_s0, %s16090_s17  }
  0x1b   :  { %s16091_s20 = smov [#allocation12]   ;;  %s16092_s23 = smov [#allocation15]  }
  0x1c   :  { %s91_s21 = sshll.u32 %s16091_s20, 4  ;;  %s117_s24 = sshll.u32 %s16092_s23, 4  ;;  %s92_s21 = int_to_ptr.vmem [resolvable:$true] %s91_s21  ;;  %s118_s24 = int_to_ptr.vmem [resolvable:$true] %s117_s24 }
  0x1d   :  { %s15874_s27 = scalar_lea.hbm %s21543_s7, 128 }
  0x1e   :  { %p15875_p8 = scmp.ne.s32.totalorder %s21543_s7, %s15874_s27  ;;  %p15878_p9 = scmp.lt.u32.totalorder %s15874_s27, %s21543_s7 }
  0x20   :  { %p15880_p10 = pnand %p15878_p9, %p15875_p8 }
  0x22   :  { %15883 = shalt.err (!%p15880_p10)
}
  0x23   :  { %s15884_s5 = scalar_lea.vmem %s92_s21, 128  ;;  %p15889_p12 = scmp.lt.s32.totalorder %s92_s21, %s92_s21 }
  0x24   :  { %p15885_p11 = scmp.ne.s32.totalorder %s92_s21, %s15884_s5  ;;  %p15890_p13 = scmp.lt.s32.totalorder %s15884_s5, %s15884_s5 }
  0x26   :  { %p15891_p0 = por %p15890_p13, %p15889_p12 }
  0x28   :  { %p15892_p1 = pnand %p15891_p0, %p15885_p11 }
  0x2a   :  { %15895 = shalt.err (!%p15892_p1)
}
  0x2b   :  { %94 = dma.hbm_to_vmem [thread:$0]  %s21543_s7, 128, %s92_s21, [#allocation13]  }
  0x2c   :  { %s15896_s20 = scalar_lea.hbm %s21547_s11, 16 }
  0x2d   :  { %p15897_p2 = scmp.ne.s32.totalorder %s21547_s11, %s15896_s20  ;;  %p15900_p3 = scmp.lt.u32.totalorder %s15896_s20, %s21547_s11 }
  0x2f   :  { %p15902_p4 = pnand %p15900_p3, %p15897_p2 }
  0x31   :  { %15905 = shalt.err (!%p15902_p4)
}
  0x32   :  { %s15906_s27 = scalar_lea.vmem %s118_s24, 16  ;;  %s15910_s28 = scalar_lea.vmem %s118_s24, 32 }
  0x33   :  { %p15907_p5 = scmp.ne.s32.totalorder %s118_s24, %s15906_s27  ;;  %p15911_p6 = scmp.lt.s32.totalorder %s118_s24, %s118_s24 }
  0x34   :  { %p15912_p7 = scmp.lt.s32.totalorder %s15910_s28, %s15906_s27 }
  0x36   :  { %p15913_p8 = por %p15912_p7, %p15911_p6 }
  0x38   :  { %p15914_p9 = pnand %p15913_p8, %p15907_p5 }
  0x3a   :  { %15917 = shalt.err (!%p15914_p9)
}
  0x3b   :  { %120 = dma.hbm_to_vmem [thread:$0]  %s21547_s11, 16, %s118_s24, [#allocation16]  }
  0x3c   :  { %s15918_s5 = scalar_lea.hbm %s21537_s1, 128 }
  0x3d   :  { %p15919_p10 = scmp.ne.s32.totalorder %s21537_s1, %s15918_s5  ;;  %p15922_p11 = scmp.lt.u32.totalorder %s15918_s5, %s21537_s1 }
  0x3f   :  { %p15924_p12 = pnand %p15922_p11, %p15919_p10 }
  0x41   :  { %15927 = shalt.err (!%p15924_p12)
}
  0x42   :  { %s16093_s20 = smov [#allocation2]   ;;  %s45_s25 = sshll.u32 %s21538_s2, 4  ;;  %s46_s25 = int_to_ptr.vmem [resolvable:$true] %s45_s25 }
  0x43   :  { %38 = dma.hbm_to_smem %s21537_s1, 128, %s16093_s20, [#allocation5]  }
  0x44   :  { %s15928_s26 = scalar_lea.vmem %s46_s25, 16  ;;  %p15933_p0 = scmp.lt.s32.totalorder %s46_s25, %s46_s25 }
  0x45   :  { %p15929_p13 = scmp.ne.s32.totalorder %s46_s25, %s15928_s26  ;;  %p15934_p1 = scmp.lt.s32.totalorder %s15928_s26, %s15928_s26 }
  0x47   :  { %p15935_p2 = por %p15934_p1, %p15933_p0 }
  0x49   :  { %p15936_p3 = pnand %p15935_p2, %p15929_p13 }
  0x4b   :  { %15939 = shalt.err (!%p15936_p3)
}
  0x4c   :  { %s16094_s27 = smov [#allocation7]   ;;  %s16095_s28 = smov [#allocation8]  }
  0x4d   :  { %48 = dma.vmem_to_smem %s46_s25, 16, %s16094_s27, [#allocation6]  }
  0x4e   :  { %s54_s7 = sshll.u32 %s16095_s28, 4  ;;  %s15940_s1 = scalar_lea.hbm %s21539_s3, 256  ;;  %s55_s7 = int_to_ptr.vmem [resolvable:$true] %s54_s7 }
  0x4f   :  { %p15941_p4 = scmp.ne.s32.totalorder %s21539_s3, %s15940_s1  ;;  %p15944_p5 = scmp.lt.u32.totalorder %s15940_s1, %s21539_s3 }
  0x51   :  { %p15946_p6 = pnand %p15944_p5, %p15941_p4 }
  0x53   :  { %15949 = shalt.err (!%p15946_p6)
}
  0x54   :  { %s15950_s0 = scalar_lea.vmem %s55_s7, 256  ;;  %p15955_p8 = scmp.lt.s32.totalorder %s55_s7, %s55_s7 }
  0x55   :  { %p15951_p7 = scmp.ne.s32.totalorder %s55_s7, %s15950_s0  ;;  %p15956_p9 = scmp.lt.s32.totalorder %s15950_s0, %s15950_s0 }
  0x57   :  { %p15957_p10 = por %p15956_p9, %p15955_p8 }
  0x59   :  { %p15958_p11 = pnand %p15957_p10, %p15951_p7 }
  0x5b   :  { %15961 = shalt.err (!%p15958_p11)
}
  0x5c   :  { %s16096_s18 = smov 128   ;;  %s16097_s19 = smov 8  }
  0x5d   :  { %60 = dma.hbm_to_vmem [thread:$0]  %s21539_s3, 256, %s55_s7, [#allocation3], %s16096_s18, %s16096_s18, %s16097_s19  }
  0x5e   :  { %s16098_s23 = smov [#allocation11]   ;;  %s16099_s24 = smov [#allocation14]  }
  0x5f   :  { %s81_s11 = sshll.u32 %s16098_s23, 4  ;;  %s102_s25 = sshll.u32 %s16099_s24, 4  ;;  %s82_s11 = int_to_ptr.vmem [resolvable:$true] %s81_s11  ;;  %s16262_s25 = int_to_ptr.vmem [resolvable:$true] %s102_s25 }
  0x60   :  { %s15962_s28 = scalar_lea.hbm %s21542_s6, 32 }
  0x61   :  { %p15963_p12 = scmp.ne.s32.totalorder %s21542_s6, %s15962_s28  ;;  %p15966_p13 = scmp.lt.u32.totalorder %s15962_s28, %s21542_s6 }
  0x63   :  { %p15968_p0 = pnand %p15966_p13, %p15963_p12 }
  0x65   :  { %15971 = shalt.err (!%p15968_p0)
}
  0x66   :  { %s15972_s3 = scalar_lea.vmem %s82_s11, 32  ;;  %p15977_p2 = scmp.lt.s32.totalorder %s82_s11, %s82_s11 }
  0x67   :  { %p15973_p1 = scmp.ne.s32.totalorder %s82_s11, %s15972_s3  ;;  %p15978_p3 = scmp.lt.s32.totalorder %s15972_s3, %s15972_s3 }
  0x69   :  { %p15979_p4 = por %p15978_p3, %p15977_p2 }
  0x6b   :  { %p15980_p5 = pnand %p15979_p4, %p15973_p1 }
  0x6d   :  { %15983 = shalt.err (!%p15980_p5)
}
  0x6e   :  { %84 = dma.hbm_to_vmem [thread:$0]  %s21542_s6, 32, %s82_s11, [#allocation10]  }
  0x6f   :  { %s15984_s0 = scalar_lea.hbm %s21545_s9, 2560 }
  0x70   :  { %p15985_p6 = scmp.ne.s32.totalorder %s21545_s9, %s15984_s0  ;;  %p15988_p7 = scmp.lt.u32.totalorder %s15984_s0, %s21545_s9 }
  0x72   :  { %p15990_p8 = pnand %p15988_p7, %p15985_p6 }
  0x74   :  { %15993 = shalt.err (!%p15990_p8)
}
  0x75   :  { %s15994_s26 = scalar_lea.vmem %s16262_s25, 2560  ;;  %p15999_p10 = scmp.lt.s32.totalorder %s16262_s25, %s16262_s25 }
  0x76   :  { %p15995_p9 = scmp.ne.s32.totalorder %s16262_s25, %s15994_s26  ;;  %p16000_p11 = scmp.lt.s32.totalorder %s15994_s26, %s15994_s26 }
  0x78   :  { %p16001_p12 = por %p16000_p11, %p15999_p10 }
  0x7a   :  { %p16002_p13 = pnand %p16001_p12, %p15995_p9 }
  0x7c   :  { %16005 = shalt.err (!%p16002_p13)
}
  0x7d   :  { %108 = dma.hbm_to_vmem [thread:$0]  %s21545_s9, 2560, %s16262_s25, [#allocation13], %s16096_s18, %s16096_s18, %s16097_s19  }
  0x7e   :  { %s16100_s27 = smov [#allocation17]   ;;  %s16101_s21 = smov [#allocation18]  }
  0x7f   :  { %s129_s28 = sshll.u32 %s16100_s27, 4  ;;  %s141_s29 = sshll.u32 %s16101_s21, 4  ;;  %s130_s28 = int_to_ptr.vmem [resolvable:$true] %s129_s28  ;;  %s142_s29 = int_to_ptr.vmem [resolvable:$true] %s141_s29 }
  0x80   :  { %s16006_s3 = scalar_lea.hbm %s21549_s13, 16 }
  0x81   :  { %p16007_p0 = scmp.ne.s32.totalorder %s21549_s13, %s16006_s3  ;;  %p16010_p1 = scmp.lt.u32.totalorder %s16006_s3, %s21549_s13 }
  0x83   :  { %p16012_p2 = pnand %p16010_p1, %p16007_p0 }
  0x85   :  { %16015 = shalt.err (!%p16012_p2)
}
  0x86   :  { %s16016_s9 = scalar_lea.vmem %s130_s28, 16  ;;  %s16020_s18 = scalar_lea.vmem %s130_s28, 32 }
  0x87   :  { %p16017_p3 = scmp.ne.s32.totalorder %s130_s28, %s16016_s9  ;;  %p16021_p4 = scmp.lt.s32.totalorder %s130_s28, %s130_s28 }
  0x88   :  { %p16022_p5 = scmp.lt.s32.totalorder %s16020_s18, %s16016_s9 }
  0x8a   :  { %p16023_p6 = por %p16022_p5, %p16021_p4 }
  0x8c   :  { %p16024_p7 = pnand %p16023_p6, %p16017_p3 }
  0x8e   :  { %16027 = shalt.err (!%p16024_p7)
}
  0x8f   :  { %132 = dma.hbm_to_vmem [thread:$0]  %s21549_s13, 16, %s130_s28, [#allocation16]  }
  0x90   :  { %s16028_s16 = scalar_lea.hbm %s21551_s15, 16 }
  0x91   :  { %p16029_p8 = scmp.ne.s32.totalorder %s21551_s15, %s16028_s16  ;;  %p16032_p9 = scmp.lt.u32.totalorder %s16028_s16, %s21551_s15 }
  0x93   :  { %p16034_p10 = pnand %p16032_p9, %p16029_p8 }
  0x95   :  { %16037 = shalt.err (!%p16034_p10)
}
  0x96   :  { %s16038_s11 = scalar_lea.vmem %s142_s29, 16  ;;  %s16042_s27 = scalar_lea.vmem %s142_s29, 32 }
  0x97   :  { %p16039_p11 = scmp.ne.s32.totalorder %s142_s29, %s16038_s11  ;;  %p16043_p12 = scmp.lt.s32.totalorder %s142_s29, %s142_s29 }
  0x98   :  { %p16044_p13 = scmp.lt.s32.totalorder %s16042_s27, %s16038_s11 }
  0x9a   :  { %p16045_p0 = por %p16044_p13, %p16043_p12 }
  0x9c   :  { %p16046_p1 = pnand %p16045_p0, %p16039_p11 }
  0x9e   :  { %16049 = shalt.err (!%p16046_p1)
}
  0x9f   :  { %144 = dma.hbm_to_vmem [thread:$0]  %s21551_s15, 16, %s142_s29, [#allocation19]  }
  0xa0   :  { %16072 = dma.done.wait [#allocation5], 128  }
  0xa1   :  { %16073 = vsyncadd [#allocation5], 4294967168 }
  0xa2   :  { %16074 = dma.done.wait [#allocation6], 16  }
  0xa3   :  { %16075 = vsyncadd [#allocation6], 4294967280 }
  0xa4   :  { %16076 = dma.done.wait [#allocation3], 256  }
  0xa5   :  { %16077 = vsyncadd [#allocation3], 4294967040 }
  0xa6   :  { %16078 = dma.done.wait [#allocation10], 15392  }
  0xa7   :  { %16079 = vsyncadd [#allocation10], 4294951904 }
  0xa8   :  { %16080 = dma.done.wait [#allocation13], 2688  }
  0xa9   :  { %16081 = vsyncadd [#allocation13], 4294964608 }
  0xaa   :  { %16082 = dma.done.wait [#allocation16], 32  }
  0xab   :  { %16083 = vsyncadd [#allocation16], 4294967264 }
  0xac   :  { %16084 = dma.done.wait [#allocation19], 16  }
  0xad   :  { %16085 = vsyncadd [#allocation19], 4294967280 }
  0xae   :  { %175 = sfence }
  0xaf   :  { %s13094_s21 = sld [smem:[#allocation2 + $0x1]]  ;;  %s13095_s1 = sld [smem:[#allocation2 + $0x2]]  ;;  %vm318_vm0 = vcmask 1046528   ;;  %vm495_vm1 = vcmask 1045504   ;;  %vm750_vm2 = vcmask 220160   ;;  %vm757_vm3 = vcmask 1042432  }
  0xb0   :  { %s13097_s30 = sld [smem:[#allocation2 + $0x4]]  ;;  %s21752_s29 = sld [smem:[#allocation71_spill]]  ;;  %vm16104_vm4 = vmmov 1   ;;  %vm5823_vm6 = vcmask 1044480   ;;  %vm5923_vm7 = vcmask 1043456   ;;  %vm5544_vm9 = vcmask 113664  }
  0xb1   :  { %s13098_s9 = sld [smem:[#allocation2 + $0x5]]  ;;  %s16102_s18 = smov 127   ;;  %vm17314_vm5 = vmpackc.low %vm757_vm3, %vm16104_vm4  ;;  %vm8507_vm10 = vcmask 261120   ;;  %vm16107_vm11 = vmmov 0   ;;  %vm8679_vm12 = vcmask 1040384   ;;  %vm8675_vm14 = vcmask 72704  }
  0xb2   :  { %s16103_s19 = smov 126   ;;  %s13100_s20 = sld [smem:[#allocation2 + $0x7]]  ;;  %vm19637_vm8 = vmpackc.low %vm495_vm1, %vm16104_vm4  ;;  %vm8776_vm15 = vcmask 654336   ;;  %vm9328_vm3 = vcmask 73728  }
  0xb3   :  { %s13101_s16 = sld [smem:[#allocation2 + $0x8]]  ;;  %s13119_s3 = sld [smem:[#allocation2 + $0x85]]  ;;  %vm20925_vm13 = vmpackc.low %vm8679_vm12, %vm16104_vm4 }
  0xb4   :  { %s13121_s15 = sld [smem:[#allocation2 + $0x87]]  ;;  %s13122_s7 = sld [smem:[#allocation2 + $0x88]] }
  0xb5   :  { %v16330_v2 = vstv %s13094_s21  ;;  %v16341_v6 = vstv %s13095_s1  ;;  %s13115_s21 = sld [smem:[#allocation2 + $0x81]]  ;;  %s13116_s1 = sld [smem:[#allocation2 + $0x82]] }
  0xb6   :  { %v16323_v0 = vld [vmem:[%s21752_s29 + $0x10] sm:$0xff]  ;;  %v16328_v1 = vld [vmem:[%s21752_s29] sm:$0xff]  ;;  %v16335_v3 = vld [vmem:[%s21752_s29 + $0x8] sm:$0xff]  ;;  %v16349_v9 = vstv %s13097_s30  ;;  %s13118_s30 = sld [smem:[#allocation2 + $0x84]]  ;;  %s190_s5 = sld [smem:[#allocation2]] }
  0xb7   :  { %v204_v4 = vmul.f32 %v16330_v2, %v16323_v0  ;;  %v202_v5 = vmul.f32 %v16330_v2, %v16328_v1  ;;  %v252_v7 = vmul.f32 %v16341_v6, %v16328_v1  ;;  %v203_v8 = vmul.f32 %v16330_v2, %v16335_v3  ;;  %v16360_v12 = vld [vmem:[%s21752_s29 + $0x18] sm:$0x3f]  ;;  %v16437_v62 = vld [vmem:[%s21752_s29 + $0x28] sm:$0xff]  ;;  %v16442_v63 = vld [vmem:[%s21752_s29 + $0x20] sm:$0xff]  ;;  %s13096_s2 = sld [smem:[#allocation2 + $0x3]]  ;;  %s13099_s22 = sld [smem:[#allocation2 + $0x6]] }
  0xb8   :  { %v254_v10 = vmul.f32 %v16341_v6, %v16323_v0  ;;  %v253_v11 = vmul.f32 %v16341_v6, %v16335_v3  ;;  %v352_v13 = vmul.f32 %v16349_v9, %v16335_v3  ;;  %v353_v14 = vmul.f32 %v16349_v9, %v16323_v0  ;;  %s13137_s25 = sld [smem:[#allocation2 + $0x101]]  ;;  %s13138_s0 = sld [smem:[#allocation2 + $0x102]] }
  0xb9   :  { %222 = vrot.lane.b32.xlu1 %v204_v4, %s16102_s18  ;;  %218 = vrot.lane.b32.xlu0 %v202_v5, %s16102_s18  ;;  %v351_v15 = vmul.f32 %v16349_v9, %v16328_v1  ;;  %v16368_v16 = vstv %s13098_s9  ;;  %v255_v17 = vmul.f32 %v16341_v6, %v16360_v12  ;;  %v205_v18 = vmul.f32 %v16330_v2, %v16360_v12  ;;  %s654_s9 = sld [smem:[#allocation7]]  ;;  %s13143_s13 = sld [smem:[#allocation2 + $0x107]] }
  0xba   :  { %v415_v19 = vmul.f32 %v16368_v16, %v16328_v1  ;;  %v416_v20 = vmul.f32 %v16368_v16, %v16335_v3  ;;  %v368_v21 = vrot.slane %v352_v13, 1  ;;  %v370_v22 = vrot.slane %v353_v14, 1  ;;  %v16470_v14 = vld [vmem:[%s21752_s29 + $0x38] sm:$0x3f]  ;;  %s13159_s23 = sld [smem:[#allocation2 + $0x181]]  ;;  %s13160_s24 = sld [smem:[#allocation2 + $0x182]] }
  0xbb   :  { %v367_v23 = vrot.slane %v351_v15, 1  ;;  %v354_v24 = vmul.f32 %v16349_v9, %v16360_v12  ;;  %v417_v26 = vmul.f32 %v16368_v16, %v16323_v0  ;;  %v418_v27 = vmul.f32 %v16368_v16, %v16360_v12  ;;  %s13162_s26 = sld [smem:[#allocation2 + $0x184]]  ;;  %s13163_s6 = sld [smem:[#allocation2 + $0x185]] }
  0xbc   :  { %v431_v25 = vrot.slane %v415_v19, 1  ;;  %v371_v28 = vsel %vm318_vm0, %v368_v21, %v370_v22  ;;  %v432_v30 = vrot.slane %v416_v20, 1  ;;  %v16394_v36 = vstv %s13100_s20  ;;  %s13140_s20 = sld [smem:[#allocation2 + $0x104]]  ;;  %s17429_s11 = sld [smem:[#allocation2 + $0x187]] }
  0xbd   :  { %268 = vrot.lane.b32.xlu1 %v252_v7, %s16103_s19  ;;  %220 = vrot.lane.b32.xlu0 %v203_v8, %s16102_s18  ;;  %v369_v29 = vsel %vm318_vm0, %v367_v23, %v368_v21  ;;  %v372_v31 = vrot.slane %v354_v24, 1  ;;  %v434_v32 = vrot.slane %v417_v26, 1  ;;  %v436_v33 = vrot.slane %v418_v27, 1  ;;  %v16453_v7 = vld [vmem:[%s21752_s29 + $0x30] sm:$0xff]  ;;  %s17439_s27 = sld [smem:[#allocation2 + $0x103]]  ;;  %s17494_s28 = sld [smem:[#allocation2 + $0x188]] }
  0xbe   :  { %v433_v34 = vsel %vm318_vm0, %v431_v25, %v432_v30  ;;  %v16399_v38 = vstv %s13101_s16  ;;  %v529_v40 = vmul.f32 %v16394_v36, %v16335_v3  ;;  %v530_v41 = vmul.f32 %v16394_v36, %v16323_v0  ;;  %s13141_s16 = sld [smem:[#allocation2 + $0x105]] }
  0xbf   :  { %v373_v35 = vsel %vm318_vm0, %v370_v22, %v372_v31  ;;  %v437_v37 = vsel %vm318_vm0, %v434_v32, %v436_v33  ;;  %v435_v39 = vsel %vm318_vm0, %v432_v30, %v434_v32  ;;  %v528_v42 = vmul.f32 %v16394_v36, %v16328_v1 }
  0xc0   :  { %v592_v43 = vmul.f32 %v16399_v38, %v16328_v1  ;;  %v593_v44 = vmul.f32 %v16399_v38, %v16335_v3  ;;  %v545_v45 = vrot.slane %v529_v40, 2  ;;  %v547_v46 = vrot.slane %v530_v41, 2 }
  0xc1   :  { %272 = vrot.lane.b32.xlu1 %v254_v10, %s16103_s19  ;;  %270 = vrot.lane.b32.xlu0 %v253_v11, %s16103_s19  ;;  %v544_v47 = vrot.slane %v528_v42, 2  ;;  %v531_v48 = vmul.f32 %v16394_v36, %v16360_v12  ;;  %v594_v51 = vmul.f32 %v16399_v38, %v16323_v0  ;;  %v595_v55 = vmul.f32 %v16399_v38, %v16360_v12 }
  0xc2   :  { %v608_v49 = vrot.slane %v592_v43, 2  ;;  %v609_v50 = vrot.slane %v593_v44, 2  ;;  %v548_v52 = vsel %vm495_vm1, %v545_v45, %v547_v46  ;;  %v207_v4 = vmul.f32 %v16330_v2, %v16437_v62 }
  0xc3   :  { %v546_v53 = vsel %vm495_vm1, %v544_v47, %v545_v45  ;;  %v549_v54 = vrot.slane %v531_v48, 2  ;;  %v611_v58 = vrot.slane %v594_v51, 2  ;;  %v613_v59 = vrot.slane %v595_v55, 2 }
  0xc4   :  { %v610_v56 = vsel %vm495_vm1, %v608_v49, %v609_v50  ;;  %v206_v5 = vmul.f32 %v16330_v2, %v16442_v63  ;;  %v256_v8 = vmul.f32 %v16341_v6, %v16442_v63  ;;  %v208_v10 = vmul.f32 %v16330_v2, %v16453_v7 }
  0xc5   :  { %274 = vrot.lane.b32.xlu1 %v255_v17, %s16103_s19  ;;  %224 = vrot.lane.b32.xlu0 %v205_v18, %s16102_s18  ;;  %v550_v57 = vsel %vm495_vm1, %v547_v46, %v549_v54  ;;  %v614_v60 = vsel %vm495_vm1, %v611_v58, %v613_v59  ;;  %v612_v61 = vsel %vm495_vm1, %v609_v50, %v611_v58  ;;  %v16518_v42 = vstv %s13116_s1  ;;  %s13117_s1 = sld [smem:[#allocation2 + $0x83]] }
  0xc6   :  { %v258_v11 = vmul.f32 %v16341_v6, %v16453_v7  ;;  %v257_v13 = vmul.f32 %v16341_v6, %v16437_v62  ;;  %v356_v15 = vmul.f32 %v16349_v9, %v16437_v62  ;;  %v357_v17 = vmul.f32 %v16349_v9, %v16453_v7 }
  0xc7   :  { %v355_v18 = vmul.f32 %v16349_v9, %v16442_v63  ;;  %v259_v19 = vmul.f32 %v16341_v6, %v16470_v14  ;;  %v209_v20 = vmul.f32 %v16330_v2, %v16470_v14  ;;  %v419_v21 = vmul.f32 %v16368_v16, %v16442_v63 }
  0xc8   :  { %v420_v22 = vmul.f32 %v16368_v16, %v16437_v62  ;;  %v375_v23 = vrot.slane %v356_v15, 1  ;;  %v377_v24 = vrot.slane %v357_v17, 1  ;;  %v358_v26 = vmul.f32 %v16349_v9, %v16470_v14 }
  0xc9   :  { %383 = vrot.lane.b32.xlu1 %v371_v28, %s16102_s18  ;;  %381 = vrot.lane.b32.xlu0 %v369_v29, %s16102_s18  ;;  %v374_v25 = vrot.slane %v355_v18, 1  ;;  %v438_v6 = vrot.slane %v419_v21, 1  ;;  %v421_v2 = vmul.f32 %v16368_v16, %v16453_v7  ;;  %v422_v27 = vmul.f32 %v16368_v16, %v16470_v14 }
  0xca   :  { %v378_v28 = vsel %vm318_vm0, %v375_v23, %v377_v24  ;;  %v439_v30 = vrot.slane %v420_v22, 1  ;;  %v1142_v43 = vmul.f32 %v16518_v42, %v16335_v3  ;;  %v1141_v44 = vmul.f32 %v16518_v42, %v16328_v1 }
  0xcb   :  { %v376_v29 = vsel %vm318_vm0, %v374_v25, %v375_v23  ;;  %v533_v45 = vmul.f32 %v16394_v36, %v16437_v62  ;;  %v534_v46 = vmul.f32 %v16394_v36, %v16453_v7  ;;  %v532_v47 = vmul.f32 %v16394_v36, %v16442_v63 }
  0xcc   :  { %v440_v9 = vsel %vm318_vm0, %v438_v6, %v439_v30  ;;  %v1143_v48 = vmul.f32 %v16518_v42, %v16323_v0  ;;  %v596_v58 = vmul.f32 %v16399_v38, %v16442_v63  ;;  %v1144_v18 = vmul.f32 %v16518_v42, %v16360_v12 }
  0xcd   :  { %445 = vrot.lane.b32.xlu1 %v433_v34, %s16103_s19  ;;  %385 = vrot.lane.b32.xlu0 %v373_v35, %s16102_s18  ;;  %v443_v34 = vrot.slane %v422_v27, 1  ;;  %v552_v49 = vrot.slane %v533_v45, 2  ;;  %v554_v50 = vrot.slane %v534_v46, 2  ;;  %v551_v51 = vrot.slane %v532_v47, 2 }
  0xce   :  { %v16608_v46 = vstv %s13122_s7  ;;  %s13145_s7 = sld [smem:[#allocation7 + $0x2]] }
  0xcf   :  { %v555_v55 = vsel %vm495_vm1, %v552_v49, %v554_v50 }
  0xd1   :  { %449 = vrot.lane.b32.xlu1 %v437_v37, %s16103_s19  ;;  %447 = vrot.lane.b32.xlu0 %v435_v39, %s16103_s19  ;;  %v16506_v37 = vstv %s13115_s21  ;;  %s17564_s21 = sld [smem:[#allocation2 + $0x106]] }
  0xd2   :  { %v1092_v39 = vmul.f32 %v16506_v37, %v16335_v3  ;;  %v1091_v40 = vmul.f32 %v16506_v37, %v16328_v1  ;;  %v1093_v41 = vmul.f32 %v16506_v37, %v16323_v0 }
  0xd5   :  { %451 = vrot.lane.b32.xlu1 %v436_v33, %s16103_s19  ;;  %387 = vrot.lane.b32.xlu0 %v372_v31, %s16102_s18  ;;  %v379_v31 = vrot.slane %v358_v26, 1  ;;  %v441_v33 = vrot.slane %v421_v2, 1 }
  0xd7   :  { %v380_v32 = vsel %vm318_vm0, %v377_v24, %v379_v31  ;;  %v444_v16 = vsel %vm318_vm0, %v441_v33, %v443_v34  ;;  %v442_v35 = vsel %vm318_vm0, %v439_v30, %v441_v33  ;;  %v16574_v24 = vstv %s13119_s3  ;;  %s13114_s3 = sld [smem:[#allocation2 + $0x80]] }
  0xd8   :  { %v1304_v26 = vmul.f32 %v16574_v24, %v16335_v3  ;;  %v1305_v27 = vmul.f32 %v16574_v24, %v16323_v0 }
  0xd9   :  { %560 = vrot.lane.b32.xlu1 %v548_v52, %s16102_s18  ;;  %558 = vrot.lane.b32.xlu0 %v546_v53, %s16102_s18  ;;  %v535_v52 = vmul.f32 %v16394_v36, %v16470_v14  ;;  %v597_v53 = vmul.f32 %v16399_v38, %v16437_v62  ;;  %v1094_v36 = vmul.f32 %v16506_v37, %v16360_v12 }
  0xda   :  { %v1320_v30 = vrot.slane %v1304_v26, 1 }
  0xdd   :  { %622 = vrot.lane.b32.xlu1 %v610_v56, %s16103_s19  ;;  %562 = vrot.lane.b32.xlu0 %v550_v57, %s16102_s18  ;;  %v553_v56 = vsel %vm495_vm1, %v551_v51, %v552_v49  ;;  %v556_v57 = vrot.slane %v535_v52, 2  ;;  %v1479_v52 = vmul.f32 %v16608_v46, %v16328_v1 }
  0xe1   :  { %626 = vrot.lane.b32.xlu1 %v614_v60, %s16103_s19  ;;  %624 = vrot.lane.b32.xlu0 %v612_v61, %s16103_s19  ;;  %v599_v61 = vmul.f32 %v16399_v38, %v16470_v14 }
  0xe5   :  { %628 = vrot.lane.b32.xlu1 %v613_v59, %s16103_s19  ;;  %564 = vrot.lane.b32.xlu0 %v549_v54, %s16102_s18  ;;  %v598_v54 = vmul.f32 %v16399_v38, %v16453_v7  ;;  %v616_v59 = vrot.slane %v597_v53, 2  ;;  %v1480_v53 = vmul.f32 %v16608_v46, %v16335_v3 }
  0xe7   :  { %v618_v60 = vrot.slane %v598_v54, 2 }
  0xe9   :  { %228 = vrot.lane.b32.xlu1 %v207_v4, %s16102_s18  ;;  %226 = vrot.lane.b32.xlu0 %v206_v5, %s16102_s18  ;;  %v557_v4 = vsel %vm495_vm1, %v554_v50, %v556_v57  ;;  %v615_v5 = vrot.slane %v596_v58, 2 }
  0xed   :  { %276 = vrot.lane.b32.xlu1 %v256_v8, %s16103_s19  ;;  %230 = vrot.lane.b32.xlu0 %v208_v10, %s16102_s18  ;;  %v16555_v8 = vstv %s13118_s30  ;;  %v619_v10 = vsel %vm495_vm1, %v616_v59, %v618_v60  ;;  %s13144_s30 = sld [smem:[#allocation2 + $0x108]] }
  0xee   :  { %v1240_v15 = vmul.f32 %v16555_v8, %v16335_v3  ;;  %v1241_v38 = vmul.f32 %v16555_v8, %v16323_v0  ;;  %v1239_v17 = vmul.f32 %v16555_v8, %v16328_v1 }
  0xf0   :  { %v1256_v21 = vrot.slane %v1240_v15, 1  ;;  %v1258_v22 = vrot.slane %v1241_v38, 1  ;;  %v1255_v23 = vrot.slane %v1239_v17, 1 }
  0xf1   :  { %280 = vrot.lane.b32.xlu1 %v258_v11, %s16103_s19  ;;  %278 = vrot.lane.b32.xlu0 %v257_v13, %s16103_s19  ;;  %v620_v11 = vrot.slane %v599_v61, 2  ;;  %v617_v13 = vsel %vm495_vm1, %v615_v5, %v616_v59  ;;  %v16626_v59 = vstv %s13096_s2  ;;  %v1496_v61 = vrot.slane %v1480_v53, 2  ;;  %s17137_s2 = sld [smem:[#allocation7 + $0x1]] }
  0xf2   :  { %v1259_v6 = vsel %vm318_vm0, %v1256_v21, %v1258_v22  ;;  %v1257_v2 = vsel %vm318_vm0, %v1255_v23, %v1256_v21  ;;  %v1481_v5 = vmul.f32 %v16608_v46, %v16323_v0  ;;  %v303_v38 = vmul.f32 %v16626_v59, %v16335_v3 }
  0xf3   :  { %v302_v17 = vmul.f32 %v16626_v59, %v16328_v1 }
  0xf5   :  { %282 = vrot.lane.b32.xlu1 %v259_v19, %s16103_s19  ;;  %232 = vrot.lane.b32.xlu0 %v209_v20, %s16102_s18  ;;  %v621_v19 = vsel %vm495_vm1, %v618_v60, %v620_v11  ;;  %v1242_v20 = vmul.f32 %v16555_v8, %v16360_v12  ;;  %v1495_v60 = vrot.slane %v1479_v52, 2 }
  0xf7   :  { %v1260_v25 = vrot.slane %v1242_v20, 1  ;;  %v1498_v20 = vrot.slane %v1481_v5, 2  ;;  %v1096_v5 = vmul.f32 %v16506_v37, %v16437_v62 }
  0xf9   :  { %391 = vrot.lane.b32.xlu1 %v378_v28, %s16102_s18  ;;  %389 = vrot.lane.b32.xlu0 %v376_v29, %s16102_s18  ;;  %v1303_v28 = vmul.f32 %v16574_v24, %v16328_v1  ;;  %v1261_v29 = vsel %vm318_vm0, %v1258_v22, %v1260_v25  ;;  %v304_v22 = vmul.f32 %v16626_v59, %v16323_v0 }
  0xfd   :  { %453 = vrot.lane.b32.xlu1 %v440_v9, %s16103_s19  ;;  %393 = vrot.lane.b32.xlu0 %v380_v32, %s16102_s18  ;;  %v1319_v9 = vrot.slane %v1303_v28, 1  ;;  %v1306_v32 = vmul.f32 %v16574_v24, %v16360_v12 }
 0x101   :  { %457 = vrot.lane.b32.xlu1 %v444_v16, %s16103_s19  ;;  %455 = vrot.lane.b32.xlu0 %v442_v35, %s16103_s19  ;;  %v1324_v16 = vrot.slane %v1306_v32, 1  ;;  %v16595_v35 = vstv %s13121_s15  ;;  %v305_v32 = vmul.f32 %v16626_v59, %v16360_v12  ;;  %s16999_s15 = sld [smem:[#allocation2 + $0x86]] }
 0x102   :  { %v1418_v54 = vmul.f32 %v16595_v35, %v16360_v12 }
 0x105   :  { %1109 = vrot.lane.b32.xlu1 %v1092_v39, %s16102_s18  ;;  %1107 = vrot.lane.b32.xlu0 %v1091_v40, %s16102_s18 }
 0x109   :  { %395 = vrot.lane.b32.xlu1 %v379_v31, %s16102_s18  ;;  %1111 = vrot.lane.b32.xlu0 %v1093_v41, %s16102_s18  ;;  %v1322_v31 = vrot.slane %v1305_v27, 1  ;;  %v1416_v41 = vmul.f32 %v16595_v35, %v16335_v3 }
 0x10b   :  { %v1323_v33 = vsel %vm318_vm0, %v1320_v30, %v1322_v31  ;;  %v1325_v45 = vsel %vm318_vm0, %v1322_v31, %v1324_v16  ;;  %v1432_v49 = vrot.slane %v1416_v41, 2  ;;  %v322_v31 = vrot.slane %v304_v22, 1 }
 0x10d   :  { %1159 = vrot.lane.b32.xlu1 %v1142_v43, %s16103_s19  ;;  %1157 = vrot.lane.b32.xlu0 %v1141_v44, %s16103_s19  ;;  %v1417_v43 = vmul.f32 %v16595_v35, %v16323_v0  ;;  %v1415_v44 = vmul.f32 %v16595_v35, %v16328_v1 }
 0x10f   :  { %v1434_v50 = vrot.slane %v1417_v43, 2  ;;  %v1431_v51 = vrot.slane %v1415_v44, 2 }
 0x111   :  { %459 = vrot.lane.b32.xlu1 %v443_v34, %s16103_s19  ;;  %1161 = vrot.lane.b32.xlu0 %v1143_v48, %s16103_s19  ;;  %v1321_v34 = vsel %vm318_vm0, %v1319_v9, %v1320_v30  ;;  %v1435_v58 = vsel %vm495_vm1, %v1432_v49, %v1434_v50  ;;  %v16650_v30 = vstv %s13099_s22 }
 0x112   :  { %v480_v43 = vmul.f32 %v16650_v30, %v16335_v3  ;;  %v479_v44 = vmul.f32 %v16650_v30, %v16328_v1  ;;  %v481_v52 = vmul.f32 %v16650_v30, %v16323_v0 }
 0x115   :  { %568 = vrot.lane.b32.xlu1 %v555_v55, %s16102_s18  ;;  %566 = vrot.lane.b32.xlu0 %v553_v56, %s16102_s18 }
 0x119   :  { %1113 = vrot.lane.b32.xlu1 %v1094_v36, %s16102_s18  ;;  %570 = vrot.lane.b32.xlu0 %v557_v4, %s16102_s18  ;;  %v1433_v36 = vsel %vm495_vm1, %v1431_v51, %v1432_v49  ;;  %v1436_v4 = vrot.slane %v1418_v54, 2 }
 0x11d   :  { %632 = vrot.lane.b32.xlu1 %v619_v10, %s16103_s19  ;;  %630 = vrot.lane.b32.xlu0 %v617_v13, %s16103_s19  ;;  %v1482_v10 = vmul.f32 %v16608_v46, %v16360_v12 }
 0x11f   :  { %v1500_v21 = vrot.slane %v1482_v10, 2 }
 0x121   :  { %1163 = vrot.lane.b32.xlu1 %v1144_v18, %s16103_s19  ;;  %634 = vrot.lane.b32.xlu0 %v621_v19, %s16103_s19  ;;  %v1497_v18 = vsel %vm495_vm1, %v1495_v60, %v1496_v61  ;;  %v1437_v19 = vsel %vm495_vm1, %v1434_v50, %v1436_v4  ;;  %v1501_v28 = vsel %vm495_vm1, %v1498_v20, %v1500_v21  ;;  %v324_v50 = vrot.slane %v305_v32, 1 }
 0x122   :  { %v497_v60 = vrot.slane %v480_v43, 2 }
 0x125   :  { %1271 = vrot.lane.b32.xlu1 %v1259_v6, %s16102_s18  ;;  %1269 = vrot.lane.b32.xlu0 %v1257_v2, %s16102_s18  ;;  %v320_v6 = vrot.slane %v303_v38, 1  ;;  %v319_v2 = vrot.slane %v302_v17, 1 }
 0x127   :  { %v323_v49 = vsel %vm318_vm0, %v320_v6, %v322_v31 }
 0x129   :  { %572 = vrot.lane.b32.xlu1 %v556_v57, %s16102_s18  ;;  %1273 = vrot.lane.b32.xlu0 %v1261_v29, %s16102_s18  ;;  %v16620_v57 = vstv %s190_s5  ;;  %v1499_v29 = vsel %vm495_vm1, %v1496_v61, %v1498_v20  ;;  %v496_v61 = vrot.slane %v479_v44, 2  ;;  %s13181_s5 = sld [smem:[#allocation2 + $0x201]] }
 0x12a   :  { %v192_v15 = vmul.f32 %v16620_v57, %v16328_v1  ;;  %v193_v26 = vmul.f32 %v16620_v57, %v16335_v3  ;;  %v195_v41 = vmul.f32 %v16620_v57, %v16360_v12 }
 0x12b   :  { %v16597_v39 = vpop.permute.xlu1 %222  ;;  %v219_v40 = vpop.permute.xlu0 %218  ;;  %v498_v20 = vsel %vm495_vm1, %v496_v61, %v497_v60 }
 0x12c   :  { %v242_v27 = vadd.f32 %v219_v40, %v192_v15  ;;  %v321_v40 = vsel %vm318_vm0, %v319_v2, %v320_v6 }
 0x12d   :  { %1335 = vrot.lane.b32.xlu1 %v1323_v33, %s16103_s19  ;;  %1333 = vrot.lane.b32.xlu0 %v1321_v34, %s16103_s19  ;;  %v194_v34 = vmul.f32 %v16620_v57, %v16323_v0 }
 0x12f   :  { %v269_v47 = vpop.permute.xlu1 %268  ;;  %v221_v48 = vpop.permute.xlu0 %220  ;;  %v244_v53 = vadd.f32 %v16597_v39, %v194_v34  ;;  %v325_v39 = vsel %vm318_vm0, %v322_v31, %v324_v50 }
 0x131   :  { %636 = vrot.lane.b32.xlu1 %v620_v11, %s16103_s19  ;;  %1337 = vrot.lane.b32.xlu0 %v1325_v45, %s16103_s19  ;;  %v243_v45 = vadd.f32 %v221_v48, %v193_v26  ;;  %v1095_v48 = vmul.f32 %v16506_v37, %v16442_v63 }
 0x133   :  { %v16618_v55 = vpop.permute.xlu1 %272  ;;  %v271_v56 = vpop.permute.xlu0 %270 }
 0x134   :  { %v293_v54 = vadd.f32 %v271_v56, %v243_v45  ;;  %v294_v10 = vadd.f32 %v16618_v55, %v244_v53  ;;  %v1097_v55 = vmul.f32 %v16506_v37, %v16453_v7  ;;  %v16694_v45 = vstv %s654_s9 }
 0x135   :  { %1339 = vrot.lane.b32.xlu1 %v1324_v16, %s16103_s19  ;;  %1275 = vrot.lane.b32.xlu0 %v1260_v25, %s16102_s18  ;;  %v292_v16 = vadd.f32 %v269_v47, %v242_v27 }
 0x136   :  { %v342_v17 = vadd.f32 %v323_v49, %v293_v54 }
 0x137   :  { %v275_v11 = vpop.permute.xlu1 %274  ;;  %v225_v13 = vpop.permute.xlu0 %224 }
 0x139   :  { %1447 = vrot.lane.b32.xlu1 %v1435_v58, %s16102_s18  ;;  %1445 = vrot.lane.b32.xlu0 %v1433_v36, %s16102_s18  ;;  %v245_v58 = vadd.f32 %v225_v13, %v195_v41  ;;  %v341_v36 = vadd.f32 %v321_v40, %v292_v16 }
 0x13b   :  { %v384_v23 = vpop.permute.xlu1 %383  ;;  %v382_v25 = vpop.permute.xlu0 %381  ;;  %v295_v38 = vadd.f32 %v275_v11, %v245_v58 }
 0x13c   :  { %v405_v15 = vadd.f32 %v382_v25, %v341_v36  ;;  %v406_v22 = vadd.f32 %v384_v23, %v342_v17  ;;  %v343_v25 = vadd.f32 %v325_v39, %v294_v10  ;;  %v1147_v23 = vmul.f32 %v16518_v42, %v16453_v7 }
 0x13d   :  { %1509 = vrot.lane.b32.xlu1 %v1497_v18, %s16103_s19  ;;  %1449 = vrot.lane.b32.xlu0 %v1437_v19, %s16102_s18  ;;  %v499_v19 = vrot.slane %v481_v52, 2  ;;  %v307_v10 = vmul.f32 %v16626_v59, %v16437_v62  ;;  %v1244_v17 = vmul.f32 %v16555_v8, %v16437_v62 }
 0x13f   :  { %v446_v9 = vpop.permute.xlu1 %445  ;;  %v386_v33 = vpop.permute.xlu0 %385  ;;  %v500_v31 = vsel %vm495_vm1, %v497_v60, %v499_v19 }
 0x140   :  { %v469_v18 = vadd.f32 %v446_v9, %v405_v15  ;;  %v407_v2 = vadd.f32 %v386_v33, %v343_v25  ;;  %v1146_v9 = vmul.f32 %v16518_v42, %v16437_v62  ;;  %v306_v15 = vmul.f32 %v16626_v59, %v16442_v63 }
 0x141   :  { %1513 = vrot.lane.b32.xlu1 %v1501_v28, %s16103_s19  ;;  %1511 = vrot.lane.b32.xlu0 %v1499_v29, %s16103_s19  ;;  %v344_v28 = vadd.f32 %v324_v50, %v295_v38  ;;  %v1243_v38 = vmul.f32 %v16555_v8, %v16442_v63  ;;  %v308_v25 = vmul.f32 %v16626_v59, %v16453_v7 }
 0x142   :  { %v518_v29 = vadd.f32 %v498_v20, %v469_v18  ;;  %v197_v20 = vmul.f32 %v16620_v57, %v16437_v62 }
 0x143   :  { %v450_v47 = vpop.permute.xlu1 %449  ;;  %v448_v51 = vpop.permute.xlu0 %447 }
 0x144   :  { %v470_v27 = vadd.f32 %v448_v51, %v406_v22  ;;  %v471_v32 = vadd.f32 %v450_v47, %v407_v2 }
 0x145   :  { %1451 = vrot.lane.b32.xlu0 %v1436_v4, %s16102_s18  ;;  %1515 = vrot.lane.b32.xlu1 %v1500_v21, %s16103_s19  ;;  %v482_v4 = vmul.f32 %v16650_v30, %v16360_v12  ;;  %v1145_v21 = vmul.f32 %v16518_v42, %v16442_v63 }
 0x146   :  { %v519_v43 = vadd.f32 %v500_v31, %v470_v27  ;;  %v1262_v31 = vrot.slane %v1243_v38, 1  ;;  %v199_v38 = vmul.f32 %v16620_v57, %v16470_v14 }
 0x147   :  { %v452_v56 = vpop.permute.xlu1 %451  ;;  %v388_v13 = vpop.permute.xlu0 %387  ;;  %v501_v6 = vrot.slane %v482_v4, 2  ;;  %v196_v4 = vmul.f32 %v16620_v57, %v16442_v63 }
 0x148   :  { %v408_v34 = vadd.f32 %v388_v13, %v344_v28  ;;  %v198_v28 = vmul.f32 %v16620_v57, %v16453_v7  ;;  %v484_v57 = vmul.f32 %v16650_v30, %v16437_v62 }
 0x149   :  { %1115 = vrot.lane.b32.xlu0 %v1095_v48, %s16102_s18  ;;  %1117 = vrot.lane.b32.xlu1 %v1096_v5, %s16102_s18  ;;  %v502_v33 = vsel %vm495_vm1, %v499_v19, %v501_v6 }
 0x14a   :  { %v472_v49 = vadd.f32 %v452_v56, %v408_v34  ;;  %v520_v51 = vadd.f32 %v502_v33, %v471_v32  ;;  %v329_v33 = vrot.slane %v308_v25, 1 }
 0x14b   :  { %v561_v26 = vpop.permute.xlu1 %560  ;;  %v559_v11 = vpop.permute.xlu0 %558 }
 0x14c   :  { %v582_v16 = vadd.f32 %v559_v11, %v518_v29  ;;  %v583_v50 = vadd.f32 %v561_v26, %v519_v43  ;;  %v521_v61 = vadd.f32 %v501_v6, %v472_v49  ;;  %v327_v26 = vrot.slane %v307_v10, 1 }
 0x14d   :  { %1119 = vrot.lane.b32.xlu0 %v1097_v55, %s16102_s18  ;;  %1165 = vrot.lane.b32.xlu1 %v1145_v21, %s16103_s19  ;;  %v326_v11 = vrot.slane %v306_v15, 1  ;;  %v16729_v6 = vmul.f32 %v16626_v59, %v16470_v14  ;;  %v1098_v29 = vmul.f32 %v16506_v37, %v16470_v14  ;;  %v16743_v59 = vmul.f32 %v16555_v8, %v16470_v14 }
 0x14e   :  { %v1308_v37 = vmul.f32 %v16574_v24, %v16437_v62  ;;  %v330_v10 = vsel %vm318_vm0, %v327_v26, %v329_v33 }
 0x14f   :  { %v623_v41 = vpop.permute.xlu1 %622  ;;  %v563_v40 = vpop.permute.xlu0 %562  ;;  %v331_v43 = vrot.slane %v16729_v6, 1  ;;  %v483_v6 = vmul.f32 %v16650_v30, %v16442_v63 }
 0x150   :  { %v646_v44 = vadd.f32 %v623_v41, %v582_v16  ;;  %v584_v54 = vadd.f32 %v563_v40, %v520_v51  ;;  %v328_v40 = vsel %vm318_vm0, %v326_v11, %v327_v26  ;;  %v16777_v11 = vmul.f32 %v16574_v24, %v16470_v14 }
 0x151   :  { %1167 = vrot.lane.b32.xlu0 %v1146_v9, %s16103_s19  ;;  %1169 = vrot.lane.b32.xlu1 %v1147_v23, %s16103_s19  ;;  %v1263_v9 = vrot.slane %v1244_v17, 1  ;;  %v1245_v23 = vmul.f32 %v16555_v8, %v16453_v7  ;;  %v332_v15 = vsel %vm318_vm0, %v329_v33, %v331_v43  ;;  %v1327_v17 = vrot.slane %v1308_v37, 1 }
 0x152   :  { %v16699_v47 = vadd.f32 %v16694_v45, %v646_v44  ;;  %v504_v33 = vrot.slane %v484_v57, 2  ;;  %v16794_v37 = vmul.f32 %v16650_v30, %v16470_v14 }
 0x153   :  { %v627_v52 = vpop.permute.xlu1 %626  ;;  %v625_v53 = vpop.permute.xlu0 %624  ;;  %v1264_v51 = vsel %vm318_vm0, %v1262_v31, %v1263_v9 }
 0x154   :  { %v647_v58 = vadd.f32 %v625_v53, %v583_v50  ;;  %v648_v36 = vadd.f32 %v627_v52, %v584_v54  ;;  %v21558_v39 = vmax.f32 %v16699_v47, 0.0  ;;  %v1265_v52 = vrot.slane %v1245_v23, 1 }
 0x155   :  { %v1267_v53 = vrot.slane %v16743_v59, 1  ;;  %v1309_v54 = vmul.f32 %v16574_v24, %v16453_v7 }
 0x156   :  { %v16702_v60 = vadd.f32 %v16694_v45, %v647_v58  ;;  %v16717_v18 = vadd.f32 %v16694_v45, %v648_v36  ;;  %v1148_v58 = vmul.f32 %v16518_v42, %v16470_v14  ;;  %v1266_v26 = vsel %vm318_vm0, %v1263_v9, %v1265_v52 }
 0x157   :  { %v629_v48 = vpop.permute.xlu1 %628  ;;  %v565_v5 = vpop.permute.xlu0 %564  ;;  %v1268_v42 = vsel %vm318_vm0, %v1265_v52, %v1267_v53  ;;  %v485_v9 = vmul.f32 %v16650_v30, %v16453_v7  ;;  %v508_v30 = vrot.slane %v16794_v37, 2 }
 0x158   :  { %v21557_v56 = vmax.f32 %v16702_v60, 0.0  ;;  %v585_v13 = vadd.f32 %v565_v5, %v521_v61  ;;  %21753 = vst [vmem:[#allocation29_spill] sm:$0xff] %v16717_v18  ;;  %v21555_v32 = vmax.f32 %v16717_v18, 0.0  ;;  %v1307_v61 = vmul.f32 %v16574_v24, %v16442_v63 }
 0x15a   :  { %v649_v19 = vadd.f32 %v629_v48, %v585_v13  ;;  %v15716_v55 = vpack.i.bf16 %v21557_v56, %v21558_v39 }
 0x15b   :  { %v229_v21 = vpop.permute.xlu1 %228  ;;  %v227_v22 = vpop.permute.xlu0 %226 }
 0x15c   :  { %v16732_v2 = vadd.f32 %v16694_v45, %v649_v19  ;;  %v246_v27 = vadd.f32 %v227_v22, %v196_v4  ;;  %15717 = vrot.lane.b32.xlu0 %v15716_v55, %s16102_s18  ;;  %v247_v44 = vadd.f32 %v229_v21, %v197_v20  ;;  %v1329_v19 = vrot.slane %v1309_v54, 1 }
 0x15d   :  { %v1326_v55 = vrot.slane %v1307_v61, 1  ;;  %v506_v54 = vrot.slane %v485_v9, 2 }
 0x15e   :  { %v21556_v34 = vmax.f32 %v16732_v2, 0.0 }
 0x15f   :  { %v277_v16 = vpop.permute.xlu1 %276  ;;  %v231_v41 = vpop.permute.xlu0 %230  ;;  %v1328_v24 = vsel %vm318_vm0, %v1326_v55, %v1327_v17  ;;  %v1419_v55 = vmul.f32 %v16595_v35, %v16442_v63 }
 0x160   :  { %v296_v49 = vadd.f32 %v277_v16, %v246_v27  ;;  %v248_v50 = vadd.f32 %v231_v41, %v198_v28  ;;  %1121 = vrot.lane.b32.xlu0 %v1098_v29, %s16102_s18  ;;  %v15721_v8 = vpack.i.bf16 %v21556_v34, %v21555_v32  ;;  %v1330_v28 = vsel %vm318_vm0, %v1327_v17, %v1329_v19 }
 0x161   :  { %v16785_v29 = vstv %s13137_s25  ;;  %v1331_v41 = vrot.slane %v16777_v11, 1  ;;  %v16887_v11 = vld [vmem:[%s21752_s29] sm:$0xff]  ;;  %s13202_s25 = sld [smem:[#allocation2 + $0x280]] }
 0x162   :  { %15722 = vrot.lane.b32.xlu1 %v15721_v8, %s16102_s18  ;;  %v345_v36 = vadd.f32 %v328_v40, %v296_v49  ;;  %v503_v40 = vrot.slane %v483_v6, 2  ;;  %v1967_v49 = vmul.f32 %v16785_v29, %v16328_v1  ;;  %v1438_v6 = vrot.slane %v1419_v55, 2 }
 0x163   :  { %v281_v48 = vpop.permute.xlu1 %280  ;;  %v279_v5 = vpop.permute.xlu0 %278  ;;  %v1332_v52 = vsel %vm318_vm0, %v1329_v19, %v1331_v41 }
 0x164   :  { %v298_v13 = vadd.f32 %v281_v48, %v248_v50  ;;  %v297_v4 = vadd.f32 %v279_v5, %v247_v44  ;;  %1277 = vrot.lane.b32.xlu0 %v1264_v51, %s16102_s18  ;;  %v16808_v48 = vstv %s13138_s0  ;;  %s13205_s0 = sld [smem:[#allocation2 + $0x283]] }
 0x166   :  { %1171 = vrot.lane.b32.xlu1 %v1148_v58, %s16103_s19  ;;  %v346_v20 = vadd.f32 %v330_v10, %v297_v4  ;;  %v347_v21 = vadd.f32 %v332_v15, %v298_v13  ;;  %v505_v58 = vsel %vm495_vm1, %v503_v40, %v504_v33  ;;  %v1968_v10 = vmul.f32 %v16785_v29, %v16335_v3 }
 0x167   :  { %v283_v22 = vpop.permute.xlu1 %282  ;;  %v233_v25 = vpop.permute.xlu0 %232 }
 0x168   :  { %v249_v27 = vadd.f32 %v233_v25, %v199_v38  ;;  %1281 = vrot.lane.b32.xlu0 %v1268_v42, %s16102_s18  ;;  %v507_v38 = vsel %vm495_vm1, %v504_v33, %v506_v54  ;;  %v509_v42 = vsel %vm495_vm1, %v506_v54, %v508_v30 }
 0x16a   :  { %v299_v31 = vadd.f32 %v283_v22, %v249_v27  ;;  %1279 = vrot.lane.b32.xlu1 %v1266_v26, %s16102_s18 }
 0x16b   :  { %v392_v23 = vpop.permute.xlu1 %391  ;;  %v390_v16 = vpop.permute.xlu0 %389 }
 0x16c   :  { %v409_v44 = vadd.f32 %v390_v16, %v345_v36  ;;  %1343 = vrot.lane.b32.xlu0 %v1330_v28, %s16103_s19  ;;  %v348_v50 = vadd.f32 %v331_v43, %v299_v31  ;;  %v1969_v43 = vmul.f32 %v16785_v29, %v16323_v0  ;;  %v410_v5 = vadd.f32 %v392_v23, %v346_v20 }
 0x16d   :  { %v2017_v20 = vmul.f32 %v16808_v48, %v16328_v1  ;;  %v2019_v1 = vmul.f32 %v16808_v48, %v16323_v0  ;;  %v1421_v28 = vmul.f32 %v16595_v35, %v16453_v7  ;;  %v16842_v31 = vmul.f32 %v16595_v35, %v16470_v14 }
 0x16e   :  { %1341 = vrot.lane.b32.xlu1 %v1328_v24, %s16103_s19  ;;  %v2018_v24 = vmul.f32 %v16808_v48, %v16335_v3  ;;  %v1483_v0 = vmul.f32 %v16608_v46, %v16442_v63 }
 0x16f   :  { %v454_v8 = vpop.permute.xlu1 %453  ;;  %v394_v51 = vpop.permute.xlu0 %393  ;;  %v1441_v33 = vrot.slane %v1421_v28, 2  ;;  %v1443_v59 = vrot.slane %v16842_v31, 2  ;;  %v17001_v31 = vstv %s13144_s30  ;;  %s18042_s30 = sld [smem:[#allocation2 + $0x183]] }
 0x170   :  { %v473_v36 = vadd.f32 %v454_v8, %v409_v44  ;;  %v411_v61 = vadd.f32 %v394_v51, %v347_v21  ;;  %1983 = vrot.lane.b32.xlu0 %v1967_v49, %s16102_s18  ;;  %v1420_v21 = vmul.f32 %v16595_v35, %v16437_v62  ;;  %v1484_v35 = vmul.f32 %v16608_v46, %v16437_v62 }
 0x171   :  { %v1502_v40 = vrot.slane %v1483_v0, 2  ;;  %v1444_v63 = vsel %vm495_vm1, %v1441_v33, %v1443_v59  ;;  %v1485_v62 = vmul.f32 %v16608_v46, %v16453_v7  ;;  %v16871_v49 = vmul.f32 %v16608_v46, %v16470_v14 }
 0x172   :  { %1345 = vrot.lane.b32.xlu1 %v1332_v52, %s16103_s19  ;;  %v16813_v15 = vadd.f32 %v505_v58, %v473_v36  ;;  %v1439_v27 = vrot.slane %v1420_v21, 2  ;;  %v1503_v44 = vrot.slane %v1484_v35, 2  ;;  %v16876_v51 = vstv %s13140_s20  ;;  %s13206_s20 = sld [smem:[#allocation2 + $0x284]] }
 0x173   :  { %v458_v13 = vpop.permute.xlu1 %457  ;;  %v456_v4 = vpop.permute.xlu0 %455  ;;  %v1505_v14 = vrot.slane %v1485_v62, 2  ;;  %v1507_v46 = vrot.slane %v16871_v49, 2  ;;  %v2355_v56 = vmul.f32 %v16887_v11, %v17001_v31 }
 0x174   :  { %v475_v17 = vadd.f32 %v458_v13, %v411_v61  ;;  %v474_v19 = vadd.f32 %v456_v4, %v410_v5  ;;  %1987 = vrot.lane.b32.xlu0 %v1969_v43, %s16102_s18  ;;  %v1440_v16 = vsel %vm495_vm1, %v1438_v6, %v1439_v27  ;;  %v1442_v58 = vsel %vm495_vm1, %v1439_v27, %v1441_v33  ;;  %v16913_v4 = vld [vmem:[%s21752_s29 + $0x10] sm:$0xff] }
 0x175   :  { %v1504_v7 = vsel %vm495_vm1, %v1502_v40, %v1503_v44  ;;  %v1970_v43 = vmul.f32 %v16785_v29, %v16360_v12  ;;  %v1508_v37 = vsel %vm495_vm1, %v1505_v14, %v1507_v46  ;;  %v1506_v21 = vsel %vm495_vm1, %v1503_v44, %v1505_v14 }
 0x176   :  { %1985 = vrot.lane.b32.xlu1 %v1968_v10, %s16102_s18  ;;  %v16827_v22 = vadd.f32 %v507_v38, %v474_v19  ;;  %v16829_v25 = vadd.f32 %v509_v42, %v475_v17  ;;  %v2117_v38 = vmul.f32 %v16913_v4, %v16876_v51  ;;  %v16919_v42 = vmul.f32 %v16876_v51, %v16360_v12 }
 0x177   :  { %v16831_v26 = vpop.permute.xlu1 %1109  ;;  %v16833_v57 = vpop.permute.xlu0 %1107  ;;  %v16925_v19 = vstv %s13141_s16  ;;  %v16968_v14 = vstv %s13143_s13  ;;  %s17467_s13 = sld [smem:[#allocation2 + $0x100]]  ;;  %s13207_s16 = sld [smem:[#allocation2 + $0x285]] }
 0x178   :  { %2033 = vrot.lane.b32.xlu0 %v2017_v20, %s16103_s19  ;;  %v2134_v12 = vrot.slane %v2117_v38, 1  ;;  %v2179_v27 = vmul.f32 %v16887_v11, %v16925_v19  ;;  %v2181_v44 = vmul.f32 %v16913_v4, %v16925_v19  ;;  %21754 = vst [vmem:[#allocation30_spill] sm:$0xff] %v16968_v14 }
 0x17a   :  { %1283 = vrot.lane.b32.xlu1 %v1267_v53, %s16102_s18  ;;  %v2195_v33 = vrot.slane %v2179_v27, 1  ;;  %v2293_v27 = vmul.f32 %v16913_v4, %v16968_v14 }
 0x17b   :  { %v396_v9 = vpop.permute.xlu1 %395  ;;  %v16849_v23 = vpop.permute.xlu0 %1111 }
 0x17c   :  { %2037 = vrot.lane.b32.xlu0 %v2019_v1, %s16103_s19  ;;  %v412_v8 = vadd.f32 %v396_v9, %v348_v50  ;;  %v16894_v50 = vld [vmem:[%s21752_s29 + $0x8] sm:$0xff]  ;;  %v2136_v1 = vrot.slane %v16919_v42, 1 }
 0x17d   :  { %v2116_v61 = vmul.f32 %v16894_v50, %v16876_v51  ;;  %v2180_v28 = vmul.f32 %v16894_v50, %v16925_v19  ;;  %v2292_v38 = vmul.f32 %v16894_v50, %v16968_v14 }
 0x17e   :  { %2035 = vrot.lane.b32.xlu1 %v2018_v24, %s16103_s19  ;;  %v16943_v24 = vld [vmem:[%s21752_s29 + $0x18] sm:$0x3f] }
 0x17f   :  { %v16859_v3 = vpop.permute.xlu1 %1159  ;;  %v16861_v53 = vpop.permute.xlu0 %1157  ;;  %v2132_v17 = vrot.slane %v2116_v61, 1  ;;  %v2020_v9 = vmul.f32 %v16943_v24, %v16808_v48  ;;  %v2196_v40 = vrot.slane %v2180_v28, 1  ;;  %v16996_v28 = vmul.f32 %v16943_v24, %v16968_v14 }
 0x180   :  { %1453 = vrot.lane.b32.xlu0 %v1440_v16, %s16102_s18  ;;  %v2137_v16 = vsel %vm318_vm0, %v2134_v12, %v2136_v1 }
 0x182   :  { %1347 = vrot.lane.b32.xlu1 %v1331_v41, %s16103_s19  ;;  %v2115_v41 = vmul.f32 %v16887_v11, %v16876_v51 }
 0x183   :  { %v460_v52 = vpop.permute.xlu1 %459  ;;  %v16878_v54 = vpop.permute.xlu0 %1161 }
 0x184   :  { %v476_v36 = vadd.f32 %v460_v52, %v412_v8  ;;  %1457 = vrot.lane.b32.xlu0 %v1444_v63, %s16102_s18  ;;  %v16957_v63 = vmul.f32 %v16943_v24, %v16925_v19  ;;  %v2135_v52 = vsel %vm318_vm0, %v2132_v17, %v2134_v12 }
 0x186   :  { %1455 = vrot.lane.b32.xlu1 %v1442_v58, %s16102_s18  ;;  %v16903_v5 = vadd.f32 %v508_v30, %v476_v36  ;;  %v2131_v30 = vrot.slane %v2115_v41, 1  ;;  %v2197_v58 = vsel %vm318_vm0, %v2195_v33, %v2196_v40  ;;  %v2198_v36 = vrot.slane %v2181_v44, 1 }
 0x187   :  { %v16905_v10 = vpop.permute.xlu1 %568  ;;  %v16907_v13 = vpop.permute.xlu0 %566 }
 0x188   :  { %1517 = vrot.lane.b32.xlu0 %v1504_v7, %s16103_s19  ;;  %v2133_v6 = vsel %vm318_vm0, %v2131_v30, %v2132_v17  ;;  %v2200_v7 = vrot.slane %v16957_v63, 1  ;;  %v2199_v17 = vsel %vm318_vm0, %v2196_v40, %v2198_v36  ;;  %v587_v39 = vadd.f32 %v16905_v10, %v16827_v22 }
 0x189   :  { %v586_v49 = vadd.f32 %v16907_v13, %v16813_v15  ;;  %v17058_v15 = vstv %s16999_s15  ;;  %s18123_s15 = sld [smem:[#allocation2 + $0x186]] }
 0x18a   :  { %1989 = vrot.lane.b32.xlu1 %v1970_v43, %s16102_s18  ;;  %v2291_v43 = vmul.f32 %v16887_v11, %v16968_v14  ;;  %v2201_v42 = vsel %vm318_vm0, %v2198_v36, %v2200_v7 }
 0x18b   :  { %v16927_v20 = vpop.permute.xlu1 %1113  ;;  %v16929_v55 = vpop.permute.xlu0 %570 }
 0x18c   :  { %1521 = vrot.lane.b32.xlu0 %v1508_v37, %s16103_s19  ;;  %v2307_v12 = vrot.slane %v2291_v43, 2  ;;  %v2356_v43 = vmul.f32 %v16894_v50, %v17001_v31 }
 0x18e   :  { %1519 = vrot.lane.b32.xlu1 %v1506_v21, %s16103_s19  ;;  %v16989_v21 = vstv %s13117_s1  ;;  %v2372_v14 = vrot.slane %v2356_v43, 2  ;;  %v17064_v43 = vmul.f32 %v16943_v24, %v17001_v31  ;;  %s18030_s1 = sld [smem:[#allocation2 + $0x180]] }
 0x18f   :  { %v16947_v0 = vpop.permute.xlu1 %632  ;;  %v16949_v35 = vpop.permute.xlu0 %630  ;;  %v1191_v63 = vmul.f32 %v16887_v11, %v16989_v21 }
 0x190   :  { %2145 = vrot.lane.b32.xlu0 %v2133_v6, %s16102_s18  ;;  %v2308_v6 = vrot.slane %v2292_v38, 2  ;;  %v17026_v38 = vmul.f32 %v16913_v4, %v17001_v31  ;;  %v651_v22 = vadd.f32 %v16947_v0, %v587_v39  ;;  %v650_v10 = vadd.f32 %v16949_v35, %v586_v49 }
 0x191   :  { %v1207_v36 = vrot.slane %v1191_v63, 1 }
 0x192   :  { %2039 = vrot.lane.b32.xlu1 %v2020_v9, %s16103_s19  ;;  %v1192_v9 = vmul.f32 %v16894_v50, %v16989_v21  ;;  %v2374_v18 = vrot.slane %v17026_v38, 2 }
 0x193   :  { %v16960_v62 = vpop.permute.xlu1 %1163  ;;  %v16962_v8 = vpop.permute.xlu0 %634 }
 0x194   :  { %2149 = vrot.lane.b32.xlu0 %v2137_v16, %s16102_s18  ;;  %v17009_v16 = vmul.f32 %v16913_v4, %v16989_v21 }
 0x196   :  { %2147 = vrot.lane.b32.xlu1 %v2135_v52, %s16102_s18  ;;  %v2309_v52 = vsel %vm495_vm1, %v2307_v12, %v2308_v6  ;;  %v1208_v12 = vrot.slane %v1192_v9, 1  ;;  %v1194_v9 = vmul.f32 %v16943_v24, %v16989_v21 }
 0x197   :  { %v16971_v41 = vpop.permute.xlu1 %1271  ;;  %v16973_v61 = vpop.permute.xlu0 %1269 }
 0x198   :  { %2209 = vrot.lane.b32.xlu0 %v2197_v58, %s16103_s19  ;;  %v2310_v58 = vrot.slane %v2293_v27, 2  ;;  %v1210_v27 = vrot.slane %v17009_v16, 1  ;;  %v21756_v16 = vrot.slane %v16996_v28, 2 }
 0x19a   :  { %1459 = vrot.lane.b32.xlu1 %v1443_v59, %s16102_s18  ;;  %v17003_v59 = vstv %s13114_s3  ;;  %v2311_v63 = vsel %vm495_vm1, %v2308_v6, %v2310_v58  ;;  %v1211_v0 = vsel %vm318_vm0, %v1208_v12, %v1210_v27  ;;  %v2375_v6 = vsel %vm495_vm1, %v2372_v14, %v2374_v18  ;;  %s18076_s3 = sld [smem:[#allocation2 + $0x208]] }
 0x19b   :  { %v16984_v37 = vpop.permute.xlu1 %572  ;;  %v16986_v30 = vpop.permute.xlu0 %1273  ;;  %21755 = vst [vmem:[#allocation31_spill] sm:$0xff] %v17003_v59  ;;  %v1084_v44 = vmul.f32 %v16943_v24, %v17003_v59 }
 0x19c   :  { %2213 = vrot.lane.b32.xlu0 %v2201_v42, %s16103_s19  ;;  %v1082_v42 = vmul.f32 %v16894_v50, %v17003_v59 }
 0x19e   :  { %2211 = vrot.lane.b32.xlu1 %v2199_v17, %s16103_s19  ;;  %v1081_v17 = vmul.f32 %v16887_v11, %v17003_v59  ;;  %v1132_v13 = vadd.f32 %v16831_v26, %v1082_v42  ;;  %v1209_v26 = vsel %vm318_vm0, %v1207_v36, %v1208_v12 }
 0x19f   :  { %v17011_v33 = vpop.permute.xlu1 %1335  ;;  %v17013_v40 = vpop.permute.xlu0 %1333 }
 0x1a0   :  { %2151 = vrot.lane.b32.xlu0 %v2136_v1, %s16102_s18  ;;  %v1083_v1 = vmul.f32 %v16913_v4, %v17003_v59  ;;  %v2313_v59 = vsel %vm495_vm1, %v2310_v58, %v21756_v16  ;;  %v1131_v35 = vadd.f32 %v16833_v57, %v1081_v17  ;;  %v17077_v58 = vadd.f32 %v16694_v45, %v650_v10 }
 0x1a1   :  { %v1182_v57 = vadd.f32 %v16859_v3, %v1132_v13 }
 0x1a2   :  { %1523 = vrot.lane.b32.xlu1 %v1507_v46, %s16103_s19  ;;  %v1134_v46 = vadd.f32 %v16927_v20, %v1084_v44  ;;  %v1133_v38 = vadd.f32 %v16849_v23, %v1083_v1  ;;  %21758 = vst [vmem:[#allocation33_spill] sm:$0xff] %v17077_v58  ;;  %v589_v23 = vadd.f32 %v16984_v37, %v16903_v5  ;;  %v2376_v1 = vrot.slane %v17064_v43, 2 }
 0x1a3   :  { %v637_v32 = vpop.permute.xlu1 %636  ;;  %v17038_v34 = vpop.permute.xlu0 %1337  ;;  %v588_v37 = vadd.f32 %v16929_v55, %v16829_v25  ;;  %v1181_v3 = vadd.f32 %v16861_v53, %v1131_v35  ;;  %v1230_v55 = vadd.f32 %v1211_v0, %v1182_v57  ;;  %v21760_v43 = vrot.slane %v16996_v28, 2 }
 0x1a4   :  { %2321 = vrot.lane.b32.xlu0 %v2309_v52, %s16102_s18  ;;  %v2371_v52 = vrot.slane %v2355_v56, 2  ;;  %v1184_v39 = vadd.f32 %v16960_v62, %v1134_v46  ;;  %v17074_v56 = vadd.f32 %v16694_v45, %v651_v22  ;;  %v1368_v62 = vmul.f32 %v16894_v50, %v17058_v15 }
 0x1a5   :  { %v1183_v5 = vadd.f32 %v16878_v54, %v1133_v38  ;;  %v653_v12 = vadd.f32 %v637_v32, %v589_v23  ;;  %v21570_v54 = vmax.f32 %v17077_v58, 0.0  ;;  %v652_v25 = vadd.f32 %v16962_v8, %v588_v37 }
 0x1a6   :  { %2215 = vrot.lane.b32.xlu1 %v2200_v7, %s16103_s19  ;;  %v1212_v7 = vrot.slane %v1194_v9, 1  ;;  %21757 = vst [vmem:[#allocation32_spill] sm:$0xff] %v17074_v56  ;;  %v2373_v17 = vsel %vm495_vm1, %v2371_v52, %v2372_v14  ;;  %v1367_v9 = vmul.f32 %v16887_v11, %v17058_v15  ;;  %v1370_v14 = vmul.f32 %v16943_v24, %v17058_v15 }
 0x1a7   :  { %v1340_v20 = vpop.permute.xlu1 %1339  ;;  %v1276_v44 = vpop.permute.xlu0 %1275  ;;  %v21571_v16 = vmax.f32 %v17074_v56, 0.0  ;;  %v1384_v22 = vrot.slane %v1368_v62, 2  ;;  %v2377_v13 = vsel %vm495_vm1, %v2374_v18, %v2376_v1  ;;  %v17109_v52 = vadd.f32 %v16694_v45, %v653_v12  ;;  %v17147_v12 = vld [vmem:[%s21752_s29 + $0x30] sm:$0xff] }
 0x1a8   :  { %2325 = vrot.lane.b32.xlu0 %v2313_v59, %s16102_s18  ;;  %v1369_v59 = vmul.f32 %v16913_v4, %v17058_v15  ;;  %v1232_v49 = vadd.f32 %v1212_v7, %v1184_v39  ;;  %v1213_v46 = vsel %vm318_vm0, %v1210_v27, %v1212_v7  ;;  %v1294_v8 = vadd.f32 %v16971_v41, %v1230_v55 }
 0x1a9   :  { %21759 = vst [vmem:[#allocation34_spill] sm:$0xff] %v17109_v52  ;;  %v1388_v38 = vrot.slane %v1370_v14, 2  ;;  %v15726_v39 = vpack.i.bf16 %v21571_v16, %v21570_v54  ;;  %v17120_v0 = vadd.f32 %v16694_v45, %v652_v25  ;;  %v1383_v41 = vrot.slane %v1367_v9, 2  ;;  %v17133_v45 = vld [vmem:[%s21752_s29 + $0x20] sm:$0xff]  ;;  %v17163_v9 = vld [vmem:[%s21752_s29 + $0x28] sm:$0xff] }
 0x1aa   :  { %2323 = vrot.lane.b32.xlu1 %v2311_v63, %s16102_s18  ;;  %v1296_v32 = vadd.f32 %v1276_v44, %v1232_v49  ;;  %v1386_v53 = vrot.slane %v1369_v59, 2  ;;  %v1231_v63 = vadd.f32 %v1213_v46, %v1183_v5  ;;  %v1229_v44 = vadd.f32 %v1209_v26, %v1181_v3  ;;  %v17151_v3 = vld [vmem:[#allocation8] sm:$0xff]  ;;  %21762 = vst [vmem:[#allocation36_spill] sm:$0xff] %v17163_v9 }
 0x1ab   :  { %v17087_v36 = vpop.permute.xlu1 %1447  ;;  %v17089_v42 = vpop.permute.xlu0 %1445  ;;  %21761 = vst [vmem:[#allocation35_spill] sm:$0xff] %v17120_v0  ;;  %v1358_v28 = vadd.f32 %v17011_v33, %v1294_v8  ;;  %v21569_v62 = vmax.f32 %v17109_v52, 0.0  ;;  %v1973_v49 = vmul.f32 %v17147_v12, %v16785_v29  ;;  %13896 = vmatprep.mubr.msk.f32.mxu0 %vm750_vm2, %v17151_v3  ;;  %v1972_v14 = vmul.f32 %v17163_v9, %v16785_v29 }
 0x1ac   :  { %2387 = vrot.lane.b32.xlu0 %v2375_v6, %s16103_s19  ;;  %v1295_v18 = vadd.f32 %v16986_v30, %v1231_v63  ;;  %v1360_v35 = vadd.f32 %v1340_v20, %v1296_v32  ;;  %v1387_v7 = vsel %vm495_vm1, %v1384_v22, %v1386_v53  ;;  %v1293_v23 = vadd.f32 %v16973_v61, %v1229_v44 }
 0x1ad   :  { %v1971_v30 = vmul.f32 %v17133_v45, %v16785_v29  ;;  %v1389_v33 = vsel %vm495_vm1, %v1386_v53, %v1388_v38  ;;  %v21568_v61 = vmax.f32 %v17120_v0, 0.0  ;;  %v1406_v59 = vadd.f32 %v1387_v7, %v1358_v28 }
 0x1ae   :  { %2385 = vrot.lane.b32.xlu1 %v2373_v17, %s16103_s19  ;;  %v1359_v57 = vadd.f32 %v17038_v34, %v1295_v18  ;;  %v1357_v20 = vadd.f32 %v17013_v40, %v1293_v23  ;;  %v1408_v34 = vadd.f32 %v1388_v38, %v1360_v35  ;;  %v1385_v17 = vsel %vm495_vm1, %v1383_v41, %v1384_v22 }
 0x1af   :  { %v1510_v10 = vpop.permute.xlu1 %1509  ;;  %v1450_v27 = vpop.permute.xlu0 %1449  ;;  %v15731_v40 = vpack.i.bf16 %v21569_v62, %v21568_v61  ;;  %v1470_v25 = vadd.f32 %v17087_v36, %v1406_v59  ;;  %v17176_v44 = vstv %s17137_s2  ;;  %v2119_v35 = vmul.f32 %v17133_v45, %v16876_v51  ;;  %s17823_s2 = sld [smem:[#allocation2 + $0x202]] }
 0x1b0   :  { %2327 = vrot.lane.b32.xlu0 %v21760_v43, %s16102_s18  ;;  %v1405_v32 = vadd.f32 %v1385_v17, %v1357_v20  ;;  %v2022_v43 = vmul.f32 %v17163_v9, %v16808_v48  ;;  %v2120_v28 = vmul.f32 %v17163_v9, %v16876_v51  ;;  %v2121_v20 = vmul.f32 %v17147_v12, %v16876_v51 }
 0x1b1   :  { %v17407_v62 = vstv %s13163_s6  ;;  %v17413_v54 = vmul.f32 %v17147_v12, %v16989_v21  ;;  %s18579_s6 = sld [smem:[#allocation2 + $0x287]] }
 0x1b2   :  { %2389 = vrot.lane.b32.xlu1 %v2377_v13, %s16103_s19  ;;  %v1469_v53 = vadd.f32 %v17089_v42, %v1405_v32  ;;  %v2021_v42 = vmul.f32 %v17133_v45, %v16808_v48  ;;  %v2183_v32 = vmul.f32 %v17133_v45, %v16925_v19  ;;  %21780 = vst [vmem:[#allocation44_spill] sm:$0xff] %v17407_v62 }
 0x1b3   :  { %v1514_v26 = vpop.permute.xlu1 %1513  ;;  %v1512_v6 = vpop.permute.xlu0 %1511  ;;  %v17455_v52 = vmul.f32 %v16943_v24, %v17407_v62 }
 0x1b4   :  { %15727 = vrot.lane.b32.xlu0 %v15726_v39, %s16102_s18  ;;  %v1534_v63 = vadd.f32 %v1512_v6, %v1470_v25  ;;  %v1533_v38 = vadd.f32 %v1510_v10, %v1469_v53 }
 0x1b6   :  { %2391 = vrot.lane.b32.xlu1 %v2376_v1, %s16103_s19  ;;  %v1407_v1 = vadd.f32 %v1389_v33, %v1359_v57  ;;  %v17195_v10 = vadd.f32 %v17176_v44, %v1534_v63  ;;  %v17203_v7 = vadd.f32 %v17176_v44, %v1533_v38  ;;  %v2139_v33 = vrot.slane %v2120_v28, 1 }
 0x1b7   :  { %v1452_v5 = vpop.permute.xlu0 %1451  ;;  %v1516_v37 = vpop.permute.xlu1 %1515  ;;  %v17262_v28 = vstv %s13159_s23 }
 0x1b8   :  { %v1472_v46 = vadd.f32 %v1452_v5, %v1408_v34  ;;  %1991 = vrot.lane.b32.xlu0 %v1971_v30, %s16102_s18  ;;  %v1471_v55 = vadd.f32 %v1450_v27, %v1407_v1  ;;  %v17187_v27 = vld [vmem:[%s21752_s29 + $0x38] sm:$0x3f]  ;;  %21766 = vst [vmem:[#allocation40_spill] sm:$0xff] %v17195_v10  ;;  %21767 = vst [vmem:[#allocation41_spill] sm:$0xff] %v17203_v7  ;;  %v21565_v23 = vmax.f32 %v17195_v10, 0.0  ;;  %v2138_v30 = vrot.slane %v2119_v35, 1 }
 0x1b9   :  { %21764 = vst [vmem:[#allocation38_spill] sm:$0xff] %v17187_v27  ;;  %v1974_v39 = vmul.f32 %v17187_v27, %v16785_v29  ;;  %v2023_v29 = vmul.f32 %v17147_v12, %v16808_v48  ;;  %v17220_v34 = vmul.f32 %v17187_v27, %v16876_v51  ;;  %v21564_v59 = vmax.f32 %v17203_v7, 0.0 }
 0x1ba   :  { %v1536_v22 = vadd.f32 %v1516_v37, %v1472_v46  ;;  %15732 = vrot.lane.b32.xlu1 %v15731_v40, %s16102_s18  ;;  %v1535_v13 = vadd.f32 %v1514_v26, %v1471_v55  ;;  %v2140_v51 = vsel %vm318_vm0, %v2138_v30, %v2139_v33  ;;  %v2184_v1 = vmul.f32 %v17163_v9, %v16925_v19 }
 0x1bb   :  { %v17173_v8 = vpop.permute.xlu0 %1115  ;;  %v17214_v57 = vpop.permute.xlu1 %1117  ;;  %v15736_v5 = vpack.i.bf16 %v21565_v23, %v21564_v59  ;;  %v2143_v40 = vrot.slane %v17220_v34, 1  ;;  %v2185_v46 = vmul.f32 %v17147_v12, %v16925_v19  ;;  %v2024_v25 = vmul.f32 %v17187_v27, %v16808_v48 }
 0x1bc   :  { %1995 = vrot.lane.b32.xlu0 %v1973_v49, %s16102_s18  ;;  %v17179_v36 = vadd.f32 %v17176_v44, %v1536_v22  ;;  %v17192_v18 = vadd.f32 %v17176_v44, %v1535_v13  ;;  %v2141_v49 = vrot.slane %v2121_v20, 1  ;;  %v2203_v22 = vrot.slane %v2184_v1, 1 }
 0x1bd   :  { %v2205_v53 = vrot.slane %v2185_v46, 1  ;;  %v17256_v48 = vmul.f32 %v17187_v27, %v16925_v19  ;;  %v2360_v34 = vmul.f32 %v17163_v9, %v17001_v31  ;;  %v3055_v7 = vmul.f32 %v16887_v11, %v17407_v62 }
 0x1be   :  { %21763 = vst [vmem:[#allocation37_spill] sm:$0xff] %v17179_v36  ;;  %1993 = vrot.lane.b32.xlu1 %v1972_v14, %s16102_s18  ;;  %21765 = vst [vmem:[#allocation39_spill] sm:$0xff] %v17192_v18  ;;  %v21567_v41 = vmax.f32 %v17179_v36, 0.0  ;;  %v21566_v6 = vmax.f32 %v17192_v18, 0.0  ;;  %v2144_v55 = vsel %vm318_vm0, %v2141_v49, %v2143_v40  ;;  %v2142_v63 = vsel %vm318_vm0, %v2139_v33, %v2141_v49 }
 0x1bf   :  { %v17209_v26 = vpop.permute.xlu0 %1119  ;;  %v17241_v14 = vpop.permute.xlu1 %1165  ;;  %v2206_v35 = vsel %vm318_vm0, %v2203_v22, %v2205_v53  ;;  %v21769_v33 = vmax.f32 %v16702_v60, 0.0  ;;  %v2843_v49 = vmul.f32 %v16887_v11, %v17262_v28  ;;  %v17427_v10 = vmul.f32 %v16894_v50, %v17407_v62 }
 0x1c0   :  { %2043 = vrot.lane.b32.xlu0 %v2022_v43, %s16103_s19  ;;  %v15741_v17 = vpack.i.bf16 %v21567_v41, %v21566_v6  ;;  %v3071_v0 = vrot.slane %v3055_v7, 1 }
 0x1c2   :  { %2041 = vrot.lane.b32.xlu1 %v2021_v42, %s16103_s19  ;;  %v2202_v42 = vrot.slane %v2183_v32, 1  ;;  %v21770_v32 = vmax.f32 %v16732_v2, 0.0 }
 0x1c3   :  { %v17233_v37 = vpop.permute.xlu0 %1167 }
 0x1c4   :  { %1997 = vrot.lane.b32.xlu0 %v1974_v39, %s16102_s18  ;;  %v17258_v39 = vpop.permute.xlu1 %1169  ;;  %v2204_v19 = vsel %vm318_vm0, %v2202_v42, %v2203_v22  ;;  %v21771_v22 = vld [vmem:[#allocation29_spill] sm:$0xff] }
 0x1c6   :  { %2045 = vrot.lane.b32.xlu1 %v2023_v29, %s16103_s19  ;;  %v21768_v29 = vmax.f32 %v16699_v47, 0.0 }
 0x1c8   :  { %15742 = vrot.lane.b32.xlu0 %v15741_v17, %s16102_s18 }
 0x1ca   :  { %15737 = vrot.lane.b32.xlu1 %v15736_v5, %s16102_s18  ;;  %v2207_v5 = vrot.slane %v17256_v48, 1 }
 0x1cc   :  { %2153 = vrot.lane.b32.xlu0 %v2140_v51, %s16102_s18 }
 0x1ce   :  { %2047 = vrot.lane.b32.xlu1 %v2024_v25, %s16103_s19  ;;  %v15718_v13 = vpop.permute.xlu0 %15717 }
 0x1cf   :  { %v15720_v43 = vunpack.i.h.bf16 %v15718_v13  ;;  %v15719_v38 = vunpack.i.l.bf16 %v15718_v13  ;;  %v21772_v13 = vmax.f32 %v21771_v22, 0.0 }
 0x1d0   :  { %2157 = vrot.lane.b32.xlu0 %v2144_v55, %s16102_s18 }
 0x1d1   :  { %v704_v30 = vmax.f32 %v21768_v29, %v15719_v38  ;;  %v705_v20 = vmax.f32 %v21769_v33, %v15720_v43  ;;  %v2208_v43 = vsel %vm318_vm0, %v2205_v53, %v2207_v5  ;;  %v17286_v38 = vstv %s13160_s24 }
 0x1d2   :  { %2155 = vrot.lane.b32.xlu1 %v2142_v63, %s16102_s18  ;;  %v17269_v17 = vpop.permute.xlu0 %1121  ;;  %21773 = vst [vmem:[#allocation29_spill] sm:$0xff] %v17286_v38  ;;  %v2844_v53 = vmul.f32 %v16894_v50, %v17262_v28 }
 0x1d3   :  { %v720_v46 = vrot.slane %v704_v30, 1  ;;  %v721_v25 = vrot.slane %v705_v20, 1 }
 0x1d4   :  { %v15723_v51 = vpop.permute.xlu1 %15722  ;;  %2219 = vrot.lane.b32.xlu0 %v2206_v35, %s16103_s19  ;;  %v2845_v35 = vmul.f32 %v16913_v4, %v17262_v28 }
 0x1d5   :  { %v15725_v1 = vunpack.i.h.bf16 %v15723_v51  ;;  %v15724_v47 = vunpack.i.l.bf16 %v15723_v51  ;;  %v722_v2 = vsel %vm318_vm0, %v720_v46, %v721_v25  ;;  %v2893_v51 = vmul.f32 %v16887_v11, %v17286_v38 }
 0x1d6   :  { %2217 = vrot.lane.b32.xlu1 %v2204_v19, %s16103_s19  ;;  %v17277_v60 = vpop.permute.xlu0 %1277  ;;  %v742_v46 = vmax.f32 %v704_v30, %v722_v2 }
 0x1d7   :  { %v707_v55 = vmax.f32 %v21770_v32, %v15725_v1  ;;  %v706_v63 = vmax.f32 %v21772_v13, %v15724_v47 }
 0x1d8   :  { %v17288_v42 = vpop.permute.xlu1 %1171  ;;  %2859 = vrot.lane.b32.xlu0 %v2843_v49, %s16102_s18 }
 0x1d9   :  { %v725_v29 = vrot.slane %v707_v55, 1  ;;  %v723_v33 = vrot.slane %v706_v63, 1 }
 0x1da   :  { %2221 = vrot.lane.b32.xlu1 %v2208_v43, %s16103_s19  ;;  %v17295_v19 = vpop.permute.xlu0 %1281  ;;  %v21774_v43 = vld [vmem:[#allocation30_spill] sm:$0xff] }
 0x1db   :  { %v726_v1 = vsel %vm318_vm0, %v723_v33, %v725_v29  ;;  %v724_v49 = vsel %vm318_vm0, %v721_v25, %v723_v33  ;;  %v745_v47 = vmax.f32 %v707_v55, %v725_v29  ;;  %v2295_v59 = vmul.f32 %v17133_v45, %v21774_v43 }
 0x1dc   :  { %v744_v32 = vmax.f32 %v706_v63, %v726_v1  ;;  %v17303_v22 = vpop.permute.xlu1 %1279  ;;  %2863 = vrot.lane.b32.xlu0 %v2845_v35, %s16102_s18  ;;  %v743_v13 = vmax.f32 %v705_v20, %v724_v49  ;;  %v2296_v23 = vmul.f32 %v17163_v9, %v21774_v43  ;;  %v21775_v55 = vmov 0 }
 0x1dd   :  { %v21776_v55 = vsel %vm17314_vm5, 4294967295, %v21775_v55  ;;  %v2895_v20 = vmul.f32 %v16913_v4, %v17286_v38  ;;  %v2314_v35 = vrot.slane %v2295_v59, 2  ;;  %v2297_v33 = vmul.f32 %v17147_v12, %v21774_v43 }
 0x1de   :  { %2861 = vrot.lane.b32.xlu1 %v2844_v53, %s16102_s18  ;;  %v17311_v6 = vpop.permute.xlu0 %1343  ;;  %v14512_v25 = vpack.c.bf16 %v743_v13, %v742_v46  ;;  %21777 = vst [vmem:[#allocation30_spill] sm:$0xff] %v21776_v55  ;;  %v14516_v30 = vpack.c.bf16 %v745_v47, %v744_v32  ;;  %v2315_v29 = vrot.slane %v2296_v23, 2  ;;  %v17327_v2 = vmul.f32 %v17187_v27, %v21774_v43  ;;  %v17349_v47 = vld [vmem:[#allocation8 + $0x8] sm:$0x3f] }
 0x1df   :  { %v2894_v59 = vmul.f32 %v16894_v50, %v17286_v38  ;;  %v2317_v1 = vrot.slane %v2297_v33, 2  ;;  %21778 = vst [vmem:[#allocation42_spill] sm:$0xff] %v17349_v47  ;;  %v2379_v43 = vrot.slane %v2360_v34, 2  ;;  %v17375_v33 = vstv %s13162_s26  ;;  %s18575_s26 = sld [smem:[#allocation2 + $0x203]] }
 0x1e0   :  { %v17318_v63 = vpop.permute.xlu1 %1341  ;;  %2909 = vrot.lane.b32.xlu0 %v2893_v51, %s16103_s19  ;;  %14513 = vmatprep.subr.bf16.mxu0 %v14512_v25  ;;  %v2359_v51 = vmul.f32 %v17133_v45, %v17001_v31  ;;  %v21572_v49 = vrot.slane %v17327_v2, 2  ;;  %21779 = vst [vmem:[#allocation43_spill] sm:$0xff] %v17375_v33  ;;  %v2991_v48 = vmul.f32 %v16887_v11, %v17375_v33 }
 0x1e1   :  { %14515 = vmatpush3.bf16.msra.mxu0 %v14512_v25 }
 0x1e2   :  { %2159 = vrot.lane.b32.xlu1 %v2143_v40, %s16102_s18  ;;  %v17332_v53 = vpop.permute.xlu0 %1983  ;;  %14518 = vmatprep.subr.msk.bf16.mxu0 %vm17314_vm5, %v14516_v30  ;;  %v2316_v40 = vsel %vm495_vm1, %v2314_v35, %v2315_v29  ;;  %v2378_v13 = vrot.slane %v2359_v51, 2  ;;  %v2320_v25 = vsel %vm495_vm1, %v2317_v1, %v21572_v49  ;;  %v21781_v49 = vld [vmem:[#allocation31_spill] sm:$0xff] }
 0x1e4   :  { %v17338_v23 = vpop.permute.xlu1 %1345  ;;  %2913 = vrot.lane.b32.xlu0 %v2895_v20, %s16103_s19  ;;  %v17366_v20 = vmul.f32 %v17187_v27, %v17001_v31 }
 0x1e5   :  { %14521 = vmatpush3.bf16.msk.msra.mxu0 %vm17314_vm5, %v14516_v30  ;;  %v2361_v30 = vmul.f32 %v17147_v12, %v17001_v31  ;;  %v2380_v31 = vsel %vm495_vm1, %v2378_v13, %v2379_v43  ;;  %v2993_v13 = vmul.f32 %v16913_v4, %v17375_v33 }
 0x1e6   :  { %2911 = vrot.lane.b32.xlu1 %v2894_v59, %s16103_s19  ;;  %v17352_v32 = vpop.permute.xlu0 %1987  ;;  %v2318_v59 = vsel %vm495_vm1, %v2315_v29, %v2317_v1  ;;  %v2846_v29 = vmul.f32 %v16943_v24, %v17262_v28 }
 0x1e7   :  { %v2381_v34 = vrot.slane %v2361_v30, 2 }
 0x1e8   :  { %v17354_v46 = vpop.permute.xlu1 %1985  ;;  %2329 = vrot.lane.b32.xlu0 %v2316_v40, %s16102_s18  ;;  %13897 = vmatmul.mubr.msk.f32.vlgmr.msra.gmra.mrb[0].mxu0 %vm750_vm2, %v17349_v47 }
 0x1e9   :  { %13918 = vmatprep.mubr.msk.f32.mxu0 %vm750_vm2, %v17151_v3  ;;  %v21573_v3 = vrot.slane %v17366_v20, 2  ;;  %v2382_v16 = vsel %vm495_vm1, %v2379_v43, %v2381_v34  ;;  %v1195_v43 = vmul.f32 %v17133_v45, %v16989_v21 }
 0x1ea   :  { %2223 = vrot.lane.b32.xlu1 %v2207_v5, %s16103_s19  ;;  %v17373_v35 = vpop.permute.xlu0 %2033  ;;  %v2992_v5 = vmul.f32 %v16894_v50, %v17375_v33 }
 0x1eb   :  { %v2384_v30 = vsel %vm495_vm1, %v2381_v34, %v21573_v3  ;;  %v1086_v3 = vmul.f32 %v17163_v9, %v21781_v49 }
 0x1ec   :  { %v17378_v51 = vpop.permute.xlu1 %1283  ;;  %2333 = vrot.lane.b32.xlu0 %v2320_v25, %s16102_s18  ;;  %v17399_v25 = vmul.f32 %v16943_v24, %v17375_v33  ;;  %v3008_v41 = vrot.slane %v2992_v5, 1  ;;  %v3010_v5 = vrot.slane %v2993_v13, 1  ;;  %v2896_v13 = vmul.f32 %v16943_v24, %v17286_v38 }
 0x1ed   :  { %v1136_v18 = vadd.f32 %v17214_v57, %v1086_v3  ;;  %v1214_v33 = vrot.slane %v1195_v43, 1  ;;  %v17459_v57 = vmul.f32 %v17187_v27, %v16989_v21  ;;  %v1372_v3 = vmul.f32 %v17163_v9, %v17058_v15 }
 0x1ee   :  { %2331 = vrot.lane.b32.xlu1 %v2318_v59, %s16102_s18  ;;  %v17388_v40 = vpop.permute.xlu0 %2037  ;;  %v3007_v59 = vrot.slane %v2991_v48, 1  ;;  %v3011_v43 = vsel %vm318_vm0, %v3008_v41, %v3010_v5 }
 0x1f0   :  { %v17392_v1 = vpop.permute.xlu1 %2035  ;;  %2393 = vrot.lane.b32.xlu0 %v2380_v31, %s16103_s19  ;;  %v1196_v31 = vmul.f32 %v17163_v9, %v16989_v21  ;;  %v3009_v47 = vsel %vm318_vm0, %v3007_v59, %v3008_v41  ;;  %v1217_v59 = vrot.slane %v17413_v54, 1  ;;  %v3057_v54 = vmul.f32 %v16913_v4, %v17407_v62 }
 0x1f1   :  { %v17478_v62 = vmul.f32 %v17147_v12, %v17058_v15 }
 0x1f2   :  { %2865 = vrot.lane.b32.xlu1 %v2846_v29, %s16102_s18  ;;  %v17405_v61 = vpop.permute.xlu0 %1453  ;;  %v1085_v29 = vmul.f32 %v17133_v45, %v21781_v49  ;;  %v3074_v38 = vrot.slane %v3057_v54, 1 }
 0x1f4   :  { %v17418_v48 = vpop.permute.xlu1 %1347  ;;  %2397 = vrot.lane.b32.xlu0 %v2384_v30, %s16103_s19  ;;  %v1215_v30 = vrot.slane %v1196_v31, 1  ;;  %v3072_v31 = vrot.slane %v17427_v10, 1  ;;  %v1088_v10 = vmul.f32 %v17187_v27, %v21781_v49  ;;  %v1135_v21 = vadd.f32 %v17173_v8, %v1085_v29 }
 0x1f5   :  { %v17486_v8 = vstv %s17429_s11  ;;  %v1391_v29 = vrot.slane %v1372_v3, 2  ;;  %v1393_v3 = vrot.slane %v17478_v62, 2  ;;  %v17528_v62 = vstv %s17467_s13  ;;  %s13184_s11 = sld [smem:[#allocation2 + $0x204]] }
 0x1f6   :  { %2395 = vrot.lane.b32.xlu1 %v2382_v16, %s16103_s19  ;;  %v17434_v34 = vpop.permute.xlu0 %1457  ;;  %v21782_v16 = vrot.slane %v17399_v25, 1  ;;  %v1218_v7 = vsel %vm318_vm0, %v1215_v30, %v1217_v59  ;;  %v3073_v56 = vsel %vm318_vm0, %v3071_v0, %v3072_v31  ;;  %v17498_v0 = vstv %s17439_s27  ;;  %s13185_s27 = sld [smem:[#allocation2 + $0x205]] }
 0x1f7   :  { %v1185_v54 = vadd.f32 %v17241_v14, %v1135_v21  ;;  %v21783_v14 = vrot.slane %v17455_v52, 1 }
 0x1f8   :  { %v17444_v36 = vpop.permute.xlu1 %1455  ;;  %3021 = vrot.lane.b32.xlu0 %v3009_v47, %s16102_s18  ;;  %v3013_v55 = vsel %vm318_vm0, %v3010_v5, %v21782_v16  ;;  %v1186_v16 = vadd.f32 %v17233_v37, %v1136_v18  ;;  %v1087_v18 = vmul.f32 %v17147_v12, %v21781_v49  ;;  %v1219_v37 = vrot.slane %v17459_v57, 1 }
 0x1f9   :  { %v3167_v49 = vmul.f32 %v16887_v11, %v17486_v8  ;;  %v17508_v57 = vmul.f32 %v16894_v50, %v17486_v8 }
 0x1fa   :  { %2915 = vrot.lane.b32.xlu1 %v2896_v13, %s16103_s19  ;;  %v17462_v47 = vpop.permute.xlu0 %1517  ;;  %v1371_v13 = vmul.f32 %v17133_v45, %v17058_v15  ;;  %v1234_v41 = vadd.f32 %v1218_v7, %v1186_v16  ;;  %v3077_v7 = vsel %vm318_vm0, %v3074_v38, %v21783_v14  ;;  %v17520_v16 = vmul.f32 %v17187_v27, %v17058_v15 }
 0x1fb   :  { %v1394_v27 = vsel %vm495_vm1, %v1391_v29, %v1393_v3 }
 0x1fc   :  { %v17480_v58 = vpop.permute.xlu1 %1989  ;;  %3025 = vrot.lane.b32.xlu0 %v3013_v55, %s16102_s18  ;;  %v1216_v55 = vsel %vm318_vm0, %v1214_v33, %v1215_v30  ;;  %v1138_v33 = vadd.f32 %v17269_v17, %v1088_v10  ;;  %v1390_v30 = vrot.slane %v1371_v13, 2  ;;  %v1298_v21 = vadd.f32 %v17303_v22, %v1234_v41 }
 0x1fd   :  { %v21784_v17 = vrot.slane %v17327_v2, 2  ;;  %v2067_v13 = vmul.f32 %v16887_v11, %v17498_v0  ;;  %v3075_v22 = vsel %vm318_vm0, %v3072_v31, %v3074_v38  ;;  %v1233_v15 = vadd.f32 %v1216_v55, %v1185_v54 }
 0x1fe   :  { %3023 = vrot.lane.b32.xlu1 %v3011_v43, %s16102_s18  ;;  %v17492_v5 = vpop.permute.xlu0 %1521  ;;  %v1137_v43 = vadd.f32 %v17209_v26, %v1087_v18  ;;  %v17534_v26 = vmul.f32 %v16894_v50, %v17498_v0  ;;  %v3183_v2 = vrot.slane %v3167_v49, 2  ;;  %v3184_v41 = vrot.slane %v17508_v57, 2 }
 0x1ff   :  { %v3169_v18 = vmul.f32 %v16913_v4, %v17486_v8  ;;  %v1188_v14 = vadd.f32 %v17288_v42, %v1138_v33  ;;  %v17548_v38 = vmul.f32 %v16943_v24, %v17486_v8  ;;  %v1297_v55 = vadd.f32 %v17277_v60, %v1233_v15 }
 0x200   :  { %v17501_v9 = vpop.permute.xlu1 %1519  ;;  %3085 = vrot.lane.b32.xlu0 %v3073_v56, %s16103_s19  ;;  %v1220_v56 = vsel %vm318_vm0, %v1217_v59, %v1219_v37  ;;  %v1187_v31 = vadd.f32 %v17258_v39, %v1137_v43  ;;  %v1362_v54 = vadd.f32 %v17311_v6, %v1298_v21  ;;  %v17557_v57 = vstv %s17494_s28 }
 0x201   :  { %v1957_v42 = vmul.f32 %v16887_v11, %v17528_v62  ;;  %v1395_v33 = vrot.slane %v17520_v16, 2  ;;  %v1361_v39 = vadd.f32 %v17318_v63, %v1297_v55  ;;  %v2084_v6 = vrot.slane %v17534_v26, 1 }
 0x202   :  { %2335 = vrot.lane.b32.xlu1 %v21784_v17, %s16102_s18  ;;  %v17525_v10 = vpop.permute.xlu0 %2145  ;;  %v1392_v17 = vsel %vm495_vm1, %v1390_v30, %v1391_v29  ;;  %v1959_v29 = vmul.f32 %v16913_v4, %v17528_v62  ;;  %v2083_v30 = vrot.slane %v2067_v13, 1  ;;  %v3185_v43 = vsel %vm495_vm1, %v3183_v2, %v3184_v41 }
 0x203   :  { %v3186_v21 = vrot.slane %v3169_v18, 2  ;;  %v3188_v15 = vrot.slane %v17548_v38, 2  ;;  %v3232_v16 = vmul.f32 %v16894_v50, %v17557_v57  ;;  %v17579_v63 = vmul.f32 %v16913_v4, %v17557_v57 }
 0x204   :  { %v17537_v59 = vpop.permute.xlu1 %2039  ;;  %3089 = vrot.lane.b32.xlu0 %v3077_v7, %s16103_s19  ;;  %v21785_v7 = vrot.slane %v17399_v25, 1  ;;  %v1235_v13 = vadd.f32 %v1220_v56, %v1187_v31  ;;  %v1958_v26 = vmul.f32 %v16894_v50, %v17528_v62  ;;  %v1410_v55 = vadd.f32 %v1394_v27, %v1362_v54 }
 0x205   :  { %v17585_v25 = vmul.f32 %v16913_v4, %v17498_v0  ;;  %v17596_v56 = vmul.f32 %v16943_v24, %v17498_v0  ;;  %v3231_v50 = vmul.f32 %v16887_v11, %v17557_v57  ;;  %v1409_v27 = vadd.f32 %v1392_v17, %v1361_v39 }
 0x206   :  { %3087 = vrot.lane.b32.xlu1 %v3075_v22, %s16103_s19  ;;  %v17554_v49 = vpop.permute.xlu0 %2149  ;;  %v1236_v22 = vadd.f32 %v1219_v37, %v1188_v14  ;;  %v21786_v37 = vrot.slane %v17366_v20, 2  ;;  %v1396_v14 = vsel %vm495_vm1, %v1393_v3, %v1395_v33  ;;  %v1299_v4 = vadd.f32 %v17295_v19, %v1235_v13 }
 0x207   :  { %v1474_v31 = vadd.f32 %v17444_v36, %v1410_v55  ;;  %v2085_v20 = vsel %vm318_vm0, %v2083_v30, %v2084_v6  ;;  %v3189_v3 = vsel %vm495_vm1, %v3186_v21, %v3188_v15  ;;  %v1473_v17 = vadd.f32 %v17405_v61, %v1409_v27 }
 0x208   :  { %v17568_v60 = vpop.permute.xlu1 %2147  ;;  %3027 = vrot.lane.b32.xlu0 %v21785_v7, %s16102_s18  ;;  %v1300_v18 = vadd.f32 %v17378_v51, %v1236_v22  ;;  %v3248_v7 = vrot.slane %v3232_v16, 2  ;;  %v3250_v22 = vrot.slane %v17579_v63, 2  ;;  %v1363_v19 = vadd.f32 %v17338_v23, %v1299_v4 }
 0x209   :  { %v1538_v36 = vadd.f32 %v17501_v9, %v1474_v31  ;;  %v2086_v30 = vrot.slane %v17585_v25, 1  ;;  %v21787_v39 = vrot.slane %v17455_v52, 1  ;;  %v3247_v13 = vrot.slane %v3231_v50, 2 }
 0x20a   :  { %2399 = vrot.lane.b32.xlu1 %v21786_v37, %s16103_s19  ;;  %v17590_v2 = vpop.permute.xlu0 %2209  ;;  %v1364_v51 = vadd.f32 %v17418_v48, %v1300_v18  ;;  %v17620_v16 = vstv %s17564_s21  ;;  %v17624_v23 = vmul.f32 %v16943_v24, %v17557_v57  ;;  %v2007_v61 = vadd.f32 %v17332_v53, %v1957_v42  ;;  %s18019_s21 = sld [smem:[#allocation2 + $0x207]] }
 0x20b   :  { %v1537_v9 = vadd.f32 %v17462_v47, %v1473_v17  ;;  %v2088_v63 = vrot.slane %v17596_v56, 1  ;;  %v2087_v52 = vsel %vm318_vm0, %v2084_v6, %v2086_v30  ;;  %v3251_v37 = vsel %vm495_vm1, %v3248_v7, %v3250_v22 }
 0x20c   :  { %v1460_v54 = vpop.permute.xlu1 %1459  ;;  %3197 = vrot.lane.b32.xlu0 %v3185_v43, %s16102_s18  ;;  %v3187_v43 = vsel %vm495_vm1, %v3184_v41, %v3186_v21  ;;  %v2009_v41 = vadd.f32 %v17352_v32, %v1959_v29  ;;  %v1960_v21 = vmul.f32 %v16943_v24, %v17528_v62  ;;  %v1412_v25 = vadd.f32 %v1395_v33, %v1364_v51  ;;  %v17646_v29 = vld [vmem:[%s21752_s29 + $0x8] sm:$0xff]  ;;  %v17662_v51 = vld [vmem:[%s21752_s29 + $0x10] sm:$0xff] }
 0x20d   :  { %v2008_v18 = vadd.f32 %v17354_v46, %v1958_v26  ;;  %v1411_v53 = vadd.f32 %v1396_v14, %v1363_v19  ;;  %v17637_v47 = vadd.f32 %v17176_v44, %v1538_v36  ;;  %v2243_v6 = vmul.f32 %v16887_v11, %v17620_v16 }
 0x20e   :  { %3091 = vrot.lane.b32.xlu1 %v21787_v39, %s16103_s19  ;;  %v17616_v48 = vpop.permute.xlu0 %2213  ;;  %v1476_v50 = vadd.f32 %v1460_v54, %v1412_v25  ;;  %v3249_v32 = vsel %vm495_vm1, %v3247_v13, %v3248_v7  ;;  %v2244_v46 = vmul.f32 %v17646_v29, %v17620_v16  ;;  %v3252_v33 = vrot.slane %v17624_v23, 2 }
 0x20f   :  { %21788 = vst [vmem:[#allocation31_spill] sm:$0xff] %v17637_v47  ;;  %v2057_v26 = vadd.f32 %v17373_v35, %v2007_v61  ;;  %v2058_v14 = vadd.f32 %v17392_v1, %v2008_v18  ;;  %v1475_v4 = vadd.f32 %v17434_v34, %v1411_v53  ;;  %v17655_v11 = vadd.f32 %v17176_v44, %v1537_v9 }
 0x210   :  { %v2212_v55 = vpop.permute.xlu1 %2211  ;;  %3201 = vrot.lane.b32.xlu0 %v3189_v3, %s16102_s18  ;;  %v2059_v31 = vadd.f32 %v17388_v40, %v2009_v41  ;;  %v2245_v35 = vmul.f32 %v17662_v51, %v17620_v16  ;;  %v2246_v1 = vmul.f32 %v16943_v24, %v17620_v16  ;;  %v21603_v3 = vmax.f32 %v17637_v47, 0.0 }
 0x211   :  { %21789 = vst [vmem:[#allocation45_spill] sm:$0xff] %v17655_v11  ;;  %v1539_v34 = vadd.f32 %v17492_v5, %v1475_v4  ;;  %v2089_v40 = vsel %vm318_vm0, %v2086_v30, %v2088_v63  ;;  %v2010_v19 = vadd.f32 %v17480_v58, %v1960_v21  ;;  %v2259_v17 = vrot.slane %v2243_v6, 2  ;;  %v21792_v4 = vld [vmem:[#allocation36_spill] sm:$0xff] }
 0x212   :  { %3199 = vrot.lane.b32.xlu1 %v3187_v43, %s16102_s18  ;;  %v2152_v42 = vpop.permute.xlu0 %2151  ;;  %v2260_v36 = vrot.slane %v2244_v46, 2  ;;  %v3253_v39 = vsel %vm495_vm1, %v3250_v22, %v3252_v33  ;;  %v21602_v43 = vmax.f32 %v17655_v11, 0.0  ;;  %v2105_v24 = vadd.f32 %v2085_v20, %v2057_v26 }
 0x213   :  { %v2106_v13 = vadd.f32 %v2087_v52, %v2058_v14  ;;  %v2060_v30 = vadd.f32 %v17537_v59, %v2010_v19  ;;  %v2107_v61 = vadd.f32 %v2089_v40, %v2059_v31  ;;  %v2262_v58 = vrot.slane %v2245_v35, 2 }
 0x214   :  { %v1524_v27 = vpop.permute.xlu1 %1523  ;;  %3263 = vrot.lane.b32.xlu0 %v3251_v37, %s16103_s19  ;;  %v2264_v9 = vrot.slane %v2246_v1, 2  ;;  %v17685_v41 = vadd.f32 %v17176_v44, %v1539_v34  ;;  %v15746_v20 = vpack.i.bf16 %v21603_v3, %v21602_v43  ;;  %v2169_v22 = vadd.f32 %v17525_v10, %v2105_v24  ;;  %v21793_v1 = vld [vmem:[#allocation29_spill] sm:$0xff] }
 0x215   :  { %v1540_v54 = vadd.f32 %v1524_v27, %v1476_v50  ;;  %v2170_v52 = vadd.f32 %v17568_v60, %v2106_v13  ;;  %v2171_v59 = vadd.f32 %v17554_v49, %v2107_v61  ;;  %v2847_v37 = vmul.f32 %v17133_v45, %v17262_v28 }
 0x216   :  { %3261 = vrot.lane.b32.xlu1 %v3249_v32, %s16103_s19  ;;  %v2322_v7 = vpop.permute.xlu0 %2321  ;;  %21791 = vst [vmem:[#allocation47_spill] sm:$0xff] %v17685_v41  ;;  %v2108_v60 = vadd.f32 %v2088_v63, %v2060_v30  ;;  %v2261_v18 = vsel %vm495_vm1, %v2259_v17, %v2260_v36  ;;  %v2263_v49 = vsel %vm495_vm1, %v2260_v36, %v2262_v58 }
 0x217   :  { %v17678_v5 = vadd.f32 %v17176_v44, %v1540_v54  ;;  %v2234_v21 = vadd.f32 %v2212_v55, %v2170_v52  ;;  %v2235_v10 = vadd.f32 %v17616_v48, %v2171_v59  ;;  %v2265_v55 = vsel %vm495_vm1, %v2262_v58, %v2264_v9  ;;  %v21799_v59 = vld [vmem:[#allocation33_spill] sm:$0xff] }
 0x218   :  { %v2216_v23 = vpop.permute.xlu1 %2215  ;;  %3203 = vrot.lane.b32.xlu0 %v3188_v15, %s16102_s18  ;;  %v2233_v15 = vadd.f32 %v17590_v2, %v2169_v22  ;;  %v21600_v2 = vmax.f32 %v17685_v41, 0.0  ;;  %v2172_v6 = vadd.f32 %v2152_v42, %v2108_v60  ;;  %v2849_v32 = vmul.f32 %v17147_v12, %v17262_v28  ;;  %v21797_v22 = vld [vmem:[#allocation32_spill] sm:$0xff] }
 0x219   :  { %21790 = vst [vmem:[#allocation46_spill] sm:$0xff] %v17678_v5  ;;  %v21601_v44 = vmax.f32 %v17678_v5, 0.0  ;;  %v2282_v63 = vadd.f32 %v2263_v49, %v2234_v21  ;;  %v2283_v26 = vadd.f32 %v2265_v55, %v2235_v10  ;;  %v2848_v27 = vmul.f32 %v21792_v4, %v17262_v28 }
 0x21a   :  { %3265 = vrot.lane.b32.xlu1 %v3253_v39, %s16103_s19  ;;  %v2326_v38 = vpop.permute.xlu0 %2325  ;;  %v2281_v56 = vadd.f32 %v2261_v18, %v2233_v15  ;;  %v2236_v46 = vadd.f32 %v2216_v23, %v2172_v6  ;;  %v2898_v34 = vmul.f32 %v21792_v4, %v21793_v1  ;;  %v2897_v36 = vmul.f32 %v17133_v45, %v21793_v1  ;;  %v21802_v18 = vld [vmem:[#allocation43_spill] sm:$0xff] }
 0x21b   :  { %v15751_v48 = vpack.i.bf16 %v21601_v44, %v21600_v2  ;;  %v2347_v31 = vadd.f32 %v2326_v38, %v2283_v26  ;;  %v17724_v39 = vstv %s13145_s7  ;;  %v21798_v52 = vmax.f32 %v21797_v22, 0.0  ;;  %s13167_s7 = sld [smem:[#allocation7 + $0x3]] }
 0x21c   :  { %v2324_v25 = vpop.permute.xlu1 %2323  ;;  %15747 = vrot.lane.b32.xlu0 %v15746_v20, %s16102_s18  ;;  %v2345_v14 = vadd.f32 %v2322_v7, %v2281_v56  ;;  %v2284_v40 = vadd.f32 %v2264_v9, %v2236_v46  ;;  %v21796_v9 = vld [vmem:[#allocation38_spill] sm:$0xff]  ;;  %v21800_v15 = vmax.f32 %v21799_v59, 0.0  ;;  %v2899_v60 = vmul.f32 %v17147_v12, %v21793_v1 }
 0x21d   :  { %v2850_v20 = vmul.f32 %v21796_v9, %v17262_v28  ;;  %v2995_v28 = vmul.f32 %v17133_v45, %v21802_v18  ;;  %v2996_v49 = vmul.f32 %v21792_v4, %v21802_v18 }
 0x21e   :  { %3267 = vrot.lane.b32.xlu1 %v3252_v33, %s16103_s19  ;;  %v2388_v53 = vpop.permute.xlu0 %2387  ;;  %v2346_v33 = vadd.f32 %v2324_v25, %v2282_v63 }
 0x220   :  { %v2386_v50 = vpop.permute.xlu1 %2385  ;;  %2867 = vrot.lane.b32.xlu0 %v2847_v37, %s16102_s18  ;;  %v2410_v17 = vadd.f32 %v2388_v53, %v2346_v33  ;;  %v2997_v53 = vmul.f32 %v17147_v12, %v21802_v18 }
 0x221   :  { %v2409_v54 = vadd.f32 %v2386_v50, %v2345_v14  ;;  %v17761_v50 = vmul.f32 %v21796_v9, %v21802_v18 }
 0x222   :  { %15752 = vrot.lane.b32.xlu1 %v15751_v48, %s16102_s18  ;;  %v2328_v42 = vpop.permute.xlu0 %2327  ;;  %v17740_v37 = vadd.f32 %v17724_v39, %v2410_v17 }
 0x223   :  { %v2348_v24 = vadd.f32 %v2328_v42, %v2284_v40  ;;  %v17727_v30 = vadd.f32 %v17724_v39, %v2409_v54  ;;  %v3019_v22 = vrot.slane %v17761_v50, 1  ;;  %v17918_v50 = vld [vmem:[%s21752_s29 + $0x38] sm:$0x3f] }
 0x224   :  { %v2390_v35 = vpop.permute.xlu1 %2389  ;;  %2871 = vrot.lane.b32.xlu0 %v2849_v32, %s16102_s18  ;;  %21801 = vst [vmem:[#allocation38_spill] sm:$0xff] %v17740_v37  ;;  %v21597_v33 = vmax.f32 %v17740_v37, 0.0 }
 0x225   :  { %v2411_v19 = vadd.f32 %v2390_v35, %v2347_v31  ;;  %21794 = vst [vmem:[#allocation36_spill] sm:$0xff] %v17727_v30  ;;  %v21596_v6 = vmax.f32 %v17727_v30, 0.0  ;;  %v3015_v31 = vrot.slane %v2996_v49, 1  ;;  %v21804_v35 = vld [vmem:[#allocation34_spill] sm:$0xff] }
 0x226   :  { %2869 = vrot.lane.b32.xlu1 %v2848_v27, %s16102_s18  ;;  %v15728_v7 = vpop.permute.xlu0 %15727  ;;  %v3014_v27 = vrot.slane %v2995_v28, 1 }
 0x227   :  { %v15730_v13 = vunpack.i.h.bf16 %v15728_v7  ;;  %v15729_v23 = vunpack.i.l.bf16 %v15728_v7  ;;  %v17730_v61 = vadd.f32 %v17724_v39, %v2411_v19  ;;  %v21806_v19 = vld [vmem:[#allocation35_spill] sm:$0xff] }
 0x228   :  { %v2392_v58 = vpop.permute.xlu1 %2391  ;;  %2919 = vrot.lane.b32.xlu0 %v2898_v34, %s16103_s19  ;;  %v21805_v34 = vmax.f32 %v21804_v35, 0.0  ;;  %v21807_v17 = vmax.f32 %v21806_v19, 0.0  ;;  %v3016_v59 = vsel %vm318_vm0, %v3014_v27, %v3015_v31 }
 0x229   :  { %21795 = vst [vmem:[#allocation29_spill] sm:$0xff] %v17730_v61  ;;  %v709_v38 = vmax.f32 %v21798_v52, %v15730_v13  ;;  %v708_v21 = vmax.f32 %v21800_v15, %v15729_v23  ;;  %v2412_v25 = vadd.f32 %v2392_v58, %v2348_v24  ;;  %v21598_v48 = vmax.f32 %v17730_v61, 0.0 }
 0x22a   :  { %2917 = vrot.lane.b32.xlu1 %v2897_v36, %s16103_s19  ;;  %v17743_v10 = vpop.permute.xlu0 %1991  ;;  %v15756_v36 = vpack.i.bf16 %v21597_v33, %v21596_v6  ;;  %v3017_v13 = vrot.slane %v2997_v53, 1  ;;  %v2900_v15 = vmul.f32 %v21796_v9, %v21793_v1 }
 0x22b   :  { %v17752_v55 = vadd.f32 %v17724_v39, %v2412_v25  ;;  %v728_v56 = vrot.slane %v709_v38, 1  ;;  %v727_v32 = vrot.slane %v708_v21, 1  ;;  %v21808_v25 = vld [vmem:[#allocation44_spill] sm:$0xff] }
 0x22c   :  { %v15733_v63 = vpop.permute.xlu1 %15732  ;;  %2873 = vrot.lane.b32.xlu0 %v2850_v20, %s16102_s18  ;;  %v3061_v18 = vmul.f32 %v17147_v12, %v21808_v25  ;;  %v3059_v53 = vmul.f32 %v17133_v45, %v21808_v25  ;;  %v17810_v45 = vmul.f32 %v21796_v9, %v21808_v25 }
 0x22d   :  { %21803 = vst [vmem:[#allocation32_spill] sm:$0xff] %v17752_v55  ;;  %v21599_v46 = vmax.f32 %v17752_v55, 0.0  ;;  %v15735_v26 = vunpack.i.h.bf16 %v15733_v63  ;;  %v15734_v14 = vunpack.i.l.bf16 %v15733_v63  ;;  %v729_v20 = vsel %vm318_vm0, %v727_v32, %v728_v56 }
 0x22e   :  { %2921 = vrot.lane.b32.xlu1 %v2899_v60, %s16103_s19  ;;  %v17766_v42 = vpop.permute.xlu0 %1995  ;;  %v3060_v60 = vmul.f32 %v21792_v4, %v21808_v25  ;;  %v3020_v4 = vsel %vm318_vm0, %v3017_v13, %v3019_v22 }
 0x22f   :  { %v15761_v54 = vpack.i.bf16 %v21599_v46, %v21598_v48  ;;  %v711_v40 = vmax.f32 %v21805_v34, %v15735_v26  ;;  %v710_v7 = vmax.f32 %v21807_v17, %v15734_v14  ;;  %v746_v14 = vmax.f32 %v708_v21, %v729_v20 }
 0x230   :  { %v17780_v24 = vpop.permute.xlu1 %1993  ;;  %v3018_v21 = vsel %vm318_vm0, %v3015_v31, %v3017_v13  ;;  %v3083_v31 = vrot.slane %v17810_v45, 1 }
 0x231   :  { %v732_v23 = vrot.slane %v711_v40, 1  ;;  %v730_v58 = vrot.slane %v710_v7, 1  ;;  %15762 = vrot.lane.b32.xlu0 %v15761_v54, %s16102_s18  ;;  %v3081_v54 = vrot.slane %v3061_v18, 1 }
 0x232   :  { %15757 = vrot.lane.b32.xlu1 %v15756_v36, %s16102_s18  ;;  %v17786_v52 = vpop.permute.xlu0 %2043 }
 0x233   :  { %v733_v28 = vsel %vm318_vm0, %v730_v58, %v732_v23  ;;  %v731_v49 = vsel %vm318_vm0, %v728_v56, %v730_v58  ;;  %v749_v63 = vmax.f32 %v711_v40, %v732_v23  ;;  %v3079_v56 = vrot.slane %v3060_v60, 1  ;;  %v17829_v58 = vld [vmem:[%s21752_s29] sm:$0xff]  ;;  %v21812_v60 = vld [vmem:[#allocation39_spill] sm:$0xff] }
 0x234   :  { %v748_v32 = vmax.f32 %v710_v7, %v733_v28  ;;  %v17799_v26 = vpop.permute.xlu1 %2041  ;;  %v747_v27 = vmax.f32 %v709_v38, %v731_v49  ;;  %v3078_v38 = vrot.slane %v3059_v53, 1  ;;  %v17816_v40 = vstv %s13181_s5  ;;  %s13203_s5 = sld [smem:[#allocation2 + $0x281]] }
 0x235   :  { %3029 = vrot.lane.b32.xlu0 %v3016_v59, %s16102_s18  ;;  %v3082_v9 = vsel %vm318_vm0, %v3079_v56, %v3081_v54  ;;  %v3719_v20 = vmul.f32 %v17829_v58, %v17816_v40  ;;  %v21810_v59 = vld [vmem:[#allocation37_spill] sm:$0xff]  ;;  %v21813_v18 = vmax.f32 %v21812_v60, 0.0  ;;  %v17868_v60 = vstv %s17823_s2  ;;  %s18393_s2 = sld [smem:[#allocation2 + $0x282]] }
 0x236   :  { %2923 = vrot.lane.b32.xlu1 %v2900_v15, %s16103_s19  ;;  %v17806_v12 = vpop.permute.xlu0 %1997  ;;  %v14532_v1 = vpack.c.bf16 %v747_v27, %v746_v14  ;;  %v14536_v34 = vpack.c.bf16 %v749_v63, %v748_v32  ;;  %v3080_v13 = vsel %vm318_vm0, %v3078_v38, %v3079_v56  ;;  %v21811_v15 = vmax.f32 %v21810_v59, 0.0  ;;  %21820 = vst [vmem:[#allocation43_spill] sm:$0xff] %v17868_v60 }
 0x237   :  { %v3084_v32 = vsel %vm318_vm0, %v3081_v54, %v3083_v31  ;;  %v3721_v54 = vmul.f32 %v17662_v51, %v17816_v40  ;;  %21824 = vst [vmem:[#allocation37_spill] sm:$0xff] %v17918_v50 }
 0x238   :  { %v17813_v35 = vpop.permute.xlu1 %2045  ;;  %14533 = vmatprep.subr.bf16.mxu0 %v14532_v1 }
 0x239   :  { %3033 = vrot.lane.b32.xlu0 %v3020_v4, %s16102_s18  ;;  %14535 = vmatpush3.bf16.msra.mxu0 %v14532_v1  ;;  %v21814_v4 = vld [vmem:[#allocation40_spill] sm:$0xff] }
 0x23a   :  { %3031 = vrot.lane.b32.xlu1 %v3018_v21, %s16102_s18  ;;  %v15743_v19 = vpop.permute.xlu0 %15742  ;;  %14538 = vmatprep.subr.msk.bf16.mxu0 %vm17314_vm5, %v14536_v34  ;;  %v21815_v1 = vmax.f32 %v21814_v4, 0.0  ;;  %v21816_v21 = vld [vmem:[#allocation41_spill] sm:$0xff] }
 0x23b   :  { %v15745_v7 = vunpack.i.h.bf16 %v15743_v19  ;;  %v15744_v36 = vunpack.i.l.bf16 %v15743_v19  ;;  %v21817_v38 = vmax.f32 %v21816_v21, 0.0 }
 0x23c   :  { %v15738_v23 = vpop.permute.xlu1 %15737 }
 0x23d   :  { %v1594_v25 = vmax.f32 %v21811_v15, %v15745_v7  ;;  %v1593_v28 = vmax.f32 %v21813_v18, %v15744_v36  ;;  %v15740_v49 = vunpack.i.h.bf16 %v15738_v23  ;;  %v15739_v53 = vunpack.i.l.bf16 %v15738_v23  ;;  %3095 = vrot.lane.b32.xlu0 %v3082_v9, %s16103_s19  ;;  %14541 = vmatpush3.bf16.msk.msra.mxu0 %vm17314_vm5, %v14536_v34  ;;  %v21818_v34 = vld [vmem:[#allocation42_spill] sm:$0xff]  ;;  %v17858_v23 = vld [vmem:[#allocation8] sm:$0xff] }
 0x23e   :  { %3093 = vrot.lane.b32.xlu1 %v3080_v13, %s16103_s19  ;;  %v17841_v63 = vpop.permute.xlu0 %2153  ;;  %21819 = vst [vmem:[#allocation33_spill] sm:$0xff] %v17858_v23  ;;  %v3720_v15 = vmul.f32 %v17646_v29, %v17816_v40 }
 0x23f   :  { %v1612_v14 = vrot.slane %v1594_v25, 1  ;;  %v1610_v27 = vrot.slane %v1593_v28, 1  ;;  %v1592_v56 = vmax.f32 %v21815_v1, %v15740_v49  ;;  %v1591_v19 = vmax.f32 %v21817_v38, %v15739_v53 }
 0x240   :  { %v17850_v9 = vpop.permute.xlu1 %2047  ;;  %13919 = vmatmul.mubr.msk.f32.vlgmr.msra.gmra.mrb[2].mxu0 %vm750_vm2, %v21818_v34 }
 0x241   :  { %v1613_v7 = vsel %vm318_vm0, %v1610_v27, %v1612_v14  ;;  %v1608_v36 = vrot.slane %v1592_v56, 1  ;;  %v1607_v13 = vrot.slane %v1591_v19, 1  ;;  %3735 = vrot.lane.b32.xlu0 %v3719_v20, %s16102_s18  ;;  %13940 = vmatprep.mubr.msk.f32.mxu0 %vm750_vm2, %v17858_v23  ;;  %v1632_v49 = vmax.f32 %v1594_v25, %v1612_v14 }
 0x242   :  { %3097 = vrot.lane.b32.xlu1 %v3084_v32, %s16103_s19  ;;  %v17863_v59 = vpop.permute.xlu0 %2157  ;;  %v1631_v53 = vmax.f32 %v1593_v28, %v1613_v7  ;;  %v3769_v32 = vmul.f32 %v17829_v58, %v17868_v60  ;;  %v17890_v28 = vld [vmem:[%s21752_s29 + $0x28] sm:$0xff]  ;;  %v3771_v7 = vmul.f32 %v17662_v51, %v17868_v60 }
 0x243   :  { %v1609_v18 = vsel %vm318_vm0, %v1607_v13, %v1608_v36  ;;  %v1611_v20 = vsel %vm318_vm0, %v1608_v36, %v1610_v27  ;;  %v17883_v27 = vld [vmem:[%s21752_s29 + $0x20] sm:$0xff]  ;;  %21822 = vst [vmem:[#allocation35_spill] sm:$0xff] %v17890_v28  ;;  %v3172_v14 = vmul.f32 %v17890_v28, %v17486_v8  ;;  %v3770_v36 = vmul.f32 %v17646_v29, %v17868_v60 }
 0x244   :  { %v17872_v4 = vpop.permute.xlu1 %2155  ;;  %v1629_v1 = vmax.f32 %v1591_v19, %v1609_v18  ;;  %v1630_v21 = vmax.f32 %v1592_v56, %v1611_v20  ;;  %21821 = vst [vmem:[#allocation34_spill] sm:$0xff] %v17883_v27  ;;  %v3171_v25 = vmul.f32 %v17883_v27, %v17486_v8  ;;  %v14556_v19 = vpack.c.bf16 %v1632_v49, %v1631_v53 }
 0x245   :  { %3739 = vrot.lane.b32.xlu0 %v3721_v54, %s16102_s18  ;;  %v3235_v49 = vmul.f32 %v17883_v27, %v17557_v57  ;;  %v3236_v53 = vmul.f32 %v17890_v28, %v17557_v57  ;;  %v2072_v3 = vmul.f32 %v17890_v28, %v17498_v0  ;;  %v2248_v55 = vmul.f32 %v17890_v28, %v17620_v16 }
 0x246   :  { %3737 = vrot.lane.b32.xlu1 %v3720_v15, %s16102_s18  ;;  %v17878_v38 = vpop.permute.xlu0 %2219  ;;  %v14552_v6 = vpack.c.bf16 %v1630_v21, %v1629_v1  ;;  %v3190_v54 = vrot.slane %v3171_v25, 2  ;;  %v3191_v15 = vrot.slane %v3172_v14, 2 }
 0x247   :  { %v3254_v14 = vrot.slane %v3235_v49, 2  ;;  %v17960_v49 = vstv %s13184_s11  ;;  %s18587_s11 = sld [smem:[#allocation2 + $0x200]] }
 0x248   :  { %v17894_v56 = vpop.permute.xlu1 %2217  ;;  %14553 = vmatprep.subr.bf16.mxu0 %v14552_v6  ;;  %21825 = vst [vmem:[#allocation39_spill] sm:$0xff] %v17960_v49  ;;  %v3869_v48 = vmul.f32 %v17662_v51, %v17960_v49 }
 0x249   :  { %3785 = vrot.lane.b32.xlu0 %v3769_v32, %s16103_s19  ;;  %14555 = vmatpush3.bf16.msra.mxu0 %v14552_v6  ;;  %v17911_v6 = vld [vmem:[%s21752_s29 + $0x30] sm:$0xff] }
 0x24a   :  { %3035 = vrot.lane.b32.xlu1 %v3019_v22, %s16102_s18  ;;  %v17904_v13 = vpop.permute.xlu0 %2859  ;;  %14558 = vmatprep.subr.msk.bf16.mxu0 %vm17314_vm5, %v14556_v19  ;;  %21823 = vst [vmem:[#allocation44_spill] sm:$0xff] %v17911_v6  ;;  %v3173_v18 = vmul.f32 %v17911_v6, %v17486_v8  ;;  %v17922_v22 = vmul.f32 %v17918_v50, %v17486_v8 }
 0x24b   :  { %v3192_v8 = vsel %vm495_vm1, %v3190_v54, %v3191_v15  ;;  %v17957_v54 = vmul.f32 %v17918_v50, %v17557_v57  ;;  %v18036_v17 = vmul.f32 %v17911_v6, %v17620_v16 }
 0x24c   :  { %v17924_v20 = vpop.permute.xlu1 %2221  ;;  %v3193_v21 = vrot.slane %v3173_v18, 2  ;;  %v21604_v32 = vrot.slane %v17922_v22, 2 }
 0x24d   :  { %3789 = vrot.lane.b32.xlu0 %v3771_v7, %s16103_s19  ;;  %14561 = vmatpush3.bf16.msk.msra.mxu0 %vm17314_vm5, %v14556_v19  ;;  %v3255_v19 = vrot.slane %v3236_v53, 2  ;;  %v17969_v53 = vld [vmem:[%s21752_s29 + $0x18] sm:$0x3f] }
 0x24e   :  { %3787 = vrot.lane.b32.xlu1 %v3770_v36, %s16103_s19  ;;  %v17934_v1 = vpop.permute.xlu0 %2863  ;;  %v3196_v36 = vsel %vm495_vm1, %v3193_v21, %v21604_v32  ;;  %v3194_v18 = vsel %vm495_vm1, %v3191_v15, %v3193_v21  ;;  %v21607_v21 = vrot.slane %v17957_v54, 2  ;;  %v2073_v32 = vmul.f32 %v17911_v6, %v17498_v0 }
 0x250   :  { %v17938_v25 = vpop.permute.xlu1 %2861  ;;  %13941 = vmatmul.mubr.msk.f32.vlgmr.msra.gmra.mrb[4].mxu0 %vm750_vm2, %v21818_v34  ;;  %v3237_v34 = vmul.f32 %v17911_v6, %v17557_v57  ;;  %v3722_v57 = vmul.f32 %v17969_v53, %v17816_v40 }
 0x251   :  { %3205 = vrot.lane.b32.xlu0 %v3192_v8, %s16102_s18  ;;  %13962 = vmatprep.mubr.msk.f32.mxu0 %vm750_vm2, %v17858_v23 }
 0x252   :  { %3099 = vrot.lane.b32.xlu1 %v3083_v31, %s16103_s19  ;;  %v17948_v7 = vpop.permute.xlu0 %2909  ;;  %v3256_v31 = vsel %vm495_vm1, %v3254_v14, %v3255_v19  ;;  %v3257_v8 = vrot.slane %v3237_v34, 2  ;;  %v3868_v14 = vmul.f32 %v17646_v29, %v17960_v49 }
 0x254   :  { %v17962_v45 = vpop.permute.xlu1 %2159  ;;  %v3260_v46 = vsel %vm495_vm1, %v3257_v8, %v21607_v21  ;;  %v3884_v44 = vrot.slane %v3868_v14, 1  ;;  %v3258_v43 = vsel %vm495_vm1, %v3255_v19, %v3257_v8  ;;  %v3886_v21 = vrot.slane %v3869_v48, 1 }
 0x255   :  { %3209 = vrot.lane.b32.xlu0 %v3196_v36, %s16102_s18  ;;  %v3867_v36 = vmul.f32 %v17829_v58, %v17960_v49  ;;  %v3772_v14 = vmul.f32 %v17969_v53, %v17868_v60  ;;  %v2071_v48 = vmul.f32 %v17883_v27, %v17498_v0  ;;  %v2269_v60 = vrot.slane %v18036_v17, 2 }
 0x256   :  { %3207 = vrot.lane.b32.xlu1 %v3194_v18, %s16102_s18  ;;  %v17974_v15 = vpop.permute.xlu0 %2913  ;;  %v17988_v18 = vmul.f32 %v17969_v53, %v17960_v49  ;;  %v3887_v11 = vsel %vm318_vm0, %v3884_v44, %v3886_v21 }
 0x257   :  { %v3883_v2 = vrot.slane %v3867_v36, 1 }
 0x258   :  { %v17981_v33 = vpop.permute.xlu1 %2911 }
 0x259   :  { %3269 = vrot.lane.b32.xlu0 %v3256_v31, %s16103_s19  ;;  %v17997_v31 = vstv %s13185_s27  ;;  %v3885_v8 = vsel %vm318_vm0, %v3883_v2, %v3884_v44  ;;  %v2093_v2 = vrot.slane %v2073_v32, 1 }
 0x25a   :  { %3741 = vrot.lane.b32.xlu1 %v3722_v57, %s16102_s18  ;;  %v17991_v34 = vpop.permute.xlu0 %2329  ;;  %21826 = vst [vmem:[#allocation40_spill] sm:$0xff] %v17997_v31  ;;  %v1962_v57 = vmul.f32 %v17890_v28, %v17528_v62  ;;  %v3931_v30 = vmul.f32 %v17829_v58, %v17997_v31  ;;  %v3932_v37 = vmul.f32 %v17646_v29, %v17997_v31 }
 0x25b   :  { %v3933_v41 = vmul.f32 %v17662_v51, %v17997_v31  ;;  %v18051_v5 = vmul.f32 %v17969_v53, %v17997_v31  ;;  %v2267_v31 = vrot.slane %v2248_v55, 2  ;;  %v1964_v55 = vmul.f32 %v17918_v50, %v17528_v62 }
 0x25c   :  { %v18003_v23 = vpop.permute.xlu1 %2223  ;;  %v2012_v61 = vadd.f32 %v17780_v24, %v1962_v57  ;;  %v3947_v32 = vrot.slane %v3931_v30, 1  ;;  %v3948_v57 = vrot.slane %v3932_v37, 1 }
 0x25d   :  { %3273 = vrot.lane.b32.xlu0 %v3260_v46, %s16103_s19  ;;  %v2091_v46 = vrot.slane %v2072_v3, 1  ;;  %v21827_v3 = vrot.slane %v17988_v18, 1 }
 0x25e   :  { %3271 = vrot.lane.b32.xlu1 %v3258_v43, %s16103_s19  ;;  %v18010_v19 = vpop.permute.xlu0 %2333  ;;  %v18025_v43 = vmul.f32 %v17918_v50, %v17498_v0  ;;  %v2062_v47 = vadd.f32 %v17786_v52, %v2012_v61  ;;  %v3949_v44 = vsel %vm318_vm0, %v3947_v32, %v3948_v57 }
 0x25f   :  { %v3889_v0 = vsel %vm318_vm0, %v3886_v21, %v21827_v3  ;;  %v2247_v3 = vmul.f32 %v17883_v27, %v17620_v16  ;;  %v2094_v49 = vsel %vm318_vm0, %v2091_v46, %v2093_v2  ;;  %v3950_v21 = vrot.slane %v3933_v41, 1 }
 0x260   :  { %v18027_v36 = vpop.permute.xlu1 %2331  ;;  %v21625_v30 = vrot.slane %v18025_v43, 1 }
 0x261   :  { %3897 = vrot.lane.b32.xlu0 %v3885_v8, %s16102_s18  ;;  %v1961_v8 = vmul.f32 %v17883_v27, %v17528_v62  ;;  %v2266_v52 = vrot.slane %v2247_v3, 2  ;;  %v2110_v3 = vadd.f32 %v2094_v49, %v2062_v47  ;;  %v2014_v49 = vadd.f32 %v17806_v12, %v1964_v55 }
 0x262   :  { %3791 = vrot.lane.b32.xlu1 %v3772_v14, %s16103_s19  ;;  %v18045_v24 = vpop.permute.xlu0 %2393  ;;  %v2090_v14 = vrot.slane %v2071_v48, 1  ;;  %v2096_v41 = vsel %vm318_vm0, %v2093_v2, %v21625_v30  ;;  %v18092_v48 = vstv %s18030_s1  ;;  %v21828_v2 = vrot.slane %v17922_v22, 2  ;;  %s18650_s1 = sld [smem:[#allocation2 + $0x288]] }
 0x263   :  { %v2011_v61 = vadd.f32 %v17743_v10, %v1961_v8  ;;  %v18086_v10 = vmul.f32 %v17918_v50, %v17620_v16  ;;  %v21829_v16 = vrot.slane %v18051_v5, 1  ;;  %v3951_v22 = vsel %vm318_vm0, %v3948_v57, %v3950_v21 }
 0x264   :  { %v18059_v37 = vpop.permute.xlu1 %2865  ;;  %v2092_v17 = vsel %vm318_vm0, %v2090_v14, %v2091_v46  ;;  %v2270_v46 = vsel %vm495_vm1, %v2267_v31, %v2269_v60  ;;  %v2833_v50 = vmul.f32 %v17829_v58, %v18092_v48 }
 0x265   :  { %3901 = vrot.lane.b32.xlu0 %v3889_v0, %s16102_s18  ;;  %v18074_v0 = vstv %s18019_s21  ;;  %v2061_v8 = vadd.f32 %v17799_v26, %v2011_v61  ;;  %v3953_v30 = vsel %vm318_vm0, %v3950_v21, %v21829_v16  ;;  %v2268_v61 = vsel %vm495_vm1, %v2266_v52, %v2267_v31  ;;  %s13211_s21 = sld [smem:[#allocation7 + $0x5]] }
 0x266   :  { %3899 = vrot.lane.b32.xlu1 %v3887_v11, %s16102_s18  ;;  %v18066_v28 = vpop.permute.xlu0 %2397  ;;  %v1963_v11 = vmul.f32 %v17911_v6, %v17528_v62  ;;  %v18096_v62 = vstv %s18042_s30  ;;  %v4043_v47 = vmul.f32 %v17829_v58, %v18074_v0  ;;  %v4044_v26 = vmul.f32 %v17646_v29, %v18074_v0  ;;  %s18693_s30 = sld [smem:[#allocation2 + $0x206]] }
 0x267   :  { %v21632_v16 = vrot.slane %v18086_v10, 2  ;;  %v2943_v6 = vmul.f32 %v17829_v58, %v18096_v62  ;;  %v2109_v12 = vadd.f32 %v2092_v17, %v2061_v8  ;;  %v18131_v31 = vmul.f32 %v17969_v53, %v18074_v0 }
 0x268   :  { %v18088_v32 = vpop.permute.xlu1 %2395  ;;  %v2835_v21 = vmul.f32 %v17662_v51, %v18092_v48  ;;  %v4059_v52 = vrot.slane %v4043_v47, 2  ;;  %v2944_v17 = vmul.f32 %v17646_v29, %v18096_v62  ;;  %v18144_v8 = vstv %s18076_s3 }
 0x269   :  { %3961 = vrot.lane.b32.xlu0 %v3949_v44, %s16103_s19  ;;  %v2174_v44 = vadd.f32 %v17872_v4, %v2110_v3  ;;  %v2064_v4 = vadd.f32 %v17850_v9, %v2014_v49  ;;  %v4060_v9 = vrot.slane %v4044_v26, 2  ;;  %v2272_v3 = vsel %vm495_vm1, %v2269_v60, %v21632_v16 }
 0x26a   :  { %3211 = vrot.lane.b32.xlu1 %v21828_v2, %s16102_s18  ;;  %v18102_v14 = vpop.permute.xlu0 %3021  ;;  %v2013_v2 = vadd.f32 %v17766_v42, %v1963_v11  ;;  %v4045_v42 = vmul.f32 %v17662_v51, %v18074_v0  ;;  %v2959_v49 = vrot.slane %v2943_v6, 1  ;;  %v18153_v47 = vmul.f32 %v17662_v51, %v18096_v62 }
 0x26b   :  { %v2238_v11 = vadd.f32 %v17878_v38, %v2174_v44  ;;  %v21830_v26 = vrot.slane %v18025_v43, 1  ;;  %v4108_v43 = vmul.f32 %v17646_v29, %v18144_v8 }
 0x26c   :  { %v18121_v27 = vpop.permute.xlu1 %2915  ;;  %v2063_v57 = vadd.f32 %v17813_v35, %v2013_v2  ;;  %v2834_v35 = vmul.f32 %v17646_v29, %v18092_v48  ;;  %v4062_v2 = vrot.slane %v4045_v42, 2 }
 0x26d   :  { %3965 = vrot.lane.b32.xlu0 %v3953_v30, %s16103_s19  ;;  %v2173_v30 = vadd.f32 %v17841_v63, %v2109_v12  ;;  %v2112_v44 = vadd.f32 %v21830_v26, %v2064_v4  ;;  %v21832_v12 = vrot.slane %v17957_v54, 2  ;;  %v2286_v42 = vadd.f32 %v2270_v46, %v2238_v11 }
 0x26e   :  { %3963 = vrot.lane.b32.xlu1 %v3951_v22, %s16103_s19  ;;  %v18137_v55 = vpop.permute.xlu0 %3025  ;;  %v21831_v22 = vrot.slane %v17988_v18, 1  ;;  %v2111_v6 = vadd.f32 %v2096_v41, %v2063_v57  ;;  %v18174_v18 = vmul.f32 %v17662_v51, %v18144_v8  ;;  %v4107_v41 = vmul.f32 %v17829_v58, %v18144_v8 }
 0x26f   :  { %v2237_v38 = vadd.f32 %v17894_v56, %v2173_v30  ;;  %v4061_v56 = vsel %vm495_vm1, %v4059_v52, %v4060_v9  ;;  %v2176_v4 = vadd.f32 %v17962_v45, %v2112_v44  ;;  %v2960_v30 = vrot.slane %v2944_v17, 1 }
 0x270   :  { %v18155_v63 = vpop.permute.xlu1 %3023  ;;  %v2175_v54 = vadd.f32 %v17863_v59, %v2111_v6  ;;  %v18182_v57 = vmul.f32 %v17969_v53, %v18096_v62  ;;  %v2962_v52 = vrot.slane %v18153_v47, 1  ;;  %v2350_v45 = vadd.f32 %v18027_v36, %v2286_v42 }
 0x271   :  { %3903 = vrot.lane.b32.xlu0 %v21831_v22, %s16102_s18  ;;  %v18186_v22 = vstv %s18123_s15  ;;  %v2240_v60 = vadd.f32 %v18003_v23, %v2176_v4  ;;  %v21833_v46 = vrot.slane %v18131_v31, 2  ;;  %v21834_v17 = vrot.slane %v18051_v5, 1 }
 0x272   :  { %3275 = vrot.lane.b32.xlu1 %v21832_v12, %s16103_s19  ;;  %v18167_v16 = vpop.permute.xlu0 %3085  ;;  %v2285_v12 = vadd.f32 %v2268_v61, %v2237_v38  ;;  %v2239_v11 = vadd.f32 %v17924_v20, %v2175_v54  ;;  %v4063_v61 = vsel %vm495_vm1, %v4060_v9, %v4062_v2  ;;  %v4124_v38 = vrot.slane %v4108_v43, 2 }
 0x273   :  { %v4065_v59 = vsel %vm495_vm1, %v4062_v2, %v21833_v46  ;;  %v4126_v23 = vrot.slane %v18174_v18, 2  ;;  %v2414_v44 = vadd.f32 %v18088_v32, %v2350_v45  ;;  %v4123_v6 = vrot.slane %v4107_v41, 2 }
 0x274   :  { %v2336_v26 = vpop.permute.xlu1 %2335  ;;  %v2349_v36 = vadd.f32 %v17991_v34, %v2285_v12  ;;  %v2883_v20 = vadd.f32 %v17904_v13, %v2833_v50  ;;  %v2961_v5 = vsel %vm318_vm0, %v2959_v49, %v2960_v30  ;;  %v2964_v4 = vrot.slane %v18182_v57, 1 }
 0x275   :  { %4073 = vrot.lane.b32.xlu0 %v4061_v56, %s16102_s18  ;;  %v18206_v56 = vmul.f32 %v17969_v53, %v18144_v8  ;;  %v2963_v9 = vsel %vm318_vm0, %v2960_v30, %v2962_v52  ;;  %v2885_v43 = vadd.f32 %v17934_v1, %v2835_v21  ;;  %v2836_v32 = vmul.f32 %v17969_v53, %v18092_v48 }
 0x276   :  { %3967 = vrot.lane.b32.xlu1 %v21834_v17, %s16103_s19  ;;  %v18198_v47 = vpop.permute.xlu0 %3089  ;;  %v2413_v34 = vadd.f32 %v18045_v24, %v2349_v36  ;;  %v21835_v18 = vrot.slane %v18086_v10, 2  ;;  %v2884_v13 = vadd.f32 %v17938_v25, %v2834_v35  ;;  %v2287_v50 = vadd.f32 %v2272_v3, %v2239_v11 }
 0x277   :  { %v4127_v30 = vsel %vm495_vm1, %v4124_v38, %v4126_v23  ;;  %v3119_v1 = vmul.f32 %v17829_v58, %v18186_v22  ;;  %v18225_v24 = vadd.f32 %v17724_v39, %v2414_v44  ;;  %v4125_v10 = vsel %vm495_vm1, %v4123_v6, %v4124_v38 }
 0x278   :  { %v3088_v2 = vpop.permute.xlu1 %3087  ;;  %v2288_v42 = vadd.f32 %v21835_v18, %v2240_v60  ;;  %v4128_v60 = vrot.slane %v18206_v56, 2  ;;  %v2933_v41 = vadd.f32 %v17948_v7, %v2883_v20  ;;  %v2934_v25 = vadd.f32 %v17981_v33, %v2884_v13  ;;  %v21841_v13 = vld [vmem:[#allocation34_spill] sm:$0xff] }
 0x279   :  { %4077 = vrot.lane.b32.xlu0 %v4065_v59, %s16102_s18  ;;  %21836 = vst [vmem:[#allocation41_spill] sm:$0xff] %v18225_v24  ;;  %v2351_v35 = vadd.f32 %v18010_v19, %v2287_v50  ;;  %v3120_v54 = vmul.f32 %v17646_v29, %v18186_v22  ;;  %v2935_v57 = vadd.f32 %v17974_v15, %v2885_v43  ;;  %v21640_v46 = vmax.f32 %v18225_v24, 0.0 }
 0x27a   :  { %4075 = vrot.lane.b32.xlu1 %v4063_v61, %s16102_s18  ;;  %v3028_v49 = vpop.permute.xlu0 %3027  ;;  %v2352_v21 = vadd.f32 %v2336_v26, %v2288_v42  ;;  %v18236_v12 = vadd.f32 %v17724_v39, %v2413_v34  ;;  %v3121_v45 = vmul.f32 %v17662_v51, %v18186_v22  ;;  %v2965_v33 = vsel %vm318_vm0, %v2962_v52, %v2964_v4 }
 0x27b   :  { %v2415_v7 = vadd.f32 %v18066_v28, %v2351_v35  ;;  %v3122_v29 = vmul.f32 %v17969_v53, %v18186_v22  ;;  %v2886_v15 = vadd.f32 %v18059_v37, %v2836_v32  ;;  %v3135_v59 = vrot.slane %v3119_v1, 2 }
 0x27c   :  { %v2400_v3 = vpop.permute.xlu1 %2399  ;;  %21837 = vst [vmem:[#allocation42_spill] sm:$0xff] %v18236_v12  ;;  %v4129_v11 = vsel %vm495_vm1, %v4126_v23, %v4128_v60  ;;  %v2981_v17 = vadd.f32 %v2961_v5, %v2933_v41  ;;  %v2982_v61 = vadd.f32 %v2963_v9, %v2934_v25  ;;  %v3136_v28 = vrot.slane %v3120_v54, 2  ;;  %v21842_v25 = vld [vmem:[#allocation44_spill] sm:$0xff]  ;;  %v21843_v54 = vld [vmem:[#allocation35_spill] sm:$0xff] }
 0x27d   :  { %v2416_v26 = vadd.f32 %v2400_v3, %v2352_v21  ;;  %4139 = vrot.lane.b32.xlu0 %v4127_v30, %s16103_s19  ;;  %v21639_v38 = vmax.f32 %v18236_v12, 0.0  ;;  %v2936_v36 = vadd.f32 %v18121_v27, %v2886_v15  ;;  %v2983_v44 = vadd.f32 %v2965_v33, %v2935_v57  ;;  %v21844_v15 = vld [vmem:[#allocation43_spill] sm:$0xff] }
 0x27e   :  { %4137 = vrot.lane.b32.xlu1 %v4125_v10, %s16103_s19  ;;  %v3198_v19 = vpop.permute.xlu0 %3197  ;;  %v21839_v37 = vrot.slane %v18131_v31, 2  ;;  %v3138_v6 = vrot.slane %v3121_v45, 2  ;;  %v18258_v56 = vadd.f32 %v17724_v39, %v2415_v7  ;;  %v3045_v23 = vadd.f32 %v18102_v14, %v2981_v17 }
 0x27f   :  { %v18250_v51 = vadd.f32 %v17724_v39, %v2416_v26  ;;  %v3046_v20 = vadd.f32 %v18155_v63, %v2982_v61  ;;  %v3140_v5 = vrot.slane %v3122_v29, 2  ;;  %v15766_v27 = vpack.i.bf16 %v21640_v46, %v21639_v38 }
 0x280   :  { %v3092_v52 = vpop.permute.xlu1 %3091  ;;  %21840 = vst [vmem:[#allocation49_spill] sm:$0xff] %v18258_v56  ;;  %v3047_v31 = vadd.f32 %v18137_v55, %v2983_v44  ;;  %v3109_v43 = vadd.f32 %v18167_v16, %v3045_v23  ;;  %v3137_v14 = vsel %vm495_vm1, %v3135_v59, %v3136_v28  ;;  %v2984_v18 = vadd.f32 %v2964_v4, %v2936_v36  ;;  %v21845_v44 = vld [vmem:[#allocation39_spill] sm:$0xff] }
 0x281   :  { %21838 = vst [vmem:[#allocation48_spill] sm:$0xff] %v18250_v51  ;;  %4079 = vrot.lane.b32.xlu0 %v21839_v37, %s16102_s18  ;;  %v3110_v34 = vadd.f32 %v3088_v2, %v3046_v20  ;;  %v21638_v39 = vmax.f32 %v18250_v51, 0.0  ;;  %v3139_v42 = vsel %vm495_vm1, %v3136_v28, %v3138_v6  ;;  %v3723_v50 = vmul.f32 %v21841_v13, %v17816_v40 }
 0x282   :  { %4141 = vrot.lane.b32.xlu1 %v4129_v11, %s16103_s19  ;;  %v3202_v9 = vpop.permute.xlu0 %3201  ;;  %v3111_v63 = vadd.f32 %v18198_v47, %v3047_v31  ;;  %v21637_v55 = vmax.f32 %v18258_v56, 0.0  ;;  %v3141_v16 = vsel %vm495_vm1, %v3138_v6, %v3140_v5  ;;  %v3048_v30 = vadd.f32 %v3028_v49, %v2984_v18 }
 0x283   :  { %v3157_v4 = vadd.f32 %v3137_v14, %v3109_v43  ;;  %v3158_v1 = vadd.f32 %v3139_v42, %v3110_v34  ;;  %v3725_v35 = vmul.f32 %v21842_v25, %v17816_v40  ;;  %v3724_v57 = vmul.f32 %v21843_v54, %v17816_v40  ;;  %v21850_v43 = vld [vmem:[#allocation45_spill] sm:$0xff] }
 0x284   :  { %v3200_v32 = vpop.permute.xlu1 %3199  ;;  %v15771_v47 = vpack.i.bf16 %v21638_v39, %v21637_v55  ;;  %v3112_v10 = vadd.f32 %v3092_v52, %v3048_v30  ;;  %v3159_v41 = vadd.f32 %v3141_v16, %v3111_v63  ;;  %v3774_v59 = vmul.f32 %v21843_v54, %v21844_v15  ;;  %v21852_v63 = vld [vmem:[#allocation37_spill] sm:$0xff] }
 0x285   :  { %15767 = vrot.lane.b32.xlu0 %v15766_v27, %s16102_s18  ;;  %v3221_v3 = vadd.f32 %v3198_v19, %v3157_v4  ;;  %v18292_v11 = vstv %s13167_s7  ;;  %v3773_v61 = vmul.f32 %v21841_v13, %v21844_v15  ;;  %v3871_v37 = vmul.f32 %v21841_v13, %v21845_v44  ;;  %s13189_s7 = sld [smem:[#allocation7 + $0x4]] }
 0x286   :  { %4143 = vrot.lane.b32.xlu1 %v4128_v60, %s16103_s19  ;;  %v3264_v2 = vpop.permute.xlu0 %3263  ;;  %v3222_v60 = vadd.f32 %v3200_v32, %v3158_v1  ;;  %v3223_v26 = vadd.f32 %v3202_v9, %v3159_v41  ;;  %v3160_v33 = vadd.f32 %v3140_v5, %v3112_v10  ;;  %v3872_v5 = vmul.f32 %v21843_v54, %v21845_v44  ;;  %v21848_v9 = vld [vmem:[#allocation31_spill] sm:$0xff] }
 0x287   :  { %v21849_v27 = vmax.f32 %v21848_v9, 0.0  ;;  %v21851_v34 = vmax.f32 %v21850_v43, 0.0  ;;  %v3726_v18 = vmul.f32 %v21852_v63, %v17816_v40  ;;  %v3775_v16 = vmul.f32 %v21842_v25, %v21844_v15  ;;  %v21859_v43 = vld [vmem:[#allocation40_spill] sm:$0xff] }
 0x288   :  { %v3262_v21 = vpop.permute.xlu1 %3261  ;;  %v3286_v19 = vadd.f32 %v3264_v2, %v3222_v60  ;;  %v3890_v30 = vrot.slane %v3871_v37, 1  ;;  %v4047_v39 = vmul.f32 %v21841_v13, %v18074_v0  ;;  %v2948_v38 = vmul.f32 %v21843_v54, %v18096_v62 }
 0x289   :  { %3743 = vrot.lane.b32.xlu0 %v3723_v50, %s16102_s18  ;;  %v3285_v45 = vadd.f32 %v3262_v21, %v3221_v3  ;;  %v3891_v21 = vrot.slane %v3872_v5, 1  ;;  %v2949_v46 = vmul.f32 %v21842_v25, %v18096_v62 }
 0x28a   :  { %15772 = vrot.lane.b32.xlu1 %v15771_v47, %s16102_s18  ;;  %v3204_v49 = vpop.permute.xlu0 %3203  ;;  %v18315_v42 = vadd.f32 %v18292_v11, %v3286_v19 }
 0x28b   :  { %v3224_v28 = vadd.f32 %v3204_v49, %v3160_v33  ;;  %v18300_v6 = vadd.f32 %v18292_v11, %v3285_v45  ;;  %v3892_v37 = vsel %vm318_vm0, %v3890_v30, %v3891_v21 }
 0x28c   :  { %v3266_v7 = vpop.permute.xlu1 %3265  ;;  %21853 = vst [vmem:[#allocation35_spill] sm:$0xff] %v18315_v42  ;;  %v21634_v60 = vmax.f32 %v18315_v42, 0.0  ;;  %v18596_v42 = vmul.f32 %v21842_v25, %v18186_v22 }
 0x28d   :  { %v3287_v29 = vadd.f32 %v3266_v7, %v3223_v26  ;;  %3747 = vrot.lane.b32.xlu0 %v3725_v35, %s16102_s18  ;;  %21846 = vst [vmem:[#allocation34_spill] sm:$0xff] %v18300_v6  ;;  %v21633_v47 = vmax.f32 %v18300_v6, 0.0  ;;  %v18337_v26 = vmul.f32 %v21852_v63, %v21845_v44  ;;  %v21855_v7 = vld [vmem:[#allocation46_spill] sm:$0xff]  ;;  %v3124_v6 = vmul.f32 %v21843_v54, %v18186_v22 }
 0x28e   :  { %3745 = vrot.lane.b32.xlu1 %v3724_v57, %s16102_s18  ;;  %v15748_v17 = vpop.permute.xlu0 %15747  ;;  %v3873_v57 = vmul.f32 %v21842_v25, %v21845_v44  ;;  %v21856_v33 = vmax.f32 %v21855_v7, 0.0 }
 0x28f   :  { %v15750_v52 = vunpack.i.h.bf16 %v15748_v17  ;;  %v15749_v36 = vunpack.i.l.bf16 %v15748_v17  ;;  %v18303_v23 = vadd.f32 %v18292_v11, %v3287_v29 }
 0x290   :  { %v3268_v20 = vpop.permute.xlu1 %3267  ;;  %v3893_v9 = vrot.slane %v3873_v57, 1 }
 0x291   :  { %21847 = vst [vmem:[#allocation44_spill] sm:$0xff] %v18303_v23  ;;  %v1596_v31 = vmax.f32 %v21849_v27, %v15750_v52  ;;  %v1595_v14 = vmax.f32 %v21851_v34, %v15749_v36  ;;  %v3288_v32 = vadd.f32 %v3268_v20, %v3224_v28  ;;  %3795 = vrot.lane.b32.xlu0 %v3774_v59, %s16103_s19  ;;  %v21635_v4 = vmax.f32 %v18303_v23, 0.0  ;;  %v21857_v59 = vld [vmem:[#allocation47_spill] sm:$0xff] }
 0x292   :  { %3793 = vrot.lane.b32.xlu1 %v3773_v61, %s16103_s19  ;;  %v18318_v50 = vpop.permute.xlu0 %2867  ;;  %v21858_v19 = vmax.f32 %v21857_v59, 0.0  ;;  %v15776_v61 = vpack.i.bf16 %v21634_v60, %v21633_v47  ;;  %v3776_v52 = vmul.f32 %v21852_v63, %v21844_v15  ;;  %v3895_v27 = vrot.slane %v18337_v26, 1 }
 0x293   :  { %v18323_v2 = vadd.f32 %v18292_v11, %v3288_v32  ;;  %v1615_v1 = vrot.slane %v1596_v31, 1  ;;  %v1614_v10 = vrot.slane %v1595_v14, 1  ;;  %v3936_v34 = vmul.f32 %v21843_v54, %v21859_v43 }
 0x294   :  { %v15753_v40 = vpop.permute.xlu1 %15752  ;;  %v3937_v15 = vmul.f32 %v21842_v25, %v21859_v43  ;;  %v4112_v26 = vmul.f32 %v21843_v54, %v18144_v8 }
 0x295   :  { %21854 = vst [vmem:[#allocation43_spill] sm:$0xff] %v18323_v2  ;;  %v21636_v41 = vmax.f32 %v18323_v2, 0.0  ;;  %v15755_v35 = vunpack.i.h.bf16 %v15753_v40  ;;  %v15754_v3 = vunpack.i.l.bf16 %v15753_v40  ;;  %3749 = vrot.lane.b32.xlu0 %v3726_v18, %s16102_s18  ;;  %v1616_v20 = vsel %vm318_vm0, %v1614_v10, %v1615_v1 }
 0x296   :  { %3797 = vrot.lane.b32.xlu1 %v3775_v16, %s16103_s19  ;;  %v18331_v49 = vpop.permute.xlu0 %2871  ;;  %v3935_v16 = vmul.f32 %v21841_v13, %v21859_v43  ;;  %v3955_v7 = vrot.slane %v3936_v34, 1 }
 0x297   :  { %v15781_v45 = vpack.i.bf16 %v21636_v41, %v21635_v4  ;;  %v1598_v29 = vmax.f32 %v21856_v33, %v15755_v35  ;;  %v1597_v17 = vmax.f32 %v21858_v19, %v15754_v3  ;;  %v1633_v35 = vmax.f32 %v1595_v14, %v1616_v20 }
 0x298   :  { %v18351_v28 = vpop.permute.xlu1 %2869  ;;  %v3957_v33 = vrot.slane %v3937_v15, 1  ;;  %v3954_v59 = vrot.slane %v3935_v16, 1  ;;  %v18382_v14 = vmul.f32 %v21852_v63, %v21859_v43 }
 0x299   :  { %v1619_v36 = vrot.slane %v1598_v29, 1  ;;  %v1617_v44 = vrot.slane %v1597_v17, 1  ;;  %15782 = vrot.lane.b32.xlu0 %v15781_v45, %s16102_s18 }
 0x29a   :  { %15777 = vrot.lane.b32.xlu1 %v15776_v61, %s16102_s18  ;;  %v18359_v5 = vpop.permute.xlu0 %2919  ;;  %v3958_v61 = vsel %vm318_vm0, %v3955_v7, %v3957_v33 }
 0x29b   :  { %v1620_v32 = vsel %vm318_vm0, %v1617_v44, %v1619_v36  ;;  %v1618_v18 = vsel %vm318_vm0, %v1615_v1, %v1617_v44  ;;  %v1636_v30 = vmax.f32 %v1598_v29, %v1619_v36  ;;  %v3896_v1 = vsel %vm318_vm0, %v3893_v9, %v3895_v27 }
 0x29c   :  { %v1635_v40 = vmax.f32 %v1597_v17, %v1620_v32  ;;  %v18370_v10 = vpop.permute.xlu1 %2917  ;;  %v1634_v3 = vmax.f32 %v1596_v31, %v1618_v18  ;;  %v3894_v29 = vsel %vm318_vm0, %v3891_v21, %v3893_v9  ;;  %v18391_v21 = vstv %s13203_s5  ;;  %v21862_v32 = vld [vmem:[#allocation32_spill] sm:$0xff] }
 0x29d   :  { %3905 = vrot.lane.b32.xlu0 %v3892_v37, %s16102_s18  ;;  %21861 = vst [vmem:[#allocation39_spill] sm:$0xff] %v18391_v21  ;;  %v3956_v36 = vsel %vm318_vm0, %v3954_v59, %v3955_v7  ;;  %v3959_v44 = vrot.slane %v18382_v14, 1  ;;  %v4595_v15 = vmul.f32 %v17829_v58, %v18391_v21  ;;  %v21863_v18 = vmax.f32 %v21862_v32, 0.0  ;;  %v21868_v7 = vld [vmem:[#allocation36_spill] sm:$0xff]  ;;  %v21871_v32 = vld [vmem:[#allocation33_spill] sm:$0xff] }
 0x29e   :  { %3799 = vrot.lane.b32.xlu1 %v3776_v52, %s16103_s19  ;;  %v18374_v57 = vpop.permute.xlu0 %2873  ;;  %v14572_v45 = vpack.c.bf16 %v1634_v3, %v1633_v35  ;;  %v14576_v19 = vpack.c.bf16 %v1636_v30, %v1635_v40  ;;  %v21864_v30 = vld [vmem:[#allocation29_spill] sm:$0xff]  ;;  %v21866_v3 = vld [vmem:[#allocation38_spill] sm:$0xff]  ;;  %v3143_v17 = vrot.slane %v3124_v6, 2  ;;  %v18641_v6 = vld [vmem:[%s21752_s29 + $0x38] sm:$0x3f] }
 0x29f   :  { %v21865_v40 = vmax.f32 %v21864_v30, 0.0  ;;  %v18437_v30 = vld [vmem:[%s21752_s29 + $0x8] sm:$0xff]  ;;  %21877 = vst [vmem:[#allocation40_spill] sm:$0xff] %v18641_v6 }
 0x2a0   :  { %v18384_v31 = vpop.permute.xlu1 %2921  ;;  %14573 = vmatprep.subr.bf16.mxu0 %v14572_v45 }
 0x2a1   :  { %3909 = vrot.lane.b32.xlu0 %v3896_v1, %s16102_s18  ;;  %14575 = vmatpush3.bf16.msra.mxu0 %v14572_v45  ;;  %v21867_v45 = vmax.f32 %v21866_v3, 0.0 }
 0x2a2   :  { %3907 = vrot.lane.b32.xlu1 %v3894_v29, %s16102_s18  ;;  %14578 = vmatprep.subr.msk.bf16.mxu0 %vm17314_vm5, %v14576_v19  ;;  %v21869_v29 = vmax.f32 %v21868_v7, 0.0 }
 0x2a3   :  { %v15763_v52 = vpop.permute.xlu0 %15762 }
 0x2a4   :  { %v15765_v37 = vunpack.i.h.bf16 %v15763_v52  ;;  %v15764_v20 = vunpack.i.l.bf16 %v15763_v52  ;;  %v15758_v9 = vpop.permute.xlu1 %15757 }
 0x2a5   :  { %v15760_v43 = vunpack.i.h.bf16 %v15758_v9  ;;  %v15759_v34 = vunpack.i.l.bf16 %v15758_v9  ;;  %3971 = vrot.lane.b32.xlu0 %v3958_v61, %s16103_s19  ;;  %14581 = vmatpush3.bf16.msk.msra.mxu0 %vm17314_vm5, %v14576_v19  ;;  %v3960_v19 = vsel %vm318_vm0, %v3957_v33, %v3959_v44 }
 0x2a6   :  { %v2470_v16 = vmax.f32 %v21863_v18, %v15765_v37  ;;  %v2469_v35 = vmax.f32 %v21865_v40, %v15764_v20  ;;  %3969 = vrot.lane.b32.xlu1 %v3956_v36, %s16103_s19  ;;  %v18418_v20 = vld [vmem:[#allocation8 + $0x8] sm:$0x3f]  ;;  %v18442_v40 = vstv %s18393_s2 }
 0x2a7   :  { %v2468_v1 = vmax.f32 %v21867_v45, %v15760_v43  ;;  %v2467_v59 = vmax.f32 %v21869_v29, %v15759_v34  ;;  %v18411_v61 = vpop.permute.xlu0 %3029  ;;  %21870 = vst [vmem:[#allocation31_spill] sm:$0xff] %v18418_v20  ;;  %v18426_v34 = vld [vmem:[%s21752_s29 + $0x10] sm:$0xff]  ;;  %21872 = vst [vmem:[#allocation45_spill] sm:$0xff] %v18442_v40  ;;  %v4645_v41 = vmul.f32 %v17829_v58, %v18442_v40 }
 0x2a8   :  { %v2488_v52 = vrot.slane %v2470_v16, 1  ;;  %v2486_v37 = vrot.slane %v2469_v35, 1  ;;  %v18416_v9 = vpop.permute.xlu1 %2923  ;;  %13963 = vmatmul.mubr.msk.f32.vlgmr.msra.gmra.mrb[6].mxu0 %vm750_vm2, %v18418_v20  ;;  %v4597_v33 = vmul.f32 %v18426_v34, %v18391_v21 }
 0x2a9   :  { %v2484_v36 = vrot.slane %v2468_v1, 1  ;;  %v2483_v43 = vrot.slane %v2467_v59, 1  ;;  %4611 = vrot.lane.b32.xlu0 %v4595_v15, %s16102_s18  ;;  %13984 = vmatprep.mubr.msk.f32.mxu0 %vm750_vm2, %v21871_v32  ;;  %v4596_v15 = vmul.f32 %v18437_v30, %v18391_v21 }
 0x2aa   :  { %v2489_v18 = vsel %vm318_vm0, %v2486_v37, %v2488_v52  ;;  %3973 = vrot.lane.b32.xlu1 %v3960_v19, %s16103_s19  ;;  %v2508_v29 = vmax.f32 %v2470_v16, %v2488_v52  ;;  %v4066_v52 = vrot.slane %v4047_v39, 2  ;;  %v4111_v39 = vmul.f32 %v21841_v13, %v18144_v8 }
 0x2ab   :  { %v18444_v3 = vpop.permute.xlu0 %3033  ;;  %v2485_v45 = vsel %vm318_vm0, %v2483_v43, %v2484_v36  ;;  %v2487_v7 = vsel %vm318_vm0, %v2484_v36, %v2486_v37  ;;  %v2507_v47 = vmax.f32 %v2469_v35, %v2489_v18  ;;  %v4048_v37 = vmul.f32 %v21843_v54, %v18074_v0 }
 0x2ac   :  { %v18448_v60 = vpop.permute.xlu1 %3031  ;;  %v2505_v19 = vmax.f32 %v2467_v59, %v2485_v45  ;;  %v2506_v4 = vmax.f32 %v2468_v1, %v2487_v7  ;;  %v4647_v59 = vmul.f32 %v18426_v34, %v18442_v40  ;;  %v4130_v45 = vrot.slane %v4111_v39, 2 }
 0x2ad   :  { %4615 = vrot.lane.b32.xlu0 %v4597_v33, %s16102_s18  ;;  %v14596_v1 = vpack.c.bf16 %v2508_v29, %v2507_v47  ;;  %v4067_v36 = vrot.slane %v4048_v37, 2  ;;  %v4049_v47 = vmul.f32 %v21842_v25, %v18074_v0  ;;  %v4131_v7 = vrot.slane %v4112_v26, 2 }
 0x2ae   :  { %4613 = vrot.lane.b32.xlu1 %v4596_v15, %s16102_s18  ;;  %v14592_v55 = vpack.c.bf16 %v2506_v4, %v2505_v19  ;;  %v4646_v4 = vmul.f32 %v18437_v30, %v18442_v40  ;;  %v4113_v19 = vmul.f32 %v21842_v25, %v18144_v8  ;;  %v18511_v37 = vmul.f32 %v21852_v63, %v18144_v8 }
 0x2af   :  { %v18458_v16 = vpop.permute.xlu0 %3095 }
 0x2b0   :  { %v18460_v35 = vpop.permute.xlu1 %3093  ;;  %14593 = vmatprep.subr.bf16.mxu0 %v14592_v55  ;;  %v4133_v8 = vrot.slane %v4113_v19, 2 }
 0x2b1   :  { %4661 = vrot.lane.b32.xlu0 %v4645_v41, %s16103_s19  ;;  %14595 = vmatpush3.bf16.msra.mxu0 %v14592_v55  ;;  %v18476_v55 = vmul.f32 %v21852_v63, %v18074_v0  ;;  %v4068_v0 = vsel %vm495_vm1, %v4066_v52, %v4067_v36  ;;  %v21642_v52 = vrot.slane %v18511_v37, 2 }
 0x2b2   :  { %3911 = vrot.lane.b32.xlu1 %v3895_v27, %s16102_s18  ;;  %14598 = vmatprep.subr.msk.bf16.mxu0 %vm17314_vm5, %v14596_v1  ;;  %v4069_v27 = vrot.slane %v4049_v47, 2 }
 0x2b3   :  { %v18478_v41 = vpop.permute.xlu0 %3735  ;;  %v21641_v33 = vrot.slane %v18476_v55, 2 }
 0x2b4   :  { %v18480_v43 = vpop.permute.xlu1 %3097 }
 0x2b5   :  { %4665 = vrot.lane.b32.xlu0 %v4647_v59, %s16103_s19  ;;  %14601 = vmatpush3.bf16.msk.msra.mxu0 %vm17314_vm5, %v14596_v1  ;;  %v4072_v29 = vsel %vm495_vm1, %v4069_v27, %v21641_v33  ;;  %v4070_v59 = vsel %vm495_vm1, %v4067_v36, %v4069_v27 }
 0x2b6   :  { %4663 = vrot.lane.b32.xlu1 %v4646_v4, %s16103_s19  ;;  %v4598_v4 = vmul.f32 %v17969_v53, %v18391_v21 }
 0x2b7   :  { %v18492_v18 = vpop.permute.xlu0 %3739 }
 0x2b8   :  { %v18494_v15 = vpop.permute.xlu1 %3737  ;;  %13985 = vmatmul.mubr.msk.f32.vlgmr.msra.gmra.mrb[8].mxu0 %vm750_vm2, %v18418_v20 }
 0x2b9   :  { %4081 = vrot.lane.b32.xlu0 %v4068_v0, %s16102_s18  ;;  %14006 = vmatprep.mubr.msk.f32.mxu0 %vm750_vm2, %v21871_v32  ;;  %v18516_v32 = vstv %s13206_s20  ;;  %s19051_s20 = sld [smem:[#allocation2 + $0x286]] }
 0x2ba   :  { %3975 = vrot.lane.b32.xlu1 %v3959_v44, %s16103_s19  ;;  %21873 = vst [vmem:[#allocation37_spill] sm:$0xff] %v18516_v32  ;;  %v4132_v44 = vsel %vm495_vm1, %v4130_v45, %v4131_v7  ;;  %v4743_v36 = vmul.f32 %v17829_v58, %v18516_v32  ;;  %v4744_v47 = vmul.f32 %v18437_v30, %v18516_v32 }
 0x2bb   :  { %v18513_v1 = vpop.permute.xlu0 %3785  ;;  %v4745_v0 = vmul.f32 %v18426_v34, %v18516_v32  ;;  %v18539_v27 = vmul.f32 %v17969_v53, %v18516_v32  ;;  %v4136_v58 = vsel %vm495_vm1, %v4133_v8, %v21642_v52  ;;  %v18567_v52 = vld [vmem:[%s21752_s29] sm:$0xff] }
 0x2bc   :  { %v18518_v14 = vpop.permute.xlu1 %3035  ;;  %v4759_v45 = vrot.slane %v4743_v36, 1 }
 0x2bd   :  { %4085 = vrot.lane.b32.xlu0 %v4072_v29, %s16102_s18  ;;  %v4760_v29 = vrot.slane %v4744_v47, 1  ;;  %v4762_v36 = vrot.slane %v4745_v0, 1  ;;  %v18585_v47 = vmul.f32 %v21852_v63, %v18096_v62 }
 0x2be   :  { %4083 = vrot.lane.b32.xlu1 %v4070_v59, %s16102_s18  ;;  %v4134_v59 = vsel %vm495_vm1, %v4131_v7, %v4133_v8  ;;  %v4648_v8 = vmul.f32 %v17969_v53, %v18442_v40  ;;  %v2969_v40 = vrot.slane %v2949_v46, 1 }
 0x2bf   :  { %v18530_v39 = vpop.permute.xlu0 %3789  ;;  %v4761_v7 = vsel %vm318_vm0, %v4759_v45, %v4760_v29  ;;  %v2947_v45 = vmul.f32 %v21841_v13, %v18096_v62 }
 0x2c0   :  { %v18532_v26 = vpop.permute.xlu1 %3787 }
 0x2c1   :  { %4145 = vrot.lane.b32.xlu0 %v4132_v44, %s16103_s19  ;;  %v18548_v44 = vstv %s13207_s16 }
 0x2c2   :  { %4617 = vrot.lane.b32.xlu1 %v4598_v4, %s16102_s18  ;;  %21874 = vst [vmem:[#allocation46_spill] sm:$0xff] %v18548_v44  ;;  %v2838_v4 = vmul.f32 %v21843_v54, %v18092_v48  ;;  %v4807_v32 = vmul.f32 %v18567_v52, %v18548_v44  ;;  %v18573_v0 = vmul.f32 %v18437_v30, %v18548_v44 }
 0x2c3   :  { %v18545_v19 = vpop.permute.xlu0 %3205  ;;  %v18608_v54 = vmul.f32 %v17969_v53, %v18548_v44  ;;  %v2839_v53 = vmul.f32 %v21842_v25, %v18092_v48 }
 0x2c4   :  { %v18554_v33 = vpop.permute.xlu1 %3099  ;;  %v2888_v20 = vadd.f32 %v18351_v28, %v2838_v4  ;;  %v4823_v46 = vrot.slane %v4807_v32, 1  ;;  %v4824_v63 = vrot.slane %v18573_v0, 1  ;;  %v4809_v28 = vmul.f32 %v18426_v34, %v18548_v44 }
 0x2c5   :  { %4149 = vrot.lane.b32.xlu0 %v4136_v58, %s16103_s19  ;;  %v2837_v4 = vmul.f32 %v21841_v13, %v18092_v48  ;;  %v4763_v0 = vsel %vm318_vm0, %v4760_v29, %v4762_v36  ;;  %v18634_v29 = vstv %s18575_s26  ;;  %v2889_v12 = vadd.f32 %v18331_v49, %v2839_v53 }
 0x2c6   :  { %4147 = vrot.lane.b32.xlu1 %v4134_v59, %s16103_s19  ;;  %v2967_v59 = vrot.slane %v2948_v38, 1  ;;  %v21875_v38 = vrot.slane %v18539_v27, 1  ;;  %v2938_v23 = vadd.f32 %v18359_v5, %v2888_v20  ;;  %v4825_v25 = vsel %vm318_vm0, %v4823_v46, %v4824_v63 }
 0x2c7   :  { %v18577_v58 = vpop.permute.xlu0 %3209  ;;  %v2887_v44 = vadd.f32 %v18318_v50, %v2837_v4  ;;  %v2840_v5 = vmul.f32 %v18641_v6, %v18092_v48  ;;  %v18657_v4 = vstv %s18587_s11 }
 0x2c8   :  { %v18589_v21 = vpop.permute.xlu1 %3207  ;;  %v4765_v62 = vsel %vm318_vm0, %v4762_v36, %v21875_v38  ;;  %v2966_v38 = vrot.slane %v2947_v45, 1  ;;  %v2970_v2 = vsel %vm318_vm0, %v2967_v59, %v2969_v40  ;;  %v4826_v36 = vrot.slane %v4809_v28, 1 }
 0x2c9   :  { %4773 = vrot.lane.b32.xlu0 %v4761_v7, %s16102_s18  ;;  %v18615_v7 = vld [vmem:[%s21752_s29 + $0x20] sm:$0xff]  ;;  %v21880_v28 = vrot.slane %v18585_v47, 1  ;;  %v18661_v45 = vmul.f32 %v18641_v6, %v18186_v22  ;;  %v21883_v6 = vrot.slane %v18608_v54, 1  ;;  %v3711_v24 = vmul.f32 %v18426_v34, %v18657_v4 }
 0x2ca   :  { %4667 = vrot.lane.b32.xlu1 %v4648_v8, %s16103_s19  ;;  %21876 = vst [vmem:[#allocation47_spill] sm:$0xff] %v18615_v7  ;;  %v3123_v32 = vmul.f32 %v18615_v7, %v18186_v22  ;;  %v2968_v46 = vsel %vm318_vm0, %v2966_v38, %v2967_v59  ;;  %v2986_v7 = vadd.f32 %v2970_v2, %v2938_v23  ;;  %v21882_v22 = vrot.slane %v18476_v55, 2 }
 0x2cb   :  { %v18619_v8 = vpop.permute.xlu0 %3269  ;;  %v2972_v50 = vsel %vm318_vm0, %v2969_v40, %v21880_v28  ;;  %v3819_v59 = vmul.f32 %v18567_v52, %v18634_v29  ;;  %v3820_v38 = vmul.f32 %v18437_v30, %v18634_v29  ;;  %v21881_v40 = vrot.slane %v18596_v42, 2 }
 0x2cc   :  { %v18625_v13 = vpop.permute.xlu1 %3741  ;;  %v3142_v20 = vrot.slane %v3123_v32, 2  ;;  %v2937_v32 = vadd.f32 %v18370_v10, %v2887_v44  ;;  %v4829_v23 = vsel %vm318_vm0, %v4826_v36, %v21883_v6  ;;  %v3050_v44 = vadd.f32 %v18448_v60, %v2986_v7 }
 0x2cd   :  { %4777 = vrot.lane.b32.xlu0 %v4765_v62, %s16102_s18  ;;  %v3146_v28 = vsel %vm495_vm1, %v3143_v17, %v21881_v40  ;;  %v4827_v40 = vsel %vm318_vm0, %v4824_v63, %v4826_v36  ;;  %v18691_v55 = vmul.f32 %v18426_v34, %v18634_v29  ;;  %v3709_v6 = vmul.f32 %v18567_v52, %v18657_v4 }
 0x2ce   :  { %4775 = vrot.lane.b32.xlu1 %v4763_v0, %s16102_s18  ;;  %v18648_v0 = vstv %s18579_s6  ;;  %v2985_v7 = vadd.f32 %v2968_v46, %v2937_v32  ;;  %v3835_v36 = vrot.slane %v3819_v59, 1  ;;  %v3114_v46 = vadd.f32 %v18458_v16, %v3050_v44 }
 0x2cf   :  { %v18645_v62 = vpop.permute.xlu0 %3273  ;;  %21879 = vst [vmem:[#allocation29_spill] sm:$0xff] %v18648_v0  ;;  %v4919_v2 = vmul.f32 %v18567_v52, %v18648_v0  ;;  %v4920_v10 = vmul.f32 %v18437_v30, %v18648_v0  ;;  %v4921_v60 = vmul.f32 %v18426_v34, %v18648_v0  ;;  %v3838_v32 = vrot.slane %v18691_v55, 1 }
 0x2d0   :  { %21878 = vst [vmem:[#allocation32_spill] sm:$0xff] %v18645_v62  ;;  %v18663_v48 = vpop.permute.xlu1 %3271  ;;  %v3710_v49 = vmul.f32 %v18437_v30, %v18657_v4  ;;  %v21885_v16 = vrot.slane %v18661_v45, 2 }
 0x2d1   :  { %4837 = vrot.lane.b32.xlu0 %v4825_v25, %s16103_s19  ;;  %v3144_v25 = vsel %vm495_vm1, %v3142_v20, %v3143_v17  ;;  %v18705_v17 = vld [vmem:[%s21752_s29 + $0x18] sm:$0x3f]  ;;  %v3836_v20 = vrot.slane %v3820_v38, 1  ;;  %v4936_v62 = vrot.slane %v4920_v10, 2  ;;  %v18726_v38 = vstv %s18650_s1 }
 0x2d2   :  { %4087 = vrot.lane.b32.xlu1 %v21882_v22, %s16102_s18  ;;  %v18709_v63 = vmul.f32 %v18705_v17, %v18648_v0  ;;  %v18714_v22 = vmul.f32 %v18705_v17, %v18634_v29  ;;  %v3049_v0 = vadd.f32 %v18411_v61, %v2985_v7  ;;  %v21886_v10 = vrot.slane %v18596_v42, 2 }
 0x2d3   :  { %v18686_v56 = vpop.permute.xlu0 %3897  ;;  %v3837_v55 = vsel %vm318_vm0, %v3835_v36, %v3836_v20  ;;  %v21888_v7 = vrot.slane %v18511_v37, 2  ;;  %v4984_v42 = vmul.f32 %v18437_v30, %v18726_v38  ;;  %v3162_v36 = vadd.f32 %v3146_v28, %v3114_v46 }
 0x2d4   :  { %v18698_v51 = vpop.permute.xlu1 %3791  ;;  %v3113_v61 = vadd.f32 %v18460_v35, %v3049_v0  ;;  %v3148_v44 = vsel %vm495_vm1, %v21886_v10, %v21885_v16  ;;  %v4985_v0 = vmul.f32 %v18426_v34, %v18726_v38  ;;  %v3839_v16 = vsel %vm318_vm0, %v3836_v20, %v3838_v32 }
 0x2d5   :  { %21884 = vst [vmem:[#allocation38_spill] sm:$0xff] %v18698_v51  ;;  %4841 = vrot.lane.b32.xlu0 %v4829_v23, %s16103_s19  ;;  %v4935_v51 = vrot.slane %v4919_v2, 2  ;;  %v2939_v23 = vadd.f32 %v18384_v31, %v2889_v12  ;;  %v4940_v2 = vrot.slane %v18709_v63, 2  ;;  %v21887_v31 = vrot.slane %v18539_v27, 1 }
 0x2d6   :  { %4839 = vrot.lane.b32.xlu1 %v4827_v40, %s16103_s19  ;;  %v4938_v40 = vrot.slane %v4921_v60, 2  ;;  %v2890_v60 = vadd.f32 %v18374_v57, %v2840_v5  ;;  %v4983_v57 = vmul.f32 %v18567_v52, %v18726_v38  ;;  %v18760_v27 = vstv %s18693_s30 }
 0x2d7   :  { %v18723_v59 = vpop.permute.xlu0 %3901  ;;  %v4937_v35 = vsel %vm495_vm1, %v4935_v51, %v4936_v62  ;;  %v2987_v5 = vadd.f32 %v2972_v50, %v2939_v23  ;;  %v3759_v20 = vadd.f32 %v18478_v41, %v3709_v6  ;;  %v3760_v46 = vadd.f32 %v18494_v15, %v3710_v49 }
 0x2d8   :  { %v18731_v53 = vpop.permute.xlu1 %3899  ;;  %v2940_v37 = vadd.f32 %v18416_v9, %v2890_v60  ;;  %v4939_v28 = vsel %vm495_vm1, %v4936_v62, %v4938_v40  ;;  %v3226_v12 = vadd.f32 %v18589_v21, %v3162_v36  ;;  %v21889_v50 = vrot.slane %v18608_v54, 1 }
 0x2d9   :  { %4779 = vrot.lane.b32.xlu0 %v21887_v31, %s16102_s18  ;;  %v4941_v31 = vsel %vm495_vm1, %v4938_v40, %v4940_v2  ;;  %v3051_v9 = vadd.f32 %v18444_v3, %v2987_v5  ;;  %v5000_v23 = vrot.slane %v4984_v42, 2  ;;  %v5002_v60 = vrot.slane %v4985_v0, 2 }
 0x2da   :  { %4151 = vrot.lane.b32.xlu1 %v21888_v7, %s16103_s19  ;;  %v3161_v7 = vadd.f32 %v3144_v25, %v3113_v61  ;;  %v18779_v62 = vmul.f32 %v18705_v17, %v18726_v38  ;;  %v3810_v41 = vadd.f32 %v18532_v26, %v3760_v46  ;;  %v3290_v21 = vadd.f32 %v18663_v48, %v3226_v12 }
 0x2db   :  { %v18755_v10 = vpop.permute.xlu0 %3961  ;;  %v4999_v6 = vrot.slane %v4983_v57, 2  ;;  %v3115_v3 = vadd.f32 %v18480_v43, %v3051_v9  ;;  %v21890_v54 = vrot.slane %v18585_v47, 1  ;;  %v3995_v61 = vmul.f32 %v18567_v52, %v18760_v27 }
 0x2dc   :  { %v18763_v51 = vpop.permute.xlu1 %3211  ;;  %v3225_v15 = vadd.f32 %v18545_v19, %v3161_v7  ;;  %v3761_v26 = vadd.f32 %v18492_v18, %v3711_v24  ;;  %v3809_v19 = vadd.f32 %v18513_v1, %v3759_v20  ;;  %v3712_v43 = vmul.f32 %v18705_v17, %v18657_v4 }
 0x2dd   :  { %4949 = vrot.lane.b32.xlu0 %v4937_v35, %s16102_s18  ;;  %v2988_v49 = vadd.f32 %v21890_v54, %v2940_v37  ;;  %v18793_v35 = vmul.f32 %v18426_v34, %v18760_v27  ;;  %v5003_v12 = vsel %vm495_vm1, %v5000_v23, %v5002_v60  ;;  %v3996_v42 = vmul.f32 %v18437_v30, %v18760_v27 }
 0x2de   :  { %4843 = vrot.lane.b32.xlu1 %v21889_v50, %s16103_s19  ;;  %v3289_v48 = vadd.f32 %v18619_v8, %v3225_v15  ;;  %v5004_v24 = vrot.slane %v18779_v62, 2  ;;  %v18808_v18 = vadd.f32 %v18292_v11, %v3290_v21  ;;  %v21891_v1 = vrot.slane %v18714_v22, 1  ;;  %v21892_v62 = vld [vmem:[#allocation32_spill] sm:$0xff] }
 0x2df   :  { %v18784_v25 = vpop.permute.xlu0 %3965  ;;  %v3052_v47 = vadd.f32 %v18518_v14, %v2988_v49  ;;  %v3858_v0 = vadd.f32 %v3839_v16, %v3810_v41  ;;  %v5001_v14 = vsel %vm495_vm1, %v4999_v6, %v5000_v23  ;;  %v3163_v37 = vadd.f32 %v3148_v44, %v3115_v3  ;;  %v21894_v3 = vld [vmem:[#allocation38_spill] sm:$0xff] }
 0x2e0   :  { %v3964_v40 = vpop.permute.xlu1 %3963  ;;  %v3841_v8 = vsel %vm318_vm0, %v3838_v32, %v21891_v1  ;;  %v3811_v20 = vadd.f32 %v18530_v39, %v3761_v26  ;;  %v18818_v46 = vadd.f32 %v18292_v11, %v3289_v48  ;;  %v3857_v7 = vadd.f32 %v3837_v55, %v3809_v19 }
 0x2e1   :  { %4953 = vrot.lane.b32.xlu0 %v4941_v31, %s16102_s18  ;;  %v3116_v57 = vadd.f32 %v18554_v33, %v3052_v47  ;;  %v4011_v31 = vrot.slane %v3995_v61, 2  ;;  %v3922_v9 = vadd.f32 %v18731_v53, %v3858_v0  ;;  %v3227_v32 = vadd.f32 %v18577_v58, %v3163_v37 }
 0x2e2   :  { %4951 = vrot.lane.b32.xlu1 %v4939_v28, %s16102_s18  ;;  %v4014_v28 = vrot.slane %v18793_v35, 2  ;;  %v4012_v33 = vrot.slane %v3996_v42, 2  ;;  %v5005_v44 = vsel %vm495_vm1, %v5002_v60, %v5004_v24  ;;  %v3998_v16 = vmul.f32 %v18705_v17, %v18760_v27 }
 0x2e3   :  { %v3904_v36 = vpop.permute.xlu0 %3903  ;;  %v3762_v39 = vadd.f32 %v18625_v13, %v3712_v43  ;;  %v3308_v50 = vmax.f32 %v18808_v18, 0.0  ;;  %v3921_v55 = vadd.f32 %v18686_v56, %v3857_v7  ;;  %v3986_v23 = vadd.f32 %v3964_v40, %v3922_v9 }
 0x2e4   :  { %v3276_v5 = vpop.permute.xlu1 %3275  ;;  %v3291_v41 = vadd.f32 %v21892_v62, %v3227_v32  ;;  %v21893_v58 = vrot.slane %v18661_v45, 2  ;;  %v4015_v6 = vsel %vm495_vm1, %v4012_v33, %v4014_v28  ;;  %v3307_v60 = vmax.f32 %v18818_v46, 0.0  ;;  %v21916_v46 = vld [vmem:[#allocation39_spill] sm:$0xff] }
 0x2e5   :  { %5015 = vrot.lane.b32.xlu0 %v5003_v12, %s16103_s19  ;;  %v3812_v54 = vadd.f32 %v21894_v3, %v3762_v39  ;;  %v3859_v13 = vadd.f32 %v3841_v8, %v3811_v20  ;;  %v3985_v49 = vadd.f32 %v18755_v10, %v3921_v55  ;;  %v4013_v45 = vsel %vm495_vm1, %v4011_v31, %v4012_v33 }
 0x2e6   :  { %5013 = vrot.lane.b32.xlu1 %v5001_v14, %s16103_s19  ;;  %v3164_v15 = vadd.f32 %v21893_v58, %v3116_v57  ;;  %v4016_v40 = vrot.slane %v3998_v16, 2  ;;  %v15786_v61 = vpack.i.bf16 %v3308_v50, %v3307_v60  ;;  %v4034_v10 = vadd.f32 %v4015_v6, %v3986_v23 }
 0x2e7   :  { %v4074_v53 = vpop.permute.xlu0 %4073  ;;  %v3923_v35 = vadd.f32 %v18723_v59, %v3859_v13  ;;  %v18849_v19 = vadd.f32 %v18292_v11, %v3291_v41  ;;  %v21895_v48 = vmov %v21891_v1  ;;  %v4033_v47 = vadd.f32 %v4013_v45, %v3985_v49 }
 0x2e8   :  { %v3968_v21 = vpop.permute.xlu1 %3967  ;;  %v3228_v56 = vadd.f32 %v18763_v51, %v3164_v15  ;;  %v3860_v43 = vadd.f32 %v21895_v48, %v3812_v54  ;;  %v4017_v42 = vsel %vm495_vm1, %v4014_v28, %v4016_v40  ;;  %v21898_v54 = vld [vmem:[#allocation42_spill] sm:$0xff] }
 0x2e9   :  { %4955 = vrot.lane.b32.xlu0 %v4940_v2, %s16102_s18  ;;  %v3987_v51 = vadd.f32 %v18784_v25, %v3923_v35  ;;  %v4097_v1 = vadd.f32 %v4074_v53, %v4033_v47  ;;  %v3309_v0 = vmax.f32 %v18849_v19, 0.0  ;;  %v18861_v25 = vstv %s13189_s7  ;;  %v21902_v47 = vld [vmem:[#allocation49_spill] sm:$0xff] }
 0x2ea   :  { %5017 = vrot.lane.b32.xlu1 %v5005_v44, %s16103_s19  ;;  %v3292_v63 = vadd.f32 %v3276_v5, %v3228_v56  ;;  %v3924_v59 = vadd.f32 %v3904_v36, %v3860_v43  ;;  %v21899_v13 = vmax.f32 %v21898_v54, 0.0 }
 0x2eb   :  { %v4078_v26 = vpop.permute.xlu0 %4077  ;;  %v4035_v37 = vadd.f32 %v4017_v42, %v3987_v51  ;;  %v21900_v51 = vld [vmem:[#allocation48_spill] sm:$0xff] }
 0x2ec   :  { %v4076_v2 = vpop.permute.xlu1 %4075  ;;  %v18859_v14 = vadd.f32 %v18292_v11, %v3292_v63  ;;  %v3988_v57 = vadd.f32 %v3968_v21, %v3924_v59  ;;  %v21896_v21 = vld [vmem:[#allocation41_spill] sm:$0xff]  ;;  %v21901_v48 = vmax.f32 %v21900_v51, 0.0 }
 0x2ed   :  { %v4098_v12 = vadd.f32 %v4076_v2, %v4034_v10  ;;  %15787 = vrot.lane.b32.xlu0 %v15786_v61, %s16102_s18  ;;  %v21897_v6 = vmax.f32 %v21896_v21, 0.0 }
 0x2ee   :  { %5019 = vrot.lane.b32.xlu1 %v5004_v24, %s16103_s19  ;;  %v4099_v24 = vadd.f32 %v4078_v26, %v4035_v37  ;;  %v3310_v20 = vmax.f32 %v18859_v14, 0.0  ;;  %v4036_v32 = vadd.f32 %v4016_v40, %v3988_v57 }
 0x2ef   :  { %v4140_v8 = vpop.permute.xlu0 %4139 }
 0x2f0   :  { %v4138_v22 = vpop.permute.xlu1 %4137  ;;  %v4162_v5 = vadd.f32 %v4140_v8, %v4098_v12  ;;  %v21903_v12 = vmax.f32 %v21902_v47, 0.0 }
 0x2f1   :  { %v4161_v31 = vadd.f32 %v4138_v22, %v4097_v1 }
 0x2f2   :  { %3331 = vrot.lane.b32.xlu1 %v3309_v0, %s16102_s18  ;;  %v18871_v7 = vadd.f32 %v18861_v25, %v4162_v5 }
 0x2f3   :  { %v18867_v36 = vadd.f32 %v18861_v25, %v4161_v31  ;;  %v4080_v28 = vpop.permute.xlu0 %4079 }
 0x2f4   :  { %v4142_v11 = vpop.permute.xlu1 %4141  ;;  %v4100_v16 = vadd.f32 %v4080_v28, %v4036_v32  ;;  %v21669_v41 = vmax.f32 %v18871_v7, 0.0 }
 0x2f5   :  { %v21671_v9 = vmax.f32 %v18867_v36, 0.0  ;;  %v4163_v33 = vadd.f32 %v4142_v11, %v4099_v24 }
 0x2f7   :  { %v15791_v44 = vpack.i.bf16 %v21671_v9, %v3310_v20  ;;  %v18879_v39 = vadd.f32 %v18861_v25, %v4163_v33  ;;  %v15768_v55 = vpop.permute.xlu0 %15767 }
 0x2f8   :  { %v15770_v23 = vunpack.i.h.bf16 %v15768_v55  ;;  %v15769_v53 = vunpack.i.l.bf16 %v15768_v55  ;;  %v4144_v62 = vpop.permute.xlu1 %4143 }
 0x2f9   :  { %v21670_v58 = vmax.f32 %v18879_v39, 0.0  ;;  %v4164_v15 = vadd.f32 %v4144_v62, %v4100_v16  ;;  %15792 = vrot.lane.b32.xlu0 %v15791_v44, %s16102_s18 }
 0x2fa   :  { %v2472_v3 = vmax.f32 %v21897_v6, %v15770_v23  ;;  %v2471_v49 = vmax.f32 %v21899_v13, %v15769_v53 }
 0x2fb   :  { %v15796_v56 = vpack.i.bf16 %v21670_v58, %v21669_v41  ;;  %v18893_v45 = vadd.f32 %v18861_v25, %v4164_v15  ;;  %v18895_v40 = vpop.permute.xlu0 %3743 }
 0x2fc   :  { %v2491_v61 = vrot.slane %v2472_v3, 1  ;;  %v15773_v35 = vpop.permute.xlu1 %15772  ;;  %v2490_v26 = vrot.slane %v2471_v49, 1 }
 0x2fd   :  { %v21668_v10 = vmax.f32 %v18893_v45, 0.0  ;;  %v15775_v63 = vunpack.i.h.bf16 %v15773_v35  ;;  %v15774_v2 = vunpack.i.l.bf16 %v15773_v35  ;;  %15797 = vrot.lane.b32.xlu1 %v15796_v56, %s16102_s18 }
 0x2fe   :  { %v2492_v8 = vsel %vm318_vm0, %v2490_v26, %v2491_v61 }
 0x2ff   :  { %v2474_v43 = vmax.f32 %v21901_v48, %v15775_v63  ;;  %v2473_v42 = vmax.f32 %v21903_v12, %v15774_v2  ;;  %4201 = vrot.lane.b32.xlu0 %v21668_v10, %s16102_s18  ;;  %v18906_v59 = vpop.permute.xlu0 %3747  ;;  %v2509_v24 = vmax.f32 %v2471_v49, %v2492_v8  ;;  %v21909_v63 = vld [vmem:[#allocation35_spill] sm:$0xff]  ;;  %v21911_v48 = vld [vmem:[#allocation34_spill] sm:$0xff] }
 0x300   :  { %v18908_v1 = vpop.permute.xlu1 %3745  ;;  %v21910_v2 = vmax.f32 %v21909_v63, 0.0  ;;  %v18959_v63 = vld [vmem:[%s21752_s29 + $0x28] sm:$0xff] }
 0x301   :  { %v2495_v22 = vrot.slane %v2474_v43, 1  ;;  %v2493_v57 = vrot.slane %v2473_v42, 1 }
 0x303   :  { %v2496_v37 = vsel %vm318_vm0, %v2493_v57, %v2495_v22  ;;  %v18912_v5 = vpop.permute.xlu0 %3795  ;;  %v2494_v31 = vsel %vm318_vm0, %v2491_v61, %v2493_v57  ;;  %v2512_v28 = vmax.f32 %v2474_v43, %v2495_v22  ;;  %v21907_v61 = vld [vmem:[#allocation44_spill] sm:$0xff]  ;;  %v21912_v43 = vmax.f32 %v21911_v48, 0.0  ;;  %v21913_v57 = vld [vmem:[#allocation31_spill] sm:$0xff] }
 0x304   :  { %v2511_v11 = vmax.f32 %v2473_v42, %v2496_v37  ;;  %v18915_v32 = vpop.permute.xlu1 %3793  ;;  %v2510_v33 = vmax.f32 %v2472_v3, %v2494_v31  ;;  %v21905_v3 = vld [vmem:[#allocation43_spill] sm:$0xff]  ;;  %v21908_v35 = vmax.f32 %v21907_v61, 0.0  ;;  %v3714_v48 = vmul.f32 %v18959_v63, %v18657_v4 }
 0x305   :  { %v21906_v49 = vmax.f32 %v21905_v3, 0.0 }
 0x306   :  { %v14612_v44 = vpack.c.bf16 %v2510_v33, %v2509_v24  ;;  %v14616_v23 = vpack.c.bf16 %v2512_v28, %v2511_v11  ;;  %v18937_v24 = vld [vmem:[#allocation8] sm:$0xff] }
 0x307   :  { %v18917_v16 = vpop.permute.xlu0 %3749 }
 0x308   :  { %v18919_v55 = vpop.permute.xlu1 %3797  ;;  %14613 = vmatprep.subr.bf16.mxu0 %v14612_v44 }
 0x309   :  { %14615 = vmatpush3.bf16.msra.mxu0 %v14612_v44 }
 0x30a   :  { %14618 = vmatprep.subr.msk.bf16.mxu0 %vm17314_vm5, %v14616_v23 }
 0x30b   :  { %v15783_v62 = vpop.permute.xlu0 %15782 }
 0x30c   :  { %v15785_v15 = vunpack.i.h.bf16 %v15783_v62  ;;  %v15784_v21 = vunpack.i.l.bf16 %v15783_v62  ;;  %v15778_v6 = vpop.permute.xlu1 %15777 }
 0x30d   :  { %v15780_v54 = vunpack.i.h.bf16 %v15778_v6  ;;  %v15779_v13 = vunpack.i.l.bf16 %v15778_v6  ;;  %14621 = vmatpush3.bf16.msk.msra.mxu0 %vm17314_vm5, %v14616_v23 }
 0x30e   :  { %v3346_v56 = vmax.f32 %v21906_v49, %v15785_v15  ;;  %v3345_v26 = vmax.f32 %v21908_v35, %v15784_v21 }
 0x30f   :  { %v3344_v51 = vmax.f32 %v21910_v2, %v15780_v54  ;;  %v3343_v47 = vmax.f32 %v21912_v43, %v15779_v13  ;;  %v18933_v12 = vpop.permute.xlu0 %3905  ;;  %v3824_v2 = vmul.f32 %v18959_v63, %v18634_v29  ;;  %v21915_v43 = vld [vmem:[#allocation40_spill] sm:$0xff] }
 0x310   :  { %v3364_v42 = vrot.slane %v3346_v56, 1  ;;  %v3362_v8 = vrot.slane %v3345_v26, 1  ;;  %v3800_v22 = vpop.permute.xlu1 %3799  ;;  %14007 = vmatmul.mubr.msk.f32.vlgmr.msra.gmra.mrb[10].mxu0 %vm750_vm2, %v21913_v57 }
 0x311   :  { %v3360_v37 = vrot.slane %v3344_v51, 1  ;;  %v3359_v31 = vrot.slane %v3343_v47, 1  ;;  %14028 = vmatprep.mubr.msk.f32.mxu0 %vm750_vm2, %v18937_v24 }
 0x312   :  { %v3365_v28 = vsel %vm318_vm0, %v3362_v8, %v3364_v42  ;;  %v3384_v23 = vmax.f32 %v3346_v56, %v3364_v42  ;;  %v21914_v56 = vld [vmem:[#allocation47_spill] sm:$0xff] }
 0x313   :  { %v3361_v11 = vsel %vm318_vm0, %v3359_v31, %v3360_v37  ;;  %v3363_v33 = vsel %vm318_vm0, %v3360_v37, %v3362_v8  ;;  %v18944_v44 = vpop.permute.xlu0 %3909  ;;  %v3383_v62 = vmax.f32 %v3345_v26, %v3365_v28  ;;  %v3823_v26 = vmul.f32 %v21914_v56, %v18634_v29  ;;  %v18974_v8 = vld [vmem:[%s21752_s29 + $0x30] sm:$0xff] }
 0x314   :  { %v3381_v15 = vmax.f32 %v3343_v47, %v3361_v11  ;;  %v3382_v21 = vmax.f32 %v3344_v51, %v3363_v33  ;;  %v3908_v6 = vpop.permute.xlu1 %3907  ;;  %v3713_v51 = vmul.f32 %v21914_v56, %v18657_v4  ;;  %v3716_v47 = vmul.f32 %v21915_v43, %v18657_v4 }
 0x315   :  { %v14636_v49 = vpack.c.bf16 %v3384_v23, %v3383_v62  ;;  %v3825_v37 = vmul.f32 %v18974_v8, %v18634_v29  ;;  %v3826_v28 = vmul.f32 %v21915_v43, %v18634_v29  ;;  %v3715_v11 = vmul.f32 %v18974_v8, %v18657_v4 }
 0x316   :  { %v14632_v54 = vpack.c.bf16 %v3382_v21, %v3381_v15  ;;  %v3842_v33 = vrot.slane %v3823_v26, 1  ;;  %v3843_v23 = vrot.slane %v3824_v2, 1  ;;  %v3763_v62 = vadd.f32 %v18895_v40, %v3713_v51 }
 0x317   :  { %v18946_v13 = vpop.permute.xlu0 %3971  ;;  %v3764_v15 = vadd.f32 %v18908_v1, %v3714_v48  ;;  %v3766_v21 = vadd.f32 %v18917_v16, %v3716_v47  ;;  %v3847_v41 = vrot.slane %v3826_v28, 1  ;;  %v3765_v58 = vadd.f32 %v18906_v59, %v3715_v11 }
 0x318   :  { %v3970_v3 = vpop.permute.xlu1 %3969  ;;  %14633 = vmatprep.subr.bf16.mxu0 %v14632_v54  ;;  %v3813_v29 = vadd.f32 %v18915_v32, %v3763_v62  ;;  %v3844_v4 = vsel %vm318_vm0, %v3842_v33, %v3843_v23  ;;  %v3999_v26 = vmul.f32 %v21914_v56, %v18760_v27  ;;  %v4000_v40 = vmul.f32 %v18959_v63, %v18760_v27 }
 0x319   :  { %14635 = vmatpush3.bf16.msra.mxu0 %v14632_v54  ;;  %v3816_v10 = vadd.f32 %v3800_v22, %v3766_v21  ;;  %v3814_v1 = vadd.f32 %v18912_v5, %v3764_v15  ;;  %v3815_v2 = vadd.f32 %v18919_v55, %v3765_v58  ;;  %v4002_v47 = vmul.f32 %v21915_v43, %v18760_v27 }
 0x31a   :  { %14638 = vmatprep.subr.msk.bf16.mxu0 %vm17314_vm5, %v14636_v49  ;;  %v3861_v51 = vadd.f32 %v3844_v4, %v3813_v29  ;;  %v4019_v28 = vrot.slane %v4000_v40, 2  ;;  %v4001_v5 = vmul.f32 %v18974_v8, %v18760_v27  ;;  %v4601_v19 = vmul.f32 %v18974_v8, %v21916_v46 }
 0x31b   :  { %v18950_v61 = vpop.permute.xlu0 %4611  ;;  %v3864_v48 = vadd.f32 %v3847_v41, %v3816_v10 }
 0x31c   :  { %v3974_v35 = vpop.permute.xlu1 %3973  ;;  %v3925_v11 = vadd.f32 %v18933_v12, %v3861_v51  ;;  %v4021_v4 = vrot.slane %v4001_v5, 2 }
 0x31d   :  { %14641 = vmatpush3.bf16.msk.msra.mxu0 %vm17314_vm5, %v14636_v49 }
 0x31e   :  { %v3989_v21 = vadd.f32 %v3970_v3, %v3925_v11 }
 0x31f   :  { %v18969_v42 = vpop.permute.xlu0 %4615 }
 0x320   :  { %v18978_v31 = vpop.permute.xlu1 %4613  ;;  %14029 = vmatmul.mubr.msk.f32.vlgmr.msra.gmra.mrb[12].mxu0 %vm750_vm2, %v21913_v57  ;;  %v3845_v57 = vrot.slane %v3825_v37, 1  ;;  %v4018_v37 = vrot.slane %v3999_v26, 2 }
 0x321   :  { %14050 = vmatprep.mubr.msk.f32.mxu0 %vm750_vm2, %v18937_v24 }
 0x322   :  { %v3846_v32 = vsel %vm318_vm0, %v3843_v23, %v3845_v57  ;;  %v3848_v59 = vsel %vm318_vm0, %v3845_v57, %v3847_v41  ;;  %v4023_v57 = vrot.slane %v4002_v47, 2  ;;  %v4020_v10 = vsel %vm495_vm1, %v4018_v37, %v4019_v28 }
 0x323   :  { %v18991_v54 = vpop.permute.xlu0 %4661  ;;  %v3862_v33 = vadd.f32 %v3846_v32, %v3814_v1  ;;  %v3863_v23 = vadd.f32 %v3848_v59, %v3815_v2 }
 0x324   :  { %v3912_v49 = vpop.permute.xlu1 %3911  ;;  %v4024_v1 = vsel %vm495_vm1, %v4021_v4, %v4023_v57 }
 0x325   :  { %v3928_v58 = vadd.f32 %v3912_v49, %v3864_v48  ;;  %v3926_v15 = vadd.f32 %v3908_v6, %v3862_v33  ;;  %v3927_v41 = vadd.f32 %v18944_v44, %v3863_v23  ;;  %v4037_v49 = vadd.f32 %v4020_v10, %v3989_v21 }
 0x326   :  { %v4022_v6 = vsel %vm495_vm1, %v4019_v28, %v4021_v4  ;;  %v186_v4 = vld [vmem:[%s21540_s4] sm:$0xff] }
 0x327   :  { %v19001_v16 = vpop.permute.xlu0 %4665  ;;  %v3991_v27 = vadd.f32 %v3974_v35, %v3927_v41  ;;  %v3990_v12 = vadd.f32 %v18946_v13, %v3926_v15  ;;  %v19038_v15 = vstv %s13202_s25 }
 0x328   :  { %v19005_v22 = vpop.permute.xlu1 %4663 }
 0x329   :  { %v4039_v32 = vadd.f32 %v4024_v1, %v3991_v27  ;;  %v4038_v44 = vadd.f32 %v4022_v6, %v3990_v12  ;;  %v188_v27 = vld [vmem:[%s21540_s4 + $0x10] sm:$0xff]  ;;  %v13898_v12 = vpop.f32.mrb[0].mxu0  ;;  %v4586_v1 = vmul.f32 %v18437_v30, %v19038_v15 }
 0x32b   :  { %v4082_v55 = vpop.permute.xlu0 %4081 }
 0x32c   :  { %v3976_v62 = vpop.permute.xlu1 %3975  ;;  %v4101_v3 = vadd.f32 %v4082_v55, %v4037_v49  ;;  %v4585_v49 = vmul.f32 %v18567_v52, %v19038_v15 }
 0x32d   :  { %v3992_v29 = vadd.f32 %v3976_v62, %v3928_v58 }
 0x32f   :  { %v4086_v26 = vpop.permute.xlu0 %4085  ;;  %v19015_v40 = vadd.f32 %v4023_v57, %v3992_v29  ;;  %v19047_v29 = vstv %s13205_s0 }
 0x330   :  { %v4084_v9 = vpop.permute.xlu1 %4083  ;;  %v4103_v48 = vadd.f32 %v4086_v26, %v4039_v32  ;;  %v4697_v41 = vmul.f32 %v18426_v34, %v19047_v29  ;;  %v187_v26 = vld [vmem:[%s21540_s4 + $0x8] sm:$0xff]  ;;  %v4695_v32 = vmul.f32 %v18567_v52, %v19047_v29 }
 0x331   :  { %v4102_v47 = vadd.f32 %v4084_v9, %v4038_v44  ;;  %v19069_v6 = vpack.c.bf16 %v187_v26, %v186_v4  ;;  %v4696_v44 = vmul.f32 %v18437_v30, %v19047_v29  ;;  %v4698_v4 = vmul.f32 %v18705_v17, %v19047_v29 }
 0x332   :  { %v4711_v30 = vrot.slane %v4695_v32, 1 }
 0x333   :  { %v4146_v2 = vpop.permute.xlu0 %4145  ;;  %14523 = vmatprep.subr.bf16.mxu1 %v19069_v6 }
 0x334   :  { %v19020_v51 = vpop.permute.xlu1 %4617  ;;  %v4165_v59 = vadd.f32 %v4146_v2, %v4101_v3  ;;  %v189_v3 = vld [vmem:[%s21540_s4 + $0x18] sm:$0x7]  ;;  %v827_v2 = vpop.f32.mrb[1].mxu0  ;;  %14525 = vmatpush3.bf16.msra.mxu1 %v19069_v6 }
 0x335   :  { %13907 = vmatprep.mubr.msk.f32.mxu1 %vm750_vm2, %v827_v2  ;;  %v4716_v2 = vrot.slane %v4698_v4, 1 }
 0x336   :  { %v19023_v13 = vadd.f32 %v18861_v25, %v4165_v59  ;;  %v19078_v59 = vpack.c.bf16 %v189_v3, %v188_v27  ;;  %v19094_v27 = vstv %s19051_s20 }
 0x337   :  { %v4150_v37 = vpop.permute.xlu0 %4149  ;;  %v4871_v32 = vmul.f32 %v18567_v52, %v19094_v27 }
 0x338   :  { %v4167_v35 = vadd.f32 %v4150_v37, %v4103_v48  ;;  %v4148_v5 = vpop.permute.xlu1 %4147  ;;  %v21672_v9 = vmax.f32 %v19023_v13, 0.0  ;;  %14528 = vmatprep.subr.msk.bf16.mxu1 %vm17314_vm5, %v19078_v59 }
 0x339   :  { %v4166_v11 = vadd.f32 %v4148_v5, %v4102_v47  ;;  %v4714_v47 = vrot.slane %v4697_v41, 1  ;;  %v4587_v5 = vmul.f32 %v18426_v34, %v19038_v15  ;;  %14531 = vmatpush3.bf16.msk.msra.mxu1 %vm17314_vm5, %v19078_v59 }
 0x33a   :  { %v19026_v28 = vadd.f32 %v18861_v25, %v4167_v35  ;;  %v4635_v35 = vadd.f32 %v18950_v61, %v4585_v49  ;;  %14543 = vmatprep.subr.bf16.mxu1 %v19069_v6 }
 0x33b   :  { %v19029_v33 = vadd.f32 %v18861_v25, %v4166_v11  ;;  %v19031_v58 = vpop.permute.xlu0 %4773  ;;  %v4636_v11 = vadd.f32 %v18978_v31, %v4586_v1  ;;  %v4873_v31 = vmul.f32 %v18426_v34, %v19094_v27  ;;  %v4637_v1 = vadd.f32 %v18969_v42, %v4587_v5  ;;  %v15848_v34 = vld [vmem:[%s21752_s29 + $0x8] sm:$0xff] }
 0x33c   :  { %v21674_v55 = vmax.f32 %v19026_v28, 0.0  ;;  %v19034_v23 = vpop.permute.xlu1 %4667  ;;  %v4685_v3 = vadd.f32 %v18991_v54, %v4635_v35  ;;  %13908 = vmatmul.mubr.msk.f32.vlgmr.msra.gmra.mrb[0].mxu1 %vm750_vm2, %v13898_v12  ;;  %v4717_v4 = vsel %vm318_vm0, %v4714_v47, %v4716_v2 }
 0x33d   :  { %v21673_v62 = vmax.f32 %v19029_v33, 0.0  ;;  %v4686_v41 = vadd.f32 %v19005_v22, %v4636_v11  ;;  %v4588_v11 = vmul.f32 %v18705_v17, %v19038_v15  ;;  %v4890_v35 = vrot.slane %v4873_v31, 2  ;;  %14545 = vmatpush3.bf16.msra.mxu1 %v19069_v6 }
 0x33e   :  { %4207 = vrot.lane.b32.xlu0 %v21674_v55, %s16102_s18  ;;  %14548 = vmatprep.subr.msk.bf16.mxu1 %vm17314_vm5, %v19078_v59 }
 0x33f   :  { %v15801_v21 = vpack.i.bf16 %v21673_v62, %v21672_v9  ;;  %v19049_v57 = vpop.permute.xlu0 %4777  ;;  %v4638_v12 = vadd.f32 %v19020_v51, %v4588_v11 }
 0x340   :  { %v4776_v10 = vpop.permute.xlu1 %4775 }
 0x341   :  { %15802 = vrot.lane.b32.xlu1 %v15801_v21, %s16102_s18  ;;  %v4712_v21 = vrot.slane %v4696_v44, 1  ;;  %v4872_v44 = vmul.f32 %v15848_v34, %v19094_v27  ;;  %v4887_v34 = vrot.slane %v4871_v32, 2  ;;  %14551 = vmatpush3.bf16.msk.msra.mxu1 %vm17314_vm5, %v19078_v59 }
 0x342   :  { %14563 = vmatprep.subr.bf16.mxu1 %v19069_v6 }
 0x343   :  { %v4838_v48 = vpop.permute.xlu0 %4837  ;;  %v4715_v61 = vsel %vm318_vm0, %v4712_v21, %v4714_v47  ;;  %v4713_v22 = vsel %vm318_vm0, %v4711_v30, %v4712_v21  ;;  %v4687_v30 = vadd.f32 %v19001_v16, %v4637_v1  ;;  %v4888_v9 = vrot.slane %v4872_v44, 2 }
 0x344   :  { %v4088_v37 = vpop.permute.xlu1 %4087  ;;  %v4734_v42 = vadd.f32 %v4715_v61, %v4686_v41  ;;  %v4733_v52 = vadd.f32 %v4713_v22, %v4685_v3  ;;  %v4874_v41 = vmul.f32 %v18705_v17, %v19094_v27  ;;  %v4688_v47 = vadd.f32 %v19034_v23, %v4638_v12 }
 0x345   :  { %v4735_v1 = vadd.f32 %v4717_v4, %v4687_v30  ;;  %v4104_v17 = vadd.f32 %v4088_v37, %v19015_v40  ;;  %v4889_v51 = vsel %vm495_vm1, %v4887_v34, %v4888_v9 }
 0x346   :  { %v4798_v21 = vadd.f32 %v4776_v10, %v4734_v42  ;;  %v4797_v61 = vadd.f32 %v19031_v58, %v4733_v52  ;;  %v4891_v10 = vsel %vm495_vm1, %v4888_v9, %v4890_v35  ;;  %v4892_v58 = vrot.slane %v4874_v41, 2 }
 0x347   :  { %v4842_v26 = vpop.permute.xlu0 %4841  ;;  %v4736_v52 = vadd.f32 %v4716_v2, %v4688_v47  ;;  %v19138_v9 = vstv %s13211_s21 }
 0x348   :  { %v4840_v49 = vpop.permute.xlu1 %4839  ;;  %v4861_v3 = vadd.f32 %v4838_v48, %v4797_v61  ;;  %v4893_v23 = vsel %vm495_vm1, %v4890_v35, %v4892_v58 }
 0x349   :  { %v4862_v31 = vadd.f32 %v4840_v49, %v4798_v21  ;;  %v4799_v49 = vadd.f32 %v19049_v57, %v4735_v1 }
 0x34a   :  { %v4909_v21 = vadd.f32 %v4889_v51, %v4861_v3 }
 0x34b   :  { %v4780_v5 = vpop.permute.xlu0 %4779  ;;  %v4910_v32 = vadd.f32 %v4891_v10, %v4862_v31  ;;  %v4863_v42 = vadd.f32 %v4842_v26, %v4799_v49 }
 0x34c   :  { %v4152_v54 = vpop.permute.xlu1 %4151  ;;  %v4800_v48 = vadd.f32 %v4780_v5, %v4736_v52 }
 0x34d   :  { %v4168_v44 = vadd.f32 %v4152_v54, %v4104_v17  ;;  %v4911_v34 = vadd.f32 %v4893_v23, %v4863_v42 }
 0x34f   :  { %v4950_v62 = vpop.permute.xlu0 %4949  ;;  %v19136_v40 = vadd.f32 %v18861_v25, %v4168_v44 }
 0x350   :  { %v4844_v16 = vpop.permute.xlu1 %4843  ;;  %v4973_v30 = vadd.f32 %v4950_v62, %v4909_v21 }
 0x351   :  { %v4864_v57 = vadd.f32 %v4844_v16, %v4800_v48  ;;  %v4186_v35 = vmax.f32 %v19136_v40, 0.0 }
 0x353   :  { %v4954_v22 = vpop.permute.xlu0 %4953  ;;  %v4912_v61 = vadd.f32 %v4892_v58, %v4864_v57 }
 0x354   :  { %v4952_v11 = vpop.permute.xlu1 %4951  ;;  %v4975_v12 = vadd.f32 %v4954_v22, %v4911_v34  ;;  %v21917_v34 = vld [vmem:[#allocation45_spill] sm:$0xff] }
 0x355   :  { %v4974_v55 = vadd.f32 %v4952_v11, %v4910_v32 }
 0x357   :  { %v5016_v4 = vpop.permute.xlu0 %5015 }
 0x358   :  { %v5014_v37 = vpop.permute.xlu1 %5013  ;;  %v5038_v41 = vadd.f32 %v5016_v4, %v4974_v55 }
 0x359   :  { %v5037_v54 = vadd.f32 %v5014_v37, %v4973_v30  ;;  %v4600_v30 = vmul.f32 %v18959_v63, %v21916_v46 }
 0x35a   :  { %v19145_v62 = vadd.f32 %v19138_v9, %v5038_v41  ;;  %v4649_v41 = vmul.f32 %v21914_v56, %v21917_v34 }
 0x35b   :  { %v19141_v26 = vadd.f32 %v19138_v9, %v5037_v54  ;;  %v4956_v2 = vpop.permute.xlu0 %4955 }
 0x35c   :  { %v5018_v5 = vpop.permute.xlu1 %5017  ;;  %v4976_v16 = vadd.f32 %v4956_v2, %v4912_v61  ;;  %v5056_v51 = vmax.f32 %v19145_v62, 0.0  ;;  %v21918_v61 = vld [vmem:[#allocation37_spill] sm:$0xff] }
 0x35d   :  { %v5055_v25 = vmax.f32 %v19141_v26, 0.0  ;;  %v5039_v31 = vadd.f32 %v5018_v5, %v4975_v12  ;;  %v4650_v5 = vmul.f32 %v18959_v63, %v21917_v34 }
 0x35f   :  { %v15806_v55 = vpack.i.bf16 %v5055_v25, %v4186_v35  ;;  %v19153_v10 = vadd.f32 %v19138_v9, %v5039_v31  ;;  %v15788_v47 = vpop.permute.xlu0 %15787  ;;  %v4747_v31 = vmul.f32 %v21914_v56, %v21918_v61 }
 0x360   :  { %v15790_v1 = vunpack.i.h.bf16 %v15788_v47  ;;  %v15789_v3 = vunpack.i.l.bf16 %v15788_v47  ;;  %v5020_v17 = vpop.permute.xlu1 %5019 }
 0x361   :  { %v5057_v49 = vmax.f32 %v19153_v10, 0.0  ;;  %v5040_v22 = vadd.f32 %v5020_v17, %v4976_v16  ;;  %15807 = vrot.lane.b32.xlu1 %v15806_v55, %s16102_s18  ;;  %v4748_v55 = vmul.f32 %v18959_v63, %v21918_v61  ;;  %v19197_v16 = vmul.f32 %v18974_v8, %v21918_v61 }
 0x362   :  { %v3348_v58 = vmax.f32 %v3308_v50, %v15790_v1  ;;  %v3347_v32 = vmax.f32 %v3307_v60, %v15789_v3  ;;  %v4599_v50 = vmul.f32 %v21914_v56, %v21916_v46  ;;  %v4651_v3 = vmul.f32 %v18974_v8, %v21917_v34 }
 0x363   :  { %v15811_v44 = vpack.i.bf16 %v5057_v49, %v5056_v51  ;;  %v19167_v11 = vadd.f32 %v19138_v9, %v5040_v22  ;;  %v4602_v56 = vmul.f32 %v21915_v43, %v21916_v46  ;;  %v21919_v17 = vmax.f32 %v18867_v36, 0.0 }
 0x364   :  { %v3367_v42 = vrot.slane %v3348_v58, 1  ;;  %v3366_v52 = vrot.slane %v3347_v32, 1  ;;  %v3332_v21 = vpop.permute.xlu1 %3331  ;;  %v21920_v36 = vmax.f32 %v18879_v39, 0.0  ;;  %v21923_v39 = vld [vmem:[#allocation46_spill] sm:$0xff] }
 0x365   :  { %v5058_v23 = vmax.f32 %v19167_v11, 0.0  ;;  %v3349_v18 = vmax.f32 %v3309_v0, %v3332_v21  ;;  %15812 = vrot.lane.b32.xlu0 %v15811_v44, %s16102_s18  ;;  %v19212_v21 = vmul.f32 %v21915_v43, %v21918_v61  ;;  %v19225_v43 = vld [vmem:[%s21752_s29 + $0x38] sm:$0x3f] }
 0x366   :  { %v3368_v60 = vsel %vm318_vm0, %v3366_v52, %v3367_v42  ;;  %v4769_v52 = vrot.slane %v19197_v16, 1 }
 0x367   :  { %v3369_v48 = vrot.slane %v3349_v18, 1  ;;  %5077 = vrot.lane.b32.xlu1 %v5058_v23, %s16102_s18  ;;  %v3385_v4 = vmax.f32 %v3347_v32, %v3368_v60 }
 0x369   :  { %4619 = vrot.lane.b32.xlu0 %v4599_v50, %s16102_s18  ;;  %v3370_v0 = vsel %vm318_vm0, %v3367_v42, %v3369_v48  ;;  %v4767_v42 = vrot.slane %v4748_v55, 1 }
 0x36a   :  { %v3386_v37 = vmax.f32 %v3348_v58, %v3370_v0  ;;  %v13920_v0 = vpop.f32.mrb[2].mxu0 }
 0x36b   :  { %4621 = vrot.lane.b32.xlu1 %v4600_v30, %s16102_s18  ;;  %v15793_v57 = vpop.permute.xlu0 %15792  ;;  %v21921_v30 = vmax.f32 %v18871_v7, 0.0  ;;  %v19232_v7 = vld [vmem:[%s21752_s29 + $0x20] sm:$0xff]  ;;  %v4770_v16 = vsel %vm318_vm0, %v4767_v42, %v4769_v52 }
 0x36c   :  { %v15795_v54 = vunpack.i.h.bf16 %v15793_v57  ;;  %v15794_v12 = vunpack.i.l.bf16 %v15793_v57  ;;  %v14652_v2 = vpack.c.bf16 %v3386_v37, %v3385_v4  ;;  %v21922_v4 = vmax.f32 %v18893_v45, 0.0 }
 0x36d   :  { %4623 = vrot.lane.b32.xlu0 %v4601_v19, %s16102_s18  ;;  %v4811_v45 = vmul.f32 %v19232_v7, %v21923_v39 }
 0x36e   :  { %v3350_v47 = vmax.f32 %v3310_v20, %v15794_v12  ;;  %14653 = vmatprep.subr.bf16.mxu0 %v14652_v2  ;;  %v4219_v22 = vmax.f32 %v21919_v17, %v15795_v54  ;;  %v4766_v20 = vrot.slane %v4747_v31, 1  ;;  %v4771_v31 = vrot.slane %v19212_v21, 1 }
 0x36f   :  { %v15798_v1 = vpop.permute.xlu1 %15797  ;;  %4669 = vrot.lane.b32.xlu1 %v4649_v41, %s16103_s19  ;;  %14655 = vmatpush3.bf16.msra.mxu0 %v14652_v2  ;;  %v4812_v2 = vmul.f32 %v18959_v63, %v21923_v39  ;;  %v4830_v17 = vrot.slane %v4811_v45, 1 }
 0x370   :  { %v3371_v58 = vrot.slane %v3350_v47, 1  ;;  %v15800_v32 = vunpack.i.h.bf16 %v15798_v1  ;;  %v15799_v44 = vunpack.i.l.bf16 %v15798_v1  ;;  %v4235_v41 = vrot.slane %v4219_v22, 1 }
 0x371   :  { %4671 = vrot.lane.b32.xlu0 %v4650_v5, %s16103_s19  ;;  %v4202_v14 = vpop.permute.xlu0 %4201  ;;  %v989_v5 = vpop.f32.mrb[3].mxu0  ;;  %v4813_v1 = vmul.f32 %v18974_v8, %v21923_v39  ;;  %v4772_v21 = vsel %vm318_vm0, %v4769_v52, %v4771_v31 }
 0x372   :  { %v3372_v50 = vsel %vm318_vm0, %v3369_v48, %v3371_v58  ;;  %v3388_v46 = vmax.f32 %v3350_v47, %v3371_v58  ;;  %v4221_v60 = vmax.f32 %v21920_v36, %v15800_v32  ;;  %v4220_v19 = vmax.f32 %v21921_v30, %v15799_v44  ;;  %13929 = vmatprep.mubr.msk.f32.mxu1 %vm750_vm2, %v989_v5  ;;  %v19263_v36 = vld [vmem:[#allocation8 + $0x8] sm:$0x3f] }
 0x373   :  { %v4222_v37 = vmax.f32 %v21922_v4, %v4202_v14  ;;  %4673 = vrot.lane.b32.xlu1 %v4651_v3, %s16103_s19  ;;  %v4652_v48 = vmul.f32 %v19225_v43, %v21917_v34  ;;  %v3387_v57 = vmax.f32 %v3349_v18, %v3372_v50  ;;  %v4768_v18 = vsel %vm318_vm0, %v4766_v20, %v4767_v42 }
 0x374   :  { %v4238_v54 = vrot.slane %v4221_v60, 1  ;;  %v4236_v12 = vrot.slane %v4220_v19, 1  ;;  %13930 = vmatmul.mubr.msk.f32.vlgmr.msra.gmra.mrb[2].mxu1 %vm750_vm2, %v13920_v0  ;;  %v4814_v58 = vmul.f32 %v19225_v43, %v21923_v39  ;;  %v4831_v20 = vrot.slane %v4812_v2, 1  ;;  %v21924_v0 = vld [vmem:[#allocation29_spill] sm:$0xff] }
 0x375   :  { %v4240_v61 = vrot.slane %v4222_v37, 1  ;;  %4625 = vrot.lane.b32.xlu0 %v4602_v56, %s16102_s18  ;;  %v14656_v34 = vpack.c.bf16 %v3388_v46, %v3387_v57  ;;  %14565 = vmatpush3.bf16.msra.mxu1 %v19069_v6  ;;  %v4833_v50 = vrot.slane %v4813_v1, 1  ;;  %v13942_v46 = vpop.f32.mrb[4].mxu0  ;;  %v4923_v4 = vmul.f32 %v19232_v7, %v21924_v0 }
 0x376   :  { %v4239_v55 = vsel %vm318_vm0, %v4236_v12, %v4238_v54  ;;  %v4237_v47 = vsel %vm318_vm0, %v4235_v41, %v4236_v12  ;;  %14568 = vmatprep.subr.msk.bf16.mxu1 %vm17314_vm5, %v19078_v59  ;;  %v4832_v30 = vsel %vm318_vm0, %v4830_v17, %v4831_v20  ;;  %v4925_v57 = vmul.f32 %v18974_v8, %v21924_v0 }
 0x377   :  { %v4258_v3 = vmax.f32 %v4220_v19, %v4239_v55  ;;  %v4241_v56 = vsel %vm318_vm0, %v4238_v54, %v4240_v61  ;;  %4675 = vrot.lane.b32.xlu1 %v4652_v48, %s16103_s19  ;;  %14658 = vmatprep.subr.msk.bf16.mxu0 %vm17314_vm5, %v14656_v34  ;;  %v4260_v44 = vmax.f32 %v4222_v37, %v4240_v61  ;;  %v4835_v19 = vrot.slane %v4814_v58, 1 }
 0x378   :  { %v4259_v32 = vmax.f32 %v4221_v60, %v4241_v56  ;;  %14661 = vmatpush3.bf16.msk.msra.mxu0 %vm17314_vm5, %v14656_v34  ;;  %v4257_v14 = vmax.f32 %v4219_v22, %v4237_v47  ;;  %v1706_v22 = vpop.f32.mrb[5].mxu0  ;;  %v4834_v52 = vsel %vm318_vm0, %v4831_v20, %v4833_v50  ;;  %v4924_v37 = vmul.f32 %v18959_v63, %v21924_v0 }
 0x379   :  { %4781 = vrot.lane.b32.xlu0 %v4768_v18, %s16102_s18  ;;  %14571 = vmatpush3.bf16.msk.msra.mxu1 %vm17314_vm5, %v19078_v59  ;;  %v4836_v48 = vsel %vm318_vm0, %v4833_v50, %v4835_v19  ;;  %v4942_v39 = vrot.slane %v4923_v4, 2  ;;  %v4926_v41 = vmul.f32 %v19225_v43, %v21924_v0  ;;  %v4945_v54 = vrot.slane %v4925_v57, 2 }
 0x37a   :  { %v14672_v42 = vpack.c.bf16 %v4258_v3, %v4257_v14  ;;  %v14676_v60 = vpack.c.bf16 %v4260_v44, %v4259_v32  ;;  %13951 = vmatprep.mubr.msk.f32.mxu1 %vm750_vm2, %v1706_v22  ;;  %14583 = vmatprep.subr.bf16.mxu1 %v19069_v6  ;;  %v4943_v45 = vrot.slane %v4924_v37, 2  ;;  %v4987_v12 = vmul.f32 %v19232_v7, %v18726_v38 }
 0x37b   :  { %4783 = vrot.lane.b32.xlu1 %v4770_v16, %s16102_s18  ;;  %14051 = vmatmul.mubr.msk.f32.vlgmr.msra.gmra.mrb[14].mxu0 %vm750_vm2, %v19263_v36  ;;  %v4988_v2 = vmul.f32 %v18959_v63, %v18726_v38  ;;  %v4947_v61 = vrot.slane %v4926_v41, 2  ;;  %v4989_v34 = vmul.f32 %v18974_v8, %v18726_v38  ;;  %v13964_v58 = vpop.f32.mrb[6].mxu0 }
 0x37c   :  { %14673 = vmatprep.subr.bf16.mxu0 %v14672_v42  ;;  %14072 = vmatprep.mubr.msk.f32.mxu0 %vm750_vm2, %v18937_v24  ;;  %v4944_v5 = vsel %vm495_vm1, %v4942_v39, %v4943_v45  ;;  %v4946_v18 = vsel %vm495_vm1, %v4943_v45, %v4945_v54  ;;  %v5006_v55 = vrot.slane %v4987_v12, 2  ;;  %v1865_v32 = vpop.f32.mrb[7].mxu0 }
 0x37d   :  { %14675 = vmatpush3.bf16.msra.mxu0 %v14672_v42  ;;  %4785 = vrot.lane.b32.xlu0 %v4772_v21, %s16102_s18  ;;  %v5007_v16 = vrot.slane %v4988_v2, 2  ;;  %v4948_v47 = vsel %vm495_vm1, %v4945_v54, %v4947_v61  ;;  %v5009_v1 = vrot.slane %v4989_v34, 2  ;;  %v21925_v21 = vmax.f32 %v19026_v28, 0.0 }
 0x37e   :  { %14678 = vmatprep.subr.msk.bf16.mxu0 %vm17314_vm5, %v14676_v60  ;;  %13952 = vmatmul.mubr.msk.f32.vlgmr.msra.gmra.mrb[4].mxu1 %vm750_vm2, %v13942_v46 }
 0x37f   :  { %4845 = vrot.lane.b32.xlu1 %v4832_v30, %s16103_s19  ;;  %14585 = vmatpush3.bf16.msra.mxu1 %v19069_v6  ;;  %v5008_v3 = vsel %vm495_vm1, %v5006_v55, %v5007_v16  ;;  %v5010_v17 = vsel %vm495_vm1, %v5007_v16, %v5009_v1 }
 0x380   :  { %14588 = vmatprep.subr.msk.bf16.mxu1 %vm17314_vm5, %v19078_v59  ;;  %13973 = vmatprep.mubr.msk.f32.mxu1 %vm750_vm2, %v1865_v32 }
 0x381   :  { %14681 = vmatpush3.bf16.msk.msra.mxu0 %vm17314_vm5, %v14676_v60  ;;  %4847 = vrot.lane.b32.xlu0 %v4834_v52, %s16103_s19  ;;  %v21926_v60 = vmax.f32 %v19029_v33, 0.0 }
 0x383   :  { %4849 = vrot.lane.b32.xlu1 %v4836_v48, %s16103_s19  ;;  %14591 = vmatpush3.bf16.msk.msra.mxu1 %vm17314_vm5, %v19078_v59 }
 0x384   :  { %14073 = vmatmul.mubr.msk.f32.vlgmr.msra.gmra.mrb[16].mxu0 %vm750_vm2, %v19263_v36  ;;  %14603 = vmatprep.subr.bf16.mxu1 %v19069_v6 }
 0x385   :  { %4787 = vrot.lane.b32.xlu0 %v4771_v31, %s16102_s18  ;;  %14094 = vmatprep.mubr.msk.f32.mxu0 %vm750_vm2, %v18937_v24  ;;  %v4990_v31 = vmul.f32 %v19225_v43, %v18726_v38 }
 0x386   :  { %13974 = vmatmul.mubr.msk.f32.vlgmr.msra.gmra.mrb[6].mxu1 %vm750_vm2, %v13964_v58 }
 0x387   :  { %4851 = vrot.lane.b32.xlu1 %v4835_v19, %s16103_s19  ;;  %v5011_v56 = vrot.slane %v4990_v31, 2  ;;  %14605 = vmatpush3.bf16.msra.mxu1 %v19069_v6  ;;  %v21927_v19 = vmax.f32 %v19023_v13, 0.0 }
 0x388   :  { %14608 = vmatprep.subr.msk.bf16.mxu1 %vm17314_vm5, %v19078_v59 }
 0x389   :  { %4957 = vrot.lane.b32.xlu0 %v4944_v5, %s16102_s18  ;;  %v5012_v38 = vsel %vm495_vm1, %v5009_v1, %v5011_v56 }
 0x38b   :  { %4959 = vrot.lane.b32.xlu1 %v4946_v18, %s16102_s18  ;;  %v13986_v44 = vpop.f32.mrb[8].mxu0  ;;  %14611 = vmatpush3.bf16.msk.msra.mxu1 %vm17314_vm5, %v19078_v59 }
 0x38c   :  { %v2582_v14 = vpop.f32.mrb[9].mxu0  ;;  %14623 = vmatprep.subr.bf16.mxu1 %v19069_v6 }
 0x38d   :  { %4961 = vrot.lane.b32.xlu0 %v4948_v47, %s16102_s18  ;;  %13995 = vmatprep.mubr.msk.f32.mxu1 %vm750_vm2, %v2582_v14 }
 0x38e   :  { %13996 = vmatmul.mubr.msk.f32.vlgmr.msra.gmra.mrb[8].mxu1 %vm750_vm2, %v13986_v44 }
 0x38f   :  { %5021 = vrot.lane.b32.xlu1 %v5008_v3, %s16103_s19  ;;  %14625 = vmatpush3.bf16.msra.mxu1 %v19069_v6 }
 0x390   :  { %14628 = vmatprep.subr.msk.bf16.mxu1 %vm17314_vm5, %v19078_v59 }
 0x391   :  { %5023 = vrot.lane.b32.xlu0 %v5010_v17, %s16103_s19 }
 0x393   :  { %5025 = vrot.lane.b32.xlu1 %v5012_v38, %s16103_s19  ;;  %14631 = vmatpush3.bf16.msk.msra.mxu1 %vm17314_vm5, %v19078_v59 }
 0x394   :  { %14643 = vmatprep.subr.bf16.mxu1 %v19069_v6 }
 0x395   :  { %4963 = vrot.lane.b32.xlu0 %v4947_v61, %s16102_s18 }
 0x397   :  { %5027 = vrot.lane.b32.xlu1 %v5011_v56, %s16103_s19 }
 0x3b0   :  { %v4208_v20 = vpop.permute.xlu0 %4207 }
 0x3b1   :  { %v4225_v50 = vmax.f32 %v21925_v21, %v4208_v20  ;;  %v4589_v20 = vmul.f32 %v19232_v7, %v19038_v15 }
 0x3b3   :  { %v15803_v42 = vpop.permute.xlu1 %15802  ;;  %v4245_v0 = vrot.slane %v4225_v50, 1 }
 0x3b4   :  { %v15805_v46 = vunpack.i.h.bf16 %v15803_v42  ;;  %v15804_v22 = vunpack.i.l.bf16 %v15803_v42 }
 0x3b6   :  { %v4224_v30 = vmax.f32 %v21926_v60, %v15805_v46  ;;  %v4223_v52 = vmax.f32 %v21927_v19, %v15804_v22  ;;  %v4700_v46 = vmul.f32 %v18959_v63, %v19047_v29  ;;  %v4590_v60 = vmul.f32 %v18959_v63, %v19038_v15 }
 0x3b8   :  { %v4243_v4 = vrot.slane %v4224_v30, 1  ;;  %v4242_v37 = vrot.slane %v4223_v52, 1 }
 0x3ba   :  { %v4244_v48 = vsel %vm318_vm0, %v4242_v37, %v4243_v4  ;;  %v4246_v57 = vsel %vm318_vm0, %v4243_v4, %v4245_v0  ;;  %v4591_v4 = vmul.f32 %v18974_v8, %v19038_v15 }
 0x3bb   :  { %v4261_v39 = vmax.f32 %v4223_v52, %v4244_v48  ;;  %v4262_v45 = vmax.f32 %v4224_v30, %v4246_v57  ;;  %v4701_v52 = vmul.f32 %v18974_v8, %v19047_v29  ;;  %v4719_v57 = vrot.slane %v4700_v46, 1 }
 0x3bd   :  { %v14692_v41 = vpack.c.bf16 %v4262_v45, %v4261_v39  ;;  %v4702_v39 = vmul.f32 %v19225_v43, %v19047_v29 }
 0x3bf   :  { %14693 = vmatprep.subr.bf16.mxu0 %v14692_v41 }
 0x3c0   :  { %14695 = vmatpush3.bf16.msra.mxu0 %v14692_v41 }
 0x3d3   :  { %v15808_v28 = vpop.permute.xlu1 %15807 }
 0x3d4   :  { %v15810_v54 = vunpack.i.h.bf16 %v15808_v28  ;;  %v15809_v12 = vunpack.i.l.bf16 %v15808_v28  ;;  %v4721_v28 = vrot.slane %v4701_v52, 1 }
 0x3d6   :  { %v4226_v33 = vmax.f32 %v4186_v35, %v15809_v12  ;;  %v5095_v2 = vmax.f32 %v5055_v25, %v15810_v54 }
 0x3d7   :  { %v15813_v13 = vpop.permute.xlu0 %15812 }
 0x3d8   :  { %v4247_v5 = vrot.slane %v4226_v33, 1  ;;  %v15815_v61 = vunpack.i.h.bf16 %v15813_v13  ;;  %v15814_v34 = vunpack.i.l.bf16 %v15813_v13  ;;  %v5111_v26 = vrot.slane %v5095_v2, 1 }
 0x3d9   :  { %v5078_v18 = vpop.permute.xlu1 %5077 }
 0x3da   :  { %v4248_v55 = vsel %vm318_vm0, %v4245_v0, %v4247_v5  ;;  %v4264_v16 = vmax.f32 %v4226_v33, %v4247_v5  ;;  %v5097_v31 = vmax.f32 %v5057_v49, %v15815_v61  ;;  %v5096_v47 = vmax.f32 %v5056_v51, %v15814_v34 }
 0x3db   :  { %v5098_v40 = vmax.f32 %v5058_v23, %v5078_v18  ;;  %v4620_v35 = vpop.permute.xlu0 %4619  ;;  %v4263_v1 = vmax.f32 %v4225_v50, %v4248_v55  ;;  %v4699_v50 = vmul.f32 %v19232_v7, %v19047_v29  ;;  %v4723_v29 = vrot.slane %v4702_v39, 1 }
 0x3dc   :  { %v5114_v25 = vrot.slane %v5097_v31, 1  ;;  %v5112_v3 = vrot.slane %v5096_v47, 1  ;;  %v4639_v0 = vadd.f32 %v4620_v35, %v4589_v20  ;;  %v4592_v5 = vmul.f32 %v19225_v43, %v19038_v15 }
 0x3dd   :  { %v5116_v56 = vrot.slane %v5098_v40, 1  ;;  %v4622_v17 = vpop.permute.xlu1 %4621  ;;  %v14696_v38 = vpack.c.bf16 %v4264_v16, %v4263_v1  ;;  %v4718_v48 = vrot.slane %v4699_v50, 1  ;;  %v4722_v61 = vsel %vm318_vm0, %v4719_v57, %v4721_v28 }
 0x3de   :  { %v5115_v58 = vsel %vm318_vm0, %v5112_v3, %v5114_v25  ;;  %v5113_v32 = vsel %vm318_vm0, %v5111_v26, %v5112_v3  ;;  %v4640_v45 = vadd.f32 %v4622_v17, %v4590_v60  ;;  %v4724_v16 = vsel %vm318_vm0, %v4721_v28, %v4723_v29 }
 0x3df   :  { %v5134_v10 = vmax.f32 %v5096_v47, %v5115_v58  ;;  %v5117_v49 = vsel %vm318_vm0, %v5114_v25, %v5116_v56  ;;  %v5136_v62 = vmax.f32 %v5098_v40, %v5116_v56  ;;  %v4624_v51 = vpop.permute.xlu0 %4623  ;;  %14698 = vmatprep.subr.msk.bf16.mxu0 %vm17314_vm5, %v14696_v38  ;;  %v5133_v11 = vmax.f32 %v5095_v2, %v5113_v32 }
 0x3e0   :  { %v5135_v23 = vmax.f32 %v5097_v31, %v5117_v49  ;;  %14701 = vmatpush3.bf16.msk.msra.mxu0 %vm17314_vm5, %v14696_v38  ;;  %v4641_v54 = vadd.f32 %v4624_v51, %v4591_v4  ;;  %v4720_v33 = vsel %vm318_vm0, %v4718_v48, %v4719_v57  ;;  %v4875_v47 = vmul.f32 %v19232_v7, %v19094_v27 }
 0x3e1   :  { %v4670_v44 = vpop.permute.xlu1 %4669  ;;  %v14712_v14 = vpack.c.bf16 %v5134_v10, %v5133_v11  ;;  %v4876_v40 = vmul.f32 %v18959_v63, %v19094_v27  ;;  %v4878_v38 = vmul.f32 %v19225_v43, %v19094_v27 }
 0x3e2   :  { %v14716_v42 = vpack.c.bf16 %v5136_v62, %v5135_v23  ;;  %v4689_v12 = vadd.f32 %v4670_v44, %v4639_v0  ;;  %v4894_v56 = vrot.slane %v4875_v47, 2 }
 0x3e3   :  { %v4672_v21 = vpop.permute.xlu0 %4671  ;;  %14095 = vmatmul.mubr.msk.f32.vlgmr.msra.gmra.mrb[18].mxu0 %vm750_vm2, %v19263_v36  ;;  %14713 = vmatprep.subr.bf16.mxu0 %v14712_v14  ;;  %v14008_v22 = vpop.f32.mrb[10].mxu0  ;;  %v4895_v17 = vrot.slane %v4876_v40, 2  ;;  %v4899_v23 = vrot.slane %v4878_v38, 2 }
 0x3e4   :  { %14715 = vmatpush3.bf16.msra.mxu0 %v14712_v14  ;;  %14116 = vmatprep.mubr.msk.f32.mxu0 %vm750_vm2, %v18937_v24  ;;  %v2741_v30 = vpop.f32.mrb[11].mxu0  ;;  %v4690_v2 = vadd.f32 %v4672_v21, %v4640_v45  ;;  %v4737_v55 = vadd.f32 %v4720_v33, %v4689_v12 }
 0x3e5   :  { %v4674_v19 = vpop.permute.xlu1 %4673  ;;  %14718 = vmatprep.subr.msk.bf16.mxu0 %vm17314_vm5, %v14716_v42  ;;  %14017 = vmatprep.mubr.msk.f32.mxu1 %vm750_vm2, %v2741_v30  ;;  %v4896_v11 = vsel %vm495_vm1, %v4894_v56, %v4895_v17 }
 0x3e6   :  { %14018 = vmatmul.mubr.msk.f32.vlgmr.msra.gmra.mrb[10].mxu1 %vm750_vm2, %v14008_v22  ;;  %v4691_v18 = vadd.f32 %v4674_v19, %v4641_v54  ;;  %v4738_v35 = vadd.f32 %v4722_v61, %v4690_v2 }
 0x3e7   :  { %v4626_v37 = vpop.permute.xlu0 %4625  ;;  %14645 = vmatpush3.bf16.msra.mxu1 %v19069_v6 }
 0x3e8   :  { %14721 = vmatpush3.bf16.msk.msra.mxu0 %vm17314_vm5, %v14716_v42  ;;  %14648 = vmatprep.subr.msk.bf16.mxu1 %vm17314_vm5, %v19078_v59  ;;  %v4642_v15 = vadd.f32 %v4626_v37, %v4592_v5  ;;  %v4739_v25 = vadd.f32 %v4724_v16, %v4691_v18 }
 0x3e9   :  { %v4676_v41 = vpop.permute.xlu1 %4675 }
 0x3ea   :  { %v4692_v32 = vadd.f32 %v4676_v41, %v4642_v15 }
 0x3eb   :  { %v4782_v13 = vpop.permute.xlu0 %4781  ;;  %14117 = vmatmul.mubr.msk.f32.vlgmr.msra.gmra.mrb[20].mxu0 %vm750_vm2, %v19263_v36  ;;  %14651 = vmatpush3.bf16.msk.msra.mxu1 %vm17314_vm5, %v19078_v59 }
 0x3ec   :  { %14663 = vmatprep.subr.bf16.mxu1 %v19069_v6  ;;  %14138 = vmatprep.mubr.msk.f32.mxu0 %vm750_vm2, %v18937_v24  ;;  %v4877_v24 = vmul.f32 %v18974_v8, %v19094_v27  ;;  %v4801_v26 = vadd.f32 %v4782_v13, %v4737_v55  ;;  %v4740_v27 = vadd.f32 %v4723_v29, %v4692_v32 }
 0x3ed   :  { %v4784_v34 = vpop.permute.xlu1 %4783 }
 0x3ee   :  { %v4802_v7 = vadd.f32 %v4784_v34, %v4738_v35  ;;  %v4897_v63 = vrot.slane %v4877_v24, 2 }
 0x3ef   :  { %v4786_v31 = vpop.permute.xlu0 %4785 }
 0x3f0   :  { %v4803_v62 = vadd.f32 %v4786_v31, %v4739_v25  ;;  %v4898_v14 = vsel %vm495_vm1, %v4895_v17, %v4897_v63  ;;  %v4900_v50 = vsel %vm495_vm1, %v4897_v63, %v4899_v23 }
 0x3f1   :  { %v4846_v1 = vpop.permute.xlu1 %4845 }
 0x3f2   :  { %v4865_v51 = vadd.f32 %v4846_v1, %v4801_v26 }
 0x3f3   :  { %v4848_v3 = vpop.permute.xlu0 %4847  ;;  %v14030_v58 = vpop.f32.mrb[12].mxu0 }
 0x3f4   :  { %v3458_v10 = vpop.f32.mrb[13].mxu0  ;;  %v4866_v44 = vadd.f32 %v4848_v3, %v4802_v7  ;;  %v4913_v42 = vadd.f32 %v4896_v11, %v4865_v51 }
 0x3f5   :  { %v4850_v49 = vpop.permute.xlu1 %4849  ;;  %14039 = vmatprep.mubr.msk.f32.mxu1 %vm750_vm2, %v3458_v10 }
 0x3f6   :  { %14040 = vmatmul.mubr.msk.f32.vlgmr.msra.gmra.mrb[12].mxu1 %vm750_vm2, %v14030_v58  ;;  %v4867_v20 = vadd.f32 %v4850_v49, %v4803_v62  ;;  %v4914_v22 = vadd.f32 %v4898_v14, %v4866_v44 }
 0x3f7   :  { %v4788_v8 = vpop.permute.xlu0 %4787  ;;  %14665 = vmatpush3.bf16.msra.mxu1 %v19069_v6 }
 0x3f8   :  { %14668 = vmatprep.subr.msk.bf16.mxu1 %vm17314_vm5, %v19078_v59  ;;  %v4804_v46 = vadd.f32 %v4788_v8, %v4740_v27  ;;  %v4915_v19 = vadd.f32 %v4900_v50, %v4867_v20 }
 0x3f9   :  { %v4852_v43 = vpop.permute.xlu1 %4851 }
 0x3fa   :  { %v4868_v0 = vadd.f32 %v4852_v43, %v4804_v46 }
 0x3fb   :  { %v4958_v21 = vpop.permute.xlu0 %4957  ;;  %14671 = vmatpush3.bf16.msk.msra.mxu1 %vm17314_vm5, %v19078_v59 }
 0x3fc   :  { %14683 = vmatprep.subr.bf16.mxu1 %v19069_v6  ;;  %v4977_v30 = vadd.f32 %v4958_v21, %v4913_v42  ;;  %v4916_v28 = vadd.f32 %v4899_v23, %v4868_v0 }
 0x3fd   :  { %v4960_v60 = vpop.permute.xlu1 %4959 }
 0x3fe   :  { %v4978_v4 = vadd.f32 %v4960_v60, %v4914_v22 }
 0x3ff   :  { %v4962_v52 = vpop.permute.xlu0 %4961 }
 0x400   :  { %v4979_v48 = vadd.f32 %v4962_v52, %v4915_v19 }
 0x401   :  { %v5022_v37 = vpop.permute.xlu1 %5021 }
 0x402   :  { %v5041_v57 = vadd.f32 %v5022_v37, %v4977_v30 }
 0x403   :  { %v5024_v39 = vpop.permute.xlu0 %5023 }
 0x404   :  { %v19439_v45 = vadd.f32 %v19138_v9, %v5041_v57  ;;  %v5042_v41 = vadd.f32 %v5024_v39, %v4978_v4 }
 0x405   :  { %v5026_v54 = vpop.permute.xlu1 %5025 }
 0x406   :  { %v5059_v12 = vmax.f32 %v19439_v45, 0.0  ;;  %v19443_v33 = vadd.f32 %v19138_v9, %v5042_v41  ;;  %v5043_v13 = vadd.f32 %v5026_v54, %v4979_v48 }
 0x407   :  { %v4964_v29 = vpop.permute.xlu0 %4963 }
 0x408   :  { %v5060_v2 = vmax.f32 %v19443_v33, 0.0  ;;  %v19447_v5 = vadd.f32 %v19138_v9, %v5043_v13  ;;  %v4980_v61 = vadd.f32 %v4964_v29, %v4916_v28 }
 0x409   :  { %v5028_v34 = vpop.permute.xlu1 %5027 }
 0x40a   :  { %v15816_v18 = vpack.i.bf16 %v5060_v2, %v5059_v12  ;;  %v5061_v55 = vmax.f32 %v19447_v5, 0.0  ;;  %v5044_v16 = vadd.f32 %v5028_v34, %v4980_v61 }
 0x40c   :  { %v19455_v31 = vadd.f32 %v19138_v9, %v5044_v16  ;;  %5083 = vrot.lane.b32.xlu1 %v5061_v55, %s16102_s18  ;;  %15817 = vrot.lane.b32.xlu0 %v15816_v18, %s16102_s18 }
 0x40e   :  { %v5062_v47 = vmax.f32 %v19455_v31, 0.0  ;;  %v5538_v31 = vld [vmem:[#allocation9 + $0x38] sm:$0x3f] }
 0x40f   :  { %v19465_v40 = vpop.f32.mrb[0].mxu1 }
 0x410   :  { %5085 = vrot.lane.b32.xlu0 %v5062_v47, %s16102_s18  ;;  %v5542_v15 = vrot.slane %v19465_v40, 1  ;;  %v19468_v35 = vpop.f32.mrb[1].mxu1  ;;  %v5725_v24 = vrot.slane %v19465_v40, 2  ;;  %v5825_v3 = vrot.slane %v19465_v40, 3  ;;  %v5925_v17 = vrot.slane %v19465_v40, 4 }
 0x411   :  { %v5541_v9 = vrot.slane %v19468_v35, 1  ;;  %v5724_v26 = vrot.slane %v19468_v35, 2  ;;  %v5824_v56 = vrot.slane %v19468_v35, 3  ;;  %v5924_v38 = vrot.slane %v19468_v35, 4 }
 0x413   :  { %v19474_v1 = vsel %vm318_vm0, %v5541_v9, %v5542_v15  ;;  %v19481_v25 = vsel %vm495_vm1, %v5724_v26, %v5725_v24  ;;  %v19490_v58 = vsel %vm5823_vm6, %v5824_v56, %v5825_v3  ;;  %v19495_v32 = vsel %vm5923_vm7, %v5924_v38, %v5925_v17 }
 0x447   :  { %v19497_v7 = vpop.f32.mrb[2].mxu1 }
 0x448   :  { %v19499_v10 = vpop.f32.mrb[3].mxu1  ;;  %v21682_v52 = vrot.slane %v19497_v7, 1  ;;  %v21677_v0 = vrot.slane %v19497_v7, 2  ;;  %v21676_v4 = vrot.slane %v19497_v7, 3  ;;  %v21675_v37 = vrot.slane %v19497_v7, 4 }
 0x449   :  { %v9340_v48 = vrot.slane %v19499_v10, 1  ;;  %v9521_v57 = vrot.slane %v19499_v10, 2  ;;  %v9619_v39 = vrot.slane %v19499_v10, 3  ;;  %v9717_v41 = vrot.slane %v19499_v10, 4 }
 0x44b   :  { %v19576_v18 = vsel %vm318_vm0, %v9340_v48, %v21682_v52  ;;  %v19581_v16 = vsel %vm495_vm1, %v9521_v57, %v21677_v0  ;;  %v19586_v9 = vsel %vm5823_vm6, %v9619_v39, %v21676_v4  ;;  %v19591_v26 = vsel %vm5923_vm7, %v9717_v41, %v21675_v37  ;;  %v19628_v0 = vld [vmem:[#allocation9 + $0x28] sm:$0xff] }
 0x44e   :  { %v14052_v49 = vpop.f32.mrb[14].mxu0 }
 0x44f   :  { %v3617_v63 = vpop.f32.mrb[15].mxu0 }
 0x450   :  { %14061 = vmatprep.mubr.msk.f32.mxu1 %vm750_vm2, %v3617_v63 }
 0x451   :  { %14062 = vmatmul.mubr.msk.f32.vlgmr.msra.gmra.mrb[14].mxu1 %vm750_vm2, %v14052_v49  ;;  %v19507_v62 = vpop.f32.mrb[4].mxu1 }
 0x452   :  { %14685 = vmatpush3.bf16.msra.mxu1 %v19069_v6  ;;  %v6122_v51 = vrot.slane %v19507_v62, 1  ;;  %v21693_v8 = vrot.slane %v19507_v62, 2  ;;  %v21692_v11 = vrot.slane %v19507_v62, 3  ;;  %v21687_v23 = vrot.slane %v19507_v62, 4  ;;  %v19516_v44 = vpop.f32.mrb[5].mxu1 }
 0x453   :  { %14688 = vmatprep.subr.msk.bf16.mxu1 %vm17314_vm5, %v19078_v59  ;;  %v6121_v43 = vrot.slane %v19516_v44, 1  ;;  %v6220_v14 = vrot.slane %v19516_v44, 2  ;;  %v6319_v20 = vrot.slane %v19516_v44, 3  ;;  %v6418_v42 = vrot.slane %v19516_v44, 4 }
 0x455   :  { %v19527_v50 = vsel %vm318_vm0, %v6121_v43, %v6122_v51  ;;  %v19532_v46 = vsel %vm495_vm1, %v6220_v14, %v21693_v8  ;;  %v19537_v22 = vsel %vm5823_vm6, %v6319_v20, %v21692_v11  ;;  %v19544_v60 = vsel %vm5923_vm7, %v6418_v42, %v21687_v23  ;;  %v6218_v23 = vld [vmem:[#allocation9 + $0xf0] sm:$0x3f] }
 0x456   :  { %14691 = vmatpush3.bf16.msk.msra.mxu1 %vm17314_vm5, %v19078_v59 }
 0x457   :  { %v14074_v27 = vpop.f32.mrb[16].mxu0  ;;  %14703 = vmatprep.subr.bf16.mxu1 %v19069_v6 }
 0x458   :  { %v4334_v21 = vpop.f32.mrb[17].mxu0 }
 0x459   :  { %14083 = vmatprep.mubr.msk.f32.mxu1 %vm750_vm2, %v4334_v21  ;;  %v19553_v30 = vpop.f32.mrb[6].mxu1 }
 0x45a   :  { %14084 = vmatmul.mubr.msk.f32.vlgmr.msra.gmra.mrb[16].mxu1 %vm750_vm2, %v14074_v27  ;;  %v19555_v19 = vpop.f32.mrb[7].mxu1 }
 0x45b   :  { %14705 = vmatpush3.bf16.msra.mxu1 %v19069_v6 }
 0x45c   :  { %14708 = vmatprep.subr.msk.bf16.mxu1 %vm17314_vm5, %v19078_v59 }
 0x45f   :  { %14711 = vmatpush3.bf16.msk.msra.mxu1 %vm17314_vm5, %v19078_v59 }
 0x460   :  { %14723 = vmatprep.subr.bf16.mxu1 %v19069_v6 }
 0x461   :  { %v19565_v28 = vpop.f32.mrb[8].mxu1 }
 0x462   :  { %v21686_v54 = vrot.slane %v19565_v28, 1  ;;  %v21685_v13 = vrot.slane %v19565_v28, 2  ;;  %v19569_v29 = vpop.f32.mrb[9].mxu1  ;;  %v21684_v49 = vrot.slane %v19565_v28, 3  ;;  %v21683_v48 = vrot.slane %v19565_v28, 4 }
 0x463   :  { %v6615_v61 = vrot.slane %v19569_v29, 1  ;;  %v6714_v34 = vrot.slane %v19569_v29, 2  ;;  %v6813_v63 = vrot.slane %v19569_v29, 3  ;;  %v6912_v57 = vrot.slane %v19569_v29, 4 }
 0x465   :  { %v19596_v56 = vsel %vm318_vm0, %v6615_v61, %v21686_v54  ;;  %v19601_v38 = vsel %vm495_vm1, %v6714_v34, %v21685_v13  ;;  %v19608_v27 = vsel %vm5823_vm6, %v6813_v63, %v21684_v49 }
 0x47e   :  { %v5084_v43 = vpop.permute.xlu1 %5083  ;;  %v15818_v14 = vpop.permute.xlu0 %15817 }
 0x47f   :  { %v5101_v20 = vmax.f32 %v5061_v55, %v5084_v43  ;;  %v15820_v42 = vunpack.i.h.bf16 %v15818_v14  ;;  %v15819_v21 = vunpack.i.l.bf16 %v15818_v14  ;;  %v19623_v55 = vsel %vm5923_vm7, %v6912_v57, %v21683_v48 }
 0x480   :  { %v14752_v57 = vpack.c.bf16 %v5538_v31, %v19628_v0  ;;  %v10010_v31 = vrot.slane %v19555_v19, 2 }
 0x481   :  { %v5100_v39 = vmax.f32 %v5060_v2, %v15820_v42  ;;  %v5099_v41 = vmax.f32 %v5059_v12, %v15819_v21  ;;  %v5121_v34 = vrot.slane %v5101_v20, 1 }
 0x482   :  { %v5086_v61 = vpop.permute.xlu0 %5085 }
 0x483   :  { %v5119_v63 = vrot.slane %v5100_v39, 1  ;;  %v5118_v37 = vrot.slane %v5099_v41, 1  ;;  %v5102_v5 = vmax.f32 %v5062_v47, %v5086_v61  ;;  %v5533_v61 = vld [vmem:[#allocation9 + $0x18] sm:$0x3f] }
 0x485   :  { %v5122_v43 = vsel %vm318_vm0, %v5119_v63, %v5121_v34  ;;  %v5120_v33 = vsel %vm318_vm0, %v5118_v37, %v5119_v63  ;;  %v5123_v2 = vrot.slane %v5102_v5, 1  ;;  %v19633_v37 = vld [vmem:[#allocation9 + $0x20] sm:$0xff]  ;;  %v5532_v63 = vld [vmem:[#allocation9 + $0x10] sm:$0x3f] }
 0x486   :  { %v5138_v14 = vmax.f32 %v5100_v39, %v5122_v43  ;;  %v5137_v45 = vmax.f32 %v5099_v41, %v5120_v33  ;;  %v5537_v39 = vld [vmem:[#allocation9 + $0x30] sm:$0x3f]  ;;  %v19651_v43 = vld [vmem:[#allocation9 + $0x48] sm:$0xff]  ;;  %v5723_v33 = vld [vmem:[#allocation9 + $0x58] sm:$0x3f] }
 0x487   :  { %v5124_v12 = vsel %vm318_vm0, %v5121_v34, %v5123_v2  ;;  %v5140_v42 = vmax.f32 %v5102_v5, %v5123_v2  ;;  %v19646_v34 = vld [vmem:[#allocation9] sm:$0xff] }
 0x488   :  { %v5139_v21 = vmax.f32 %v5101_v20, %v5124_v12  ;;  %v14732_v4 = vpack.c.bf16 %v5138_v14, %v5137_v45  ;;  %v19641_v20 = vld [vmem:[#allocation9 + $0x8] sm:$0xff]  ;;  %v14761_v2 = vpack.c.bf16 %v5532_v63, %v19646_v34  ;;  %v21681_v14 = vrot.slane %v19553_v30, 1  ;;  %v5495_v41 = vld [vmem:[#allocation14 + $0x70] sm:$0xff] }
 0x489   :  { %v14758_v5 = vpack.c.bf16 %v5533_v61, %v19641_v20  ;;  %v21680_v45 = vrot.slane %v19553_v30, 2  ;;  %v21694_v12 = vmov 0.0  }
 0x48a   :  { %v14736_v47 = vpack.c.bf16 %v5140_v42, %v5139_v21  ;;  %14733 = vmatprep.subr.bf16.mxu0 %v14732_v4  ;;  %v21679_v42 = vrot.slane %v19553_v30, 3  ;;  %v9912_v21 = vrot.slane %v19555_v19, 1 }
 0x48b   :  { %14735 = vmatpush3.bf16.msra.mxu0 %v14732_v4  ;;  %v14755_v4 = vpack.c.bf16 %v5537_v39, %v19633_v37  ;;  %v10206_v39 = vrot.slane %v19555_v19, 4 }
 0x48c   :  { %14738 = vmatprep.subr.msk.bf16.mxu0 %vm17314_vm5, %v14736_v47  ;;  %v19678_v61 = vsel %vm318_vm0, %v9912_v21, %v21681_v14  ;;  %v5822_v21 = vld [vmem:[#allocation9 + $0x78] sm:$0x3f] }
 0x48f   :  { %14741 = vmatpush3.bf16.msk.msra.mxu0 %vm17314_vm5, %v14736_v47  ;;  %v14764_v47 = vpack.c.bf16 %v5723_v33, %v19651_v43 }
 0x490   :  { %14754 = vmatprep.subr.msk.bf16.mxu0 %vm19637_vm8, %v14752_v57  ;;  %v21678_v57 = vrot.slane %v19553_v30, 4 }
 0x492   :  { %14139 = vmatmul.mubr.msk.f32.vlgmr.msra.gmra.mrb[22].mxu0 %vm750_vm2, %v19263_v36  ;;  %v10108_v36 = vrot.slane %v19555_v19, 3  ;;  %v19697_v33 = vsel %vm5923_vm7, %v10206_v39, %v21678_v57  ;;  %v19716_v39 = vld [vmem:[#allocation9 + $0x88] sm:$0xff]  ;;  %v5922_v57 = vld [vmem:[#allocation9 + $0x98] sm:$0x3f] }
 0x493   :  { %14757 = vmatpush1.bf16.msk.msra.mxu0 %vm19637_vm8, %v14755_v4  ;;  %5619 = vmatprep.mubr.f32.mxu0 %v21694_v12  ;;  %v19683_v4 = vsel %vm495_vm1, %v10010_v31, %v21680_v45  ;;  %v6119_v45 = vld [vmem:[#allocation9 + $0xd0] sm:$0x3f] }
 0x494   :  { %14760 = vmatprep.subr.msk.bf16.mxu0 %vm19637_vm8, %v14758_v5  ;;  %v19688_v63 = vsel %vm5823_vm6, %v10108_v36, %v21679_v42  ;;  %v5722_v5 = vld [vmem:[#allocation9 + $0x50] sm:$0x3f]  ;;  %v6022_v42 = vld [vmem:[#allocation9 + $0xb8] sm:$0x3f] }
 0x496   :  { %13226 = vmatmul.mubr.msk.f32.vlgmr.msra.gmra.mrb[24].mxu0 %vm5544_vm9, %v19474_v1  ;;  %v19692_v1 = vld [vmem:[#allocation9 + $0x40] sm:$0xff] }
 0x497   :  { %5625 = vmatprep.mubr.f32.mxu0 %v21694_v12  ;;  %14763 = vmatpush1.bf16.msk.msra.mxu0 %vm19637_vm8, %v14761_v2  ;;  %v19699_v2 = vld [vmem:[#allocation9 + $0x68] sm:$0xff]  ;;  %v14767_v31 = vpack.c.bf16 %v5722_v5, %v19692_v1  ;;  %v14776_v5 = vpack.c.bf16 %v5922_v57, %v19716_v39 }
 0x498   :  { %14766 = vmatprep.subr.msk.bf16.mxu0 %vm19637_vm8, %v14764_v47  ;;  %v14770_v36 = vpack.c.bf16 %v5822_v21, %v19699_v2  ;;  %v19714_v47 = vld [vmem:[#allocation9 + $0x60] sm:$0xff] }
 0x499   :  { %v19730_v21 = vld [vmem:[#allocation9 + $0x80] sm:$0xff] }
 0x49a   :  { %13227 = vmatmul.mubr.msk.f32.gmra.mrb[26].mxu0 %vm5544_vm9, %v5542_v15  ;;  %v5821_v15 = vld [vmem:[#allocation9 + $0x70] sm:$0x3f] }
 0x49b   :  { %5706 = vmatprep.mubr.f32.mxu0 %v21694_v12 }
 0x49e   :  { %13230 = vmatmul.mubr.msk.f32.vlgmr.msra.gmra.mrb[24].mxu0 %vm5544_vm9, %v19468_v35  ;;  %v14773_v35 = vpack.c.bf16 %v5821_v15, %v19714_v47  ;;  %v19747_v15 = vld [vmem:[#allocation9 + $0xa0] sm:$0xff] }
 0x49f   :  { %5712 = vmatprep.mubr.f32.mxu0 %v21694_v12  ;;  %14769 = vmatpush1.bf16.msk.msra.mxu0 %vm19637_vm8, %v14767_v31  ;;  %v5921_v31 = vld [vmem:[#allocation9 + $0x90] sm:$0x3f] }
 0x4a0   :  { %14772 = vmatprep.subr.msk.bf16.mxu0 %vm19637_vm8, %v14770_v36  ;;  %v19732_v36 = vld [vmem:[#allocation9 + $0xa8] sm:$0xff] }
 0x4a1   :  { %v14782_v57 = vpack.c.bf16 %v6022_v42, %v19732_v36 }
 0x4a2   :  { %13231 = vmatmul.mubr.msk.f32.gmra.mrb[26].mxu0 %vm5544_vm9, %v19465_v40 }
 0x4a3   :  { %5801 = vmatprep.mubr.f32.mxu0 %v21694_v12 }
 0x4a6   :  { %13234 = vmatmul.mubr.msk.f32.vlgmr.msra.gmra.mrb[24].mxu0 %vm5544_vm9, %v19481_v25  ;;  %v14779_v25 = vpack.c.bf16 %v5921_v31, %v19730_v21 }
 0x4a7   :  { %5807 = vmatprep.mubr.f32.mxu0 %v21694_v12  ;;  %14775 = vmatpush1.bf16.msk.msra.mxu0 %vm19637_vm8, %v14773_v35  ;;  %v19749_v35 = vld [vmem:[#allocation9 + $0xc8] sm:$0xff] }
 0x4a8   :  { %14778 = vmatprep.subr.msk.bf16.mxu0 %vm19637_vm8, %v14776_v5  ;;  %v6120_v5 = vld [vmem:[#allocation9 + $0xd8] sm:$0x3f] }
 0x4a9   :  { %v14788_v42 = vpack.c.bf16 %v6120_v5, %v19749_v35 }
 0x4aa   :  { %13235 = vmatmul.mubr.msk.f32.gmra.mrb[26].mxu0 %vm5544_vm9, %v5725_v24  ;;  %v6021_v24 = vld [vmem:[#allocation9 + $0xb0] sm:$0x3f] }
 0x4ab   :  { %5901 = vmatprep.mubr.f32.mxu0 %v21694_v12 }
 0x4ae   :  { %13238 = vmatmul.mubr.msk.f32.vlgmr.msra.gmra.mrb[24].mxu0 %vm5544_vm9, %v19490_v58  ;;  %v14785_v58 = vpack.c.bf16 %v6021_v24, %v19747_v15  ;;  %v6219_v24 = vld [vmem:[#allocation9 + $0xf8] sm:$0x3f] }
 0x4af   :  { %5907 = vmatprep.mubr.f32.mxu0 %v21694_v12  ;;  %14781 = vmatpush1.bf16.msk.msra.mxu0 %vm19637_vm8, %v14779_v25 }
 0x4b0   :  { %14784 = vmatprep.subr.msk.bf16.mxu0 %vm19637_vm8, %v14782_v57  ;;  %v19762_v57 = vld [vmem:[#allocation9 + $0xc0] sm:$0xff] }
 0x4b1   :  { %v14791_v5 = vpack.c.bf16 %v6119_v45, %v19762_v57 }
 0x4b2   :  { %13239 = vmatmul.mubr.msk.f32.gmra.mrb[26].mxu0 %vm5544_vm9, %v5825_v3  ;;  %v19768_v3 = vld [vmem:[#allocation9 + $0xe8] sm:$0xff] }
 0x4b3   :  { %6001 = vmatprep.mubr.f32.mxu0 %v21694_v12  ;;  %v14794_v14 = vpack.c.bf16 %v6219_v24, %v19768_v3 }
 0x4b6   :  { %v14096_v31 = vpop.f32.mrb[18].mxu0  ;;  %13242 = vmatmul.mubr.msk.f32.vlgmr.msra.gmra.mrb[24].mxu0 %vm5544_vm9, %v19495_v32 }
 0x4b7   :  { %v4493_v25 = vpop.f32.mrb[19].mxu0  ;;  %6007 = vmatprep.mubr.f32.mxu0 %v21694_v12  ;;  %14787 = vmatpush1.bf16.msk.msra.mxu0 %vm19637_vm8, %v14785_v58 }
 0x4b8   :  { %14105 = vmatprep.mubr.msk.f32.mxu1 %vm750_vm2, %v4493_v25  ;;  %14790 = vmatprep.subr.msk.bf16.mxu0 %vm19637_vm8, %v14788_v42 }
 0x4b9   :  { %14106 = vmatmul.mubr.msk.f32.vlgmr.msra.gmra.mrb[18].mxu1 %vm750_vm2, %v14096_v31  ;;  %v19770_v32 = vpop.f32.mrb[10].mxu1 }
 0x4ba   :  { %14725 = vmatpush3.bf16.msra.mxu1 %v19069_v6  ;;  %13243 = vmatmul.mubr.msk.f32.gmra.mrb[26].mxu0 %vm5544_vm9, %v5925_v17  ;;  %v21691_v58 = vrot.slane %v19770_v32, 1  ;;  %v21688_v25 = vrot.slane %v19770_v32, 2  ;;  %v19779_v42 = vpop.f32.mrb[11].mxu1  ;;  %v21690_v31 = vrot.slane %v19770_v32, 3  ;;  %v21689_v52 = vrot.slane %v19770_v32, 4 }
 0x4bb   :  { %14728 = vmatprep.subr.msk.bf16.mxu1 %vm17314_vm5, %v19078_v59  ;;  %6099 = vmatprep.mubr.f32.mxu0 %v21694_v12  ;;  %v10401_v40 = vrot.slane %v19779_v42, 1  ;;  %v10499_v17 = vrot.slane %v19779_v42, 2  ;;  %v10597_v45 = vrot.slane %v19779_v42, 3  ;;  %v10695_v48 = vrot.slane %v19779_v42, 4 }
 0x4bd   :  { %v19803_v24 = vsel %vm318_vm0, %v10401_v40, %v21691_v58  ;;  %v19808_v54 = vsel %vm495_vm1, %v10499_v17, %v21688_v25  ;;  %v19823_v40 = vsel %vm5923_vm7, %v10695_v48, %v21689_v52  ;;  %v19826_v17 = vld [vmem:[#allocation9 + $0x108] sm:$0xff]  ;;  %v6318_v25 = vld [vmem:[#allocation9 + $0x118] sm:$0x3f]  ;;  %v19840_v48 = vld [vmem:[#allocation9 + $0x100] sm:$0xff] }
 0x4be   :  { %v14118_v49 = vpop.f32.mrb[20].mxu0  ;;  %14731 = vmatpush3.bf16.msk.msra.mxu1 %vm17314_vm5, %v19078_v59  ;;  %13246 = vmatmul.mubr.msk.f32.vlgmr.msra.gmra.mrb[24].mxu0 %vm5544_vm9, %v19516_v44  ;;  %21930 = vst [vmem:[#allocation36_spill] sm:$0xff] %v19803_v24  ;;  %21931 = vst [vmem:[#allocation33_spill] sm:$0xff] %v19808_v54  ;;  %v19813_v44 = vsel %vm5823_vm6, %v10597_v45, %v21690_v31  ;;  %v7010_v54 = vld [vmem:[#allocation9 + $0x1f8] sm:$0x3f] }
 0x4bf   :  { %v5210_v13 = vpop.f32.mrb[21].mxu0  ;;  %6105 = vmatprep.mubr.f32.mxu0 %v21694_v12  ;;  %14793 = vmatpush1.bf16.msk.msra.mxu0 %vm19637_vm8, %v14791_v5  ;;  %21932 = vst [vmem:[#allocation32_spill] sm:$0xff] %v19813_v44  ;;  %v19818_v5 = vld [vmem:[#allocation9 + $0xe0] sm:$0xff]  ;;  %21933 = vst [vmem:[#allocation38_spill] sm:$0xff] %v19823_v40  ;;  %v6911_v44 = vld [vmem:[#allocation9 + $0x1d8] sm:$0x3f] }
 0x4c0   :  { %14127 = vmatprep.mubr.msk.f32.mxu1 %vm750_vm2, %v5210_v13  ;;  %14796 = vmatprep.subr.msk.bf16.mxu0 %vm19637_vm8, %v14794_v14  ;;  %v14797_v13 = vpack.c.bf16 %v6218_v23, %v19818_v5  ;;  %v6317_v14 = vld [vmem:[#allocation9 + $0x110] sm:$0x3f]  ;;  %v19851_v23 = vld [vmem:[#allocation9 + $0x128] sm:$0xff] }
 0x4c1   :  { %14128 = vmatmul.mubr.msk.f32.vlgmr.msra.gmra.mrb[20].mxu1 %vm750_vm2, %v14118_v49  ;;  %14743 = vmatprep.subr.bf16.mxu1 %v19069_v6  ;;  %v14800_v49 = vpack.c.bf16 %v6318_v25, %v19826_v17 }
 0x4c2   :  { %13247 = vmatmul.mubr.msk.f32.gmra.mrb[26].mxu0 %vm5544_vm9, %v19507_v62  ;;  %14745 = vmatpush3.bf16.msra.mxu1 %v19069_v6  ;;  %v14803_v6 = vpack.c.bf16 %v6317_v14, %v19840_v48 }
 0x4c3   :  { %6198 = vmatprep.mubr.f32.mxu0 %v21694_v12  ;;  %14748 = vmatprep.subr.msk.bf16.mxu1 %vm17314_vm5, %v19078_v59 }
 0x4c6   :  { %13250 = vmatmul.mubr.msk.f32.vlgmr.msra.gmra.mrb[24].mxu0 %vm5544_vm9, %v19527_v50  ;;  %14751 = vmatpush3.bf16.msk.msra.mxu1 %vm17314_vm5, %v19078_v59  ;;  %v6417_v50 = vld [vmem:[#allocation9 + $0x138] sm:$0x3f] }
 0x4c7   :  { %6204 = vmatprep.mubr.f32.mxu0 %v21694_v12  ;;  %14799 = vmatpush1.bf16.msk.msra.mxu0 %vm19637_vm8, %v14797_v13  ;;  %v14806_v58 = vpack.c.bf16 %v6417_v50, %v19851_v23  ;;  %v21934_v50 = vmov 0.0  }
 0x4c8   :  { %14802 = vmatprep.subr.msk.bf16.mxu0 %vm19637_vm8, %v14800_v49 }
 0x4c9   :  { %v19853_v25 = vpop.f32.mrb[12].mxu1 }
 0x4ca   :  { %13251 = vmatmul.mubr.msk.f32.gmra.mrb[26].mxu0 %vm5544_vm9, %v6122_v51  ;;  %v21699_v53 = vrot.slane %v19853_v25, 1  ;;  %v21698_v59 = vrot.slane %v19853_v25, 2  ;;  %v21696_v45 = vrot.slane %v19853_v25, 3  ;;  %v21697_v13 = vrot.slane %v19853_v25, 4  ;;  %v19862_v49 = vpop.f32.mrb[13].mxu1 }
 0x4cb   :  { %6297 = vmatprep.mubr.f32.mxu0 %v21694_v12  ;;  %v7109_v14 = vrot.slane %v19862_v49, 1  ;;  %v7208_v52 = vrot.slane %v19862_v49, 2  ;;  %v7307_v31 = vrot.slane %v19862_v49, 3  ;;  %v7406_v51 = vrot.slane %v19862_v49, 4 }
 0x4cd   :  { %v19873_v11 = vsel %vm318_vm0, %v7109_v14, %v21699_v53  ;;  %v19878_v8 = vsel %vm495_vm1, %v7208_v52, %v21698_v59  ;;  %v19883_v12 = vsel %vm5823_vm6, %v7307_v31, %v21696_v45  ;;  %v19888_v40 = vsel %vm5923_vm7, %v7406_v51, %v21697_v13  ;;  %v19897_v52 = vld [vmem:[#allocation9 + $0x120] sm:$0xff]  ;;  %v6416_v31 = vld [vmem:[#allocation9 + $0x130] sm:$0x3f]  ;;  %v19899_v14 = vld [vmem:[#allocation9 + $0x148] sm:$0xff] }
 0x4ce   :  { %13254 = vmatmul.mubr.msk.f32.vlgmr.msra.gmra.mrb[24].mxu0 %vm5544_vm9, %v19532_v46  ;;  %v6516_v45 = vld [vmem:[#allocation9 + $0x158] sm:$0x3f]  ;;  %v21935_v51 = vrot.slane %v19507_v62, 2  ;;  %v14809_v46 = vpack.c.bf16 %v6416_v31, %v19897_v52  ;;  %v21936_v31 = vrot.slane %v19507_v62, 3 }
 0x4cf   :  { %6303 = vmatprep.mubr.f32.mxu0 %v21934_v50  ;;  %14805 = vmatpush1.bf16.msk.msra.mxu0 %vm19637_vm8, %v14803_v6  ;;  %v14812_v13 = vpack.c.bf16 %v6516_v45, %v19899_v14  ;;  %v6515_v6 = vld [vmem:[#allocation9 + $0x150] sm:$0x3f]  ;;  %v6614_v59 = vld [vmem:[#allocation9 + $0x178] sm:$0x3f] }
 0x4d0   :  { %14808 = vmatprep.subr.msk.bf16.mxu0 %vm19637_vm8, %v14806_v58  ;;  %v19914_v58 = vld [vmem:[#allocation9 + $0x140] sm:$0xff]  ;;  %v6713_v53 = vld [vmem:[#allocation9 + $0x198] sm:$0x3f] }
 0x4d2   :  { %13255 = vmatmul.mubr.msk.f32.gmra.mrb[26].mxu0 %vm5544_vm9, %v21935_v51  ;;  %v19916_v51 = vld [vmem:[#allocation9 + $0x168] sm:$0xff] }
 0x4d3   :  { %6396 = vmatprep.mubr.f32.mxu0 %v21934_v50  ;;  %v14818_v45 = vpack.c.bf16 %v6614_v59, %v19916_v51 }
 0x4d6   :  { %13258 = vmatmul.mubr.msk.f32.vlgmr.msra.gmra.mrb[24].mxu0 %vm5544_vm9, %v19537_v22  ;;  %v14815_v22 = vpack.c.bf16 %v6515_v6, %v19914_v58  ;;  %v21937_v6 = vrot.slane %v19507_v62, 4  ;;  %v19948_v62 = vld [vmem:[#allocation9 + $0x180] sm:$0xff] }
 0x4d7   :  { %6402 = vmatprep.mubr.f32.mxu0 %v21934_v50  ;;  %14811 = vmatpush1.bf16.msk.msra.mxu0 %vm19637_vm8, %v14809_v46  ;;  %v6613_v46 = vld [vmem:[#allocation9 + $0x170] sm:$0x3f] }
 0x4d8   :  { %14814 = vmatprep.subr.msk.bf16.mxu0 %vm19637_vm8, %v14812_v13  ;;  %v19931_v13 = vld [vmem:[#allocation9 + $0x160] sm:$0xff] }
 0x4da   :  { %13259 = vmatmul.mubr.msk.f32.gmra.mrb[26].mxu0 %vm5544_vm9, %v21936_v31  ;;  %v19933_v31 = vld [vmem:[#allocation9 + $0x188] sm:$0xff] }
 0x4db   :  { %6495 = vmatprep.mubr.f32.mxu0 %v21934_v50  ;;  %v14824_v59 = vpack.c.bf16 %v6713_v53, %v19933_v31 }
 0x4de   :  { %13262 = vmatmul.mubr.msk.f32.vlgmr.msra.gmra.mrb[24].mxu0 %vm5544_vm9, %v19544_v60  ;;  %v14821_v60 = vpack.c.bf16 %v6613_v46, %v19931_v13  ;;  %v19964_v46 = vld [vmem:[#allocation9 + $0x1a0] sm:$0xff] }
 0x4df   :  { %6501 = vmatprep.mubr.f32.mxu0 %v21934_v50  ;;  %14817 = vmatpush1.bf16.msk.msra.mxu0 %vm19637_vm8, %v14815_v22  ;;  %v6712_v22 = vld [vmem:[#allocation9 + $0x190] sm:$0x3f]  ;;  %21938 = vst [vmem:[#allocation41_spill] sm:$0xff] %v19964_v46 }
 0x4e0   :  { %14820 = vmatprep.subr.msk.bf16.mxu0 %vm19637_vm8, %v14818_v45  ;;  %v19950_v45 = vld [vmem:[#allocation9 + $0x1a8] sm:$0xff] }
 0x4e2   :  { %13263 = vmatmul.mubr.msk.f32.gmra.mrb[26].mxu0 %vm5544_vm9, %v21937_v6  ;;  %v6812_v6 = vld [vmem:[#allocation9 + $0x1b8] sm:$0x3f] }
 0x4e3   :  { %6593 = vmatprep.mubr.f32.mxu0 %v21934_v50  ;;  %v14830_v53 = vpack.c.bf16 %v6812_v6, %v19950_v45 }
 0x4e6   :  { %13266 = vmatmul.mubr.msk.f32.vlgmr.msra.gmra.mrb[24].mxu0 %vm5544_vm9, %v19569_v29  ;;  %v14827_v29 = vpack.c.bf16 %v6712_v22, %v19948_v62  ;;  %v21940_v22 = vrot.slane %v19565_v28, 1 }
 0x4e7   :  { %6599 = vmatprep.mubr.f32.mxu0 %v21934_v50  ;;  %14823 = vmatpush1.bf16.msk.msra.mxu0 %vm19637_vm8, %v14821_v60  ;;  %v6811_v60 = vld [vmem:[#allocation9 + $0x1b0] sm:$0x3f] }
 0x4e8   :  { %14826 = vmatprep.subr.msk.bf16.mxu0 %vm19637_vm8, %v14824_v59  ;;  %v19966_v59 = vld [vmem:[#allocation9 + $0x1c8] sm:$0xff] }
 0x4e9   :  { %21939 = vst [vmem:[#allocation42_spill] sm:$0xff] %v19966_v59  ;;  %v14836_v6 = vpack.c.bf16 %v6911_v44, %v19966_v59  ;;  %v7108_v59 = vld [vmem:[#allocation9 + $0x218] sm:$0x3f] }
 0x4ea   :  { %13267 = vmatmul.mubr.msk.f32.gmra.mrb[26].mxu0 %vm5544_vm9, %v19565_v28 }
 0x4eb   :  { %6692 = vmatprep.mubr.f32.mxu0 %v21934_v50 }
 0x4ee   :  { %13270 = vmatmul.mubr.msk.f32.vlgmr.msra.gmra.mrb[24].mxu0 %vm5544_vm9, %v19596_v56  ;;  %v14833_v56 = vpack.c.bf16 %v6811_v60, %v19964_v46  ;;  %v21943_v60 = vrot.slane %v19565_v28, 2 }
 0x4ef   :  { %6698 = vmatprep.mubr.f32.mxu0 %v21934_v50  ;;  %14829 = vmatpush1.bf16.msk.msra.mxu0 %vm19637_vm8, %v14827_v29  ;;  %v19981_v29 = vld [vmem:[#allocation9 + $0x1c0] sm:$0xff] }
 0x4f0   :  { %14832 = vmatprep.subr.msk.bf16.mxu0 %vm19637_vm8, %v14830_v53  ;;  %21941 = vst [vmem:[#allocation48_spill] sm:$0xff] %v19981_v29  ;;  %v6910_v53 = vld [vmem:[#allocation9 + $0x1d0] sm:$0x3f] }
 0x4f2   :  { %13271 = vmatmul.mubr.msk.f32.gmra.mrb[26].mxu0 %vm5544_vm9, %v21940_v22  ;;  %v19983_v22 = vld [vmem:[#allocation9 + $0x1e8] sm:$0xff] }
 0x4f3   :  { %6791 = vmatprep.mubr.f32.mxu0 %v21934_v50  ;;  %21942 = vst [vmem:[#allocation49_spill] sm:$0xff] %v19983_v22  ;;  %v14842_v44 = vpack.c.bf16 %v7010_v54, %v19983_v22  ;;  %v7207_v22 = vld [vmem:[#allocation9 + $0x238] sm:$0x3f] }
 0x4f6   :  { %13274 = vmatmul.mubr.msk.f32.vlgmr.msra.gmra.mrb[24].mxu0 %vm5544_vm9, %v19601_v38  ;;  %v14839_v38 = vpack.c.bf16 %v6910_v53, %v19981_v29  ;;  %v21946_v53 = vrot.slane %v19565_v28, 3  ;;  %v7602_v29 = vld [vmem:[#allocation9 + $0x2b8] sm:$0x3f] }
 0x4f7   :  { %6797 = vmatprep.mubr.f32.mxu0 %v21934_v50  ;;  %14835 = vmatpush1.bf16.msk.msra.mxu0 %vm19637_vm8, %v14833_v56  ;;  %v19998_v56 = vld [vmem:[#allocation9 + $0x1e0] sm:$0xff] }
 0x4f8   :  { %14838 = vmatprep.subr.msk.bf16.mxu0 %vm19637_vm8, %v14836_v6  ;;  %21944 = vst [vmem:[#allocation30_spill] sm:$0xff] %v19998_v56  ;;  %v7009_v6 = vld [vmem:[#allocation9 + $0x1f0] sm:$0x3f] }
 0x4f9   :  { %v14845_v54 = vpack.c.bf16 %v7009_v6, %v19998_v56  ;;  %v21949_v6 = vrot.slane %v19565_v28, 4  ;;  %v20032_v28 = vld [vmem:[#allocation9 + $0x220] sm:$0xff]  ;;  %v20116_v56 = vld [vmem:[#allocation9 + $0x2a8] sm:$0xff] }
 0x4fa   :  { %13275 = vmatmul.mubr.msk.f32.gmra.mrb[26].mxu0 %vm5544_vm9, %v21943_v60  ;;  %v20000_v60 = vld [vmem:[#allocation9 + $0x208] sm:$0xff]  ;;  %21950 = vst [vmem:[#allocation34_spill] sm:$0xff] %v20032_v28  ;;  %21967 = vst [vmem:[#allocation54_spill] sm:$0xff] %v20116_v56 }
 0x4fb   :  { %6890 = vmatprep.mubr.f32.mxu0 %v21934_v50  ;;  %21945 = vst [vmem:[#allocation43_spill] sm:$0xff] %v20000_v60 }
 0x4fe   :  { %13278 = vmatmul.mubr.msk.f32.vlgmr.msra.gmra.mrb[24].mxu0 %vm5544_vm9, %v19608_v27  ;;  %v14848_v27 = vpack.c.bf16 %v7108_v59, %v20000_v60 }
 0x4ff   :  { %6896 = vmatprep.mubr.f32.mxu0 %v21934_v50  ;;  %14841 = vmatpush1.bf16.msk.msra.mxu0 %vm19637_vm8, %v14839_v38  ;;  %v20015_v38 = vld [vmem:[#allocation9 + $0x200] sm:$0xff] }
 0x500   :  { %14844 = vmatprep.subr.msk.bf16.mxu0 %vm19637_vm8, %v14842_v44  ;;  %21947 = vst [vmem:[#allocation44_spill] sm:$0xff] %v20015_v38  ;;  %v7107_v44 = vld [vmem:[#allocation9 + $0x210] sm:$0x3f] }
 0x502   :  { %13279 = vmatmul.mubr.msk.f32.gmra.mrb[26].mxu0 %vm5544_vm9, %v21946_v53  ;;  %v20017_v53 = vld [vmem:[#allocation9 + $0x228] sm:$0xff] }
 0x503   :  { %6989 = vmatprep.mubr.f32.mxu0 %v21934_v50  ;;  %21948 = vst [vmem:[#allocation35_spill] sm:$0xff] %v20017_v53  ;;  %v14854_v59 = vpack.c.bf16 %v7207_v22, %v20017_v53  ;;  %v7405_v53 = vld [vmem:[#allocation9 + $0x278] sm:$0x3f] }
 0x506   :  { %13282 = vmatmul.mubr.msk.f32.vlgmr.msra.gmra.mrb[24].mxu0 %vm5544_vm9, %v19623_v55  ;;  %v14851_v55 = vpack.c.bf16 %v7107_v44, %v20015_v38  ;;  %v20048_v44 = vld [vmem:[#allocation9 + $0x240] sm:$0xff] }
 0x507   :  { %6995 = vmatprep.mubr.f32.mxu0 %v21934_v50  ;;  %14847 = vmatpush1.bf16.msk.msra.mxu0 %vm19637_vm8, %v14845_v54  ;;  %v7206_v54 = vld [vmem:[#allocation9 + $0x230] sm:$0x3f]  ;;  %21952 = vst [vmem:[#allocation47_spill] sm:$0xff] %v20048_v44 }
 0x508   :  { %14850 = vmatprep.subr.msk.bf16.mxu0 %vm19637_vm8, %v14848_v27  ;;  %v20034_v27 = vld [vmem:[#allocation9 + $0x248] sm:$0xff] }
 0x509   :  { %21951 = vst [vmem:[#allocation31_spill] sm:$0xff] %v20034_v27 }
 0x50a   :  { %13283 = vmatmul.mubr.msk.f32.gmra.mrb[26].mxu0 %vm5544_vm9, %v21949_v6  ;;  %v7306_v6 = vld [vmem:[#allocation9 + $0x258] sm:$0x3f] }
 0x50b   :  { %7087 = vmatprep.mubr.f32.mxu0 %v21934_v50  ;;  %v14860_v22 = vpack.c.bf16 %v7306_v6, %v20034_v27  ;;  %v7504_v27 = vld [vmem:[#allocation9 + $0x298] sm:$0x3f] }
 0x50e   :  { %13286 = vmatmul.mubr.msk.f32.vlgmr.msra.gmra.mrb[24].mxu0 %vm5544_vm9, %v19862_v49  ;;  %v14857_v49 = vpack.c.bf16 %v7206_v54, %v20032_v28  ;;  %v21954_v54 = vrot.slane %v19853_v25, 1  ;;  %v20094_v28 = vld [vmem:[#allocation9 + $0x280] sm:$0xff] }
 0x50f   :  { %7093 = vmatprep.mubr.f32.mxu0 %v21934_v50  ;;  %14853 = vmatpush1.bf16.msk.msra.mxu0 %vm19637_vm8, %v14851_v55  ;;  %v7305_v55 = vld [vmem:[#allocation9 + $0x250] sm:$0x3f]  ;;  %21960 = vst [vmem:[#allocation29_spill] sm:$0xff] %v20094_v28 }
 0x510   :  { %14856 = vmatprep.subr.msk.bf16.mxu0 %vm19637_vm8, %v14854_v59  ;;  %v20050_v59 = vld [vmem:[#allocation9 + $0x268] sm:$0xff] }
 0x511   :  { %21953 = vst [vmem:[#allocation40_spill] sm:$0xff] %v20050_v59  ;;  %v14866_v6 = vpack.c.bf16 %v7405_v53, %v20050_v59 }
 0x512   :  { %13287 = vmatmul.mubr.msk.f32.gmra.mrb[26].mxu0 %vm5544_vm9, %v19853_v25 }
 0x513   :  { %7186 = vmatprep.mubr.f32.mxu0 %v21934_v50 }
 0x516   :  { %13290 = vmatmul.mubr.msk.f32.vlgmr.msra.gmra.mrb[24].mxu0 %vm5544_vm9, %v19873_v11  ;;  %v14863_v11 = vpack.c.bf16 %v7305_v55, %v20048_v44  ;;  %v21957_v55 = vrot.slane %v19853_v25, 2  ;;  %v7503_v44 = vld [vmem:[#allocation9 + $0x290] sm:$0x3f] }
 0x517   :  { %7192 = vmatprep.mubr.f32.mxu0 %v21934_v50  ;;  %14859 = vmatpush1.bf16.msk.msra.mxu0 %vm19637_vm8, %v14857_v49  ;;  %v20065_v49 = vld [vmem:[#allocation9 + $0x260] sm:$0xff] }
 0x518   :  { %14862 = vmatprep.subr.msk.bf16.mxu0 %vm19637_vm8, %v14860_v22  ;;  %21955 = vst [vmem:[#allocation39_spill] sm:$0xff] %v20065_v49  ;;  %v7404_v22 = vld [vmem:[#allocation9 + $0x270] sm:$0x3f] }
 0x51a   :  { %13291 = vmatmul.mubr.msk.f32.gmra.mrb[26].mxu0 %vm5544_vm9, %v21954_v54  ;;  %v20067_v54 = vld [vmem:[#allocation9 + $0x288] sm:$0xff] }
 0x51b   :  { %7285 = vmatprep.mubr.f32.mxu0 %v21934_v50  ;;  %21956 = vst [vmem:[#allocation45_spill] sm:$0xff] %v20067_v54 }
 0x51e   :  { %13294 = vmatmul.mubr.msk.f32.vlgmr.msra.gmra.mrb[24].mxu0 %vm5544_vm9, %v19878_v8  ;;  %v14869_v8 = vpack.c.bf16 %v7404_v22, %v20065_v49 }
 0x51f   :  { %7291 = vmatprep.mubr.f32.mxu0 %v21934_v50  ;;  %14865 = vmatpush1.bf16.msk.msra.mxu0 %vm19637_vm8, %v14863_v11  ;;  %v14872_v11 = vpack.c.bf16 %v7504_v27, %v20067_v54 }
 0x520   :  { %14868 = vmatprep.subr.msk.bf16.mxu0 %vm19637_vm8, %v14866_v6 }
 0x522   :  { %13295 = vmatmul.mubr.msk.f32.gmra.mrb[26].mxu0 %vm5544_vm9, %v21957_v55 }
 0x523   :  { %7384 = vmatprep.mubr.f32.mxu0 %v21934_v50 }
 0x524   :  { %v20074_v53 = vpop.f32.mrb[14].mxu1 }
 0x525   :  { %21958 = vst [vmem:[#allocation37_spill] sm:$0xff] %v20074_v53  ;;  %v21715_v6 = vrot.slane %v20074_v53, 1  ;;  %v21714_v59 = vrot.slane %v20074_v53, 2  ;;  %v20081_v38 = vpop.f32.mrb[15].mxu1 }
 0x526   :  { %21959 = vst [vmem:[#allocation46_spill] sm:$0xff] %v20081_v38  ;;  %13298 = vmatmul.mubr.msk.f32.vlgmr.msra.gmra.mrb[24].mxu0 %vm5544_vm9, %v19883_v12  ;;  %v10890_v55 = vrot.slane %v20081_v38, 1  ;;  %v10988_v22 = vrot.slane %v20081_v38, 2  ;;  %v11086_v49 = vrot.slane %v20081_v38, 3  ;;  %v11184_v27 = vrot.slane %v20081_v38, 4 }
 0x527   :  { %7390 = vmatprep.mubr.f32.mxu0 %v21934_v50  ;;  %14871 = vmatpush1.bf16.msk.msra.mxu0 %vm19637_vm8, %v14869_v8  ;;  %v21963_v38 = vrot.slane %v20074_v53, 3 }
 0x528   :  { %14874 = vmatprep.subr.msk.bf16.mxu0 %vm19637_vm8, %v14872_v11  ;;  %v20099_v12 = vsel %vm318_vm0, %v10890_v55, %v21715_v6  ;;  %v20104_v54 = vsel %vm495_vm1, %v10988_v22, %v21714_v59  ;;  %v21965_v11 = vrot.slane %v20074_v53, 4  ;;  %v21968_v55 = vrot.slane %v19853_v25, 3  ;;  %v7701_v6 = vld [vmem:[#allocation9 + $0x2d8] sm:$0x3f] }
 0x529   :  { %21961 = vst [vmem:[#allocation50_spill] sm:$0xff] %v20099_v12  ;;  %21962 = vst [vmem:[#allocation51_spill] sm:$0xff] %v20104_v54  ;;  %v20109_v8 = vsel %vm5823_vm6, %v11086_v49, %v21963_v38  ;;  %v14875_v22 = vpack.c.bf16 %v7503_v44, %v20094_v28  ;;  %v14878_v59 = vpack.c.bf16 %v7602_v29, %v20116_v56  ;;  %v7601_v28 = vld [vmem:[#allocation9 + $0x2b0] sm:$0x3f] }
 0x52a   :  { %21964 = vst [vmem:[#allocation52_spill] sm:$0xff] %v20109_v8  ;;  %v20114_v60 = vsel %vm5923_vm7, %v11184_v27, %v21965_v11  ;;  %13299 = vmatmul.mubr.msk.f32.gmra.mrb[26].mxu0 %vm5544_vm9, %v21968_v55  ;;  %v20140_v8 = vld [vmem:[#allocation9 + $0x2c8] sm:$0xff] }
 0x52b   :  { %21966 = vst [vmem:[#allocation53_spill] sm:$0xff] %v20114_v60  ;;  %7483 = vmatprep.mubr.f32.mxu0 %v21934_v50  ;;  %v14884_v24 = vpack.c.bf16 %v7701_v6, %v20140_v8 }
 0x52d   :  { %v20124_v38 = vpop.f32.mrb[16].mxu1 }
 0x52e   :  { %13302 = vmatmul.mubr.msk.f32.vlgmr.msra.gmra.mrb[24].mxu0 %vm5544_vm9, %v19888_v40  ;;  %v7604_v49 = vrot.slane %v20124_v38, 1  ;;  %v7703_v27 = vrot.slane %v20124_v38, 2  ;;  %v4415_v55 = vpop.f32.mrb[17].mxu1  ;;  %v20137_v40 = vld [vmem:[#allocation9 + $0x2a0] sm:$0xff]  ;;  %v21969_v12 = vrot.slane %v20124_v38, 3  ;;  %v21970_v53 = vrot.slane %v20124_v38, 4 }
 0x52f   :  { %7489 = vmatprep.mubr.f32.mxu0 %v21934_v50  ;;  %14877 = vmatpush1.bf16.msk.msra.mxu0 %vm19637_vm8, %v14875_v22  ;;  %v7603_v29 = vrot.slane %v4415_v55, 1  ;;  %v7702_v44 = vrot.slane %v4415_v55, 2  ;;  %v7801_v60 = vrot.slane %v4415_v55, 3  ;;  %v7900_v56 = vrot.slane %v4415_v55, 4 }
 0x530   :  { %14880 = vmatprep.subr.msk.bf16.mxu0 %vm19637_vm8, %v14878_v59  ;;  %v21971_v59 = vrot.slane %v19853_v25, 4  ;;  %v7700_v25 = vld [vmem:[#allocation9 + $0x2d0] sm:$0x3f] }
 0x531   :  { %v7605_v11 = vsel %vm318_vm0, %v7603_v29, %v7604_v49  ;;  %v7704_v54 = vsel %vm495_vm1, %v7702_v44, %v7703_v27  ;;  %v7803_v22 = vsel %vm5823_vm6, %v7801_v60, %v21969_v12  ;;  %v7902_v46 = vsel %vm5923_vm7, %v7900_v56, %v21970_v53  ;;  %v20161_v56 = vld [vmem:[#allocation9 + $0x2c0] sm:$0xff]  ;;  %v20163_v60 = vld [vmem:[#allocation9 + $0x2e8] sm:$0xff]  ;;  %v7800_v53 = vld [vmem:[#allocation9 + $0x2f8] sm:$0x3f] }
 0x532   :  { %13303 = vmatmul.mubr.msk.f32.gmra.mrb[26].mxu0 %vm5544_vm9, %v21971_v59  ;;  %v14881_v29 = vpack.c.bf16 %v7601_v28, %v20137_v40  ;;  %21972 = vst [vmem:[#allocation55_spill] sm:$0xff] %v20161_v56  ;;  %21973 = vst [vmem:[#allocation56_spill] sm:$0xff] %v20163_v60  ;;  %v14887_v28 = vpack.c.bf16 %v7700_v25, %v20161_v56  ;;  %v14890_v6 = vpack.c.bf16 %v7800_v53, %v20163_v60  ;;  %v7799_v12 = vld [vmem:[#allocation9 + $0x2f0] sm:$0x3f]  ;;  %v7899_v44 = vld [vmem:[#allocation9 + $0x318] sm:$0x3f] }
 0x533   :  { %7581 = vmatprep.mubr.f32.mxu0 %v21934_v50  ;;  %v7898_v25 = vld [vmem:[#allocation9 + $0x310] sm:$0x3f]  ;;  %v7998_v53 = vld [vmem:[#allocation9 + $0x338] sm:$0x3f] }
 0x534   :  { %v8195_v60 = vld [vmem:[#allocation9 + $0x378] sm:$0x3f] }
 0x536   :  { %13306 = vmatmul.mubr.msk.f32.vlgmr.msra.gmra.mrb[24].mxu0 %vm5544_vm9, %v4415_v55  ;;  %v20178_v55 = vld [vmem:[#allocation9 + $0x308] sm:$0xff] }
 0x537   :  { %7587 = vmatprep.mubr.f32.mxu0 %v21934_v50  ;;  %14883 = vmatpush1.bf16.msk.msra.mxu0 %vm19637_vm8, %v14881_v29  ;;  %21975 = vst [vmem:[#allocation58_spill] sm:$0xff] %v20178_v55  ;;  %v14896_v59 = vpack.c.bf16 %v7899_v44, %v20178_v55  ;;  %v20190_v29 = vld [vmem:[#allocation9 + $0x300] sm:$0xff]  ;;  %v8096_v44 = vld [vmem:[#allocation9 + $0x358] sm:$0x3f] }
 0x538   :  { %14886 = vmatprep.subr.msk.bf16.mxu0 %vm19637_vm8, %v14884_v24  ;;  %v20176_v24 = vld [vmem:[#allocation9 + $0x2e0] sm:$0xff]  ;;  %21976 = vst [vmem:[#allocation59_spill] sm:$0xff] %v20190_v29 }
 0x539   :  { %21974 = vst [vmem:[#allocation57_spill] sm:$0xff] %v20176_v24 }
 0x53a   :  { %13307 = vmatmul.mubr.msk.f32.gmra.mrb[26].mxu0 %vm5544_vm9, %v20124_v38 }
 0x53b   :  { %7680 = vmatprep.mubr.f32.mxu0 %v21934_v50 }
 0x53e   :  { %13310 = vmatmul.mubr.msk.f32.vlgmr.msra.gmra.mrb[24].mxu0 %vm5544_vm9, %v7605_v11  ;;  %v14893_v11 = vpack.c.bf16 %v7799_v12, %v20176_v24  ;;  %v7997_v12 = vld [vmem:[#allocation9 + $0x330] sm:$0x3f]  ;;  %v20260_v24 = vld [vmem:[#allocation9 + $0x368] sm:$0xff] }
 0x53f   :  { %7686 = vmatprep.mubr.f32.mxu0 %v21934_v50  ;;  %14889 = vmatpush1.bf16.msk.msra.mxu0 %vm19637_vm8, %v14887_v28  ;;  %21992 = vst [vmem:[#allocation70_spill] sm:$0xff] %v20260_v24 }
 0x540   :  { %14892 = vmatprep.subr.msk.bf16.mxu0 %vm19637_vm8, %v14890_v6  ;;  %v20204_v6 = vld [vmem:[#allocation9 + $0x320] sm:$0xff] }
 0x541   :  { %21978 = vst [vmem:[#allocation61_spill] sm:$0xff] %v20204_v6 }
 0x542   :  { %13311 = vmatmul.mubr.msk.f32.gmra.mrb[26].mxu0 %vm5544_vm9, %v7604_v49  ;;  %v20192_v49 = vld [vmem:[#allocation9 + $0x328] sm:$0xff] }
 0x543   :  { %7779 = vmatprep.mubr.f32.mxu0 %v21934_v50  ;;  %21977 = vst [vmem:[#allocation60_spill] sm:$0xff] %v20192_v49  ;;  %v14902_v28 = vpack.c.bf16 %v7998_v53, %v20192_v49 }
 0x546   :  { %13314 = vmatmul.mubr.msk.f32.vlgmr.msra.gmra.mrb[24].mxu0 %vm5544_vm9, %v7704_v54  ;;  %v14899_v54 = vpack.c.bf16 %v7898_v25, %v20190_v29  ;;  %v21981_v25 = vrot.slane %v20124_v38, 4 }
 0x547   :  { %7785 = vmatprep.mubr.f32.mxu0 %v21934_v50  ;;  %14895 = vmatpush1.bf16.msk.msra.mxu0 %vm19637_vm8, %v14893_v11  ;;  %v21980_v11 = vrot.slane %v20124_v38, 3 }
 0x548   :  { %14898 = vmatprep.subr.msk.bf16.mxu0 %vm19637_vm8, %v14896_v59 }
 0x54a   :  { %13315 = vmatmul.mubr.msk.f32.gmra.mrb[26].mxu0 %vm5544_vm9, %v7703_v27  ;;  %v20206_v27 = vld [vmem:[#allocation9 + $0x348] sm:$0xff] }
 0x54b   :  { %7878 = vmatprep.mubr.f32.mxu0 %v21934_v50  ;;  %21979 = vst [vmem:[#allocation62_spill] sm:$0xff] %v20206_v27  ;;  %v14908_v59 = vpack.c.bf16 %v8096_v44, %v20206_v27  ;;  %v8095_v27 = vld [vmem:[#allocation9 + $0x350] sm:$0x3f] }
 0x54e   :  { %13318 = vmatmul.mubr.msk.f32.vlgmr.msra.gmra.mrb[24].mxu0 %vm5544_vm9, %v7803_v22  ;;  %v14905_v22 = vpack.c.bf16 %v7997_v12, %v20204_v6 }
 0x54f   :  { %7884 = vmatprep.mubr.f32.mxu0 %v21934_v50  ;;  %14901 = vmatpush1.bf16.msk.msra.mxu0 %vm19637_vm8, %v14899_v54 }
 0x550   :  { %14904 = vmatprep.subr.msk.bf16.mxu0 %vm19637_vm8, %v14902_v28 }
 0x552   :  { %13319 = vmatmul.mubr.msk.f32.gmra.mrb[26].mxu0 %vm5544_vm9, %v21980_v11 }
 0x553   :  { %7977 = vmatprep.mubr.f32.mxu0 %v21934_v50 }
 0x556   :  { %13322 = vmatmul.mubr.msk.f32.vlgmr.msra.gmra.mrb[24].mxu0 %vm5544_vm9, %v7902_v46 }
 0x557   :  { %7983 = vmatprep.mubr.f32.mxu0 %v21934_v50  ;;  %14907 = vmatpush1.bf16.msk.msra.mxu0 %vm19637_vm8, %v14905_v22 }
 0x558   :  { %14910 = vmatprep.subr.msk.bf16.mxu0 %vm19637_vm8, %v14908_v59 }
 0x55a   :  { %13323 = vmatmul.mubr.msk.f32.gmra.mrb[26].mxu0 %vm5544_vm9, %v21981_v25 }
 0x55b   :  { %8075 = vmatprep.mubr.f32.mxu0 %v21934_v50 }
 0x565   :  { %v14140_v53 = vpop.f32.mrb[22].mxu0 }
 0x566   :  { %v5369_v54 = vpop.f32.mrb[23].mxu0 }
 0x567   :  { %14149 = vmatprep.mubr.msk.f32.mxu1 %vm750_vm2, %v5369_v54  ;;  %v20238_v54 = vld [vmem:[#allocation9 + $0x340] sm:$0xff] }
 0x568   :  { %14150 = vmatmul.mubr.msk.f32.vlgmr.msra.gmra.mrb[22].mxu1 %vm750_vm2, %v14140_v53  ;;  %21984 = vst [vmem:[#allocation65_spill] sm:$0xff] %v20238_v54  ;;  %vm9251_vm2 = vcmask 687104  }
 0x58c   :  { %v20226_v46 = vpop.f32.mrb[18].mxu1 }
 0x58d   :  { %21982 = vst [vmem:[#allocation63_spill] sm:$0xff] %v20226_v46  ;;  %v21728_v28 = vrot.slane %v20226_v46, 1  ;;  %v20232_v11 = vpop.f32.mrb[19].mxu1  ;;  %v21986_v38 = vrot.slane %v20226_v46, 2  ;;  %v21988_v6 = vrot.slane %v20226_v46, 3  ;;  %v21990_v29 = vrot.slane %v20226_v46, 4 }
 0x58e   :  { %21983 = vst [vmem:[#allocation64_spill] sm:$0xff] %v20232_v11  ;;  %v11379_v22 = vrot.slane %v20232_v11, 1  ;;  %v11477_v59 = vrot.slane %v20232_v11, 2  ;;  %v11575_v25 = vrot.slane %v20232_v11, 3  ;;  %v11673_v53 = vrot.slane %v20232_v11, 4 }
 0x58f   :  { %v8294_v11 = vld [vmem:[#allocation9 + $0x398] sm:$0x3f] }
 0x590   :  { %v20243_v12 = vsel %vm318_vm0, %v11379_v22, %v21728_v28  ;;  %v20248_v44 = vsel %vm495_vm1, %v11477_v59, %v21986_v38  ;;  %v20253_v49 = vsel %vm5823_vm6, %v11575_v25, %v21988_v6  ;;  %v20258_v55 = vsel %vm5923_vm7, %v11673_v53, %v21990_v29 }
 0x591   :  { %21985 = vst [vmem:[#allocation66_spill] sm:$0xff] %v20243_v12  ;;  %21987 = vst [vmem:[#allocation67_spill] sm:$0xff] %v20248_v44  ;;  %v14911_v22 = vpack.c.bf16 %v8095_v27, %v20238_v54  ;;  %v14914_v38 = vpack.c.bf16 %v8195_v60, %v20260_v24  ;;  %v20277_v27 = vld [vmem:[#allocation9 + $0x360] sm:$0xff]  ;;  %v8194_v24 = vld [vmem:[#allocation9 + $0x370] sm:$0x3f] }
 0x592   :  { %21989 = vst [vmem:[#allocation68_spill] sm:$0xff] %v20253_v49  ;;  %21991 = vst [vmem:[#allocation69_spill] sm:$0xff] %v20258_v55 }
 0x594   :  { %v20263_v28 = vpop.f32.mrb[20].mxu1 }
 0x595   :  { %v8098_v59 = vrot.slane %v20263_v28, 1  ;;  %v8197_v44 = vrot.slane %v20263_v28, 2  ;;  %v8296_v6 = vrot.slane %v20263_v28, 3  ;;  %v8395_v25 = vrot.slane %v20263_v28, 4  ;;  %v5291_v49 = vpop.f32.mrb[21].mxu1 }
 0x596   :  { %v8097_v29 = vrot.slane %v5291_v49, 1  ;;  %v8196_v53 = vrot.slane %v5291_v49, 2  ;;  %v8295_v55 = vrot.slane %v5291_v49, 3  ;;  %v8394_v12 = vrot.slane %v5291_v49, 4  ;;  %13326 = vmatmul.mubr.msk.f32.vlgmr.msra.gmra.mrb[24].mxu0 %vm5544_vm9, %v5291_v49  ;;  %v20282_v49 = vld [vmem:[#allocation9 + $0x388] sm:$0xff] }
 0x597   :  { %8081 = vmatprep.mubr.f32.mxu0 %v21934_v50  ;;  %14913 = vmatpush1.bf16.msk.msra.mxu0 %vm19637_vm8, %v14911_v22  ;;  %v14917_v22 = vpack.c.bf16 %v8194_v24, %v20277_v27 }
 0x598   :  { %v8099_v60 = vsel %vm318_vm0, %v8097_v29, %v8098_v59  ;;  %14916 = vmatprep.subr.msk.bf16.mxu0 %vm19637_vm8, %v14914_v38  ;;  %v8198_v54 = vsel %vm495_vm1, %v8196_v53, %v8197_v44  ;;  %v8297_v56 = vsel %vm5823_vm6, %v8295_v55, %v8296_v6  ;;  %v8396_v46 = vsel %vm5923_vm7, %v8394_v12, %v8395_v25  ;;  %v20295_v55 = vld [vmem:[#allocation9 + $0x380] sm:$0xff]  ;;  %v8293_v12 = vld [vmem:[#allocation9 + $0x390] sm:$0x3f]  ;;  %v8393_v29 = vld [vmem:[#allocation9 + $0x3b8] sm:$0x3f] }
 0x599   :  { %v14920_v38 = vpack.c.bf16 %v8294_v11, %v20282_v49  ;;  %v14923_v24 = vpack.c.bf16 %v8293_v12, %v20295_v55  ;;  %v20309_v53 = vld [vmem:[#allocation9 + $0x3a0] sm:$0xff]  ;;  %v9333_v12 = vld [vmem:[#allocation9 + $0x18] sm:$0x3f] }
 0x59a   :  { %13327 = vmatmul.mubr.msk.f32.gmra.mrb[26].mxu0 %vm5544_vm9, %v20263_v28  ;;  %v20297_v28 = vld [vmem:[#allocation9 + $0x3a8] sm:$0xff] }
 0x59b   :  { %8174 = vmatprep.mubr.f32.mxu0 %v21934_v50  ;;  %v14926_v11 = vpack.c.bf16 %v8393_v29, %v20297_v28  ;;  %v9520_v29 = vld [vmem:[#allocation9 + $0x58] sm:$0x3f] }
 0x59e   :  { %13330 = vmatmul.mubr.msk.f32.vlgmr.msra.gmra.mrb[24].mxu0 %vm5544_vm9, %v8099_v60  ;;  %v8392_v60 = vld [vmem:[#allocation9 + $0x3b0] sm:$0x3f] }
 0x59f   :  { %8180 = vmatprep.mubr.f32.mxu0 %v21934_v50  ;;  %14919 = vmatpush1.bf16.msk.msra.mxu0 %vm19637_vm8, %v14917_v22  ;;  %v14929_v22 = vpack.c.bf16 %v8392_v60, %v20309_v53  ;;  %v21994_v60 = vrot.slane %v19497_v7, 2 }
 0x5a0   :  { %14922 = vmatprep.subr.msk.bf16.mxu0 %vm19637_vm8, %v14920_v38  ;;  %v9336_v38 = vld [vmem:[#allocation9 + $0x30] sm:$0x3f] }
 0x5a2   :  { %13331 = vmatmul.mubr.msk.f32.gmra.mrb[26].mxu0 %vm5544_vm9, %v8098_v59  ;;  %v9337_v59 = vld [vmem:[#allocation9 + $0x38] sm:$0x3f] }
 0x5a3   :  { %8273 = vmatprep.mubr.f32.mxu0 %v21934_v50 }
 0x5a6   :  { %13334 = vmatmul.mubr.msk.f32.vlgmr.msra.gmra.mrb[24].mxu0 %vm5544_vm9, %v8198_v54  ;;  %v15107_v54 = vpack.c.bf16 %v9337_v59, %v19628_v0  ;;  %v15113_v0 = vpack.c.bf16 %v9333_v12, %v19641_v20  ;;  %v15119_v20 = vpack.c.bf16 %v9520_v29, %v19651_v43  ;;  %v9617_v43 = vld [vmem:[#allocation9 + $0x70] sm:$0x3f]  ;;  %v9911_v59 = vld [vmem:[#allocation9 + $0xd8] sm:$0x3f] }
 0x5a7   :  { %8279 = vmatprep.mubr.f32.mxu0 %v21934_v50  ;;  %14925 = vmatpush1.bf16.msk.msra.mxu0 %vm19637_vm8, %v14923_v24  ;;  %v9716_v24 = vld [vmem:[#allocation9 + $0x98] sm:$0x3f] }
 0x5a8   :  { %14928 = vmatprep.subr.msk.bf16.mxu0 %vm19637_vm8, %v14926_v11  ;;  %v9814_v11 = vld [vmem:[#allocation9 + $0xb8] sm:$0x3f] }
 0x5a9   :  { %v5462_v12 = vld [vmem:[%s21544_s8 + $0x8] sm:$0xff] }
 0x5aa   :  { %13335 = vmatmul.mubr.msk.f32.gmra.mrb[26].mxu0 %vm5544_vm9, %v8197_v44  ;;  %v15110_v44 = vpack.c.bf16 %v9336_v38, %v19633_v37  ;;  %v21996_v38 = vrot.slane %v19497_v7, 4 }
 0x5ab   :  { %8372 = vmatprep.mubr.f32.mxu0 %v21934_v50 }
 0x5ae   :  { %13338 = vmatmul.mubr.msk.f32.vlgmr.msra.gmra.mrb[24].mxu0 %vm5544_vm9, %v8297_v56  ;;  %v9332_v56 = vld [vmem:[#allocation9 + $0x10] sm:$0x3f] }
 0x5af   :  { %8378 = vmatprep.mubr.f32.mxu0 %v21934_v50  ;;  %14931 = vmatpush1.bf16.msk.msra.mxu0 %vm19637_vm8, %v14929_v22  ;;  %v15116_v37 = vpack.c.bf16 %v9332_v56, %v19646_v34  ;;  %v21995_v22 = vrot.slane %v19497_v7, 3 }
 0x5b0   :  { %15109 = vmatprep.subr.msk.bf16.mxu0 %vm19637_vm8, %v15107_v54  ;;  %v10009_v54 = vld [vmem:[#allocation9 + $0xf8] sm:$0x3f] }
 0x5b2   :  { %13339 = vmatmul.mubr.msk.f32.gmra.mrb[26].mxu0 %vm5544_vm9, %v8296_v6  ;;  %v9618_v6 = vld [vmem:[#allocation9 + $0x78] sm:$0x3f] }
 0x5b3   :  { %8471 = vmatprep.mubr.f32.mxu0 %v21934_v50 }
 0x5b6   :  { %13342 = vmatmul.mubr.msk.f32.vlgmr.msra.gmra.mrb[24].mxu0 %vm5544_vm9, %v8396_v46  ;;  %v9519_v46 = vld [vmem:[#allocation9 + $0x50] sm:$0x3f] }
 0x5b7   :  { %8477 = vmatprep.mubr.f32.mxu0 %v21934_v50  ;;  %15112 = vmatpush1.bf16.msk.msra.mxu0 %vm19637_vm8, %v15110_v44  ;;  %v15122_v34 = vpack.c.bf16 %v9519_v46, %v19692_v1  ;;  %v15128_v1 = vpack.c.bf16 %v9617_v43, %v19714_v47  ;;  %v5463_v44 = vld [vmem:[%s21544_s8 + $0x10] sm:$0xff]  ;;  %v5466_v46 = vld [vmem:[%s21544_s8 + $0x28] sm:$0xff] }
 0x5b8   :  { %15115 = vmatprep.subr.msk.bf16.mxu0 %vm19637_vm8, %v15113_v0  ;;  %v5464_v0 = vld [vmem:[%s21544_s8 + $0x18] sm:$0xff] }
 0x5b9   :  { %v20427_v29 = vpack.c.bf16 %v5464_v0, %v5463_v44 }
 0x5ba   :  { %13343 = vmatmul.mubr.msk.f32.gmra.mrb[26].mxu0 %vm5544_vm9, %v8395_v25  ;;  %v21993_v25 = vrot.slane %v19497_v7, 1 }
 0x5bb   :  { %9417 = vmatprep.mubr.f32.mxu0 %v21934_v50 }
 0x5be   :  { %13400 = vmatmul.mubr.msk.f32.vlgmr.msra.gmra.mrb[28].mxu0 %vm5544_vm9, %v19576_v18  ;;  %v15125_v18 = vpack.c.bf16 %v9618_v6, %v19699_v2  ;;  %v15131_v2 = vpack.c.bf16 %v9716_v24, %v19716_v39  ;;  %v9813_v39 = vld [vmem:[#allocation9 + $0xb0] sm:$0x3f]  ;;  %v21997_v6 = vrot.slane %v19553_v30, 1 }
 0x5bf   :  { %9423 = vmatprep.mubr.f32.mxu0 %v21934_v50  ;;  %15118 = vmatpush1.bf16.msk.msra.mxu0 %vm19637_vm8, %v15116_v37 }
 0x5c0   :  { %15121 = vmatprep.subr.msk.bf16.mxu0 %vm19637_vm8, %v15119_v20  ;;  %v5465_v20 = vld [vmem:[%s21544_s8 + $0x20] sm:$0xff] }
 0x5c2   :  { %13401 = vmatmul.mubr.msk.f32.gmra.mrb[30].mxu0 %vm5544_vm9, %v21993_v25  ;;  %v5467_v25 = vld [vmem:[%s21544_s8 + $0x30] sm:$0xff] }
 0x5c3   :  { %9504 = vmatprep.mubr.f32.mxu0 %v21934_v50 }
 0x5c6   :  { %13404 = vmatmul.mubr.msk.f32.vlgmr.msra.gmra.mrb[28].mxu0 %vm5544_vm9, %v19499_v10  ;;  %v9715_v10 = vld [vmem:[#allocation9 + $0x90] sm:$0x3f] }
 0x5c7   :  { %9510 = vmatprep.mubr.f32.mxu0 %v21934_v50  ;;  %15124 = vmatpush1.bf16.msk.msra.mxu0 %vm19637_vm8, %v15122_v34  ;;  %v15134_v47 = vpack.c.bf16 %v9715_v10, %v19730_v21  ;;  %v15140_v21 = vpack.c.bf16 %v9813_v39, %v19747_v15  ;;  %v5468_v34 = vld [vmem:[%s21544_s8 + $0x38] sm:$0xff]  ;;  %v21998_v10 = vrot.slane %v19553_v30, 2 }
 0x5c8   :  { %15127 = vmatprep.subr.msk.bf16.mxu0 %vm19637_vm8, %v15125_v18  ;;  %v20460_v43 = vpack.c.bf16 %v5468_v34, %v5467_v25  ;;  %v22005_v25 = vld [vmem:[#allocation33_spill] sm:$0xff] }
 0x5c9   :  { %v10693_v34 = vld [vmem:[#allocation9 + $0x1d0] sm:$0x3f] }
 0x5ca   :  { %13405 = vmatmul.mubr.msk.f32.gmra.mrb[30].mxu0 %vm5544_vm9, %v19497_v7 }
 0x5cb   :  { %9598 = vmatprep.mubr.f32.mxu0 %v21934_v50 }
 0x5ce   :  { %13408 = vmatmul.mubr.msk.f32.vlgmr.msra.gmra.mrb[28].mxu0 %vm5544_vm9, %v19581_v16  ;;  %v15137_v16 = vpack.c.bf16 %v9814_v11, %v19732_v36  ;;  %v9910_v36 = vld [vmem:[#allocation9 + $0xd0] sm:$0x3f]  ;;  %v5471_v11 = vld [vmem:[%s21544_s8 + $0x50] sm:$0xff] }
 0x5cf   :  { %9604 = vmatprep.mubr.f32.mxu0 %v21934_v50  ;;  %15130 = vmatpush1.bf16.msk.msra.mxu0 %vm19637_vm8, %v15128_v1  ;;  %v15146_v15 = vpack.c.bf16 %v9910_v36, %v19762_v57  ;;  %v10008_v57 = vld [vmem:[#allocation9 + $0xf0] sm:$0x3f]  ;;  %v5476_v36 = vld [vmem:[%s21544_s8 + $0x78] sm:$0xff] }
 0x5d0   :  { %15133 = vmatprep.subr.msk.bf16.mxu0 %vm19637_vm8, %v15131_v2  ;;  %v15152_v56 = vpack.c.bf16 %v10008_v57, %v19818_v5  ;;  %v20443_v5 = vpack.c.bf16 %v5466_v46, %v5465_v20  ;;  %v5469_v1 = vld [vmem:[%s21544_s8 + $0x40] sm:$0xff]  ;;  %v5470_v2 = vld [vmem:[%s21544_s8 + $0x48] sm:$0xff]  ;;  %v5479_v57 = vld [vmem:[%s21544_s8 + $0x90] sm:$0xff] }
 0x5d1   :  { %v10595_v20 = vld [vmem:[#allocation9 + $0x1b0] sm:$0x3f]  ;;  %v10694_v46 = vld [vmem:[#allocation9 + $0x1d8] sm:$0x3f] }
 0x5d2   :  { %13409 = vmatmul.mubr.msk.f32.gmra.mrb[30].mxu0 %vm5544_vm9, %v21994_v60  ;;  %v5472_v60 = vld [vmem:[%s21544_s8 + $0x58] sm:$0xff] }
 0x5d3   :  { %9696 = vmatprep.mubr.f32.mxu0 %v21934_v50 }
 0x5d6   :  { %13412 = vmatmul.mubr.msk.f32.vlgmr.msra.gmra.mrb[28].mxu0 %vm5544_vm9, %v19586_v9  ;;  %v15143_v9 = vpack.c.bf16 %v9911_v59, %v19749_v35  ;;  %v5461_v35 = vld [vmem:[%s21544_s8] sm:$0xff] }
 0x5d7   :  { %9702 = vmatprep.mubr.f32.mxu0 %v21934_v50  ;;  %15136 = vmatpush1.bf16.msk.msra.mxu0 %vm19637_vm8, %v15134_v47  ;;  %v20410_v7 = vpack.c.bf16 %v5462_v12, %v5461_v35  ;;  %v5473_v59 = vld [vmem:[%s21544_s8 + $0x60] sm:$0xff]  ;;  %v5478_v35 = vld [vmem:[%s21544_s8 + $0x88] sm:$0xff]  ;;  %v22000_v12 = vrot.slane %v19553_v30, 4 }
 0x5d8   :  { %15139 = vmatprep.subr.msk.bf16.mxu0 %vm19637_vm8, %v15137_v16  ;;  %v20493_v16 = vpack.c.bf16 %v5472_v60, %v5471_v11  ;;  %v10791_v11 = vld [vmem:[#allocation9 + $0x1f0] sm:$0x3f]  ;;  %v10889_v60 = vld [vmem:[#allocation9 + $0x218] sm:$0x3f] }
 0x5da   :  { %13413 = vmatmul.mubr.msk.f32.gmra.mrb[30].mxu0 %vm5544_vm9, %v21995_v22  ;;  %v5474_v22 = vld [vmem:[%s21544_s8 + $0x68] sm:$0xff] }
 0x5db   :  { %9794 = vmatprep.mubr.f32.mxu0 %v21934_v50 }
 0x5de   :  { %13416 = vmatmul.mubr.msk.f32.vlgmr.msra.gmra.mrb[28].mxu0 %vm5544_vm9, %v19591_v26  ;;  %v15149_v26 = vpack.c.bf16 %v10009_v54, %v19768_v3  ;;  %v10107_v3 = vld [vmem:[#allocation9 + $0x118] sm:$0x3f] }
 0x5df   :  { %9800 = vmatprep.mubr.f32.mxu0 %v21934_v50  ;;  %15142 = vmatpush1.bf16.msk.msra.mxu0 %vm19637_vm8, %v15140_v21  ;;  %v15155_v37 = vpack.c.bf16 %v10107_v3, %v19826_v17  ;;  %v10205_v17 = vld [vmem:[#allocation9 + $0x138] sm:$0x3f]  ;;  %v21999_v21 = vrot.slane %v19553_v30, 3  ;;  %v5480_v3 = vld [vmem:[%s21544_s8 + $0x98] sm:$0xff] }
 0x5e0   :  { %15145 = vmatprep.subr.msk.bf16.mxu0 %vm19637_vm8, %v15143_v9  ;;  %v15161_v24 = vpack.c.bf16 %v10205_v17, %v19851_v23  ;;  %v10303_v23 = vld [vmem:[#allocation9 + $0x158] sm:$0x3f]  ;;  %v5475_v9 = vld [vmem:[%s21544_s8 + $0x70] sm:$0xff]  ;;  %v20559_v0 = vpack.c.bf16 %v5480_v3, %v5479_v57 }
 0x5e1   :  { %v15167_v39 = vpack.c.bf16 %v10303_v23, %v19899_v14  ;;  %v10400_v14 = vld [vmem:[#allocation9 + $0x178] sm:$0x3f] }
 0x5e2   :  { %13417 = vmatmul.mubr.msk.f32.gmra.mrb[30].mxu0 %vm5544_vm9, %v21996_v38  ;;  %v20526_v38 = vpack.c.bf16 %v5476_v36, %v5475_v9  ;;  %v22004_v17 = vld [vmem:[#allocation42_spill] sm:$0xff]  ;;  %v22014_v36 = vrot.slane %v19770_v32, 4 }
 0x5e3   :  { %9891 = vmatprep.mubr.f32.mxu0 %v21934_v50  ;;  %v10987_v9 = vld [vmem:[#allocation9 + $0x238] sm:$0x3f] }
 0x5e4   :  { %v22019_v57 = vld [vmem:[#allocation34_spill] sm:$0xff] }
 0x5e6   :  { %13420 = vmatmul.mubr.msk.f32.vlgmr.msra.gmra.mrb[28].mxu0 %vm5544_vm9, %v19555_v19  ;;  %v21747_v19 = vmov 0.0|0.0  }
 0x5e7   :  { %9897 = vmatprep.mubr.f32.mxu0 %v21934_v50  ;;  %15148 = vmatpush1.bf16.msk.msra.mxu0 %vm19637_vm8, %v15146_v15  ;;  %v15173_v15 = vpack.c.bf16 %v10400_v14, %v19916_v51  ;;  %v10498_v51 = vld [vmem:[#allocation9 + $0x198] sm:$0x3f] }
 0x5e8   :  { %15151 = vmatprep.subr.msk.bf16.mxu0 %vm19637_vm8, %v15149_v26  ;;  %14932 = vmatprep.subr.bf16.mxu1 %v21747_v19  ;;  %v5477_v26 = vld [vmem:[%s21544_s8 + $0x80] sm:$0xff]  ;;  %v22013_v14 = vld [vmem:[#allocation38_spill] sm:$0xff] }
 0x5e9   :  { %14934 = vmatpush1.bf16.msra.mxu1 %v20410_v7 }
 0x5ea   :  { %13421 = vmatmul.mubr.msk.f32.gmra.mrb[30].mxu0 %vm5544_vm9, %v19553_v30  ;;  %14935 = vmatprep.subr.bf16.mxu1 %v21747_v19  ;;  %v15179_v30 = vpack.c.bf16 %v10498_v51, %v19933_v31  ;;  %v11085_v51 = vld [vmem:[#allocation9 + $0x258] sm:$0x3f] }
 0x5eb   :  { %9989 = vmatprep.mubr.f32.mxu0 %v21934_v50 }
 0x5ed   :  { %14937 = vmatpush1.bf16.msra.mxu1 %v20427_v29 }
 0x5ee   :  { %13424 = vmatmul.mubr.msk.f32.vlgmr.msra.gmra.mrb[28].mxu0 %vm5544_vm9, %v19678_v61  ;;  %14938 = vmatprep.subr.bf16.mxu1 %v21747_v19  ;;  %v10106_v61 = vld [vmem:[#allocation9 + $0x110] sm:$0x3f] }
 0x5ef   :  { %9995 = vmatprep.mubr.f32.mxu0 %v21934_v50  ;;  %15154 = vmatpush1.bf16.msk.msra.mxu0 %vm19637_vm8, %v15152_v56  ;;  %v15158_v18 = vpack.c.bf16 %v10106_v61, %v19840_v48  ;;  %v20476_v48 = vpack.c.bf16 %v5470_v2, %v5469_v1  ;;  %v10596_v56 = vld [vmem:[#allocation9 + $0x1b8] sm:$0x3f]  ;;  %v22002_v61 = vrot.slane %v19770_v32, 1  ;;  %v22007_v1 = vld [vmem:[#allocation48_spill] sm:$0xff] }
 0x5f0   :  { %15157 = vmatprep.subr.msk.bf16.mxu0 %vm19637_vm8, %v15155_v37  ;;  %v22001_v37 = vld [vmem:[#allocation36_spill] sm:$0xff]  ;;  %v15194_v2 = vpack.c.bf16 %v10693_v34, %v22007_v1  ;;  %v11183_v1 = vld [vmem:[#allocation9 + $0x278] sm:$0x3f] }
 0x5f1   :  { %14940 = vmatpush1.bf16.msra.mxu1 %v20443_v5 }
 0x5f2   :  { %13425 = vmatmul.mubr.msk.f32.gmra.mrb[30].mxu0 %vm5544_vm9, %v21997_v6  ;;  %14941 = vmatprep.subr.bf16.mxu1 %v21747_v19  ;;  %v15191_v6 = vpack.c.bf16 %v10694_v46, %v22004_v17  ;;  %v22021_v17 = vld [vmem:[#allocation50_spill] sm:$0xff] }
 0x5f3   :  { %10087 = vmatprep.mubr.f32.mxu0 %v21934_v50 }
 0x5f5   :  { %14943 = vmatpush1.bf16.msra.mxu1 %v20460_v43 }
 0x5f6   :  { %13428 = vmatmul.mubr.msk.f32.vlgmr.msra.gmra.mrb[28].mxu0 %vm5544_vm9, %v19683_v4  ;;  %14944 = vmatprep.subr.bf16.mxu1 %v21747_v19  ;;  %v10204_v4 = vld [vmem:[#allocation9 + $0x130] sm:$0x3f] }
 0x5f7   :  { %10093 = vmatprep.mubr.f32.mxu0 %v21934_v50  ;;  %15160 = vmatpush1.bf16.msk.msra.mxu0 %vm19637_vm8, %v15158_v18  ;;  %v15164_v47 = vpack.c.bf16 %v10204_v4, %v19897_v52  ;;  %v20509_v52 = vpack.c.bf16 %v5474_v22, %v5473_v59  ;;  %v10792_v18 = vld [vmem:[#allocation9 + $0x1f8] sm:$0x3f]  ;;  %v22012_v22 = vld [vmem:[#allocation43_spill] sm:$0xff] }
 0x5f8   :  { %15163 = vmatprep.subr.msk.bf16.mxu0 %vm19637_vm8, %v15161_v24  ;;  %v22006_v24 = vrot.slane %v19770_v32, 2  ;;  %v22008_v4 = vld [vmem:[#allocation49_spill] sm:$0xff] }
 0x5f9   :  { %14946 = vmatpush1.bf16.msra.mxu1 %v20476_v48  ;;  %v15197_v23 = vpack.c.bf16 %v10792_v18, %v22008_v4  ;;  %v11084_v18 = vld [vmem:[#allocation9 + $0x250] sm:$0x3f]  ;;  %v22023_v4 = vld [vmem:[#allocation47_spill] sm:$0xff] }
 0x5fa   :  { %13429 = vmatmul.mubr.msk.f32.gmra.mrb[30].mxu0 %vm5544_vm9, %v21998_v10  ;;  %14947 = vmatprep.subr.bf16.mxu1 %v21747_v19  ;;  %v22009_v10 = vld [vmem:[#allocation32_spill] sm:$0xff] }
 0x5fb   :  { %10185 = vmatprep.mubr.f32.mxu0 %v21934_v50 }
 0x5fd   :  { %14949 = vmatpush1.bf16.msra.mxu1 %v20493_v16 }
 0x5fe   :  { %13432 = vmatmul.mubr.msk.f32.vlgmr.msra.gmra.mrb[28].mxu0 %vm5544_vm9, %v19688_v63  ;;  %14950 = vmatprep.subr.bf16.mxu1 %v21747_v19  ;;  %v10302_v63 = vld [vmem:[#allocation9 + $0x150] sm:$0x3f] }
 0x5ff   :  { %10191 = vmatprep.mubr.f32.mxu0 %v21934_v50  ;;  %15166 = vmatpush1.bf16.msk.msra.mxu0 %vm19637_vm8, %v15164_v47  ;;  %v15170_v54 = vpack.c.bf16 %v10302_v63, %v19914_v58  ;;  %v20542_v58 = vpack.c.bf16 %v5478_v35, %v5477_v26  ;;  %v22010_v47 = vrot.slane %v19770_v32, 3  ;;  %v15203_v63 = vpack.c.bf16 %v10889_v60, %v22012_v22  ;;  %v22016_v26 = vld [vmem:[#allocation35_spill] sm:$0xff] }
 0x600   :  { %15169 = vmatprep.subr.msk.bf16.mxu0 %vm19637_vm8, %v15167_v39  ;;  %v22011_v39 = vld [vmem:[#allocation30_spill] sm:$0xff]  ;;  %v15209_v35 = vpack.c.bf16 %v10987_v9, %v22016_v26  ;;  %v22025_v60 = vld [vmem:[#allocation51_spill] sm:$0xff]  ;;  %v22029_v9 = vld [vmem:[#allocation52_spill] sm:$0xff] }
 0x601   :  { %14952 = vmatpush1.bf16.msra.mxu1 %v20509_v52  ;;  %v15200_v59 = vpack.c.bf16 %v10791_v11, %v22011_v39  ;;  %v11281_v39 = vld [vmem:[#allocation9 + $0x298] sm:$0x3f]  ;;  %v22027_v22 = vld [vmem:[#allocation39_spill] sm:$0xff] }
 0x602   :  { %13433 = vmatmul.mubr.msk.f32.gmra.mrb[30].mxu0 %vm5544_vm9, %v21999_v21  ;;  %14953 = vmatprep.subr.bf16.mxu1 %v21747_v19  ;;  %v10888_v21 = vld [vmem:[#allocation9 + $0x210] sm:$0x3f] }
 0x603   :  { %10283 = vmatprep.mubr.f32.mxu0 %v21934_v50  ;;  %v22031_v26 = vld [vmem:[#allocation29_spill] sm:$0xff] }
 0x605   :  { %14955 = vmatpush1.bf16.msra.mxu1 %v20526_v38 }
 0x606   :  { %13436 = vmatmul.mubr.msk.f32.vlgmr.msra.gmra.mrb[28].mxu0 %vm5544_vm9, %v19697_v33  ;;  %14956 = vmatprep.subr.bf16.mxu1 %v21747_v19  ;;  %v10399_v33 = vld [vmem:[#allocation9 + $0x170] sm:$0x3f] }
 0x607   :  { %10289 = vmatprep.mubr.f32.mxu0 %v21934_v50  ;;  %15172 = vmatpush1.bf16.msk.msra.mxu0 %vm19637_vm8, %v15170_v54  ;;  %v15176_v44 = vpack.c.bf16 %v10399_v33, %v19931_v13  ;;  %v10497_v13 = vld [vmem:[#allocation9 + $0x190] sm:$0x3f]  ;;  %v22017_v33 = vld [vmem:[#allocation46_spill] sm:$0xff] }
 0x608   :  { %15175 = vmatprep.subr.msk.bf16.mxu0 %vm19637_vm8, %v15173_v15  ;;  %v15182_v31 = vpack.c.bf16 %v10497_v13, %v19948_v62  ;;  %v22003_v62 = vld [vmem:[#allocation41_spill] sm:$0xff]  ;;  %v22015_v54 = vld [vmem:[#allocation44_spill] sm:$0xff] }
 0x609   :  { %14958 = vmatpush1.bf16.msra.mxu1 %v20542_v58  ;;  %v15206_v15 = vpack.c.bf16 %v10888_v21, %v22015_v54  ;;  %v11378_v54 = vld [vmem:[#allocation9 + $0x2b8] sm:$0x3f] }
 0x60a   :  { %13437 = vmatmul.mubr.msk.f32.gmra.mrb[30].mxu0 %vm5544_vm9, %v22000_v12  ;;  %14959 = vmatprep.subr.bf16.mxu1 %v21747_v19  ;;  %v22018_v12 = vld [vmem:[#allocation37_spill] sm:$0xff] }
 0x60b   :  { %10380 = vmatprep.mubr.f32.mxu0 %v21934_v50 }
 0x60d   :  { %14961 = vmatpush1.bf16.msra.mxu1 %v20559_v0 }
 0x60e   :  { %13440 = vmatmul.mubr.msk.f32.vlgmr.msra.gmra.mrb[28].mxu0 %vm5544_vm9, %v19779_v42  ;;  %14962 = vmatprep.subr.bf16.mxu1 %v21747_v19  ;;  %v15185_v42 = vpack.c.bf16 %v10596_v56, %v19950_v45  ;;  %v15188_v45 = vpack.c.bf16 %v10595_v20, %v22003_v62 }
 0x60f   :  { %10386 = vmatprep.mubr.f32.mxu0 %v21934_v50  ;;  %15178 = vmatpush1.bf16.msk.msra.mxu0 %vm19637_vm8, %v15176_v44  ;;  %v22020_v44 = vld [vmem:[#allocation31_spill] sm:$0xff] }
 0x610   :  { %15181 = vmatprep.subr.msk.bf16.mxu0 %vm19637_vm8, %v15179_v30  ;;  %v15215_v30 = vpack.c.bf16 %v11085_v51, %v22020_v44  ;;  %v22033_v51 = vld [vmem:[#allocation53_spill] sm:$0xff]  ;;  %v22034_v44 = vrot.slane %v22018_v12, 4 }
 0x612   :  { %13441 = vmatmul.mubr.msk.f32.gmra.mrb[30].mxu0 %vm5544_vm9, %v19770_v32  ;;  %v10986_v32 = vld [vmem:[#allocation9 + $0x230] sm:$0x3f] }
 0x613   :  { %10478 = vmatprep.mubr.f32.mxu0 %v21934_v50  ;;  %v15212_v3 = vpack.c.bf16 %v10986_v32, %v22019_v57  ;;  %v11377_v57 = vld [vmem:[#allocation9 + $0x2b0] sm:$0x3f] }
 0x616   :  { %13444 = vmatmul.mubr.msk.f32.vlgmr.msra.gmra.mrb[28].mxu0 %vm5544_vm9, %v22001_v37 }
 0x617   :  { %10484 = vmatprep.mubr.f32.mxu0 %v21934_v50  ;;  %15184 = vmatpush1.bf16.msk.msra.mxu0 %vm19637_vm8, %v15182_v31 }
 0x618   :  { %15187 = vmatprep.subr.msk.bf16.mxu0 %vm19637_vm8, %v15185_v42 }
 0x61a   :  { %13445 = vmatmul.mubr.msk.f32.gmra.mrb[30].mxu0 %vm5544_vm9, %v22002_v61 }
 0x61b   :  { %10576 = vmatprep.mubr.f32.mxu0 %v21934_v50 }
 0x61e   :  { %13448 = vmatmul.mubr.msk.f32.vlgmr.msra.gmra.mrb[28].mxu0 %vm5544_vm9, %v22005_v25 }
 0x61f   :  { %10582 = vmatprep.mubr.f32.mxu0 %v21934_v50  ;;  %15190 = vmatpush1.bf16.msk.msra.mxu0 %vm19637_vm8, %v15188_v45 }
 0x620   :  { %15193 = vmatprep.subr.msk.bf16.mxu0 %vm19637_vm8, %v15191_v6 }
 0x622   :  { %13449 = vmatmul.mubr.msk.f32.gmra.mrb[30].mxu0 %vm5544_vm9, %v22006_v24 }
 0x623   :  { %10674 = vmatprep.mubr.f32.mxu0 %v21934_v50 }
 0x626   :  { %13452 = vmatmul.mubr.msk.f32.vlgmr.msra.gmra.mrb[28].mxu0 %vm5544_vm9, %v22009_v10  ;;  %v22024_v10 = vld [vmem:[#allocation40_spill] sm:$0xff] }
 0x627   :  { %10680 = vmatprep.mubr.f32.mxu0 %v21934_v50  ;;  %15196 = vmatpush1.bf16.msk.msra.mxu0 %vm19637_vm8, %v15194_v2  ;;  %v22022_v2 = vrot.slane %v22018_v12, 1  ;;  %v15221_v11 = vpack.c.bf16 %v11183_v1, %v22024_v10  ;;  %v22039_v1 = vld [vmem:[#allocation66_spill] sm:$0xff]  ;;  %v22041_v10 = vld [vmem:[#allocation57_spill] sm:$0xff] }
 0x628   :  { %15199 = vmatprep.subr.msk.bf16.mxu0 %vm19637_vm8, %v15197_v23  ;;  %v15218_v23 = vpack.c.bf16 %v11084_v18, %v22023_v4  ;;  %v11672_v4 = vld [vmem:[#allocation9 + $0x318] sm:$0x3f] }
 0x62a   :  { %13453 = vmatmul.mubr.msk.f32.gmra.mrb[30].mxu0 %vm5544_vm9, %v22010_v47  ;;  %v11182_v47 = vld [vmem:[#allocation9 + $0x270] sm:$0x3f] }
 0x62b   :  { %10772 = vmatprep.mubr.f32.mxu0 %v21934_v50 }
 0x62e   :  { %13456 = vmatmul.mubr.msk.f32.vlgmr.msra.gmra.mrb[28].mxu0 %vm5544_vm9, %v22013_v14  ;;  %v22028_v14 = vld [vmem:[#allocation45_spill] sm:$0xff] }
 0x62f   :  { %10778 = vmatprep.mubr.f32.mxu0 %v21934_v50  ;;  %15202 = vmatpush1.bf16.msk.msra.mxu0 %vm19637_vm8, %v15200_v59  ;;  %v22026_v59 = vrot.slane %v22018_v12, 2  ;;  %v15227_v21 = vpack.c.bf16 %v11281_v39, %v22028_v14  ;;  %v22043_v39 = vld [vmem:[#allocation67_spill] sm:$0xff] }
 0x630   :  { %15205 = vmatprep.subr.msk.bf16.mxu0 %vm19637_vm8, %v15203_v63  ;;  %v15224_v63 = vpack.c.bf16 %v11182_v47, %v22027_v22  ;;  %v11770_v22 = vld [vmem:[#allocation9 + $0x338] sm:$0x3f]  ;;  %v22045_v14 = vld [vmem:[#allocation59_spill] sm:$0xff] }
 0x632   :  { %13457 = vmatmul.mubr.msk.f32.gmra.mrb[30].mxu0 %vm5544_vm9, %v22014_v36  ;;  %v11280_v36 = vld [vmem:[#allocation9 + $0x290] sm:$0x3f] }
 0x633   :  { %10869 = vmatprep.mubr.f32.mxu0 %v21934_v50 }
 0x636   :  { %13460 = vmatmul.mubr.msk.f32.vlgmr.msra.gmra.mrb[28].mxu0 %vm5544_vm9, %v22017_v33  ;;  %v22032_v33 = vld [vmem:[#allocation54_spill] sm:$0xff] }
 0x637   :  { %10875 = vmatprep.mubr.f32.mxu0 %v21934_v50  ;;  %15208 = vmatpush1.bf16.msk.msra.mxu0 %vm19637_vm8, %v15206_v15  ;;  %v22030_v15 = vrot.slane %v22018_v12, 3  ;;  %v15233_v32 = vpack.c.bf16 %v11378_v54, %v22032_v33  ;;  %v22047_v54 = vld [vmem:[#allocation68_spill] sm:$0xff]  ;;  %v8489_v33 = vlaneseq }
 0x638   :  { %15211 = vmatprep.subr.msk.bf16.mxu0 %vm19637_vm8, %v15209_v35  ;;  %v15230_v35 = vpack.c.bf16 %v11280_v36, %v22031_v26  ;;  %v11867_v26 = vld [vmem:[#allocation9 + $0x358] sm:$0x3f] }
 0x63a   :  { %13461 = vmatmul.mubr.msk.f32.gmra.mrb[30].mxu0 %vm5544_vm9, %v22018_v12  ;;  %v11475_v12 = vld [vmem:[#allocation9 + $0x2d0] sm:$0x3f] }
 0x63b   :  { %10967 = vmatprep.mubr.f32.mxu0 %v21934_v50  ;;  %v20640_v13 = vpop.f32.mrb[22].mxu1 }
 0x63c   :  { %v11869_v56 = vrot.slane %v20640_v13, 1  ;;  %v11967_v31 = vrot.slane %v20640_v13, 2  ;;  %v12065_v42 = vrot.slane %v20640_v13, 3  ;;  %v12163_v37 = vrot.slane %v20640_v13, 4  ;;  %v20646_v20 = vpop.f32.mrb[23].mxu1 }
 0x63d   :  { %v11868_v46 = vrot.slane %v20646_v20, 1  ;;  %v11966_v61 = vrot.slane %v20646_v20, 2  ;;  %v12064_v62 = vrot.slane %v20646_v20, 3  ;;  %v12162_v45 = vrot.slane %v20646_v20, 4 }
 0x63e   :  { %13464 = vmatmul.mubr.msk.f32.vlgmr.msra.gmra.mrb[28].mxu0 %vm5544_vm9, %v22021_v17  ;;  %v22038_v17 = vld [vmem:[#allocation56_spill] sm:$0xff] }
 0x63f   :  { %10973 = vmatprep.mubr.f32.mxu0 %v21934_v50  ;;  %15214 = vmatpush1.bf16.msk.msra.mxu0 %vm19637_vm8, %v15212_v3  ;;  %v20660_v6 = vsel %vm318_vm0, %v11868_v46, %v11869_v56  ;;  %v20665_v25 = vsel %vm495_vm1, %v11966_v61, %v11967_v31  ;;  %v20670_v34 = vsel %vm5823_vm6, %v12064_v62, %v12065_v42  ;;  %v11476_v3 = vld [vmem:[#allocation9 + $0x2d8] sm:$0x3f]  ;;  %v22035_v61 = vld [vmem:[#allocation64_spill] sm:$0xff]  ;;  %vm9177_vm1 = vcmask 982016  }
 0x640   :  { %15217 = vmatprep.subr.msk.bf16.mxu0 %vm19637_vm8, %v15215_v30  ;;  %v20677_v24 = vsel %vm5923_vm7, %v12162_v45, %v12163_v37  ;;  %v15236_v30 = vpack.c.bf16 %v11377_v57, %v20137_v40  ;;  %v15239_v46 = vpack.c.bf16 %v11476_v3, %v20140_v8  ;;  %v11574_v62 = vld [vmem:[#allocation9 + $0x2f8] sm:$0x3f]  ;;  %v22036_v45 = vld [vmem:[#allocation63_spill] sm:$0xff] }
 0x641   :  { %v22037_v40 = vld [vmem:[#allocation55_spill] sm:$0xff]  ;;  %v15245_v18 = vpack.c.bf16 %v11574_v62, %v22038_v17  ;;  %v22050_v57 = vld [vmem:[#allocation62_spill] sm:$0xff]  ;;  %v22053_v17 = vld [vmem:[#allocation65_spill] sm:$0xff] }
 0x642   :  { %13465 = vmatmul.mubr.msk.f32.gmra.mrb[30].mxu0 %vm5544_vm9, %v22022_v2  ;;  %v15242_v8 = vpack.c.bf16 %v11475_v12, %v22037_v40  ;;  %v11573_v2 = vld [vmem:[#allocation9 + $0x2f0] sm:$0x3f]  ;;  %v15263_v3 = vpack.c.bf16 %v11867_v26, %v22050_v57  ;;  %v22052_v12 = vrot.slane %v22036_v45, 4  ;;  %v5459_v40 = vld [vmem:[#allocation11] sm:$0x3] }
 0x643   :  { %11065 = vmatprep.mubr.f32.mxu0 %v21934_v50  ;;  %v5483_v26 = vld [vmem:[#allocation14 + $0x10] sm:$0xff]  ;;  %v5485_v57 = vld [vmem:[#allocation14 + $0x20] sm:$0xff] }
 0x646   :  { %13468 = vmatmul.mubr.msk.f32.vlgmr.msra.gmra.mrb[28].mxu0 %vm5544_vm9, %v22025_v60  ;;  %v22042_v60 = vld [vmem:[#allocation58_spill] sm:$0xff] }
 0x647   :  { %11071 = vmatprep.mubr.f32.mxu0 %v21934_v50  ;;  %15220 = vmatpush1.bf16.msk.msra.mxu0 %vm19637_vm8, %v15218_v23  ;;  %v22040_v23 = vrot.slane %v22036_v45, 1  ;;  %v15251_v47 = vpack.c.bf16 %v11672_v4, %v22042_v60 }
 0x648   :  { %15223 = vmatprep.subr.msk.bf16.mxu0 %vm19637_vm8, %v15221_v11  ;;  %v15248_v11 = vpack.c.bf16 %v11573_v2, %v22041_v10  ;;  %v11964_v10 = vld [vmem:[#allocation9 + $0x370] sm:$0x3f] }
 0x64a   :  { %13469 = vmatmul.mubr.msk.f32.gmra.mrb[30].mxu0 %vm5544_vm9, %v22026_v59  ;;  %v11671_v59 = vld [vmem:[#allocation9 + $0x310] sm:$0x3f] }
 0x64b   :  { %11163 = vmatprep.mubr.f32.mxu0 %v21934_v50 }
 0x64e   :  { %13472 = vmatmul.mubr.msk.f32.vlgmr.msra.gmra.mrb[28].mxu0 %vm5544_vm9, %v22029_v9  ;;  %v22046_v9 = vld [vmem:[#allocation60_spill] sm:$0xff] }
 0x64f   :  { %11169 = vmatprep.mubr.f32.mxu0 %v21934_v50  ;;  %15226 = vmatpush1.bf16.msk.msra.mxu0 %vm19637_vm8, %v15224_v63  ;;  %v22044_v63 = vrot.slane %v22036_v45, 2  ;;  %v15257_v36 = vpack.c.bf16 %v11770_v22, %v22046_v9  ;;  %v15272_v22 = vpack.c.bf16 %v11964_v10, %v20277_v27  ;;  %v12062_v27 = vld [vmem:[#allocation9 + $0x390] sm:$0x3f]  ;;  %v5499_v10 = vld [vmem:[#allocation14 + $0x90] sm:$0xff] }
 0x650   :  { %15229 = vmatprep.subr.msk.bf16.mxu0 %vm19637_vm8, %v15227_v21  ;;  %v15254_v21 = vpack.c.bf16 %v11671_v59, %v22045_v14 }
 0x652   :  { %13473 = vmatmul.mubr.msk.f32.gmra.mrb[30].mxu0 %vm5544_vm9, %v22030_v15  ;;  %v11769_v15 = vld [vmem:[#allocation9 + $0x330] sm:$0x3f] }
 0x653   :  { %11261 = vmatprep.mubr.f32.mxu0 %v21934_v50 }
 0x656   :  { %13476 = vmatmul.mubr.msk.f32.vlgmr.msra.gmra.mrb[28].mxu0 %vm5544_vm9, %v22033_v51 }
 0x657   :  { %11267 = vmatprep.mubr.f32.mxu0 %v21934_v50  ;;  %15232 = vmatpush1.bf16.msk.msra.mxu0 %vm19637_vm8, %v15230_v35  ;;  %v22048_v35 = vrot.slane %v22036_v45, 3 }
 0x658   :  { %15235 = vmatprep.subr.msk.bf16.mxu0 %vm19637_vm8, %v15233_v32  ;;  %v22049_v32 = vld [vmem:[#allocation61_spill] sm:$0xff] }
 0x659   :  { %v15260_v51 = vpack.c.bf16 %v11769_v15, %v22049_v32  ;;  %v12161_v32 = vld [vmem:[#allocation9 + $0x3b8] sm:$0x3f] }
 0x65a   :  { %13477 = vmatmul.mubr.msk.f32.gmra.mrb[30].mxu0 %vm5544_vm9, %v22034_v44  ;;  %v22051_v44 = vld [vmem:[#allocation69_spill] sm:$0xff] }
 0x65b   :  { %11358 = vmatprep.mubr.f32.mxu0 %v21934_v50 }
 0x65e   :  { %13480 = vmatmul.mubr.msk.f32.vlgmr.msra.gmra.mrb[28].mxu0 %vm5544_vm9, %v22035_v61  ;;  %v11965_v61 = vld [vmem:[#allocation9 + $0x378] sm:$0x3f] }
 0x65f   :  { %11364 = vmatprep.mubr.f32.mxu0 %v21934_v50  ;;  %15238 = vmatpush1.bf16.msk.msra.mxu0 %vm19637_vm8, %v15236_v30  ;;  %v8490_v30 = vshrl.u32 %v8489_v33, 7 }
 0x660   :  { %15241 = vmatprep.subr.msk.bf16.mxu0 %vm19637_vm8, %v15239_v46  ;;  %v11866_v46 = vld [vmem:[#allocation9 + $0x350] sm:$0x3f] }
 0x661   :  { %v8491_v62 = vsub.s32 0, %v8490_v30 }
 0x662   :  { %13481 = vmatmul.mubr.msk.f32.gmra.mrb[30].mxu0 %vm5544_vm9, %v22036_v45 }
 0x663   :  { %11456 = vmatprep.mubr.f32.mxu0 %v21934_v50  ;;  %v20790_v4 = vrot.slane %v5459_v40, %v8491_v62 }
 0x666   :  { %13484 = vmatmul.mubr.msk.f32.vlgmr.msra.gmra.mrb[28].mxu0 %vm5544_vm9, %v22039_v1  ;;  %v22054_v1 = vld [vmem:[#allocation70_spill] sm:$0xff] }
 0x667   :  { %11462 = vmatprep.mubr.f32.mxu0 %v21934_v50  ;;  %15244 = vmatpush1.bf16.msk.msra.mxu0 %vm19637_vm8, %v15242_v8  ;;  %v8495_v8 = vsub.s32 1, %v8490_v30  ;;  %v15269_v2 = vpack.c.bf16 %v11965_v61, %v22054_v1  ;;  %v15281_v30 = vpack.c.bf16 %v12161_v32, %v20297_v28  ;;  %v5488_v61 = vld [vmem:[#allocation14 + $0x38] sm:$0xff] }
 0x668   :  { %15247 = vmatprep.subr.msk.bf16.mxu0 %vm19637_vm8, %v15245_v18  ;;  %v15266_v18 = vpack.c.bf16 %v11866_v46, %v22053_v17  ;;  %v5487_v46 = vld [vmem:[#allocation14 + $0x30] sm:$0xff]  ;;  %v5492_v17 = vld [vmem:[#allocation14 + $0x58] sm:$0xff] }
 0x669   :  { %v20857_v28 = vpack.c.bf16 %v5488_v61, %v5487_v46  ;;  %v5496_v1 = vld [vmem:[#allocation14 + $0x78] sm:$0xff]  ;;  %v13352_v61 = vld [vmem:[%s21546_s10 + $0x60] sm:$0xff] }
 0x66a   :  { %13485 = vmatmul.mubr.msk.f32.gmra.mrb[30].mxu0 %vm5544_vm9, %v22040_v23  ;;  %v20793_v23 = vrot.slane %v5459_v40, %v8495_v8  ;;  %v5491_v8 = vld [vmem:[#allocation14 + $0x50] sm:$0xff] }
 0x66b   :  { %11554 = vmatprep.mubr.f32.mxu0 %v21934_v50 }
 0x66e   :  { %13488 = vmatmul.mubr.msk.f32.vlgmr.msra.gmra.mrb[28].mxu0 %vm5544_vm9, %v22043_v39  ;;  %v12063_v39 = vld [vmem:[#allocation9 + $0x398] sm:$0x3f] }
 0x66f   :  { %11560 = vmatprep.mubr.f32.mxu0 %v21934_v50  ;;  %15250 = vmatpush1.bf16.msk.msra.mxu0 %vm19637_vm8, %v15248_v11  ;;  %v15275_v9 = vpack.c.bf16 %v12063_v39, %v20282_v49 }
 0x670   :  { %15253 = vmatprep.subr.msk.bf16.mxu0 %vm19637_vm8, %v15251_v47  ;;  %v5482_v47 = vld [vmem:[#allocation14 + $0x8] sm:$0xff] }
 0x672   :  { %13489 = vmatmul.mubr.msk.f32.gmra.mrb[30].mxu0 %vm5544_vm9, %v22044_v63 }
 0x673   :  { %11652 = vmatprep.mubr.f32.mxu0 %v21934_v50 }
 0x676   :  { %13492 = vmatmul.mubr.msk.f32.vlgmr.msra.gmra.mrb[28].mxu0 %vm5544_vm9, %v22047_v54 }
 0x677   :  { %11658 = vmatprep.mubr.f32.mxu0 %v21934_v50  ;;  %15256 = vmatpush1.bf16.msk.msra.mxu0 %vm19637_vm8, %v15254_v21 }
 0x678   :  { %15259 = vmatprep.subr.msk.bf16.mxu0 %vm19637_vm8, %v15257_v36 }
 0x67a   :  { %13493 = vmatmul.mubr.msk.f32.gmra.mrb[30].mxu0 %vm5544_vm9, %v22048_v35  ;;  %v5484_v35 = vld [vmem:[#allocation14 + $0x18] sm:$0xff] }
 0x67b   :  { %11750 = vmatprep.mubr.f32.mxu0 %v21934_v50 }
 0x67e   :  { %13496 = vmatmul.mubr.msk.f32.vlgmr.msra.gmra.mrb[28].mxu0 %vm5544_vm9, %v22051_v44  ;;  %v15278_v44 = vpack.c.bf16 %v12062_v27, %v20295_v55  ;;  %v12160_v55 = vld [vmem:[#allocation9 + $0x3b0] sm:$0x3f] }
 0x67f   :  { %11756 = vmatprep.mubr.f32.mxu0 %v21934_v50  ;;  %15262 = vmatpush1.bf16.msk.msra.mxu0 %vm19637_vm8, %v15260_v51  ;;  %v15284_v62 = vpack.c.bf16 %v12160_v55, %v20309_v53  ;;  %v5493_v53 = vld [vmem:[#allocation14 + $0x60] sm:$0xff]  ;;  %v13353_v55 = vld [vmem:[%s21546_s10 + $0x68] sm:$0xff] }
 0x680   :  { %15265 = vmatprep.subr.msk.bf16.mxu0 %vm19637_vm8, %v15263_v3  ;;  %v5486_v3 = vld [vmem:[#allocation14 + $0x28] sm:$0xff] }
 0x682   :  { %13497 = vmatmul.mubr.msk.f32.gmra.mrb[30].mxu0 %vm5544_vm9, %v22052_v12  ;;  %v5490_v12 = vld [vmem:[#allocation14 + $0x48] sm:$0xff] }
 0x683   :  { %11847 = vmatprep.mubr.f32.mxu0 %v21934_v50 }
 0x686   :  { %13500 = vmatmul.mubr.msk.f32.vlgmr.msra.gmra.mrb[28].mxu0 %vm5544_vm9, %v20646_v20  ;;  %v5481_v20 = vld [vmem:[#allocation14] sm:$0xff] }
 0x687   :  { %11853 = vmatprep.mubr.f32.mxu0 %v21934_v50  ;;  %15268 = vmatpush1.bf16.msk.msra.mxu0 %vm19637_vm8, %v15266_v18  ;;  %v20807_v21 = vpack.c.bf16 %v5482_v47, %v5481_v20 }
 0x688   :  { %15271 = vmatprep.subr.msk.bf16.mxu0 %vm19637_vm8, %v15269_v2  ;;  %v5497_v2 = vld [vmem:[#allocation14 + $0x80] sm:$0xff] }
 0x689   :  { %v8473_v45 = vpop.f32.mrb[24].mxu0 }
 0x68a   :  { %v20800_v11 = vadd.f32 %v20790_v4, %v8473_v45  ;;  %v8475_v60 = vpop.f32.mrb[25].mxu0  ;;  %13501 = vmatmul.mubr.msk.f32.gmra.mrb[30].mxu0 %vm5544_vm9, %v20640_v13  ;;  %v5498_v45 = vld [vmem:[#allocation14 + $0x88] sm:$0xff] }
 0x68b   :  { %v8500_v59 = vadd.f32 %v20793_v23, %v8475_v60  ;;  %11945 = vmatprep.mubr.f32.mxu0 %v21934_v50  ;;  %v5500_v60 = vld [vmem:[#allocation14 + $0x98] sm:$0xff] }
 0x68c   :  { %v8503_v36 = vmax.f32 %v20800_v11, 0.0  ;;  %v20901_v20 = vpack.c.bf16 %v5500_v60, %v5499_v10  ;;  %v8754_v10 = vld [vmem:[%s21546_s10 + $0x8] sm:$0xff] }
 0x68d   :  { %v8504_v63 = vmax.f32 %v8500_v59, 0.0  ;;  %v8479_v14 = vpop.f32.mrb[26].mxu0 }
 0x68e   :  { %v20812_v54 = vadd.f32 %v20790_v4, %v8479_v14  ;;  %v8481_v15 = vpop.f32.mrb[27].mxu0  ;;  %13504 = vmatmul.mubr.msk.f32.vlgmr.msra.gmra.mrb[28].mxu0 %vm5544_vm9, %v20660_v6  ;;  %v20827_v6 = vpack.c.bf16 %v5484_v35, %v5483_v26 }
 0x68f   :  { %v20817_v33 = vadd.f32 %v20793_v23, %v8481_v15  ;;  %13344 = vmatprep.mubr.msk.f32.mxu1 %vm8507_vm10, %v8504_v63  ;;  %11951 = vmatprep.mubr.f32.mxu0 %v21934_v50 }
 0x690   :  { %8579 = vmatmul.mubr.f32.vlgmr.msra.gmra.mrb[24].mxu1 %v8503_v36  ;;  %15274 = vmatpush1.bf16.msk.msra.mxu0 %vm19637_vm8, %v15272_v22  ;;  %v8505_v51 = vmax.f32 %v20812_v54, 0.0 }
 0x691   :  { %v8506_v49 = vmax.f32 %v20817_v33, 0.0  ;;  %14964 = vmatpush1.bf16.msra.mxu1 %v20807_v21  ;;  %15277 = vmatprep.subr.msk.bf16.mxu0 %vm19637_vm8, %v15275_v9 }
 0x692   :  { %13505 = vmatmul.mubr.msk.f32.gmra.mrb[30].mxu0 %vm5544_vm9, %v11869_v56  ;;  %14965 = vmatprep.subr.bf16.mxu1 %v21747_v19  ;;  %v20846_v56 = vpack.c.bf16 %v5486_v3, %v5485_v57  ;;  %v13350_v57 = vld [vmem:[%s21546_s10 + $0x50] sm:$0xff]  ;;  %v13351_v3 = vld [vmem:[%s21546_s10 + $0x58] sm:$0xff] }
 0x693   :  { %13345 = vmatprep.mubr.msk.f32.mxu1 %vm8507_vm10, %v8506_v49  ;;  %12043 = vmatprep.mubr.f32.mxu0 %v21934_v50  ;;  %v20939_v46 = vpack.c.bf16 %v13351_v3, %v13350_v57  ;;  %v13362_v57 = vld [vmem:[%s21546_s10 + $0xa0] sm:$0xff]  ;;  %v13363_v3 = vld [vmem:[%s21546_s10 + $0xa8] sm:$0xff] }
 0x694   :  { %8584 = vmatmul.mubr.f32.gmra.mrb[26].mxu1 %v8505_v51 }
 0x695   :  { %14967 = vmatpush1.bf16.msra.mxu1 %v20827_v6  ;;  %13346 = vmatprep.mubr.msk.f32.mxu1 %vm8507_vm10, %v8504_v63 }
 0x696   :  { %13508 = vmatmul.mubr.msk.f32.vlgmr.msra.gmra.mrb[28].mxu0 %vm5544_vm9, %v20665_v25  ;;  %14968 = vmatprep.subr.bf16.mxu1 %v21747_v19  ;;  %v5489_v25 = vld [vmem:[#allocation14 + $0x40] sm:$0xff] }
 0x697   :  { %12049 = vmatprep.mubr.f32.mxu0 %v21934_v50  ;;  %15280 = vmatpush1.bf16.msk.msra.mxu0 %vm19637_vm8, %v15278_v44  ;;  %v20866_v40 = vpack.c.bf16 %v5490_v12, %v5489_v25  ;;  %v20951_v25 = vpack.c.bf16 %v13353_v55, %v13352_v61  ;;  %v13354_v12 = vld [vmem:[%s21546_s10 + $0x70] sm:$0xff]  ;;  %v13365_v55 = vld [vmem:[%s21546_s10 + $0xb8] sm:$0xff] }
 0x698   :  { %15283 = vmatprep.subr.msk.bf16.mxu0 %vm19637_vm8, %v15281_v30  ;;  %v20937_v30 = vld [vmem:[#allocation12] sm:$0x1f] }
 0x699   :  { %14970 = vmatpush1.bf16.msra.mxu1 %v20846_v56  ;;  %v13364_v61 = vld [vmem:[%s21546_s10 + $0xb0] sm:$0xff] }
 0x69a   :  { %13509 = vmatmul.mubr.msk.f32.gmra.mrb[30].mxu0 %vm5544_vm9, %v11967_v31  ;;  %14971 = vmatprep.subr.bf16.mxu1 %v21747_v19  ;;  %v20875_v31 = vpack.c.bf16 %v5492_v17, %v5491_v8  ;;  %v13356_v17 = vld [vmem:[%s21546_s10 + $0x80] sm:$0xff] }
 0x69b   :  { %12141 = vmatprep.mubr.f32.mxu0 %v21934_v50 }
 0x69d   :  { %14973 = vmatpush1.bf16.msra.mxu1 %v20857_v28 }
 0x69e   :  { %13512 = vmatmul.mubr.msk.f32.vlgmr.msra.gmra.mrb[28].mxu0 %vm5544_vm9, %v20670_v34  ;;  %14974 = vmatprep.subr.bf16.mxu1 %v21747_v19  ;;  %v5494_v34 = vld [vmem:[#allocation14 + $0x68] sm:$0xff] }
 0x69f   :  { %12147 = vmatprep.mubr.f32.mxu0 %v21934_v50  ;;  %15286 = vmatpush1.bf16.msk.msra.mxu0 %vm19637_vm8, %v15284_v62  ;;  %v20883_v18 = vpack.c.bf16 %v5494_v34, %v5493_v53  ;;  %v13355_v62 = vld [vmem:[%s21546_s10 + $0x78] sm:$0xff]  ;;  %v13357_v53 = vld [vmem:[%s21546_s10 + $0x88] sm:$0xff] }
 0x6a0   :  { %v20963_v8 = vpack.c.bf16 %v13355_v62, %v13354_v12  ;;  %v20973_v34 = vpack.c.bf16 %v13357_v53, %v13356_v17  ;;  %v21061_v12 = vpack.c.bf16 %v13365_v55, %v13364_v61  ;;  %v13366_v62 = vld [vmem:[%s21546_s10 + $0xc0] sm:$0xff]  ;;  %v13367_v17 = vld [vmem:[%s21546_s10 + $0xc8] sm:$0xff] }
 0x6a1   :  { %14976 = vmatpush1.bf16.msra.mxu1 %v20866_v40  ;;  %v21073_v53 = vpack.c.bf16 %v13367_v17, %v13366_v62  ;;  %v13379_v61 = vld [vmem:[%s21546_s10 + $0x120] sm:$0xff]  ;;  %v13380_v55 = vld [vmem:[%s21546_s10 + $0x128] sm:$0xff]  ;;  %v13381_v17 = vld [vmem:[%s21546_s10 + $0x130] sm:$0xff] }
 0x6a2   :  { %13513 = vmatmul.mubr.msk.f32.gmra.mrb[30].mxu0 %vm5544_vm9, %v12065_v42  ;;  %14977 = vmatprep.subr.bf16.mxu1 %v21747_v19  ;;  %v20890_v42 = vpack.c.bf16 %v5496_v1, %v5495_v41  ;;  %v13358_v41 = vld [vmem:[%s21546_s10 + $0x90] sm:$0xff]  ;;  %v13359_v1 = vld [vmem:[%s21546_s10 + $0x98] sm:$0xff]  ;;  %v21137_v62 = vpack.c.bf16 %v13380_v55, %v13379_v61 }
 0x6a3   :  { %12239 = vmatprep.mubr.f32.mxu0 %v21934_v50  ;;  %v13390_v55 = vld [vmem:[%s21546_s10 + $0x170] sm:$0xff] }
 0x6a5   :  { %14979 = vmatpush1.bf16.msra.mxu1 %v20875_v31 }
 0x6a6   :  { %13516 = vmatmul.mubr.msk.f32.vlgmr.msra.gmra.mrb[28].mxu0 %vm5544_vm9, %v20677_v24  ;;  %14980 = vmatprep.subr.bf16.mxu1 %v21747_v19  ;;  %v20897_v24 = vpack.c.bf16 %v5498_v45, %v5497_v2  ;;  %v20983_v2 = vpack.c.bf16 %v13359_v1, %v13358_v41  ;;  %v8753_v45 = vld [vmem:[%s21546_s10] sm:$0xff]  ;;  %v13368_v41 = vld [vmem:[%s21546_s10 + $0xd0] sm:$0xff]  ;;  %v13369_v1 = vld [vmem:[%s21546_s10 + $0xd8] sm:$0xff] }
 0x6a7   :  { %12245 = vmatprep.mubr.f32.mxu0 %v21934_v50 }
 0x6a9   :  { %14982 = vmatpush1.bf16.msra.mxu1 %v20883_v18 }
 0x6aa   :  { %13517 = vmatmul.mubr.msk.f32.gmra.mrb[30].mxu0 %vm5544_vm9, %v12163_v37  ;;  %14983 = vmatprep.subr.bf16.mxu1 %v21747_v19 }
 0x6ad   :  { %14985 = vmatpush1.bf16.msra.mxu1 %v20890_v42 }
 0x6ae   :  { %14986 = vmatprep.subr.bf16.mxu1 %v21747_v19 }
 0x6b1   :  { %14988 = vmatpush1.bf16.msra.mxu1 %v20897_v24 }
 0x6b2   :  { %14989 = vmatprep.subr.bf16.mxu1 %v21747_v19 }
 0x6b5   :  { %14991 = vmatpush1.bf16.msra.mxu1 %v20901_v20 }
 0x6b6   :  { %14992 = vmatprep.subr.bf16.mxu1 %v21747_v19 }
 0x6b8   :  { %8654 = vmatmul.mubr.f32.vlgmr.msra.gmra.mrb[28].mxu1 %v8503_v36 }
 0x6b9   :  { %13347 = vmatprep.mubr.msk.f32.mxu1 %vm8507_vm10, %v8506_v49 }
 0x6bc   :  { %8659 = vmatmul.mubr.f32.gmra.mrb[30].mxu1 %v8505_v51 }
 0x6bd   :  { %14156 = vmatprep.mubr.msk.f32.mxu1 %vm16107_vm11, %v21934_v50 }
 0x763   :  { %v8580_v13 = vpop.f32.mrb[24].mxu1 }
 0x764   :  { %v8582_v37 = vpop.f32.mrb[25].mxu1 }
 0x767   :  { %v8585_v47 = vpop.f32.mrb[26].mxu1 }
 0x768   :  { %v8587_v39 = vpop.f32.mrb[27].mxu1 }
 0x769   :  { %v8755_v39 = vld [vmem:[%s21546_s10 + $0x10] sm:$0xff] }
 0x779   :  { %v20915_v59 = vpop.f32.mrb[28].mxu0 }
 0x77a   :  { %v20917_v22 = vpop.f32.mrb[29].mxu0 }
 0x77d   :  { %v20919_v11 = vpop.f32.mrb[30].mxu0 }
 0x77e   :  { %v20921_v63 = vpop.f32.mrb[31].mxu0 }
 0x78b   :  { %v8655_v14 = vpop.f32.mrb[28].mxu1 }
 0x78c   :  { %v8664_v9 = vmax.f32 %v8580_v13, %v8655_v14  ;;  %v8657_v36 = vpop.f32.mrb[29].mxu1  ;;  %v20996_v13 = vpack.c.bf16 %v8754_v10, %v8753_v45  ;;  %v8756_v14 = vld [vmem:[%s21546_s10 + $0x18] sm:$0xff]  ;;  %v21083_v45 = vpack.c.bf16 %v13369_v1, %v13368_v41  ;;  %v13370_v10 = vld [vmem:[%s21546_s10 + $0xe0] sm:$0xff] }
 0x78d   :  { %v8757_v36 = vld [vmem:[%s21546_s10 + $0x20] sm:$0xff]  ;;  %v13382_v41 = vld [vmem:[%s21546_s10 + $0x138] sm:$0xff] }
 0x78e   :  { %v8668_v35 = vrot.slane %v8664_v9, 1  ;;  %v21147_v1 = vpack.c.bf16 %v13382_v41, %v13381_v17  ;;  %v13391_v17 = vld [vmem:[%s21546_s10 + $0x178] sm:$0xff] }
 0x78f   :  { %v8660_v54 = vpop.f32.mrb[30].mxu1  ;;  %v21191_v41 = vpack.c.bf16 %v13391_v17, %v13390_v55  ;;  %v5505_v55 = vld [vmem:[%s21548_s12 + $0x18] sm:$0xff] }
 0x790   :  { %v8665_v15 = vmax.f32 %v8585_v47, %v8660_v54  ;;  %v8662_v26 = vpop.f32.mrb[31].mxu1  ;;  %v8758_v54 = vld [vmem:[%s21546_s10 + $0x28] sm:$0xff] }
 0x791   :  { %v8759_v26 = vld [vmem:[%s21546_s10 + $0x30] sm:$0xff]  ;;  %22060 = vst [vmem:[#allocation33_spill] sm:$0xff] %v21191_v41 }
 0x792   :  { %v8669_v33 = vrot.slane %v8665_v15, 1 }
 0x794   :  { %v8670_v27 = vsel %vm318_vm0, %v8668_v35, %v8669_v33  ;;  %v8674_v49 = vmax.f32 %v8665_v15, %v8669_v33  ;;  %v21019_v15 = vpack.c.bf16 %v8758_v54, %v8757_v36  ;;  %v8760_v35 = vld [vmem:[%s21546_s10 + $0x38] sm:$0xff] }
 0x795   :  { %v8673_v32 = vmax.f32 %v8664_v9, %v8670_v27  ;;  %v21007_v9 = vpack.c.bf16 %v8756_v14, %v8755_v39  ;;  %v21029_v33 = vpack.c.bf16 %v8760_v35, %v8759_v26  ;;  %v8761_v27 = vld [vmem:[%s21546_s10 + $0x40] sm:$0xff]  ;;  %v13373_v39 = vld [vmem:[%s21546_s10 + $0xf0] sm:$0xff]  ;;  %v13374_v14 = vld [vmem:[%s21546_s10 + $0xf8] sm:$0xff] }
 0x796   :  { %v21103_v36 = vpack.c.bf16 %v13374_v14, %v13373_v39  ;;  %v13375_v26 = vld [vmem:[%s21546_s10 + $0x100] sm:$0xff]  ;;  %v13376_v35 = vld [vmem:[%s21546_s10 + $0x108] sm:$0xff] }
 0x797   :  { %v14993_v44 = vpack.c.bf16 %v8674_v49, %v8673_v32  ;;  %v8762_v49 = vld [vmem:[%s21546_s10 + $0x48] sm:$0xff] }
 0x798   :  { %v21039_v32 = vpack.c.bf16 %v8762_v49, %v8761_v27  ;;  %v21115_v27 = vpack.c.bf16 %v13376_v35, %v13375_v26  ;;  %v13377_v49 = vld [vmem:[%s21546_s10 + $0x110] sm:$0xff]  ;;  %v13387_v26 = vld [vmem:[%s21546_s10 + $0x158] sm:$0xff] }
 0x799   :  { %14995 = vmatpush3.bf16.msk.msra.mxu1 %vm20925_vm13, %v14993_v44  ;;  %v21049_v44 = vpack.c.bf16 %v13363_v3, %v13362_v57  ;;  %v13378_v57 = vld [vmem:[%s21546_s10 + $0x118] sm:$0xff] }
 0x79a   :  { %14996 = vmatprep.subr.bf16.mxu1 %v21747_v19  ;;  %v21127_v3 = vpack.c.bf16 %v13378_v57, %v13377_v49  ;;  %v13388_v49 = vld [vmem:[%s21546_s10 + $0x160] sm:$0xff]  ;;  %v13389_v57 = vld [vmem:[%s21546_s10 + $0x168] sm:$0xff] }
 0x79b   :  { %v21181_v61 = vpack.c.bf16 %v13389_v57, %v13388_v49  ;;  %v5503_v49 = vld [vmem:[%s21548_s12 + $0x8] sm:$0xff] }
 0x79c   :  { %14157 = vmatmul.mubr.msk.f32.vlgmr.msra.gmra.mrb[32].mxu1 %vm8675_vm14, %v20937_v30 }
 0x79d   :  { %14998 = vmatpush3.bf16.msra.mxu1 %v20939_v46  ;;  %14179 = vmatprep.mubr.msk.f32.mxu1 %vm16107_vm11, %v21934_v50  ;;  %22059 = vst [vmem:[#allocation42_spill] sm:$0xff] %v21181_v61 }
 0x79e   :  { %14999 = vmatprep.subr.bf16.mxu1 %v21747_v19 }
 0x7a1   :  { %15001 = vmatpush3.bf16.msra.mxu1 %v20951_v25 }
 0x7a2   :  { %15002 = vmatprep.subr.bf16.mxu1 %v21747_v19 }
 0x7a5   :  { %15004 = vmatpush3.bf16.msra.mxu1 %v20963_v8 }
 0x7a6   :  { %15005 = vmatprep.subr.bf16.mxu1 %v21747_v19 }
 0x7a9   :  { %15007 = vmatpush3.bf16.msra.mxu1 %v20973_v34 }
 0x7aa   :  { %15008 = vmatprep.subr.bf16.mxu1 %v21747_v19 }
 0x7ad   :  { %15010 = vmatpush3.bf16.msra.mxu1 %v20983_v2 }
 0x7ae   :  { %15011 = vmatprep.subr.bf16.mxu1 %v21747_v19 }
 0x86f   :  { %v20994_v60 = vpop.f32.mrb[32].mxu1 }
 0x870   :  { %v8775_v37 = vrot.slane %v20994_v60, 1  ;;  %v14158_v47 = vpop.f32.mrb[33].mxu1  ;;  %v8932_v54 = vrot.slane %v20994_v60, 2  ;;  %v9017_v14 = vrot.slane %v20994_v60, 3 }
 0x872   :  { %14180 = vmatmul.mubr.msk.f32.vlgmr.msra.gmra.mrb[34].mxu1 %vm8776_vm15, %v8775_v37  ;;  %v13371_v37 = vld [vmem:[%s21546_s10 + $0xe8] sm:$0xff] }
 0x873   :  { %15013 = vmatpush3.bf16.msra.mxu1 %v20996_v13  ;;  %14202 = vmatprep.mubr.msk.f32.mxu1 %vm16107_vm11, %v21934_v50  ;;  %v21093_v47 = vpack.c.bf16 %v13371_v37, %v13370_v10  ;;  %v13384_v10 = vld [vmem:[%s21546_s10 + $0x140] sm:$0xff]  ;;  %v13385_v37 = vld [vmem:[%s21546_s10 + $0x148] sm:$0xff] }
 0x874   :  { %15014 = vmatprep.subr.bf16.mxu1 %v21747_v19  ;;  %v21157_v39 = vpack.c.bf16 %v13385_v37, %v13384_v10  ;;  %v13392_v10 = vld [vmem:[%s21546_s10 + $0x180] sm:$0xff]  ;;  %v13393_v37 = vld [vmem:[%s21546_s10 + $0x188] sm:$0xff] }
 0x876   :  { %22057 = vst [vmem:[#allocation36_spill] sm:$0xff] %v21157_v39 }
 0x877   :  { %15016 = vmatpush3.bf16.msra.mxu1 %v21007_v9 }
 0x878   :  { %15017 = vmatprep.subr.bf16.mxu1 %v21747_v19 }
 0x87b   :  { %15019 = vmatpush3.bf16.msra.mxu1 %v21019_v15 }
 0x87c   :  { %15020 = vmatprep.subr.bf16.mxu1 %v21747_v19 }
 0x87f   :  { %15022 = vmatpush3.bf16.msra.mxu1 %v21029_v33 }
 0x880   :  { %15023 = vmatprep.subr.bf16.mxu1 %v21747_v19 }
 0x883   :  { %15025 = vmatpush3.bf16.msra.mxu1 %v21039_v32 }
 0x884   :  { %15026 = vmatprep.subr.bf16.mxu1 %v21747_v19 }
 0x886   :  { %14203 = vmatmul.mubr.msk.f32.vlgmr.msra.gmra.mrb[36].mxu1 %vm8776_vm15, %v20994_v60 }
 0x887   :  { %15028 = vmatpush3.bf16.msra.mxu1 %v21049_v44  ;;  %14225 = vmatprep.mubr.msk.f32.mxu1 %vm16107_vm11, %v21934_v50 }
 0x888   :  { %15029 = vmatprep.subr.bf16.mxu1 %v21747_v19 }
 0x88b   :  { %15031 = vmatpush3.bf16.msra.mxu1 %v21061_v12 }
 0x88c   :  { %15032 = vmatprep.subr.bf16.mxu1 %v21747_v19 }
 0x88f   :  { %15034 = vmatpush3.bf16.msra.mxu1 %v21073_v53 }
 0x890   :  { %15035 = vmatprep.subr.bf16.mxu1 %v21747_v19 }
 0x893   :  { %15037 = vmatpush3.bf16.msra.mxu1 %v21083_v45 }
 0x894   :  { %15038 = vmatprep.subr.bf16.mxu1 %v21747_v19 }
 0x897   :  { %15040 = vmatpush3.bf16.msra.mxu1 %v21093_v47 }
 0x898   :  { %15041 = vmatprep.subr.bf16.mxu1 %v21747_v19 }
 0x89a   :  { %14226 = vmatmul.mubr.msk.f32.vlgmr.msra.gmra.mrb[38].mxu1 %vm8776_vm15, %v8932_v54  ;;  %v13386_v54 = vld [vmem:[%s21546_s10 + $0x150] sm:$0xff] }
 0x89b   :  { %15043 = vmatpush3.bf16.msra.mxu1 %v21103_v36  ;;  %14248 = vmatprep.mubr.msk.f32.mxu1 %vm16107_vm11, %v21934_v50  ;;  %v21169_v35 = vpack.c.bf16 %v13387_v26, %v13386_v54  ;;  %v9102_v54 = vrot.slane %v20994_v60, 4  ;;  %v5502_v26 = vld [vmem:[%s21548_s12] sm:$0xff]  ;;  %v5504_v60 = vld [vmem:[%s21548_s12 + $0x10] sm:$0xff] }
 0x89c   :  { %15044 = vmatprep.subr.bf16.mxu1 %v21747_v19  ;;  %v21216_v57 = vpack.c.bf16 %v5503_v49, %v5502_v26  ;;  %v21226_v17 = vpack.c.bf16 %v5505_v55, %v5504_v60  ;;  %v5509_v49 = vld [vmem:[%s21548_s12 + $0x38] sm:$0xff]  ;;  %v5510_v55 = vld [vmem:[%s21548_s12 + $0x40] sm:$0xff] }
 0x89d   :  { %22058 = vst [vmem:[#allocation41_spill] sm:$0xff] %v21169_v35 }
 0x89e   :  { %22062 = vst [vmem:[#allocation49_spill] sm:$0xff] %v21216_v57  ;;  %22063 = vst [vmem:[#allocation32_spill] sm:$0xff] %v21226_v17 }
 0x89f   :  { %15046 = vmatpush3.bf16.msra.mxu1 %v21115_v27 }
 0x8a0   :  { %15047 = vmatprep.subr.bf16.mxu1 %v21747_v19 }
 0x8a3   :  { %15049 = vmatpush3.bf16.msra.mxu1 %v21127_v3 }
 0x8a4   :  { %15050 = vmatprep.subr.bf16.mxu1 %v21747_v19 }
 0x8a7   :  { %15052 = vmatpush3.bf16.msra.mxu1 %v21137_v62 }
 0x8a8   :  { %15053 = vmatprep.subr.bf16.mxu1 %v21747_v19 }
 0x8ab   :  { %15055 = vmatpush3.bf16.msra.mxu1 %v21147_v1 }
 0x8ac   :  { %15056 = vmatprep.subr.bf16.mxu1 %v21747_v19 }
 0x8ae   :  { %14249 = vmatmul.mubr.msk.f32.vlgmr.msra.gmra.mrb[40].mxu1 %vm8776_vm15, %v9017_v14  ;;  %v21201_v14 = vpack.c.bf16 %v13393_v37, %v13392_v10  ;;  %v5506_v10 = vld [vmem:[%s21548_s12 + $0x20] sm:$0xff]  ;;  %v5507_v37 = vld [vmem:[%s21548_s12 + $0x28] sm:$0xff] }
 0x8af   :  { %15058 = vmatpush3.bf16.msra.mxu1 %v21157_v39  ;;  %14271 = vmatprep.mubr.msk.f32.mxu1 %vm16107_vm11, %v21934_v50  ;;  %v21239_v26 = vpack.c.bf16 %v5507_v37, %v5506_v10  ;;  %v5512_v37 = vld [vmem:[%s21548_s12 + $0x50] sm:$0xff] }
 0x8b0   :  { %15059 = vmatprep.subr.bf16.mxu1 %v21747_v19  ;;  %22061 = vst [vmem:[#allocation48_spill] sm:$0xff] %v21201_v14 }
 0x8b1   :  { %22064 = vst [vmem:[#allocation30_spill] sm:$0xff] %v21239_v26 }
 0x8b3   :  { %15061 = vmatpush3.bf16.msra.mxu1 %v21169_v35  ;;  %v5518_v35 = vld [vmem:[%s21550_s14] sm:$0xff] }
 0x8b4   :  { %15062 = vmatprep.subr.bf16.mxu1 %v21747_v19 }
 0x8b7   :  { %15064 = vmatpush3.bf16.msra.mxu1 %v21181_v61 }
 0x8b8   :  { %15065 = vmatprep.subr.bf16.mxu1 %v21747_v19 }
 0x8bb   :  { %15067 = vmatpush3.bf16.msra.mxu1 %v21191_v41 }
 0x8bc   :  { %15068 = vmatprep.subr.bf16.mxu1 %v21747_v19 }
 0x8bf   :  { %15070 = vmatpush3.bf16.msra.mxu1 %v21201_v14 }
 0x8c0   :  { %15071 = vmatprep.subr.bf16.mxu1 %v21747_v19 }
 0x8c2   :  { %14272 = vmatmul.mubr.msk.f32.vlgmr.msra.gmra.mrb[42].mxu1 %vm8776_vm15, %v9102_v54  ;;  %v5508_v54 = vld [vmem:[%s21548_s12 + $0x30] sm:$0xff] }
 0x8c3   :  { %14304 = vmatprep.mubr.msk.f32.mxu1 %vm16107_vm11, %v21934_v50  ;;  %15073 = vmatpush3.bf16.msra.mxu1 %v21216_v57  ;;  %v21245_v60 = vpack.c.bf16 %v5509_v49, %v5508_v54  ;;  %v5513_v54 = vld [vmem:[%s21548_s12 + $0x58] sm:$0xff] }
 0x8c4   :  { %15074 = vmatprep.subr.bf16.mxu1 %v21747_v19  ;;  %v21265_v49 = vpack.c.bf16 %v5513_v54, %v5512_v37  ;;  %v21283_v37 = vld [vmem:[%s21548_s12 + $0x70] sm:$0xff] }
 0x8c5   :  { %22065 = vst [vmem:[#allocation43_spill] sm:$0xff] %v21245_v60  ;;  %22069 = vst [vmem:[#allocation46_spill] sm:$0xff] %v21283_v37 }
 0x8c6   :  { %22067 = vst [vmem:[#allocation44_spill] sm:$0xff] %v21265_v49 }
 0x8c7   :  { %15076 = vmatpush3.bf16.msra.mxu1 %v21226_v17  ;;  %v5511_v17 = vld [vmem:[%s21548_s12 + $0x48] sm:$0xff] }
 0x8c8   :  { %15077 = vmatprep.subr.bf16.mxu1 %v21747_v19  ;;  %v21255_v10 = vpack.c.bf16 %v5511_v17, %v5510_v55  ;;  %v5514_v17 = vld [vmem:[%s21548_s12 + $0x60] sm:$0xff]  ;;  %v5515_v55 = vld [vmem:[%s21548_s12 + $0x68] sm:$0xff] }
 0x8ca   :  { %22066 = vst [vmem:[#allocation38_spill] sm:$0xff] %v21255_v10 }
 0x8cb   :  { %15079 = vmatpush3.bf16.msra.mxu1 %v21239_v26 }
 0x8cc   :  { %15080 = vmatprep.subr.bf16.mxu1 %v21747_v19 }
 0x8cf   :  { %15082 = vmatpush3.bf16.msra.mxu1 %v21245_v60  ;;  %v21276_v60 = vpack.c.bf16 %v5515_v55, %v5514_v17 }
 0x8d0   :  { %15083 = vmatprep.subr.bf16.mxu1 %v21747_v19 }
 0x8d1   :  { %22068 = vst [vmem:[#allocation35_spill] sm:$0xff] %v21276_v60 }
 0x8d3   :  { %15085 = vmatpush3.bf16.msra.mxu1 %v21255_v10 }
 0x8d4   :  { %15086 = vmatprep.subr.bf16.mxu1 %v21747_v19 }
 0x8d7   :  { %15088 = vmatpush3.bf16.msra.mxu1 %v21265_v49 }
 0x8d8   :  { %15089 = vmatprep.subr.bf16.mxu1 %v21747_v19 }
 0x8db   :  { %15091 = vmatpush3.bf16.msra.mxu1 %v21276_v60 }
 0x8dc   :  { %14302 = vmatprep.subr.mxu1 %v21934_v50 }
 0x8df   :  { %14303 = vmatpush3.msra.mxu1 %v21283_v37  ;;  %v5519_v37 = vld [vmem:[%s21550_s14 + $0x8] sm:$0xff] }
 0x8e0   :  { %15092 = vmatprep.subr.bf16.mxu1 %v21747_v19  ;;  %v21293_v19 = vld [vmem:[#allocation15] sm:$0x1] }
 0x945   :  { %v8845_v54 = vpop.f32.mrb[34].mxu1 }
 0x946   :  { %v14181_v49 = vpop.f32.mrb[35].mxu1 }
 0x959   :  { %v8917_v10 = vpop.f32.mrb[36].mxu1 }
 0x95a   :  { %v8918_v26 = vadd.f32 %v8917_v10, %v8845_v54  ;;  %v14204_v57 = vpop.f32.mrb[37].mxu1  ;;  %v5524_v54 = vld [vmem:[%s21550_s14 + $0x30] sm:$0xff] }
 0x95b   :  { %v21295_v57 = vpack.c.bf16 %v5519_v37, %v5518_v35  ;;  %v22070_v35 = vmov 0.0|0.0  }
 0x96d   :  { %v9001_v17 = vpop.f32.mrb[38].mxu1 }
 0x96e   :  { %v9005_v55 = vadd.f32 %v9001_v17, %v8918_v26  ;;  %v14227_v14 = vpop.f32.mrb[39].mxu1  ;;  %v5521_v26 = vld [vmem:[%s21550_s14 + $0x18] sm:$0xff] }
 0x96f   :  { %v5525_v17 = vld [vmem:[%s21550_s14 + $0x38] sm:$0xff] }
 0x981   :  { %v9086_v60 = vpop.f32.mrb[40].mxu1 }
 0x982   :  { %v9090_v41 = vadd.f32 %v9086_v60, %v9005_v55  ;;  %v14250_v61 = vpop.f32.mrb[41].mxu1  ;;  %v21328_v55 = vpack.c.bf16 %v5525_v17, %v5524_v54 }
 0x983   :  { %v5520_v61 = vld [vmem:[%s21550_s14 + $0x10] sm:$0xff] }
 0x984   :  { %v21306_v60 = vpack.c.bf16 %v5521_v26, %v5520_v61  ;;  %v21346_v61 = vld [vmem:[%s21550_s14 + $0x50] sm:$0xf]  ;;  %v12257_v26 = vadd.f32 %v20917_v22, %v20793_v23 }
 0x995   :  { %v9171_v49 = vpop.f32.mrb[42].mxu1 }
 0x996   :  { %v9175_v39 = vadd.f32 %v9171_v49, %v9090_v41  ;;  %v14273_v10 = vpop.f32.mrb[43].mxu1  ;;  %v5523_v41 = vld [vmem:[%s21550_s14 + $0x28] sm:$0xff]  ;;  %v5526_v49 = vld [vmem:[%s21550_s14 + $0x40] sm:$0xff] }
 0x997   :  { %v5527_v10 = vld [vmem:[%s21550_s14 + $0x48] sm:$0xff] }
 0x998   :  { %v9176_v14 = vadd.f32 %v9175_v39, %v21293_v19  ;;  %v5522_v39 = vld [vmem:[%s21550_s14 + $0x20] sm:$0xff]  ;;  %s16108_s14 = smov [#allocation20]  }
 0x999   :  { %v21318_v37 = vpack.c.bf16 %v5523_v41, %v5522_v39  ;;  %v21353_v39 = vld [vmem:[#allocation17] sm:$0x1]  ;;  %s13076_s18 = sshll.u32 %s16108_s14, 4  ;;  %s13077_s18 = int_to_ptr.vmem [resolvable:$true] %s13076_s18 }
 0x99a   :  { %14305 = vmatmul.mubr.msk.f32.vlgmr.msra.gmra.mrb[44].mxu1 %vm9177_vm1, %v9176_v14  ;;  %v21338_v14 = vpack.c.bf16 %v5527_v10, %v5526_v49  ;;  %v12261_v49 = vmax.f32 %v12257_v26, 0.0  ;;  %s16050_s19 = scalar_lea.vmem %s13077_s18, 32  ;;  %p16055_p3 = scmp.lt.s32.totalorder %s13077_s18, %s13077_s18 }
 0x99b   :  { %15094 = vmatpush3.bf16.msra.mxu1 %v21295_v57  ;;  %14329 = vmatprep.mubr.msk.f32.mxu1 %vm16107_vm11, %v21934_v50  ;;  %p16051_p2 = scmp.ne.s32.totalorder %s13077_s18, %s16050_s19  ;;  %p16056_p4 = scmp.lt.s32.totalorder %s16050_s19, %s16050_s19 }
 0x99c   :  { %15095 = vmatprep.subr.bf16.mxu1 %v22070_v35 }
 0x99d   :  { %p16057_p5 = por %p16056_p4, %p16055_p3 }
 0x99f   :  { %15097 = vmatpush3.bf16.msra.mxu1 %v21306_v60  ;;  %p16058_p6 = pnand %p16057_p5, %p16051_p2 }
 0x9a0   :  { %15098 = vmatprep.subr.bf16.mxu1 %v22070_v35 }
 0x9a3   :  { %15100 = vmatpush3.bf16.msra.mxu1 %v21318_v37 }
 0x9a4   :  { %15101 = vmatprep.subr.bf16.mxu1 %v22070_v35 }
 0x9a7   :  { %15103 = vmatpush3.bf16.msra.mxu1 %v21328_v55 }
 0x9a8   :  { %15104 = vmatprep.subr.bf16.mxu1 %v22070_v35 }
 0x9ab   :  { %15106 = vmatpush3.bf16.msra.mxu1 %v21338_v14 }
 0x9ac   :  { %14327 = vmatprep.subr.mxu1 %v21934_v50 }
 0x9af   :  { %14328 = vmatpush3.msk.msra.mxu1 %vm5923_vm7, %v21346_v61 }
 0x9b0   :  { %15287 = vmatprep.subr.bf16.mxu1 %v22070_v35 }
 0xa6d   :  { %v9247_v41 = vpop.f32.mrb[44].mxu1 }
 0xa6e   :  { %v9248_v54 = vadd.f32 %v9247_v41, %v21353_v39  ;;  %v14306_v17 = vpop.f32.mrb[45].mxu1 }
 0xa70   :  { %14330 = vmatmul.mubr.msk.f32.vlgmr.msra.gmra.mrb[46].mxu1 %vm9251_vm2, %v9248_v54 }
 0xa71   :  { %15289 = vmatpush1.bf16.msra.mxu1 %v20410_v7  ;;  %13518 = vmatprep.mubr.msk.f32.mxu1 %vm8507_vm10, %v12261_v49  ;;  %v12256_v7 = vadd.f32 %v20915_v59, %v20790_v4 }
 0xa72   :  { %15290 = vmatprep.subr.bf16.mxu1 %v22070_v35 }
 0xa75   :  { %15292 = vmatpush1.bf16.msra.mxu1 %v20427_v29  ;;  %v12259_v29 = vadd.f32 %v20921_v63, %v20793_v23 }
 0xa76   :  { %15293 = vmatprep.subr.bf16.mxu1 %v22070_v35 }
 0xa79   :  { %15295 = vmatpush1.bf16.msra.mxu1 %v20443_v5  ;;  %v12260_v5 = vmax.f32 %v12256_v7, 0.0 }
 0xa7a   :  { %15296 = vmatprep.subr.bf16.mxu1 %v22070_v35 }
 0xa7d   :  { %15298 = vmatpush1.bf16.msra.mxu1 %v20460_v43  ;;  %v12258_v43 = vadd.f32 %v20919_v11, %v20790_v4 }
 0xa7e   :  { %15299 = vmatprep.subr.bf16.mxu1 %v22070_v35 }
 0xa81   :  { %15301 = vmatpush1.bf16.msra.mxu1 %v20476_v48  ;;  %v12263_v48 = vmax.f32 %v12259_v29, 0.0 }
 0xa82   :  { %15302 = vmatprep.subr.bf16.mxu1 %v22070_v35 }
 0xa85   :  { %15304 = vmatpush1.bf16.msra.mxu1 %v20493_v16  ;;  %v12262_v16 = vmax.f32 %v12258_v43, 0.0 }
 0xa86   :  { %15305 = vmatprep.subr.bf16.mxu1 %v22070_v35 }
 0xa89   :  { %15307 = vmatpush1.bf16.msra.mxu1 %v20509_v52  ;;  %v21409_v52 = vld [vmem:[#allocation18] sm:$0x1] }
 0xa8a   :  { %15308 = vmatprep.subr.bf16.mxu1 %v22070_v35 }
 0xa8d   :  { %15310 = vmatpush1.bf16.msra.mxu1 %v20526_v38 }
 0xa8e   :  { %15311 = vmatprep.subr.bf16.mxu1 %v22070_v35 }
 0xa91   :  { %15313 = vmatpush1.bf16.msra.mxu1 %v20542_v58 }
 0xa92   :  { %15314 = vmatprep.subr.bf16.mxu1 %v22070_v35 }
 0xa95   :  { %15316 = vmatpush1.bf16.msra.mxu1 %v20559_v0 }
 0xa96   :  { %15317 = vmatprep.subr.bf16.mxu1 %v22070_v35 }
 0xa98   :  { %12335 = vmatmul.mubr.f32.vlgmr.msra.gmra.mrb[48].mxu1 %v12260_v5 }
 0xa99   :  { %13519 = vmatprep.mubr.msk.f32.mxu1 %vm8507_vm10, %v12263_v48  ;;  %15319 = vmatpush1.bf16.msra.mxu1 %v20807_v21 }
 0xa9a   :  { %15320 = vmatprep.subr.bf16.mxu1 %v22070_v35 }
 0xa9c   :  { %12340 = vmatmul.mubr.f32.gmra.mrb[50].mxu1 %v12262_v16 }
 0xa9d   :  { %15322 = vmatpush1.bf16.msra.mxu1 %v20827_v6  ;;  %13520 = vmatprep.mubr.msk.f32.mxu1 %vm8507_vm10, %v12261_v49 }
 0xa9e   :  { %15323 = vmatprep.subr.bf16.mxu1 %v22070_v35 }
 0xaa1   :  { %15325 = vmatpush1.bf16.msra.mxu1 %v20846_v56 }
 0xaa2   :  { %15326 = vmatprep.subr.bf16.mxu1 %v22070_v35 }
 0xaa5   :  { %15328 = vmatpush1.bf16.msra.mxu1 %v20857_v28 }
 0xaa6   :  { %15329 = vmatprep.subr.bf16.mxu1 %v22070_v35 }
 0xaa9   :  { %15331 = vmatpush1.bf16.msra.mxu1 %v20866_v40 }
 0xaaa   :  { %15332 = vmatprep.subr.bf16.mxu1 %v22070_v35 }
 0xaad   :  { %15334 = vmatpush1.bf16.msra.mxu1 %v20875_v31 }
 0xaae   :  { %15335 = vmatprep.subr.bf16.mxu1 %v22070_v35 }
 0xab1   :  { %15337 = vmatpush1.bf16.msra.mxu1 %v20883_v18 }
 0xab2   :  { %15338 = vmatprep.subr.bf16.mxu1 %v22070_v35 }
 0xab5   :  { %15340 = vmatpush1.bf16.msra.mxu1 %v20890_v42 }
 0xab6   :  { %15341 = vmatprep.subr.bf16.mxu1 %v22070_v35 }
 0xab9   :  { %15343 = vmatpush1.bf16.msra.mxu1 %v20897_v24 }
 0xaba   :  { %15344 = vmatprep.subr.bf16.mxu1 %v22070_v35 }
 0xabd   :  { %15346 = vmatpush1.bf16.msra.mxu1 %v20901_v20 }
 0xabe   :  { %15347 = vmatprep.subr.bf16.mxu1 %v22070_v35 }
 0xac0   :  { %12410 = vmatmul.mubr.f32.vlgmr.msra.gmra.mrb[52].mxu1 %v12260_v5 }
 0xac1   :  { %13521 = vmatprep.mubr.msk.f32.mxu1 %vm8507_vm10, %v12263_v48 }
 0xac4   :  { %12415 = vmatmul.mubr.f32.gmra.mrb[54].mxu1 %v12262_v16 }
 0xac5   :  { %14336 = vmatprep.mubr.msk.f32.mxu1 %vm16107_vm11, %v21934_v50 }
 0xb43   :  { %v9324_v38 = vpop.f32.mrb[46].mxu1 }
 0xb44   :  { %v9325_v58 = vadd.f32 %v9324_v38, %v21409_v52  ;;  %v14331_v0 = vpop.f32.mrb[47].mxu1 }
 0xb46   :  { %9329 = vst.msk [vmem:[#allocation20] sm:$0x1] %vm9328_vm3, %v9325_v58 }
 0xb6b   :  { %v12336_v4 = vpop.f32.mrb[48].mxu1 }
 0xb6c   :  { %v12338_v23 = vpop.f32.mrb[49].mxu1 }
 0xb6f   :  { %v12341_v21 = vpop.f32.mrb[50].mxu1 }
 0xb70   :  { %v12343_v6 = vpop.f32.mrb[51].mxu1 }
 0xb93   :  { %v12411_v56 = vpop.f32.mrb[52].mxu1 }
 0xb94   :  { %v12420_v28 = vmax.f32 %v12336_v4, %v12411_v56  ;;  %v12413_v40 = vpop.f32.mrb[53].mxu1 }
 0xb96   :  { %v12424_v24 = vrot.slane %v12420_v28, 1 }
 0xb97   :  { %v12416_v31 = vpop.f32.mrb[54].mxu1 }
 0xb98   :  { %v12421_v18 = vmax.f32 %v12341_v21, %v12416_v31  ;;  %v12418_v42 = vpop.f32.mrb[55].mxu1 }
 0xb9a   :  { %v12425_v20 = vrot.slane %v12421_v18, 1 }
 0xb9c   :  { %v12426_v59 = vsel %vm318_vm0, %v12424_v24, %v12425_v20  ;;  %v12430_v22 = vmax.f32 %v12421_v18, %v12425_v20 }
 0xb9d   :  { %v12429_v11 = vmax.f32 %v12420_v28, %v12426_v59 }
 0xb9f   :  { %v15348_v63 = vpack.c.bf16 %v12430_v22, %v12429_v11 }
 0xba1   :  { %15350 = vmatpush3.bf16.msk.msra.mxu1 %vm20925_vm13, %v15348_v63 }
 0xba2   :  { %15351 = vmatprep.subr.bf16.mxu1 %v22070_v35 }
 0xba4   :  { %14337 = vmatmul.mubr.msk.f32.vlgmr.msra.gmra.mrb[56].mxu1 %vm8675_vm14, %v20937_v30 }
 0xba5   :  { %15353 = vmatpush3.bf16.msra.mxu1 %v20939_v46  ;;  %14359 = vmatprep.mubr.msk.f32.mxu1 %vm16107_vm11, %v21934_v50 }
 0xba6   :  { %15354 = vmatprep.subr.bf16.mxu1 %v22070_v35 }
 0xba9   :  { %15356 = vmatpush3.bf16.msra.mxu1 %v20951_v25 }
 0xbaa   :  { %15357 = vmatprep.subr.bf16.mxu1 %v22070_v35 }
 0xbad   :  { %15359 = vmatpush3.bf16.msra.mxu1 %v20963_v8 }
 0xbae   :  { %15360 = vmatprep.subr.bf16.mxu1 %v22070_v35 }
 0xbb1   :  { %15362 = vmatpush3.bf16.msra.mxu1 %v20973_v34  ;;  %v22071_v34 = vld [vmem:[#allocation36_spill] sm:$0xff] }
 0xbb2   :  { %15363 = vmatprep.subr.bf16.mxu1 %v22070_v35 }
 0xbb5   :  { %15365 = vmatpush3.bf16.msra.mxu1 %v20983_v2  ;;  %v22072_v2 = vld [vmem:[#allocation41_spill] sm:$0xff] }
 0xbb6   :  { %15366 = vmatprep.subr.bf16.mxu1 %v22070_v35 }
 0xc77   :  { %v12500_v51 = vpop.f32.mrb[56].mxu1 }
 0xc78   :  { %v12525_v30 = vrot.slane %v12500_v51, 1  ;;  %v14338_v46 = vpop.f32.mrb[57].mxu1  ;;  %v12680_v25 = vrot.slane %v12500_v51, 2  ;;  %v12764_v8 = vrot.slane %v12500_v51, 3 }
 0xc7a   :  { %14360 = vmatmul.mubr.msk.f32.vlgmr.msra.gmra.mrb[58].mxu1 %vm8776_vm15, %v12525_v30 }
 0xc7b   :  { %15368 = vmatpush3.bf16.msra.mxu1 %v20996_v13  ;;  %14382 = vmatprep.mubr.msk.f32.mxu1 %vm16107_vm11, %v21934_v50  ;;  %v22073_v13 = vld [vmem:[#allocation42_spill] sm:$0xff] }
 0xc7c   :  { %15369 = vmatprep.subr.bf16.mxu1 %v22070_v35 }
 0xc7f   :  { %15371 = vmatpush3.bf16.msra.mxu1 %v21007_v9  ;;  %v22074_v9 = vld [vmem:[#allocation33_spill] sm:$0xff] }
 0xc80   :  { %15372 = vmatprep.subr.bf16.mxu1 %v22070_v35 }
 0xc83   :  { %15374 = vmatpush3.bf16.msra.mxu1 %v21019_v15  ;;  %v22075_v15 = vld [vmem:[#allocation48_spill] sm:$0xff] }
 0xc84   :  { %15375 = vmatprep.subr.bf16.mxu1 %v22070_v35 }
 0xc87   :  { %15377 = vmatpush3.bf16.msra.mxu1 %v21029_v33  ;;  %v12848_v33 = vrot.slane %v12500_v51, 4 }
 0xc88   :  { %15378 = vmatprep.subr.bf16.mxu1 %v22070_v35 }
 0xc8b   :  { %15380 = vmatpush3.bf16.msra.mxu1 %v21039_v32  ;;  %v22076_v32 = vld [vmem:[#allocation49_spill] sm:$0xff] }
 0xc8c   :  { %15381 = vmatprep.subr.bf16.mxu1 %v22070_v35 }
 0xc8e   :  { %14383 = vmatmul.mubr.msk.f32.vlgmr.msra.gmra.mrb[60].mxu1 %vm8776_vm15, %v12500_v51 }
 0xc8f   :  { %15383 = vmatpush3.bf16.msra.mxu1 %v21049_v44  ;;  %14405 = vmatprep.mubr.msk.f32.mxu1 %vm16107_vm11, %v21934_v50  ;;  %v22077_v44 = vld [vmem:[#allocation32_spill] sm:$0xff] }
 0xc90   :  { %15384 = vmatprep.subr.bf16.mxu1 %v22070_v35 }
 0xc93   :  { %15386 = vmatpush3.bf16.msra.mxu1 %v21061_v12  ;;  %v22078_v12 = vld [vmem:[#allocation30_spill] sm:$0xff] }
 0xc94   :  { %15387 = vmatprep.subr.bf16.mxu1 %v22070_v35 }
 0xc97   :  { %15389 = vmatpush3.bf16.msra.mxu1 %v21073_v53  ;;  %v22079_v53 = vld [vmem:[#allocation43_spill] sm:$0xff] }
 0xc98   :  { %15390 = vmatprep.subr.bf16.mxu1 %v22070_v35 }
 0xc9b   :  { %15392 = vmatpush3.bf16.msra.mxu1 %v21083_v45  ;;  %v22080_v45 = vld [vmem:[#allocation38_spill] sm:$0xff] }
 0xc9c   :  { %15393 = vmatprep.subr.bf16.mxu1 %v22070_v35 }
 0xc9f   :  { %15395 = vmatpush3.bf16.msra.mxu1 %v21093_v47  ;;  %v22081_v47 = vld [vmem:[#allocation44_spill] sm:$0xff] }
 0xca0   :  { %15396 = vmatprep.subr.bf16.mxu1 %v22070_v35 }
 0xca2   :  { %14406 = vmatmul.mubr.msk.f32.vlgmr.msra.gmra.mrb[62].mxu1 %vm8776_vm15, %v12680_v25 }
 0xca3   :  { %15398 = vmatpush3.bf16.msra.mxu1 %v21103_v36  ;;  %14428 = vmatprep.mubr.msk.f32.mxu1 %vm16107_vm11, %v21934_v50  ;;  %v22082_v36 = vld [vmem:[#allocation35_spill] sm:$0xff] }
 0xca4   :  { %15399 = vmatprep.subr.bf16.mxu1 %v22070_v35 }
 0xca7   :  { %15401 = vmatpush3.bf16.msra.mxu1 %v21115_v27  ;;  %v22083_v27 = vld [vmem:[#allocation46_spill] sm:$0xff] }
 0xca8   :  { %15402 = vmatprep.subr.bf16.mxu1 %v22070_v35 }
 0xcab   :  { %15404 = vmatpush3.bf16.msra.mxu1 %v21127_v3 }
 0xcac   :  { %15405 = vmatprep.subr.bf16.mxu1 %v22070_v35 }
 0xcaf   :  { %15407 = vmatpush3.bf16.msra.mxu1 %v21137_v62 }
 0xcb0   :  { %15408 = vmatprep.subr.bf16.mxu1 %v22070_v35 }
 0xcb3   :  { %15410 = vmatpush3.bf16.msra.mxu1 %v21147_v1 }
 0xcb4   :  { %15411 = vmatprep.subr.bf16.mxu1 %v22070_v35 }
 0xcb6   :  { %14429 = vmatmul.mubr.msk.f32.vlgmr.msra.gmra.mrb[64].mxu1 %vm8776_vm15, %v12764_v8 }
 0xcb7   :  { %15413 = vmatpush3.bf16.msra.mxu1 %v22071_v34  ;;  %14451 = vmatprep.mubr.msk.f32.mxu1 %vm16107_vm11, %v21934_v50 }
 0xcb8   :  { %15414 = vmatprep.subr.bf16.mxu1 %v22070_v35 }
 0xcbb   :  { %15416 = vmatpush3.bf16.msra.mxu1 %v22072_v2 }
 0xcbc   :  { %15417 = vmatprep.subr.bf16.mxu1 %v22070_v35 }
 0xcbf   :  { %15419 = vmatpush3.bf16.msra.mxu1 %v22073_v13 }
 0xcc0   :  { %15420 = vmatprep.subr.bf16.mxu1 %v22070_v35 }
 0xcc3   :  { %15422 = vmatpush3.bf16.msra.mxu1 %v22074_v9 }
 0xcc4   :  { %15423 = vmatprep.subr.bf16.mxu1 %v22070_v35 }
 0xcc7   :  { %15425 = vmatpush3.bf16.msra.mxu1 %v22075_v15 }
 0xcc8   :  { %15426 = vmatprep.subr.bf16.mxu1 %v22070_v35 }
 0xcca   :  { %14452 = vmatmul.mubr.msk.f32.vlgmr.msra.gmra.mrb[66].mxu1 %vm8776_vm15, %v12848_v33 }
 0xccb   :  { %15428 = vmatpush3.bf16.msra.mxu1 %v22076_v32  ;;  %14484 = vmatprep.mubr.msk.f32.mxu1 %vm16107_vm11, %v21934_v50 }
 0xccc   :  { %15429 = vmatprep.subr.bf16.mxu1 %v22070_v35 }
 0xccf   :  { %15431 = vmatpush3.bf16.msra.mxu1 %v22077_v44 }
 0xcd0   :  { %15432 = vmatprep.subr.bf16.mxu1 %v22070_v35 }
 0xcd3   :  { %15434 = vmatpush3.bf16.msra.mxu1 %v22078_v12 }
 0xcd4   :  { %15435 = vmatprep.subr.bf16.mxu1 %v22070_v35 }
 0xcd7   :  { %15437 = vmatpush3.bf16.msra.mxu1 %v22079_v53 }
 0xcd8   :  { %15438 = vmatprep.subr.bf16.mxu1 %v22070_v35 }
 0xcdb   :  { %15440 = vmatpush3.bf16.msra.mxu1 %v22080_v45 }
 0xcdc   :  { %15441 = vmatprep.subr.bf16.mxu1 %v22070_v35 }
 0xcdf   :  { %15443 = vmatpush3.bf16.msra.mxu1 %v22081_v47 }
 0xce0   :  { %15444 = vmatprep.subr.bf16.mxu1 %v22070_v35 }
 0xce3   :  { %15446 = vmatpush3.bf16.msra.mxu1 %v22082_v36 }
 0xce4   :  { %14482 = vmatprep.subr.mxu1 %v21934_v50 }
 0xce7   :  { %14483 = vmatpush3.msra.mxu1 %v22083_v27 }
 0xce8   :  { %15447 = vmatprep.subr.bf16.mxu1 %v22070_v35 }
 0xd4d   :  { %v12594_v3 = vpop.f32.mrb[58].mxu1 }
 0xd4e   :  { %v14361_v62 = vpop.f32.mrb[59].mxu1 }
 0xd61   :  { %v12666_v1 = vpop.f32.mrb[60].mxu1 }
 0xd62   :  { %v12667_v10 = vadd.f32 %v12666_v1, %v12594_v3  ;;  %v14384_v26 = vpop.f32.mrb[61].mxu1 }
 0xd75   :  { %v12749_v41 = vpop.f32.mrb[62].mxu1 }
 0xd76   :  { %v12753_v54 = vadd.f32 %v12749_v41, %v12667_v10  ;;  %v14407_v17 = vpop.f32.mrb[63].mxu1 }
 0xd89   :  { %v12833_v49 = vpop.f32.mrb[64].mxu1 }
 0xd8a   :  { %v12837_v7 = vadd.f32 %v12833_v49, %v12753_v54  ;;  %v14430_v29 = vpop.f32.mrb[65].mxu1 }
 0xd9d   :  { %v12917_v5 = vpop.f32.mrb[66].mxu1 }
 0xd9e   :  { %v12921_v43 = vadd.f32 %v12917_v5, %v12837_v7  ;;  %v14453_v48 = vpop.f32.mrb[67].mxu1 }
 0xda0   :  { %v12922_v16 = vadd.f32 %v12921_v43, %v21293_v19 }
 0xda2   :  { %14485 = vmatmul.mubr.msk.f32.vlgmr.msra.gmra.mrb[68].mxu1 %vm9177_vm1, %v12922_v16 }
 0xda3   :  { %15449 = vmatpush3.bf16.msra.mxu1 %v21295_v57  ;;  %14509 = vmatprep.mubr.msk.f32.mxu1 %vm16107_vm11, %v21934_v50 }
 0xda4   :  { %15450 = vmatprep.subr.bf16.mxu1 %v22070_v35 }
 0xda7   :  { %15452 = vmatpush3.bf16.msra.mxu1 %v21306_v60 }
 0xda8   :  { %15453 = vmatprep.subr.bf16.mxu1 %v22070_v35 }
 0xdab   :  { %15455 = vmatpush3.bf16.msra.mxu1 %v21318_v37 }
 0xdac   :  { %15456 = vmatprep.subr.bf16.mxu1 %v22070_v35 }
 0xdaf   :  { %15458 = vmatpush3.bf16.msra.mxu1 %v21328_v55 }
 0xdb0   :  { %15459 = vmatprep.subr.bf16.mxu1 %v22070_v35 }
 0xdb3   :  { %15461 = vmatpush3.bf16.msra.mxu1 %v21338_v14 }
 0xdb4   :  { %14507 = vmatprep.subr.mxu1 %v21934_v50 }
 0xdb7   :  { %14508 = vmatpush3.msk.msra.mxu1 %vm5923_vm7, %v21346_v61 }
 0xe75   :  { %v12992_v19 = vpop.f32.mrb[68].mxu1 }
 0xe76   :  { %v12993_v57 = vadd.f32 %v12992_v19, %v21353_v39  ;;  %v14486_v60 = vpop.f32.mrb[69].mxu1 }
 0xe78   :  { %14510 = vmatmul.mubr.msk.f32.vlgmr.msra.gmra.mrb[70].mxu1 %vm9251_vm2, %v12993_v57 }
 0xf4b   :  { %v13065_v37 = vpop.f32.mrb[70].mxu1 }
 0xf4c   :  { %v13066_v55 = vadd.f32 %v13065_v37, %v21409_v52  ;;  %v14511_v38 = vpop.f32.mrb[71].mxu1 }
 0xf4e   :  { %13070 = vst.msk [vmem:[#allocation20 + $0x1] sm:$0x1] %vm9328_vm3, %v13066_v55 }
 0xf4f   :  { %16061 = shalt.err (!%p16058_p6)
}
 0xf50   :  { %s22084_s2 = sld [smem:[#allocation72_spill]] }
 0xf56   :  { %s16062_s22 = scalar_lea.hbm %s22084_s2, 32 }
 0xf57   :  { %p16063_p7 = scmp.ne.s32.totalorder %s22084_s2, %s16062_s22  ;;  %p16066_p8 = scmp.lt.u32.totalorder %s16062_s22, %s22084_s2 }
 0xf59   :  { %p16068_p9 = pnand %p16066_p8, %p16063_p7 }
 0xf5b   :  { %16071 = shalt.err (!%p16068_p9)
}
 0xf5c   :  { %s16109_s0 = smov 1  }
 0xf5d   :  { %13082 = dma.vmem_to_hbm [thread:$0]  %s13077_s18, 32, %s22084_s2, [#allocation4], %s16090_s17, %s16090_s17, %s16109_s0  }
 0xf5e   :  { %16086 = dma.done.wait [#allocation4], 32  }
 0xf5f   :  { %16087 = vsyncadd [#allocation4], 4294967264 }
 0xf60   :  { %13086 = vsyncpa [#allocation3], 1 }
 0xf61   :  { %13087 = vsyncpa [#allocation10], 1 }
 0xf62   :  { %13088 = vsyncpa [#allocation13], 1 }
 0xf63   :  { %13089 = vsyncpa [#allocation16], 1 }
 0xf64   :  { %13090 = vsyncpa [#allocation19], 1 }
 0xf65   :  { %13091 = vsyncpa [#allocation4], 1 }
 0xf66   :  { %13092 = vsyncpa [#allocation5], 1 }
 0xf67   :  { %13093 = vsyncpa [#allocation6], 1 }

</bundles_post_ra>
